<compile_context>
chip_gen: v5e
topology: v5e:2x2
jax: 0.10.0
libtpu: 0.0.40
codegen_flags: <defaults>
</compile_context>

<pallas_src>
import functools

import jax
import jax.numpy as jnp
from jax.experimental import pallas as pl
from jax.experimental.pallas import tpu as pltpu


def _srcnn5_kernel(p1_ref, w1_ref, b1_ref, w2_ref, b2_ref, w3k_ref, b3_ref,
                   w4_ref, b4_ref, w5k_ref, b5_ref, o_ref,
                   a1_ref, b3buf_ref, b5buf_ref, acc3_ref, *, H, W):
    """Fused SRCNN5 forward for one image.

    p1_ref  : (H*W, 256)        im2col patches for conv1 (K zero-padded), bf16
    w1_ref  : (256, 256)        conv1 weights in im2col layout, bf16
    w2_ref  : (256, 128)        conv2 (1x1), bf16
    w3k_ref : (3, 3*128, 128)   conv3 weights, kw taps folded along K, bf16
    w4_ref  : (128, 64)         conv4 (1x1), bf16
    w5k_ref : (5, 5*64, 8)      conv5 weights, kw folded along K, Cout 2->8, bf16
    b*_ref  : (1, Cout)         f32 biases
    o_ref   : (H*W, 8)          f32 output (channels 0..1 are real)
    """
    HW = H * W
    f32 = jnp.float32
    bf16 = jnp.bfloat16

    # w-coordinate of every flattened (h*W + w) row; broadcasts over lanes.
    col = jax.lax.broadcasted_iota(jnp.int32, (HW, 1), 0) % W

    def scatter(buf_ref, val, shift, row_pad, blk):
        """Store `val` (HW, C) into lane-block `blk` of the flat staging
        buffer, shifted `shift` columns (zero fill at image-row boundaries)
        and `row_pad` image rows down.  Pad strips are zeroed explicitly so
        every (row, lane) of the block is freshly written each grid step."""
        c = val.shape[-1]
        rows = buf_ref.shape[0]
        off = row_pad * W + shift
        lo = blk * c
        if shift > 0:      # right shift: last `shift` src cols wrap -> zero
            val = jnp.where(col >= W - shift, jnp.zeros_like(val), val)
        elif shift < 0:    # left shift: first `-shift` src cols wrap -> zero
            val = jnp.where(col < -shift, jnp.zeros_like(val), val)
        buf_ref[0:off, lo:lo + c] = jnp.zeros((off, c), val.dtype)
        buf_ref[off:off + HW, lo:lo + c] = val
        buf_ref[off + HW:rows, lo:lo + c] = jnp.zeros((rows - off - HW, c),
                                                      val.dtype)

    # ---- Layer 1: 9x9 conv as a single im2col matmul + bias + ReLU --------
    a1 = jnp.dot(p1_ref[...], w1_ref[...], preferred_element_type=f32)
    a1_ref[...] = jnp.maximum(a1 + b1_ref[...], 0.0).astype(bf16)

    # ---- Layer 2: 1x1 conv (HW,256)@(256,128) + ReLU -----------------------
    a2 = jnp.dot(a1_ref[...], w2_ref[...], preferred_element_type=f32)
    a2 = jnp.maximum(a2 + b2_ref[...], 0.0).astype(bf16)

    # Stage width-shifted copies of a2 for the K-folded 3x3 conv.
    for kw in range(3):
        scatter(b3buf_ref, a2, 1 - kw, 1, kw)

    # ---- Layer 3: 3x3 conv = 3 matmuls with K = 3*128 = 384 ----------------
    # Row (kh) shifts are sublane-aligned slices of the flat staging buffer.
    for kh in range(3):
        t = jnp.dot(b3buf_ref[kh * W:kh * W + HW, :], w3k_ref[kh],
                    preferred_element_type=f32)
        if kh == 0:
            acc3_ref[...] = t
        else:
            acc3_ref[...] += t
    a3 = jnp.maximum(acc3_ref[...] + b3_ref[...], 0.0).astype(bf16)

    # ---- Layer 4: 1x1 conv (HW,128)@(128,64) + ReLU -------------------------
    a4 = jnp.dot(a3, w4_ref[...], preferred_element_type=f32)
    a4 = jnp.maximum(a4 + b4_ref[...], 0.0).astype(bf16)

    # Stage width-shifted copies of a4 for the K-folded 5x5 conv.
    for kw in range(5):
        scatter(b5buf_ref, a4, 2 - kw, 2, kw)

    # ---- Layer 5: 5x5 conv = 5 matmuls with K = 5*64 = 320, no ReLU --------
    # Output is only 8 lanes wide -> accumulate in registers (2 vregs).
    out = jnp.dot(b5buf_ref[0:HW, :], w5k_ref[0], preferred_element_type=f32)
    for kh in range(1, 5):
        out = out + jnp.dot(b5buf_ref[kh * W:kh * W + HW, :], w5k_ref[kh],
                            preferred_element_type=f32)
    o_ref[...] = out + b5_ref[...]


def _srcnn5_forward_impl(x_nchw, params):
    """SRCNN5 forward. x_nchw: (N, 2, H, W) f32 -> (N, 2, H, W) f32."""
    (w1, b1), (w2, b2), (w3, b3), (w4, b4), (w5, b5) = params
    N, Cin, H, W = x_nchw.shape
    HW = H * W
    K1 = w1.shape[0]            # 9
    C1 = w1.shape[3]            # 256
    C2 = w2.shape[3]            # 128
    C3 = w3.shape[3]            # 128
    C4 = w4.shape[3]            # 64
    C5 = w5.shape[3]            # 2
    C5P = 8                     # padded conv5 output channels
    K3 = w3.shape[0]            # 3
    K5 = w5.shape[0]            # 5
    p1 = (K1 - 1) // 2
    bf16 = jnp.bfloat16

    x = jnp.transpose(x_nchw, (0, 2, 3, 1)).astype(jnp.float32)   # NHWC

    # im2col for layer 1 (Cin=2 is far too narrow to feed the MXU directly).
    xp = jnp.pad(x, ((0, 0), (p1, p1), (p1, p1), (0, 0)))
    cols = [xp[:, kh:kh + H, kw:kw + W, :]
            for kh in range(K1) for kw in range(K1)]               # (N,H,W,Cin)
    K1D = K1 * K1 * Cin                                            # 162
    K1P = pl.cdiv(K1D, 128) * 128                                  # 256
    patches = jnp.stack(cols, axis=3).reshape(N, HW, K1D)
    patches = jnp.pad(patches, ((0, 0), (0, 0), (0, K1P - K1D))).astype(bf16)

    # Weight repacking: bf16 MXU operands, conv3/conv5 kw taps folded along K.
    w1m = jnp.pad(w1.reshape(K1D, C1), ((0, K1P - K1D), (0, 0))).astype(bf16)
    w2m = w2.reshape(C1, C2).astype(bf16)
    w3k = w3.reshape(K3, K3 * C2, C3).astype(bf16)                 # (3,384,128)
    w4m = w4.reshape(C3, C4).astype(bf16)
    w5k = jnp.pad(w5, ((0, 0), (0, 0), (0, 0), (0, C5P - C5))
                  ).reshape(K5, K5 * C4, C5P).astype(bf16)         # (5,320,8)
    b5p = jnp.pad(b5, (0, C5P - C5))

    kernel = functools.partial(_srcnn5_kernel, H=H, W=W)

    out = pl.pallas_call(
        kernel,
        out_shape=jax.ShapeDtypeStruct((N, HW, C5P), jnp.float32),
        grid=(N,),
        in_specs=[
            pl.BlockSpec((None, HW, K1P), lambda n: (n, 0, 0)),
            pl.BlockSpec((K1P, C1), lambda n: (0, 0)),
            pl.BlockSpec((1, C1), lambda n: (0, 0)),
            pl.BlockSpec((C1, C2), lambda n: (0, 0)),
            pl.BlockSpec((1, C2), lambda n: (0, 0)),
            pl.BlockSpec((K3, K3 * C2, C3), lambda n: (0, 0, 0)),
            pl.BlockSpec((1, C3), lambda n: (0, 0)),
            pl.BlockSpec((C3, C4), lambda n: (0, 0)),
            pl.BlockSpec((1, C4), lambda n: (0, 0)),
            pl.BlockSpec((K5, K5 * C4, C5P), lambda n: (0, 0, 0)),
            pl.BlockSpec((1, C5P), lambda n: (0, 0)),
        ],
        out_specs=pl.BlockSpec((None, HW, C5P), lambda n: (n, 0, 0)),
        scratch_shapes=[
            pltpu.VMEM((HW, C1), bf16),                   # a1 (post conv1)
            pltpu.VMEM(((H + 2) * W, K3 * C2), bf16),     # conv3 K-folded stage
            pltpu.VMEM(((H + 4) * W, K5 * C4), bf16),     # conv5 K-folded stage
            pltpu.VMEM((HW, C3), jnp.float32),            # conv3 f32 accumulator
        ],
        compiler_params=pltpu.CompilerParams(
            dimension_semantics=("parallel",),
            vmem_limit_bytes=32 * 1024 * 1024,
        ),
    )(patches, w1m, b1.reshape(1, C1), w2m, b2.reshape(1, C2),
      w3k, b3.reshape(1, C3), w4m, b4.reshape(1, C4),
      w5k, b5p.reshape(1, C5P))

    y = out[:, :, :C5]                                    # (N, HW, 2)
    return jnp.transpose(y, (0, 2, 1)).reshape(N, C5, H, W)


srcnn5_forward = jax.jit(_srcnn5_forward_impl)


def init_params(key):
    """Deterministic parameter init (kaiming-uniform-like fan_in scaling).

    Weights stored as (KH, KW, Cin, Cout) -- PyTorch's (Cout, Cin, KH, KW)
    permuted to a lane-friendly layout.
    """
    layer_defs = [  # (Cin, Cout, K) for conv1..conv5 of SRCNN5
        (2, 256, 9),
        (256, 128, 1),
        (128, 128, 3),
        (128, 64, 1),
        (64, 2, 5),
    ]
    params = []
    for (cin, cout, k) in layer_defs:
        key, kw_key, kb_key = jax.random.split(key, 3)
        fan_in = cin * k * k
        bound = 1.0 / jnp.sqrt(fan_in)
        w = jax.random.uniform(
            kw_key, (k, k, cin, cout), jnp.float32, minval=-bound, maxval=bound)
        b = jax.random.uniform(
            kb_key, (cout,), jnp.float32, minval=-bound, maxval=bound)
        params.append((w, b))
    return params


def _conv2d_ref(x_nchw, w_hwio, b):
    k = w_hwio.shape[0]
    pad = (k - 1) // 2
    w_oihw = jnp.transpose(w_hwio, (3, 2, 0, 1))
    y = jax.lax.conv_general_dilated(
        x_nchw, w_oihw, window_strides=(1, 1),
        padding=[(pad, pad), (pad, pad)],
        dimension_numbers=("NCHW", "OIHW", "NCHW"),
        precision=jax.lax.Precision.HIGHEST)
    return y + b.reshape(1, -1, 1, 1)


def srcnn5_reference(x_nchw, params):
    relus = [True, True, True, True, False]
    y = x_nchw
    for (w, b), relu in zip(params, relus):
        y = _conv2d_ref(y, w, b)
        if relu:
            y = jnp.maximum(y, 0.0)
    return y


if __name__ == "__main__":
    key = jax.random.PRNGKey(0)
    key, xk = jax.random.split(key)
    # conv1 expects 2 input channels; small spatial size 16x16.
    x = jax.random.normal(xk, (2, 2, 16, 16), jnp.float32)

    params = init_params(key)

    out = jax.block_until_ready(srcnn5_forward(x, params))

    assert out.shape == (2, 2, 16, 16), out.shape
    assert out.dtype == jnp.float32

    # Validate against a pure-JAX (XLA conv, f32) reference.  The kernel uses
    # bf16 MXU operands with f32 accumulation, so allow 2% of the max |ref|.
    ref = jax.block_until_ready(srcnn5_reference(x, params))
    err = float(jnp.max(jnp.abs(out - ref)))
    scale = float(jnp.max(jnp.abs(ref))) + 1e-6
    assert err <= 0.02 * scale, ("mismatch vs reference", err, scale)

    print("KERNEL_OK")
</pallas_src>

<mosaic_0001>
module attributes {stable_mosaic.version = 11 : i64} {
  func.func @_srcnn5_kernel(%arg0: i32, %arg1: memref<1x256x256xbf16, #tpu.memory_space<vmem>>, %arg2: memref<256x256xbf16, #tpu.memory_space<vmem>>, %arg3: memref<1x256xf32, #tpu.memory_space<vmem>>, %arg4: memref<256x128xbf16, #tpu.memory_space<vmem>>, %arg5: memref<1x128xf32, #tpu.memory_space<vmem>>, %arg6: memref<3x384x128xbf16, #tpu.memory_space<vmem>>, %arg7: memref<1x128xf32, #tpu.memory_space<vmem>>, %arg8: memref<128x64xbf16, #tpu.memory_space<vmem>>, %arg9: memref<1x64xf32, #tpu.memory_space<vmem>>, %arg10: memref<5x320x8xbf16, #tpu.memory_space<vmem>>, %arg11: memref<1x8xf32, #tpu.memory_space<vmem>>, %arg12: memref<1x256x8xf32, #tpu.memory_space<vmem>>, %arg13: memref<256x256xbf16, #tpu.memory_space<vmem>>, %arg14: memref<288x384xbf16, #tpu.memory_space<vmem>>, %arg15: memref<320x320xbf16, #tpu.memory_space<vmem>>, %arg16: memref<256x128xf32, #tpu.memory_space<vmem>>) attributes {dimension_semantics = [#tpu.dimension_semantics<parallel>], iteration_bounds = array<i64: 2>, scalar_prefetch = 0 : i64, scratch_operands = 4 : i64, tpu.core_type = #tpu.core_type<tc>, window_params = [{transform_indices = @transform_0, window_bounds = array<i64: 1, 256, 256>}, {pipeline_mode = #tpu.pipeline_mode<synchronous>, transform_indices = @transform_1, window_bounds = array<i64: 256, 256>}, {pipeline_mode = #tpu.pipeline_mode<synchronous>, transform_indices = @transform_2, window_bounds = array<i64: 1, 256>}, {pipeline_mode = #tpu.pipeline_mode<synchronous>, transform_indices = @transform_3, window_bounds = array<i64: 256, 128>}, {pipeline_mode = #tpu.pipeline_mode<synchronous>, transform_indices = @transform_4, window_bounds = array<i64: 1, 128>}, {pipeline_mode = #tpu.pipeline_mode<synchronous>, transform_indices = @transform_5, window_bounds = array<i64: 3, 384, 128>}, {pipeline_mode = #tpu.pipeline_mode<synchronous>, transform_indices = @transform_6, window_bounds = array<i64: 1, 128>}, {pipeline_mode = #tpu.pipeline_mode<synchronous>, transform_indices = @transform_7, window_bounds = array<i64: 128, 64>}, {pipeline_mode = #tpu.pipeline_mode<synchronous>, transform_indices = @transform_8, window_bounds = array<i64: 1, 64>}, {pipeline_mode = #tpu.pipeline_mode<synchronous>, transform_indices = @transform_9, window_bounds = array<i64: 5, 320, 8>}, {pipeline_mode = #tpu.pipeline_mode<synchronous>, transform_indices = @transform_10, window_bounds = array<i64: 1, 8>}, {transform_indices = @transform_11, window_bounds = array<i64: 1, 256, 8>}]} {
    %0 = tpu.iota {dimensions = array<i32: 0>} : vector<256x1xi32>
    %c16_i32 = arith.constant 16 : i32
    %c0_i32 = arith.constant 0 : i32
    %1 = arith.cmpi eq, %c16_i32, %c0_i32 : i32
    %c1_i32 = arith.constant 1 : i32
    %2 = arith.select %1, %c1_i32, %c16_i32 : i32
    %3 = vector.broadcast %2 : i32 to vector<256x1xi32>
    %4 = arith.remsi %0, %3 : vector<256x1xi32>
    %c0_i32_0 = arith.constant 0 : i32
    %5 = vector.broadcast %c0_i32_0 : i32 to vector<256x1xi32>
    %6 = arith.cmpi ne, %4, %5 : vector<256x1xi32>
    %c0_i32_1 = arith.constant 0 : i32
    %7 = vector.broadcast %c0_i32_1 : i32 to vector<256x1xi32>
    %8 = arith.cmpi slt, %4, %7 : vector<256x1xi32>
    %c0_i32_2 = arith.constant 0 : i32
    %9 = arith.cmpi slt, %2, %c0_i32_2 : i32
    %10 = vector.broadcast %9 : i1 to vector<256x1xi1>
    %11 = vector.broadcast %10 : vector<256x1xi1> to vector<256x1xi1>
    %12 = arith.xori %8, %11 : vector<256x1xi1>
    %13 = arith.andi %12, %6 : vector<256x1xi1>
    %14 = vector.broadcast %2 : i32 to vector<256x1xi32>
    %15 = arith.addi %4, %14 : vector<256x1xi32>
    %16 = arith.select %13, %15, %4 : vector<256x1xi1>, vector<256x1xi32>
    %c0 = arith.constant 0 : index
    %c0_3 = arith.constant 0 : index
    %c0_4 = arith.constant 0 : index
    %17 = vector.load %arg1[%c0, %c0_3, %c0_4] : memref<1x256x256xbf16, #tpu.memory_space<vmem>>, vector<1x256x256xbf16>
    %18 = vector.shape_cast %17 : vector<1x256x256xbf16> to vector<256x256xbf16>
    %c0_5 = arith.constant 0 : index
    %c0_6 = arith.constant 0 : index
    %19 = vector.load %arg2[%c0_5, %c0_6] : memref<256x256xbf16, #tpu.memory_space<vmem>>, vector<256x256xbf16>
    %cst = arith.constant dense<0.000000e+00> : vector<256x256xf32>
    %20 = tpu.matmul %18, %19, %cst {dimension_numbers = #tpu.dot_dimension_numbers<[1], [0], [0], [1], [0, 0, 1, 1], [], []>} : vector<256x256xbf16>, vector<256x256xbf16>, vector<256x256xf32> -> vector<256x256xf32>
    %c0_7 = arith.constant 0 : index
    %c0_8 = arith.constant 0 : index
    %21 = vector.load %arg3[%c0_7, %c0_8] : memref<1x256xf32, #tpu.memory_space<vmem>>, vector<1x256xf32>
    %22 = vector.broadcast %21 : vector<1x256xf32> to vector<256x256xf32>
    %23 = arith.addf %20, %22 : vector<256x256xf32>
    %cst_9 = arith.constant 0.000000e+00 : f32
    %24 = vector.broadcast %cst_9 : f32 to vector<256x256xf32>
    %25 = arith.maximumf %23, %24 : vector<256x256xf32>
    %26 = arith.truncf %25 : vector<256x256xf32> to vector<256x256xbf16>
    %c0_10 = arith.constant 0 : index
    %c0_11 = arith.constant 0 : index
    %27 = vector.load %arg13[%c0_10, %c0_11] : memref<256x256xbf16, #tpu.memory_space<vmem>>, vector<256x256xbf16>
    tpu.vector_store %arg13[%c0_10, %c0_11], %26 {strides = array<i32>} : memref<256x256xbf16, #tpu.memory_space<vmem>>, vector<256x256xbf16>,
    %c0_12 = arith.constant 0 : index
    %c0_13 = arith.constant 0 : index
    %28 = vector.load %arg13[%c0_12, %c0_13] : memref<256x256xbf16, #tpu.memory_space<vmem>>, vector<256x256xbf16>
    %c0_14 = arith.constant 0 : index
    %c0_15 = arith.constant 0 : index
    %29 = vector.load %arg4[%c0_14, %c0_15] : memref<256x128xbf16, #tpu.memory_space<vmem>>, vector<256x128xbf16>
    %cst_16 = arith.constant dense<0.000000e+00> : vector<256x128xf32>
    %30 = tpu.matmul %28, %29, %cst_16 {dimension_numbers = #tpu.dot_dimension_numbers<[1], [0], [0], [1], [0, 0, 1, 1], [], []>} : vector<256x256xbf16>, vector<256x128xbf16>, vector<256x128xf32> -> vector<256x128xf32>
    %c0_17 = arith.constant 0 : index
    %c0_18 = arith.constant 0 : index
    %31 = vector.load %arg5[%c0_17, %c0_18] : memref<1x128xf32, #tpu.memory_space<vmem>>, vector<1x128xf32>
    %32 = vector.broadcast %31 : vector<1x128xf32> to vector<256x128xf32>
    %33 = arith.addf %30, %32 : vector<256x128xf32>
    %cst_19 = arith.constant 0.000000e+00 : f32
    %34 = vector.broadcast %cst_19 : f32 to vector<256x128xf32>
    %35 = arith.maximumf %33, %34 : vector<256x128xf32>
    %36 = arith.truncf %35 : vector<256x128xf32> to vector<256x128xbf16>
    %c15_i32 = arith.constant 15 : i32
    %37 = vector.broadcast %c15_i32 : i32 to vector<256x1xi32>
    %38 = arith.cmpi sge, %16, %37 : vector<256x1xi32>
    %cst_20 = arith.constant 0.000000e+00 : bf16
    %39 = vector.broadcast %cst_20 : bf16 to vector<256x128xbf16>
    %40 = vector.shape_cast %38 : vector<256x1xi1> to vector<256x1xi1>
    %41 = vector.broadcast %40 : vector<256x1xi1> to vector<256x128xi1>
    %42 = arith.select %41, %39, %36 : vector<256x128xi1>, vector<256x128xbf16>
    %cst_21 = arith.constant 0.000000e+00 : bf16
    %43 = vector.broadcast %cst_21 : bf16 to vector<17x128xbf16>
    %c0_22 = arith.constant 0 : index
    %c0_23 = arith.constant 0 : index
    %44 = vector.load %arg14[%c0_22, %c0_23] : memref<288x384xbf16, #tpu.memory_space<vmem>>, vector<17x128xbf16>
    tpu.vector_store %arg14[%c0_22, %c0_23], %43 {strides = array<i32>} : memref<288x384xbf16, #tpu.memory_space<vmem>>, vector<17x128xbf16>,
    %c17 = arith.constant 17 : index
    %c0_24 = arith.constant 0 : index
    %45 = vector.load %arg14[%c17, %c0_24] : memref<288x384xbf16, #tpu.memory_space<vmem>>, vector<256x128xbf16>
    tpu.vector_store %arg14[%c17, %c0_24], %42 {strides = array<i32>} : memref<288x384xbf16, #tpu.memory_space<vmem>>, vector<256x128xbf16>,
    %cst_25 = arith.constant 0.000000e+00 : bf16
    %46 = vector.broadcast %cst_25 : bf16 to vector<15x128xbf16>
    %c273 = arith.constant 273 : index
    %c0_26 = arith.constant 0 : index
    %47 = vector.load %arg14[%c273, %c0_26] : memref<288x384xbf16, #tpu.memory_space<vmem>>, vector<15x128xbf16>
    tpu.vector_store %arg14[%c273, %c0_26], %46 {strides = array<i32>} : memref<288x384xbf16, #tpu.memory_space<vmem>>, vector<15x128xbf16>,
    %cst_27 = arith.constant 0.000000e+00 : bf16
    %48 = vector.broadcast %cst_27 : bf16 to vector<16x128xbf16>
    %c0_28 = arith.constant 0 : index
    %c128 = arith.constant 128 : index
    %49 = vector.load %arg14[%c0_28, %c128] : memref<288x384xbf16, #tpu.memory_space<vmem>>, vector<16x128xbf16>
    tpu.vector_store %arg14[%c0_28, %c128], %48 {strides = array<i32>} : memref<288x384xbf16, #tpu.memory_space<vmem>>, vector<16x128xbf16>,
    %c16 = arith.constant 16 : index
    %c128_29 = arith.constant 128 : index
    %50 = vector.load %arg14[%c16, %c128_29] : memref<288x384xbf16, #tpu.memory_space<vmem>>, vector<256x128xbf16>
    tpu.vector_store %arg14[%c16, %c128_29], %36 {strides = array<i32>} : memref<288x384xbf16, #tpu.memory_space<vmem>>, vector<256x128xbf16>,
    %cst_30 = arith.constant 0.000000e+00 : bf16
    %51 = vector.broadcast %cst_30 : bf16 to vector<16x128xbf16>
    %c272 = arith.constant 272 : index
    %c128_31 = arith.constant 128 : index
    %52 = vector.load %arg14[%c272, %c128_31] : memref<288x384xbf16, #tpu.memory_space<vmem>>, vector<16x128xbf16>
    tpu.vector_store %arg14[%c272, %c128_31], %51 {strides = array<i32>} : memref<288x384xbf16, #tpu.memory_space<vmem>>, vector<16x128xbf16>,
    %c1_i32_32 = arith.constant 1 : i32
    %53 = vector.broadcast %c1_i32_32 : i32 to vector<256x1xi32>
    %54 = arith.cmpi slt, %16, %53 : vector<256x1xi32>
    %cst_33 = arith.constant 0.000000e+00 : bf16
    %55 = vector.broadcast %cst_33 : bf16 to vector<256x128xbf16>
    %56 = vector.shape_cast %54 : vector<256x1xi1> to vector<256x1xi1>
    %57 = vector.broadcast %56 : vector<256x1xi1> to vector<256x128xi1>
    %58 = arith.select %57, %55, %36 : vector<256x128xi1>, vector<256x128xbf16>
    %cst_34 = arith.constant 0.000000e+00 : bf16
    %59 = vector.broadcast %cst_34 : bf16 to vector<15x128xbf16>
    %c0_35 = arith.constant 0 : index
    %c256 = arith.constant 256 : index
    %60 = vector.load %arg14[%c0_35, %c256] : memref<288x384xbf16, #tpu.memory_space<vmem>>, vector<15x128xbf16>
    tpu.vector_store %arg14[%c0_35, %c256], %59 {strides = array<i32>} : memref<288x384xbf16, #tpu.memory_space<vmem>>, vector<15x128xbf16>,
    %c15 = arith.constant 15 : index
    %c256_36 = arith.constant 256 : index
    %61 = vector.load %arg14[%c15, %c256_36] : memref<288x384xbf16, #tpu.memory_space<vmem>>, vector<256x128xbf16>
    tpu.vector_store %arg14[%c15, %c256_36], %58 {strides = array<i32>} : memref<288x384xbf16, #tpu.memory_space<vmem>>, vector<256x128xbf16>,
    %cst_37 = arith.constant 0.000000e+00 : bf16
    %62 = vector.broadcast %cst_37 : bf16 to vector<17x128xbf16>
    %c271 = arith.constant 271 : index
    %c256_38 = arith.constant 256 : index
    %63 = vector.load %arg14[%c271, %c256_38] : memref<288x384xbf16, #tpu.memory_space<vmem>>, vector<17x128xbf16>
    tpu.vector_store %arg14[%c271, %c256_38], %62 {strides = array<i32>} : memref<288x384xbf16, #tpu.memory_space<vmem>>, vector<17x128xbf16>,
    %c0_39 = arith.constant 0 : index
    %c0_40 = arith.constant 0 : index
    %64 = vector.load %arg14[%c0_39, %c0_40] : memref<288x384xbf16, #tpu.memory_space<vmem>>, vector<256x384xbf16>
    %c0_41 = arith.constant 0 : index
    %c0_42 = arith.constant 0 : index
    %c0_43 = arith.constant 0 : index
    %65 = vector.load %arg6[%c0_41, %c0_42, %c0_43] : memref<3x384x128xbf16, #tpu.memory_space<vmem>>, vector<1x384x128xbf16>
    %66 = vector.shape_cast %65 : vector<1x384x128xbf16> to vector<384x128xbf16>
    %cst_44 = arith.constant dense<0.000000e+00> : vector<256x128xf32>
    %67 = tpu.matmul %64, %66, %cst_44 {dimension_numbers = #tpu.dot_dimension_numbers<[1], [0], [0], [1], [0, 0, 1, 1], [], []>} : vector<256x384xbf16>, vector<384x128xbf16>, vector<256x128xf32> -> vector<256x128xf32>
    %c0_45 = arith.constant 0 : index
    %c0_46 = arith.constant 0 : index
    %68 = vector.load %arg16[%c0_45, %c0_46] : memref<256x128xf32, #tpu.memory_space<vmem>>, vector<256x128xf32>
    tpu.vector_store %arg16[%c0_45, %c0_46], %67 {strides = array<i32>} : memref<256x128xf32, #tpu.memory_space<vmem>>, vector<256x128xf32>,
    %c16_47 = arith.constant 16 : index
    %c0_48 = arith.constant 0 : index
    %69 = vector.load %arg14[%c16_47, %c0_48] : memref<288x384xbf16, #tpu.memory_space<vmem>>, vector<256x384xbf16>
    %c1 = arith.constant 1 : index
    %c0_49 = arith.constant 0 : index
    %c0_50 = arith.constant 0 : index
    %70 = vector.load %arg6[%c1, %c0_49, %c0_50] : memref<3x384x128xbf16, #tpu.memory_space<vmem>>, vector<1x384x128xbf16>
    %71 = vector.shape_cast %70 : vector<1x384x128xbf16> to vector<384x128xbf16>
    %cst_51 = arith.constant dense<0.000000e+00> : vector<256x128xf32>
    %72 = tpu.matmul %69, %71, %cst_51 {dimension_numbers = #tpu.dot_dimension_numbers<[1], [0], [0], [1], [0, 0, 1, 1], [], []>} : vector<256x384xbf16>, vector<384x128xbf16>, vector<256x128xf32> -> vector<256x128xf32>
    %c0_52 = arith.constant 0 : index
    %c0_53 = arith.constant 0 : index
    %73 = vector.load %arg16[%c0_52, %c0_53] : memref<256x128xf32, #tpu.memory_space<vmem>>, vector<256x128xf32>
    %74 = arith.addf %73, %72 : vector<256x128xf32>
    %c0_54 = arith.constant 0 : index
    %c0_55 = arith.constant 0 : index
    %75 = vector.load %arg16[%c0_54, %c0_55] : memref<256x128xf32, #tpu.memory_space<vmem>>, vector<256x128xf32>
    tpu.vector_store %arg16[%c0_54, %c0_55], %74 {strides = array<i32>} : memref<256x128xf32, #tpu.memory_space<vmem>>, vector<256x128xf32>,
    %c32 = arith.constant 32 : index
    %c0_56 = arith.constant 0 : index
    %76 = vector.load %arg14[%c32, %c0_56] : memref<288x384xbf16, #tpu.memory_space<vmem>>, vector<256x384xbf16>
    %c2 = arith.constant 2 : index
    %c0_57 = arith.constant 0 : index
    %c0_58 = arith.constant 0 : index
    %77 = vector.load %arg6[%c2, %c0_57, %c0_58] : memref<3x384x128xbf16, #tpu.memory_space<vmem>>, vector<1x384x128xbf16>
    %78 = vector.shape_cast %77 : vector<1x384x128xbf16> to vector<384x128xbf16>
    %cst_59 = arith.constant dense<0.000000e+00> : vector<256x128xf32>
    %79 = tpu.matmul %76, %78, %cst_59 {dimension_numbers = #tpu.dot_dimension_numbers<[1], [0], [0], [1], [0, 0, 1, 1], [], []>} : vector<256x384xbf16>, vector<384x128xbf16>, vector<256x128xf32> -> vector<256x128xf32>
    %c0_60 = arith.constant 0 : index
    %c0_61 = arith.constant 0 : index
    %80 = vector.load %arg16[%c0_60, %c0_61] : memref<256x128xf32, #tpu.memory_space<vmem>>, vector<256x128xf32>
    %81 = arith.addf %80, %79 : vector<256x128xf32>
    %c0_62 = arith.constant 0 : index
    %c0_63 = arith.constant 0 : index
    %82 = vector.load %arg16[%c0_62, %c0_63] : memref<256x128xf32, #tpu.memory_space<vmem>>, vector<256x128xf32>
    tpu.vector_store %arg16[%c0_62, %c0_63], %81 {strides = array<i32>} : memref<256x128xf32, #tpu.memory_space<vmem>>, vector<256x128xf32>,
    %c0_64 = arith.constant 0 : index
    %c0_65 = arith.constant 0 : index
    %83 = vector.load %arg16[%c0_64, %c0_65] : memref<256x128xf32, #tpu.memory_space<vmem>>, vector<256x128xf32>
    %c0_66 = arith.constant 0 : index
    %c0_67 = arith.constant 0 : index
    %84 = vector.load %arg7[%c0_66, %c0_67] : memref<1x128xf32, #tpu.memory_space<vmem>>, vector<1x128xf32>
    %85 = vector.broadcast %84 : vector<1x128xf32> to vector<256x128xf32>
    %86 = arith.addf %83, %85 : vector<256x128xf32>
    %cst_68 = arith.constant 0.000000e+00 : f32
    %87 = vector.broadcast %cst_68 : f32 to vector<256x128xf32>
    %88 = arith.maximumf %86, %87 : vector<256x128xf32>
    %89 = arith.truncf %88 : vector<256x128xf32> to vector<256x128xbf16>
    %c0_69 = arith.constant 0 : index
    %c0_70 = arith.constant 0 : index
    %90 = vector.load %arg8[%c0_69, %c0_70] : memref<128x64xbf16, #tpu.memory_space<vmem>>, vector<128x64xbf16>
    %cst_71 = arith.constant dense<0.000000e+00> : vector<256x64xf32>
    %91 = tpu.matmul %89, %90, %cst_71 {dimension_numbers = #tpu.dot_dimension_numbers<[1], [0], [0], [1], [0, 0, 1, 1], [], []>} : vector<256x128xbf16>, vector<128x64xbf16>, vector<256x64xf32> -> vector<256x64xf32>
    %c0_72 = arith.constant 0 : index
    %c0_73 = arith.constant 0 : index
    %92 = vector.load %arg9[%c0_72, %c0_73] : memref<1x64xf32, #tpu.memory_space<vmem>>, vector<1x64xf32>
    %93 = vector.broadcast %92 : vector<1x64xf32> to vector<256x64xf32>
    %94 = arith.addf %91, %93 : vector<256x64xf32>
    %cst_74 = arith.constant 0.000000e+00 : f32
    %95 = vector.broadcast %cst_74 : f32 to vector<256x64xf32>
    %96 = arith.maximumf %94, %95 : vector<256x64xf32>
    %97 = arith.truncf %96 : vector<256x64xf32> to vector<256x64xbf16>
    %c14_i32 = arith.constant 14 : i32
    %98 = vector.broadcast %c14_i32 : i32 to vector<256x1xi32>
    %99 = arith.cmpi sge, %16, %98 : vector<256x1xi32>
    %cst_75 = arith.constant 0.000000e+00 : bf16
    %100 = vector.broadcast %cst_75 : bf16 to vector<256x64xbf16>
    %101 = vector.shape_cast %99 : vector<256x1xi1> to vector<256x1xi1>
    %102 = vector.broadcast %101 : vector<256x1xi1> to vector<256x64xi1>
    %103 = arith.select %102, %100, %97 : vector<256x64xi1>, vector<256x64xbf16>
    %cst_76 = arith.constant 0.000000e+00 : bf16
    %104 = vector.broadcast %cst_76 : bf16 to vector<34x64xbf16>
    %c0_77 = arith.constant 0 : index
    %c0_78 = arith.constant 0 : index
    %105 = vector.load %arg15[%c0_77, %c0_78] : memref<320x320xbf16, #tpu.memory_space<vmem>>, vector<34x64xbf16>
    tpu.vector_store %arg15[%c0_77, %c0_78], %104 {strides = array<i32>} : memref<320x320xbf16, #tpu.memory_space<vmem>>, vector<34x64xbf16>,
    %c34 = arith.constant 34 : index
    %c0_79 = arith.constant 0 : index
    %106 = vector.load %arg15[%c34, %c0_79] : memref<320x320xbf16, #tpu.memory_space<vmem>>, vector<256x64xbf16>
    tpu.vector_store %arg15[%c34, %c0_79], %103 {strides = array<i32>} : memref<320x320xbf16, #tpu.memory_space<vmem>>, vector<256x64xbf16>,
    %cst_80 = arith.constant 0.000000e+00 : bf16
    %107 = vector.broadcast %cst_80 : bf16 to vector<30x64xbf16>
    %c290 = arith.constant 290 : index
    %c0_81 = arith.constant 0 : index
    %108 = vector.load %arg15[%c290, %c0_81] : memref<320x320xbf16, #tpu.memory_space<vmem>>, vector<30x64xbf16>
    tpu.vector_store %arg15[%c290, %c0_81], %107 {strides = array<i32>} : memref<320x320xbf16, #tpu.memory_space<vmem>>, vector<30x64xbf16>,
    %c15_i32_82 = arith.constant 15 : i32
    %109 = vector.broadcast %c15_i32_82 : i32 to vector<256x1xi32>
    %110 = arith.cmpi sge, %16, %109 : vector<256x1xi32>
    %cst_83 = arith.constant 0.000000e+00 : bf16
    %111 = vector.broadcast %cst_83 : bf16 to vector<256x64xbf16>
    %112 = vector.shape_cast %110 : vector<256x1xi1> to vector<256x1xi1>
    %113 = vector.broadcast %112 : vector<256x1xi1> to vector<256x64xi1>
    %114 = arith.select %113, %111, %97 : vector<256x64xi1>, vector<256x64xbf16>
    %cst_84 = arith.constant 0.000000e+00 : bf16
    %115 = vector.broadcast %cst_84 : bf16 to vector<33x64xbf16>
    %c0_85 = arith.constant 0 : index
    %c64 = arith.constant 64 : index
    %116 = vector.load %arg15[%c0_85, %c64] : memref<320x320xbf16, #tpu.memory_space<vmem>>, vector<33x64xbf16>
    tpu.vector_store %arg15[%c0_85, %c64], %115 {strides = array<i32>} : memref<320x320xbf16, #tpu.memory_space<vmem>>, vector<33x64xbf16>,
    %c33 = arith.constant 33 : index
    %c64_86 = arith.constant 64 : index
    %117 = vector.load %arg15[%c33, %c64_86] : memref<320x320xbf16, #tpu.memory_space<vmem>>, vector<256x64xbf16>
    tpu.vector_store %arg15[%c33, %c64_86], %114 {strides = array<i32>} : memref<320x320xbf16, #tpu.memory_space<vmem>>, vector<256x64xbf16>,
    %cst_87 = arith.constant 0.000000e+00 : bf16
    %118 = vector.broadcast %cst_87 : bf16 to vector<31x64xbf16>
    %c289 = arith.constant 289 : index
    %c64_88 = arith.constant 64 : index
    %119 = vector.load %arg15[%c289, %c64_88] : memref<320x320xbf16, #tpu.memory_space<vmem>>, vector<31x64xbf16>
    tpu.vector_store %arg15[%c289, %c64_88], %118 {strides = array<i32>} : memref<320x320xbf16, #tpu.memory_space<vmem>>, vector<31x64xbf16>,
    %cst_89 = arith.constant 0.000000e+00 : bf16
    %120 = vector.broadcast %cst_89 : bf16 to vector<32x64xbf16>
    %c0_90 = arith.constant 0 : index
    %c128_91 = arith.constant 128 : index
    %121 = vector.load %arg15[%c0_90, %c128_91] : memref<320x320xbf16, #tpu.memory_space<vmem>>, vector<32x64xbf16>
    tpu.vector_store %arg15[%c0_90, %c128_91], %120 {strides = array<i32>} : memref<320x320xbf16, #tpu.memory_space<vmem>>, vector<32x64xbf16>,
    %c32_92 = arith.constant 32 : index
    %c128_93 = arith.constant 128 : index
    %122 = vector.load %arg15[%c32_92, %c128_93] : memref<320x320xbf16, #tpu.memory_space<vmem>>, vector<256x64xbf16>
    tpu.vector_store %arg15[%c32_92, %c128_93], %97 {strides = array<i32>} : memref<320x320xbf16, #tpu.memory_space<vmem>>, vector<256x64xbf16>,
    %cst_94 = arith.constant 0.000000e+00 : bf16
    %123 = vector.broadcast %cst_94 : bf16 to vector<32x64xbf16>
    %c288 = arith.constant 288 : index
    %c128_95 = arith.constant 128 : index
    %124 = vector.load %arg15[%c288, %c128_95] : memref<320x320xbf16, #tpu.memory_space<vmem>>, vector<32x64xbf16>
    tpu.vector_store %arg15[%c288, %c128_95], %123 {strides = array<i32>} : memref<320x320xbf16, #tpu.memory_space<vmem>>, vector<32x64xbf16>,
    %c1_i32_96 = arith.constant 1 : i32
    %125 = vector.broadcast %c1_i32_96 : i32 to vector<256x1xi32>
    %126 = arith.cmpi slt, %16, %125 : vector<256x1xi32>
    %cst_97 = arith.constant 0.000000e+00 : bf16
    %127 = vector.broadcast %cst_97 : bf16 to vector<256x64xbf16>
    %128 = vector.shape_cast %126 : vector<256x1xi1> to vector<256x1xi1>
    %129 = vector.broadcast %128 : vector<256x1xi1> to vector<256x64xi1>
    %130 = arith.select %129, %127, %97 : vector<256x64xi1>, vector<256x64xbf16>
    %cst_98 = arith.constant 0.000000e+00 : bf16
    %131 = vector.broadcast %cst_98 : bf16 to vector<31x64xbf16>
    %c0_99 = arith.constant 0 : index
    %c192 = arith.constant 192 : index
    %132 = vector.load %arg15[%c0_99, %c192] : memref<320x320xbf16, #tpu.memory_space<vmem>>, vector<31x64xbf16>
    tpu.vector_store %arg15[%c0_99, %c192], %131 {strides = array<i32>} : memref<320x320xbf16, #tpu.memory_space<vmem>>, vector<31x64xbf16>,
    %c31 = arith.constant 31 : index
    %c192_100 = arith.constant 192 : index
    %133 = vector.load %arg15[%c31, %c192_100] : memref<320x320xbf16, #tpu.memory_space<vmem>>, vector<256x64xbf16>
    tpu.vector_store %arg15[%c31, %c192_100], %130 {strides = array<i32>} : memref<320x320xbf16, #tpu.memory_space<vmem>>, vector<256x64xbf16>,
    %cst_101 = arith.constant 0.000000e+00 : bf16
    %134 = vector.broadcast %cst_101 : bf16 to vector<33x64xbf16>
    %c287 = arith.constant 287 : index
    %c192_102 = arith.constant 192 : index
    %135 = vector.load %arg15[%c287, %c192_102] : memref<320x320xbf16, #tpu.memory_space<vmem>>, vector<33x64xbf16>
    tpu.vector_store %arg15[%c287, %c192_102], %134 {strides = array<i32>} : memref<320x320xbf16, #tpu.memory_space<vmem>>, vector<33x64xbf16>,
    %c2_i32 = arith.constant 2 : i32
    %136 = vector.broadcast %c2_i32 : i32 to vector<256x1xi32>
    %137 = arith.cmpi slt, %16, %136 : vector<256x1xi32>
    %cst_103 = arith.constant 0.000000e+00 : bf16
    %138 = vector.broadcast %cst_103 : bf16 to vector<256x64xbf16>
    %139 = vector.shape_cast %137 : vector<256x1xi1> to vector<256x1xi1>
    %140 = vector.broadcast %139 : vector<256x1xi1> to vector<256x64xi1>
    %141 = arith.select %140, %138, %97 : vector<256x64xi1>, vector<256x64xbf16>
    %cst_104 = arith.constant 0.000000e+00 : bf16
    %142 = vector.broadcast %cst_104 : bf16 to vector<30x64xbf16>
    %c0_105 = arith.constant 0 : index
    %c256_106 = arith.constant 256 : index
    %143 = vector.load %arg15[%c0_105, %c256_106] : memref<320x320xbf16, #tpu.memory_space<vmem>>, vector<30x64xbf16>
    tpu.vector_store %arg15[%c0_105, %c256_106], %142 {strides = array<i32>} : memref<320x320xbf16, #tpu.memory_space<vmem>>, vector<30x64xbf16>,
    %c30 = arith.constant 30 : index
    %c256_107 = arith.constant 256 : index
    %144 = vector.load %arg15[%c30, %c256_107] : memref<320x320xbf16, #tpu.memory_space<vmem>>, vector<256x64xbf16>
    tpu.vector_store %arg15[%c30, %c256_107], %141 {strides = array<i32>} : memref<320x320xbf16, #tpu.memory_space<vmem>>, vector<256x64xbf16>,
    %cst_108 = arith.constant 0.000000e+00 : bf16
    %145 = vector.broadcast %cst_108 : bf16 to vector<34x64xbf16>
    %c286 = arith.constant 286 : index
    %c256_109 = arith.constant 256 : index
    %146 = vector.load %arg15[%c286, %c256_109] : memref<320x320xbf16, #tpu.memory_space<vmem>>, vector<34x64xbf16>
    tpu.vector_store %arg15[%c286, %c256_109], %145 {strides = array<i32>} : memref<320x320xbf16, #tpu.memory_space<vmem>>, vector<34x64xbf16>,
    %c0_110 = arith.constant 0 : index
    %c0_111 = arith.constant 0 : index
    %147 = vector.load %arg15[%c0_110, %c0_111] : memref<320x320xbf16, #tpu.memory_space<vmem>>, vector<256x320xbf16>
    %c0_112 = arith.constant 0 : index
    %c0_113 = arith.constant 0 : index
    %c0_114 = arith.constant 0 : index
    %148 = vector.load %arg10[%c0_112, %c0_113, %c0_114] : memref<5x320x8xbf16, #tpu.memory_space<vmem>>, vector<1x320x8xbf16>
    %149 = vector.shape_cast %148 : vector<1x320x8xbf16> to vector<320x8xbf16>
    %cst_115 = arith.constant dense<0.000000e+00> : vector<256x8xf32>
    %150 = tpu.matmul %147, %149, %cst_115 {dimension_numbers = #tpu.dot_dimension_numbers<[1], [0], [0], [1], [0, 0, 1, 1], [], []>} : vector<256x320xbf16>, vector<320x8xbf16>, vector<256x8xf32> -> vector<256x8xf32>
    %c16_116 = arith.constant 16 : index
    %c0_117 = arith.constant 0 : index
    %151 = vector.load %arg15[%c16_116, %c0_117] : memref<320x320xbf16, #tpu.memory_space<vmem>>, vector<256x320xbf16>
    %c1_118 = arith.constant 1 : index
    %c0_119 = arith.constant 0 : index
    %c0_120 = arith.constant 0 : index
    %152 = vector.load %arg10[%c1_118, %c0_119, %c0_120] : memref<5x320x8xbf16, #tpu.memory_space<vmem>>, vector<1x320x8xbf16>
    %153 = vector.shape_cast %152 : vector<1x320x8xbf16> to vector<320x8xbf16>
    %cst_121 = arith.constant dense<0.000000e+00> : vector<256x8xf32>
    %154 = tpu.matmul %151, %153, %cst_121 {dimension_numbers = #tpu.dot_dimension_numbers<[1], [0], [0], [1], [0, 0, 1, 1], [], []>} : vector<256x320xbf16>, vector<320x8xbf16>, vector<256x8xf32> -> vector<256x8xf32>
    %155 = arith.addf %150, %154 : vector<256x8xf32>
    %c32_122 = arith.constant 32 : index
    %c0_123 = arith.constant 0 : index
    %156 = vector.load %arg15[%c32_122, %c0_123] : memref<320x320xbf16, #tpu.memory_space<vmem>>, vector<256x320xbf16>
    %c2_124 = arith.constant 2 : index
    %c0_125 = arith.constant 0 : index
    %c0_126 = arith.constant 0 : index
    %157 = vector.load %arg10[%c2_124, %c0_125, %c0_126] : memref<5x320x8xbf16, #tpu.memory_space<vmem>>, vector<1x320x8xbf16>
    %158 = vector.shape_cast %157 : vector<1x320x8xbf16> to vector<320x8xbf16>
    %cst_127 = arith.constant dense<0.000000e+00> : vector<256x8xf32>
    %159 = tpu.matmul %156, %158, %cst_127 {dimension_numbers = #tpu.dot_dimension_numbers<[1], [0], [0], [1], [0, 0, 1, 1], [], []>} : vector<256x320xbf16>, vector<320x8xbf16>, vector<256x8xf32> -> vector<256x8xf32>
    %160 = arith.addf %155, %159 : vector<256x8xf32>
    %c48 = arith.constant 48 : index
    %c0_128 = arith.constant 0 : index
    %161 = vector.load %arg15[%c48, %c0_128] : memref<320x320xbf16, #tpu.memory_space<vmem>>, vector<256x320xbf16>
    %c3 = arith.constant 3 : index
    %c0_129 = arith.constant 0 : index
    %c0_130 = arith.constant 0 : index
    %162 = vector.load %arg10[%c3, %c0_129, %c0_130] : memref<5x320x8xbf16, #tpu.memory_space<vmem>>, vector<1x320x8xbf16>
    %163 = vector.shape_cast %162 : vector<1x320x8xbf16> to vector<320x8xbf16>
    %cst_131 = arith.constant dense<0.000000e+00> : vector<256x8xf32>
    %164 = tpu.matmul %161, %163, %cst_131 {dimension_numbers = #tpu.dot_dimension_numbers<[1], [0], [0], [1], [0, 0, 1, 1], [], []>} : vector<256x320xbf16>, vector<320x8xbf16>, vector<256x8xf32> -> vector<256x8xf32>
    %165 = arith.addf %160, %164 : vector<256x8xf32>
    %c64_132 = arith.constant 64 : index
    %c0_133 = arith.constant 0 : index
    %166 = vector.load %arg15[%c64_132, %c0_133] : memref<320x320xbf16, #tpu.memory_space<vmem>>, vector<256x320xbf16>
    %c4 = arith.constant 4 : index
    %c0_134 = arith.constant 0 : index
    %c0_135 = arith.constant 0 : index
    %167 = vector.load %arg10[%c4, %c0_134, %c0_135] : memref<5x320x8xbf16, #tpu.memory_space<vmem>>, vector<1x320x8xbf16>
    %168 = vector.shape_cast %167 : vector<1x320x8xbf16> to vector<320x8xbf16>
    %cst_136 = arith.constant dense<0.000000e+00> : vector<256x8xf32>
    %169 = tpu.matmul %166, %168, %cst_136 {dimension_numbers = #tpu.dot_dimension_numbers<[1], [0], [0], [1], [0, 0, 1, 1], [], []>} : vector<256x320xbf16>, vector<320x8xbf16>, vector<256x8xf32> -> vector<256x8xf32>
    %170 = arith.addf %165, %169 : vector<256x8xf32>
    %c0_137 = arith.constant 0 : index
    %c0_138 = arith.constant 0 : index
    %171 = vector.load %arg11[%c0_137, %c0_138] : memref<1x8xf32, #tpu.memory_space<vmem>>, vector<1x8xf32>
    %172 = vector.broadcast %171 : vector<1x8xf32> to vector<256x8xf32>
    %173 = arith.addf %170, %172 : vector<256x8xf32>
    %c0_139 = arith.constant 0 : index
    %c0_140 = arith.constant 0 : index
    %c0_141 = arith.constant 0 : index
    %174 = vector.load %arg12[%c0_139, %c0_140, %c0_141] : memref<1x256x8xf32, #tpu.memory_space<vmem>>, vector<1x256x8xf32>
    %175 = vector.shape_cast %174 : vector<1x256x8xf32> to vector<256x8xf32>
    %176 = vector.shape_cast %173 : vector<256x8xf32> to vector<1x256x8xf32>
    tpu.vector_store %arg12[%c0_139, %c0_140, %c0_141], %176 {strides = array<i32>} : memref<1x256x8xf32, #tpu.memory_space<vmem>>, vector<1x256x8xf32>,
    return
  }
  func.func @transform_0(%arg0: i32) -> (i32, i32, i32) {
    %c0_i32 = arith.constant 0 : i32
    %c0_i32_0 = arith.constant 0 : i32
    %c0_i32_1 = arith.constant 0 : i32
    return %arg0, %c0_i32, %c0_i32_0 : i32, i32, i32
  }
  func.func @transform_1(%arg0: i32) -> (i32, i32) {
    %c0_i32 = arith.constant 0 : i32
    %c0_i32_0 = arith.constant 0 : i32
    %c0_i32_1 = arith.constant 0 : i32
    return %c0_i32, %c0_i32_0 : i32, i32
  }
  func.func @transform_2(%arg0: i32) -> (i32, i32) {
    %c0_i32 = arith.constant 0 : i32
    %c0_i32_0 = arith.constant 0 : i32
    %c0_i32_1 = arith.constant 0 : i32
    return %c0_i32, %c0_i32_0 : i32, i32
  }
  func.func @transform_3(%arg0: i32) -> (i32, i32) {
    %c0_i32 = arith.constant 0 : i32
    %c0_i32_0 = arith.constant 0 : i32
    %c0_i32_1 = arith.constant 0 : i32
    return %c0_i32, %c0_i32_0 : i32, i32
  }
  func.func @transform_4(%arg0: i32) -> (i32, i32) {
    %c0_i32 = arith.constant 0 : i32
    %c0_i32_0 = arith.constant 0 : i32
    %c0_i32_1 = arith.constant 0 : i32
    return %c0_i32, %c0_i32_0 : i32, i32
  }
  func.func @transform_5(%arg0: i32) -> (i32, i32, i32) {
    %c0_i32 = arith.constant 0 : i32
    %c0_i32_0 = arith.constant 0 : i32
    %c0_i32_1 = arith.constant 0 : i32
    %c0_i32_2 = arith.constant 0 : i32
    return %c0_i32, %c0_i32_0, %c0_i32_1 : i32, i32, i32
  }
  func.func @transform_6(%arg0: i32) -> (i32, i32) {
    %c0_i32 = arith.constant 0 : i32
    %c0_i32_0 = arith.constant 0 : i32
    %c0_i32_1 = arith.constant 0 : i32
    return %c0_i32, %c0_i32_0 : i32, i32
  }
  func.func @transform_7(%arg0: i32) -> (i32, i32) {
    %c0_i32 = arith.constant 0 : i32
    %c0_i32_0 = arith.constant 0 : i32
    %c0_i32_1 = arith.constant 0 : i32
    return %c0_i32, %c0_i32_0 : i32, i32
  }
  func.func @transform_8(%arg0: i32) -> (i32, i32) {
    %c0_i32 = arith.constant 0 : i32
    %c0_i32_0 = arith.constant 0 : i32
    %c0_i32_1 = arith.constant 0 : i32
    return %c0_i32, %c0_i32_0 : i32, i32
  }
  func.func @transform_9(%arg0: i32) -> (i32, i32, i32) {
    %c0_i32 = arith.constant 0 : i32
    %c0_i32_0 = arith.constant 0 : i32
    %c0_i32_1 = arith.constant 0 : i32
    %c0_i32_2 = arith.constant 0 : i32
    return %c0_i32, %c0_i32_0, %c0_i32_1 : i32, i32, i32
  }
  func.func @transform_10(%arg0: i32) -> (i32, i32) {
    %c0_i32 = arith.constant 0 : i32
    %c0_i32_0 = arith.constant 0 : i32
    %c0_i32_1 = arith.constant 0 : i32
    return %c0_i32, %c0_i32_0 : i32, i32
  }
  func.func @transform_11(%arg0: i32) -> (i32, i32, i32) {
    %c0_i32 = arith.constant 0 : i32
    %c0_i32_0 = arith.constant 0 : i32
    %c0_i32_1 = arith.constant 0 : i32
    return %arg0, %c0_i32, %c0_i32_0 : i32, i32, i32
  }
}

</mosaic_0001>

<bundles_post_ra>
// kernel: _srcnn5_forward_impl.1
= control target key start
LH: loop header
LB: loop body
LE: loop exit
PB: predicated region body
PF: predicated region fallthrough
CT: control target
= control target key end

     0   :  { %s15439_s17 = smov 0   ;;  %s21027_s0 = inlined_call_operand.vmem [shape: bf16[2,256,256], index: 0, kind: input, shape index: {}]   ;;  %s21028_s1 = inlined_call_operand.vmem [shape: bf16[256,256], index: 1, kind: input, shape index: {}]   ;;  %s21029_s2 = inlined_call_operand.vmem [shape: f32[1,256], index: 2, kind: input, shape index: {}]   ;;  %s21030_s3 = inlined_call_operand.vmem [shape: bf16[256,128], index: 3, kind: input, shape index: {}]   ;;  %s21031_s4 = inlined_call_operand.vmem [shape: f32[1,128], index: 4, kind: input, shape index: {}]   ;;  %s21032_s5 = inlined_call_operand.vmem [shape: bf16[3,384,128], index: 5, kind: input, shape index: {}]   ;;  %s21033_s6 = inlined_call_operand.vmem [shape: f32[1,128], index: 6, kind: input, shape index: {}]   ;;  %s21034_s7 = inlined_call_operand.vmem [shape: bf16[128,64], index: 7, kind: input, shape index: {}]   ;;  %s21035_s8 = inlined_call_operand.vmem [shape: f32[1,64], index: 8, kind: input, shape index: {}]   ;;  %s21036_s9 = inlined_call_operand.vmem [shape: bf16[5,320,8], index: 9, kind: input, shape index: {}]   ;;  %s21037_s10 = inlined_call_operand.vmem [shape: f32[1,8], index: 10, kind: input, shape index: {}]   ;;  %s21038_s11 = inlined_call_operand.vmem [shape: f32[2,256,8], index: 11, kind: output, shape index: {}]  }
   0x1 LB: > { %s11820_s18 = sadd.s32 4294967295, %s15374_s17   ;;  %p11824_p0 = scmp.ge.s32.totalorder %s15374_s17, 1  ;;  %s15374_s17 = sphi %s15439_s17, %s21_s17  }
   0x2   : > { %p337_p1 = scmp.lt.s32.totalorder %s15374_s17, 3 }
   0x4   : > { %p338_p2 = pnand %p11824_p0, %p337_p1 }
   0x6   : > { %341 = sbr.rel (%p338_p2) target bundleno = 2631 (0xa47), region = 64 }
   0xb   : > { %v12015_v0 = vld [vmem:[%s21028_s1 + $0x70] sm:$0xf]  ;;  %v14740_v1 = vld [vmem:[%s21028_s1 + $0x74] sm:$0xf0]  ;;  %v12007_v2 = vld [vmem:[%s21028_s1 + $0x60] sm:$0xf] }
   0xc   : > { %v12016_v3 = vor.u32 %v14740_v1, %v12015_v0  ;;  %v14738_v4 = vld [vmem:[%s21028_s1 + $0x64] sm:$0xf0]  ;;  %v11999_v6 = vld [vmem:[%s21028_s1 + $0x50] sm:$0xf]  ;;  %v14736_v7 = vld [vmem:[%s21028_s1 + $0x54] sm:$0xf0] }
   0xd   : > { %v12008_v5 = vor.u32 %v14738_v4, %v12007_v2  ;;  %v12079_v8 = vld [vmem:[%s21028_s1 + $0xf0] sm:$0xf]  ;;  %v11991_v9 = vld [vmem:[%s21028_s1 + $0x40] sm:$0xf]  ;;  %v14734_v10 = vld [vmem:[%s21028_s1 + $0x44] sm:$0xf0]  ;;  %v12000_v12 = vor.u32 %v14736_v7, %v11999_v6 }
   0xe   : > { %15324 = vmatpush.bf16.msra.mxu3 %v12016_v3  ;;  %1195 = vmatpush.bf16.msra.mxu0 %v12016_v3  ;;  %v14756_v11 = vld [vmem:[%s21028_s1 + $0xf4] sm:$0xf0]  ;;  %v12071_v14 = vld [vmem:[%s21028_s1 + $0xe0] sm:$0xf]  ;;  %v14754_v15 = vld [vmem:[%s21028_s1 + $0xe4] sm:$0xf0]  ;;  %v11992_v16 = vor.u32 %v14734_v10, %v11991_v9 }
   0xf   : > { %v12080_v13 = vor.u32 %v14756_v11, %v12079_v8  ;;  %v12072_v17 = vor.u32 %v14754_v15, %v12071_v14  ;;  %v11983_v18 = vld [vmem:[%s21028_s1 + $0x30] sm:$0xf]  ;;  %v14732_v19 = vld [vmem:[%s21028_s1 + $0x34] sm:$0xf0]  ;;  %p377_p3 = scmp.lt.s32.totalorder %s11820_s18, 1  ;;  %vm2735_vm0 = vcmask 1043456  }
  0x10   : > { %v11984_v20 = vor.u32 %v14732_v19, %v11983_v18  ;;  %v11975_v21 = vld [vmem:[%s21028_s1 + $0x20] sm:$0xf]  ;;  %v14730_v22 = vld [vmem:[%s21028_s1 + $0x24] sm:$0xf0]  ;;  %v12063_v23 = vld [vmem:[%s21028_s1 + $0xd0] sm:$0xf] }
  0x11   : > { %1284 = vmatpush.bf16.msra.mxu1 %v12080_v13  ;;  %s21963_s18 = smov (!%p377_p3, %s11820_s18), 1  ;;  %v14752_v24 = vld [vmem:[%s21028_s1 + $0xd4] sm:$0xf0]  ;;  %v11976_v25 = vor.u32 %v14730_v22, %v11975_v21  ;;  %v11967_v26 = vld [vmem:[%s21028_s1 + $0x10] sm:$0xf]  ;;  %vm21048_vm3 = vcmask 1040384  }
  0x12   : > { %15325 = vmatpush.bf16.msra.mxu3 %v12008_v5  ;;  %1196 = vmatpush.bf16.msra.mxu0 %v12008_v5  ;;  %v12064_v27 = vor.u32 %v14752_v24, %v12063_v23  ;;  %v14728_v28 = vld [vmem:[%s21028_s1 + $0x14] sm:$0xf0]  ;;  %v12055_v29 = vld [vmem:[%s21028_s1 + $0xc0] sm:$0xf]  ;;  %v14750_v30 = vld [vmem:[%s21028_s1 + $0xc4] sm:$0xf0] }
  0x13   : > { %s14691_s29 = sshll.u32 %s21963_s18, 8  ;;  %v11968_v31 = vor.u32 %v14728_v28, %v11967_v26  ;;  %v12056_v32 = vor.u32 %v14750_v30, %v12055_v29  ;;  %v11959_v33 = vld [vmem:[%s21028_s1] sm:$0xf]  ;;  %v14726_v34 = vld [vmem:[%s21028_s1 + $0x4] sm:$0xf0]  ;;  %vm15377_vm7 = vmmov 0  }
  0x14   : > { %s15531_s19 = scalar_lea.vmem %s21027_s0, %s14691_s29  ;;  %v11960_v35 = vor.u32 %v14726_v34, %v11959_v33  ;;  %v12047_v39 = vld [vmem:[%s21028_s1 + $0xb0] sm:$0xf]  ;;  %v14748_v40 = vld [vmem:[%s21028_s1 + $0xb4] sm:$0xf0]  ;;  %v12039_v42 = vld [vmem:[%s21028_s1 + $0xa0] sm:$0xf]  ;;  %s20872_s30 = scalar_lea.vmem %s21038_s11, %s14691_s29 }
  0x15   : > { %1285 = vmatpush.bf16.msra.mxu1 %v12072_v17  ;;  %v11927_v36 = vld [vmem:[%s15531_s19 + $0xc0] sm:$0xf]  ;;  %v14718_v37 = vld [vmem:[%s15531_s19 + $0xc4] sm:$0xf0]  ;;  %v12048_v41 = vor.u32 %v14748_v40, %v12047_v39  ;;  %v11935_v45 = vld [vmem:[%s15531_s19 + $0xd0] sm:$0xf] }
  0x16   : > { %15326 = vmatpush.bf16.msra.mxu3 %v12000_v12  ;;  %1197 = vmatpush.bf16.msra.mxu0 %v12000_v12  ;;  %v15535_v38 = vor.u32 %v14718_v37, %v11927_v36  ;;  %v14746_v43 = vld [vmem:[%s21028_s1 + $0xa4] sm:$0xf0]  ;;  %v14720_v46 = vld [vmem:[%s15531_s19 + $0xd4] sm:$0xf0]  ;;  %v12031_v48 = vld [vmem:[%s21028_s1 + $0x90] sm:$0xf] }
  0x17   : > { %v12040_v44 = vor.u32 %v14746_v43, %v12039_v42  ;;  %v15552_v47 = vor.u32 %v14720_v46, %v11935_v45  ;;  %v14744_v49 = vld [vmem:[%s21028_s1 + $0x94] sm:$0xf0]  ;;  %v12023_v51 = vld [vmem:[%s21028_s1 + $0x80] sm:$0xf]  ;;  %v14742_v52 = vld [vmem:[%s21028_s1 + $0x84] sm:$0xf0] }
  0x18   : > { %v12032_v50 = vor.u32 %v14744_v49, %v12031_v48  ;;  %v12024_v53 = vor.u32 %v14742_v52, %v12023_v51  ;;  %v11943_v54 = vld [vmem:[%s15531_s19 + $0xe0] sm:$0xf]  ;;  %v14722_v55 = vld [vmem:[%s15531_s19 + $0xe4] sm:$0xf0]  ;;  %v14739_v57 = vld [vmem:[%s21028_s1 + $0x74] sm:$0xf] }
  0x19   : > { %1286 = vmatpush.bf16.msra.mxu1 %v12064_v27  ;;  %v15569_v56 = vor.u32 %v14722_v55, %v11943_v54  ;;  %v12017_v58 = vld [vmem:[%s21028_s1 + $0x78] sm:$0xf0]  ;;  %v14737_v59 = vld [vmem:[%s21028_s1 + $0x64] sm:$0xf]  ;;  %v12009_v61 = vld [vmem:[%s21028_s1 + $0x68] sm:$0xf0] }
  0x1a   : > { %15327 = vmatpush.bf16.msra.mxu3 %v11992_v16  ;;  %1198 = vmatpush.bf16.msra.mxu0 %v11992_v16  ;;  %v12020_v60 = vor.u32 %v14739_v57, %v12017_v58  ;;  %v12012_v62 = vor.u32 %v14737_v59, %v12009_v61  ;;  %v11951_v63 = vld [vmem:[%s15531_s19 + $0xf0] sm:$0xf]  ;;  %v14724_v0 = vld [vmem:[%s15531_s19 + $0xf4] sm:$0xf0]  ;;  %v14735_v2 = vld [vmem:[%s21028_s1 + $0x54] sm:$0xf] }
  0x1b   : > { %v15586_v1 = vor.u32 %v14724_v0, %v11951_v63  ;;  %v12001_v3 = vld [vmem:[%s21028_s1 + $0x58] sm:$0xf0]  ;;  %v14733_v4 = vld [vmem:[%s21028_s1 + $0x44] sm:$0xf]  ;;  %v11993_v6 = vld [vmem:[%s21028_s1 + $0x48] sm:$0xf0] }
  0x1c   : > { %1373 = vmatpush.bf16.msra.mxu2 %v12020_v60  ;;  %v12004_v5 = vor.u32 %v14735_v2, %v12001_v3  ;;  %v11996_v7 = vor.u32 %v14733_v4, %v11993_v6  ;;  %v14717_v8 = vld [vmem:[%s15531_s19 + $0xc4] sm:$0xf]  ;;  %v11929_v9 = vld [vmem:[%s15531_s19 + $0xc8] sm:$0xf0]  ;;  %v14731_v11 = vld [vmem:[%s21028_s1 + $0x34] sm:$0xf] }
  0x1d   : > { %1287 = vmatpush.bf16.msra.mxu1 %v12056_v32  ;;  %v15603_v10 = vor.u32 %v14717_v8, %v11929_v9  ;;  %v11985_v12 = vld [vmem:[%s21028_s1 + $0x38] sm:$0xf0]  ;;  %v11977_v15 = vld [vmem:[%s21028_s1 + $0x28] sm:$0xf0]  ;;  %v14725_v22 = vld [vmem:[%s21028_s1 + $0x4] sm:$0xf] }
  0x1e   : > { %15328 = vmatpush.bf16.msra.mxu3 %v11984_v20  ;;  %1199 = vmatpush.bf16.msra.mxu0 %v11984_v20  ;;  %v11988_v14 = vor.u32 %v14731_v11, %v11985_v12  ;;  %v11937_v18 = vld [vmem:[%s15531_s19 + $0xd8] sm:$0xf0]  ;;  %v14727_v20 = vld [vmem:[%s21028_s1 + $0x14] sm:$0xf]  ;;  %v11961_v24 = vld [vmem:[%s21028_s1 + $0x8] sm:$0xf0] }
  0x1f   : > { %v11969_v21 = vld [vmem:[%s21028_s1 + $0x18] sm:$0xf0]  ;;  %v14721_v26 = vld [vmem:[%s15531_s19 + $0xe4] sm:$0xf]  ;;  %v14755_v29 = vld [vmem:[%s21028_s1 + $0xf4] sm:$0xf] }
  0x20   : > { %1374 = vmatpush.bf16.msra.mxu2 %v12012_v62  ;;  %v11972_v23 = vor.u32 %v14727_v20, %v11969_v21  ;;  %v12081_v30 = vld [vmem:[%s21028_s1 + $0xf8] sm:$0xf0]  ;;  %v12073_v33 = vld [vmem:[%s21028_s1 + $0xe8] sm:$0xf0]  ;;  %v14751_v39 = vld [vmem:[%s21028_s1 + $0xd4] sm:$0xf] }
  0x21   : > { %1288 = vmatpush.bf16.msra.mxu1 %v12048_v41  ;;  %v11953_v36 = vld [vmem:[%s15531_s19 + $0xf8] sm:$0xf0]  ;;  %v11831_v42 = vld [vmem:[%s15531_s19] sm:$0xf]  ;;  %v14694_v43 = vld [vmem:[%s15531_s19 + $0x4] sm:$0xf0] }
  0x22   : > { %15329 = vmatpush.bf16.msra.mxu3 %v11976_v25  ;;  %1200 = vmatpush.bf16.msra.mxu0 %v11976_v25  ;;  %v11964_v25 = vor.u32 %v14725_v22, %v11961_v24  ;;  %v12065_v40 = vld [vmem:[%s21028_s1 + $0xd8] sm:$0xf0]  ;;  %v14693_v45 = vld [vmem:[%s15531_s19 + $0x4] sm:$0xf]  ;;  %v11833_v46 = vld [vmem:[%s15531_s19 + $0x8] sm:$0xf0] }
  0x23   : > { %v15667_v48 = vor.u32 %v14693_v45, %v11833_v46  ;;  %v14749_v49 = vld [vmem:[%s21028_s1 + $0xc4] sm:$0xf]  ;;  %v14796_v52 = vld [vmem:[%s21030_s3 + $0x38] sm:$0xff]  ;;  %v14747_v54 = vld [vmem:[%s21028_s1 + $0xb4] sm:$0xf]  ;;  %vm3335_vm10 = vcmask 1043459  }
  0x24   : > { %1375 = vmatpush.bf16.msra.mxu2 %v12004_v5  ;;  %v12049_v55 = vld [vmem:[%s21028_s1 + $0xb8] sm:$0xf0]  ;;  %v11839_v58 = vld [vmem:[%s15531_s19 + $0x10] sm:$0xf]  ;;  %v14696_v59 = vld [vmem:[%s15531_s19 + $0x14] sm:$0xf0] }
  0x25   : > { %1289 = vmatpush.bf16.msra.mxu1 %v12040_v44  ;;  %v12052_v57 = vor.u32 %v14747_v54, %v12049_v55  ;;  %v11841_v63 = vld [vmem:[%s15531_s19 + $0x18] sm:$0xf0]  ;;  %v14745_v0 = vld [vmem:[%s21028_s1 + $0xa4] sm:$0xf]  ;;  %v12041_v2 = vld [vmem:[%s21028_s1 + $0xa8] sm:$0xf0] }
  0x26   : > { %15330 = vmatpush.bf16.msra.mxu3 %v11968_v31  ;;  %1201 = vmatpush.bf16.msra.mxu0 %v11968_v31  ;;  %v12084_v31 = vor.u32 %v14755_v29, %v12081_v30  ;;  %v12044_v3 = vor.u32 %v14745_v0, %v12041_v2  ;;  %v12033_v6 = vld [vmem:[%s21028_s1 + $0x98] sm:$0xf0]  ;;  %v11847_v8 = vld [vmem:[%s15531_s19 + $0x20] sm:$0xf]  ;;  %v14698_v9 = vld [vmem:[%s15531_s19 + $0x24] sm:$0xf0] }
  0x27   : > { %v11848_v11 = vor.u32 %v14698_v9, %v11847_v8  ;;  %v11855_v22 = vld [vmem:[%s15531_s19 + $0x30] sm:$0xf]  ;;  %v14801_v54 = vld [vmem:[%s21030_s3 + $0x60] sm:$0xff]  ;;  %v11881_v2 = vld [vmem:[%s15531_s19 + $0x68] sm:$0xf0]  ;;  %s15378_s16 = smov 64  }
  0x28   : > { %1376 = vmatpush.bf16.msra.mxu2 %v11996_v7  ;;  %v14705_v0 = vld [vmem:[%s15531_s19 + $0x64] sm:$0xf]  ;;  %v14800_v8 = vld [vmem:[%s21030_s3 + $0x58] sm:$0xff]  ;;  %v11887_v9 = vld [vmem:[%s15531_s19 + $0x70] sm:$0xf] }
  0x29   : > { %1290 = vmatpush.bf16.msra.mxu1 %v12032_v50  ;;  %vm21046_vm1 = vsmask.f32 3328  ;;  %vm21049_vm4 = vsmask.f32 256  ;;  %vm16217_vm8 = vmpackc.low %vm15377_vm7, %vm15377_vm7  ;;  %vm21040_vm11 = vsmask.f32 7950 }
  0x2a   : > { %15331 = vmatpush.bf16.msra.mxu3 %v11960_v35  ;;  %1202 = vmatpush.bf16.msra.mxu0 %v11960_v35  ;;  %v14723_v35 = vld [vmem:[%s15531_s19 + $0xf4] sm:$0xf]  ;;  %vm16137_vm2 = vmand %vm2735_vm0, %vm21046_vm1  ;;  %vm21039_vm12 = vsmask.f32 7938 }
  0x2b   : > { %v15654_v37 = vor.u32 %v14723_v35, %v11953_v36  ;;  %v14701_v36 = vld [vmem:[%s15531_s19 + $0x44] sm:$0xf]  ;;  %vm16146_vm5 = vmand %vm21048_vm3, %vm21049_vm4 }
  0x2c   : > { %1377 = vmatpush.bf16.msra.mxu2 %v11988_v14  ;;  %vm16248_vm14 = vmand %vm3335_vm10, %vm21040_vm11  ;;  %vm2981_vm10 = vsmask.f32 7440 }
  0x2d   : > { %1263 = vmatmul.bf16.vlgmr.msra.gmra.mxu3 %v15535_v38  ;;  %1291 = vmatpush.bf16.msra.mxu1 %v12024_v53  ;;  %vm16261_vm15 = vmand %vm2735_vm0, %vm21039_vm12  ;;  %vm2413_vm0 = vsmask.f32 4368 }
  0x2e   : > { %15332 = vmatpush.bf16.msrb.mxu3 %v12080_v13  ;;  %v14729_v13 = vld [vmem:[%s21028_s1 + $0x24] sm:$0xf]  ;;  %2003 = vmatpush.bf16.msrb.mxu0 %v14796_v52  ;;  %vm16296_vm11 = vmor %vm21046_vm1, %vm2981_vm10 }
  0x2f   : > { %v11980_v16 = vor.u32 %v14729_v13, %v11977_v15  ;;  %v14697_v13 = vld [vmem:[%s15531_s19 + $0x24] sm:$0xf]  ;;  %vm16304_vm10 = vmor %vm21049_vm4, %vm2413_vm0 }
  0x30   : > { %1292 = vmatmul.bf16.vlgmr.msra.gmra.mxu1 %v15667_v48 }
  0x31   : > { %1378 = vmatpush.bf16.msra.mxu2 %v11980_v16 }
  0x32   : > { %15333 = vmatpush.bf16.msrb.mxu3 %v12072_v17  ;;  %v14719_v17 = vld [vmem:[%s15531_s19 + $0xd4] sm:$0xf] }
  0x33   : > { %v15620_v19 = vor.u32 %v14719_v17, %v11937_v18  ;;  %v14741_v17 = vld [vmem:[%s21028_s1 + $0x84] sm:$0xf]  ;;  %v12025_v18 = vld [vmem:[%s21028_s1 + $0x88] sm:$0xf0] }
  0x34   : > { %v12028_v20 = vor.u32 %v14741_v17, %v12025_v18 }
  0x35   : > { %1379 = vmatpush.bf16.msra.mxu2 %v11972_v23 }
  0x36   : > { %15334 = vmatpush.bf16.msrb.mxu3 %v12064_v27  ;;  %v11945_v27 = vld [vmem:[%s15531_s19 + $0xe8] sm:$0xf0] }
  0x37   : > { %v15637_v28 = vor.u32 %v14721_v26, %v11945_v27  ;;  %v14699_v26 = vld [vmem:[%s15531_s19 + $0x34] sm:$0xf]  ;;  %v11857_v27 = vld [vmem:[%s15531_s19 + $0x38] sm:$0xf0] }
  0x38   : > { %v15743_v29 = vor.u32 %v14699_v26, %v11857_v27 }
  0x39   : > { %1380 = vmatpush.bf16.msra.mxu2 %v11964_v25 }
  0x3a   : > { %15335 = vmatpush.bf16.msrb.mxu3 %v12056_v32  ;;  %v14753_v32 = vld [vmem:[%s21028_s1 + $0xe4] sm:$0xf] }
  0x3b   : > { %v12076_v34 = vor.u32 %v14753_v32, %v12073_v33  ;;  %v11863_v32 = vld [vmem:[%s15531_s19 + $0x40] sm:$0xf]  ;;  %v14702_v33 = vld [vmem:[%s15531_s19 + $0x44] sm:$0xf0] }
  0x3d   : > { %1268 = vmatmul.bf16.gmra.mxu3 %v15552_v47 }
  0x3e   : > { %15336 = vmatpush.bf16.msrb.mxu3 %v12048_v41  ;;  %v12068_v41 = vor.u32 %v14751_v39, %v12065_v40  ;;  %v11865_v39 = vld [vmem:[%s15531_s19 + $0x48] sm:$0xf0] }
  0x3f   : > { %v15761_v40 = vor.u32 %v14701_v36, %v11865_v39 }
  0x42   : > { %15337 = vmatpush.bf16.msrb.mxu3 %v12040_v44  ;;  %v11832_v44 = vor.u32 %v14694_v43, %v11831_v42  ;;  %v11871_v43 = vld [vmem:[%s15531_s19 + $0x50] sm:$0xf] }
  0x44   : > { %1203 = vmatmul.bf16.vlgmr.msra.gmra.mxu0 %v11832_v44  ;;  %1381 = vmatmul.bf16.vlgmr.msra.gmra.mxu2 %v11832_v44  ;;  %v14704_v44 = vld [vmem:[%s15531_s19 + $0x54] sm:$0xf0] }
  0x45   : > { %v11872_v46 = vor.u32 %v14704_v44, %v11871_v43 }
  0x46   : > { %15338 = vmatpush.bf16.msrb.mxu3 %v12032_v50  ;;  %v12057_v50 = vld [vmem:[%s21028_s1 + $0xc8] sm:$0xf0] }
  0x47   : > { %v12060_v51 = vor.u32 %v14749_v49, %v12057_v50  ;;  %v14703_v50 = vld [vmem:[%s15531_s19 + $0x54] sm:$0xf] }
  0x4a   : > { %15339 = vmatpush.bf16.msrb.mxu3 %v12024_v53  ;;  %v14804_v53 = vld [vmem:[%s21030_s3 + $0x78] sm:$0xff] }
  0x4b   : > { %2092 = vmatpush.bf16.msrb.mxu1 %v14804_v53 }
  0x4d   : > { %1273 = vmatmul.bf16.gmra.mxu3 %v15569_v56 }
  0x4e   : > { %15340 = vmatpush.bf16.msra.mxu3 %v12020_v60  ;;  %v11840_v60 = vor.u32 %v14696_v59, %v11839_v58  ;;  %v11879_v59 = vld [vmem:[%s15531_s19 + $0x60] sm:$0xf] }
  0x52   : > { %15341 = vmatpush.bf16.msra.mxu3 %v12012_v62  ;;  %v14695_v62 = vld [vmem:[%s15531_s19 + $0x14] sm:$0xf] }
  0x54   : > { %1208 = vmatmul.bf16.gmra.mxu0 %v11840_v60  ;;  %1386 = vmatmul.bf16.gmra.mxu2 %v11840_v60  ;;  %v14706_v60 = vld [vmem:[%s15531_s19 + $0x64] sm:$0xf0] }
  0x56   : > { %15342 = vmatpush.bf16.msra.mxu3 %v12004_v5  ;;  %v14743_v5 = vld [vmem:[%s21028_s1 + $0x94] sm:$0xf] }
  0x5a   : > { %15343 = vmatpush.bf16.msra.mxu3 %v11996_v7  ;;  %v12036_v7 = vor.u32 %v14743_v5, %v12033_v6 }
  0x5d   : > { %1278 = vmatmul.bf16.gmra.mxu3 %v15586_v1 }
  0x5e   : > { %15344 = vmatpush.bf16.msra.mxu3 %v11988_v14  ;;  %v11849_v14 = vld [vmem:[%s15531_s19 + $0x28] sm:$0xf0] }
  0x5f   : > { %v15722_v15 = vor.u32 %v14697_v13, %v11849_v14 }
  0x62   : > { %15345 = vmatpush.bf16.msra.mxu3 %v11980_v16  ;;  %v14803_v16 = vld [vmem:[%s21030_s3 + $0x70] sm:$0xff] }
  0x63   : > { %2093 = vmatpush.bf16.msrb.mxu1 %v14803_v16  ;;  %v11889_v16 = vld [vmem:[%s15531_s19 + $0x78] sm:$0xf0] }
  0x64   : > { %1213 = vmatmul.bf16.gmra.mxu0 %v11848_v11  ;;  %1391 = vmatmul.bf16.gmra.mxu2 %v11848_v11  ;;  %v14708_v11 = vld [vmem:[%s15531_s19 + $0x74] sm:$0xf0] }
  0x65   : > { %v11888_v13 = vor.u32 %v14708_v11, %v11887_v9  ;;  %v11913_v9 = vld [vmem:[%s15531_s19 + $0xa8] sm:$0xf0] }
  0x66   : > { %15346 = vmatpush.bf16.msra.mxu3 %v11972_v23  ;;  %v14700_v23 = vld [vmem:[%s15531_s19 + $0x34] sm:$0xf0] }
  0x67   : > { %v11856_v24 = vor.u32 %v14700_v23, %v11855_v22  ;;  %v11895_v23 = vld [vmem:[%s15531_s19 + $0x80] sm:$0xf] }
  0x6a   : > { %15347 = vmatpush.bf16.msra.mxu3 %v11964_v25 }
  0x6d   : > { %1352 = vmatmul.bf16.vlgmr.msrb.gmra.mxu3 %v15603_v10 }
  0x6e   : > { %1462 = vmatpush.bf16.msrb.mxu3 %v12084_v31  ;;  %v14802_v31 = vld [vmem:[%s21030_s3 + $0x68] sm:$0xff] }
  0x6f   : > { %2094 = vmatpush.bf16.msrb.mxu1 %v14802_v31  ;;  %v14709_v31 = vld [vmem:[%s15531_s19 + $0x84] sm:$0xf] }
  0x72   : > { %1463 = vmatpush.bf16.msrb.mxu3 %v12076_v34  ;;  %v11864_v34 = vor.u32 %v14702_v33, %v11863_v32  ;;  %v11897_v32 = vld [vmem:[%s15531_s19 + $0x88] sm:$0xf0] }
  0x73   : > { %2095 = vmatpush.bf16.msrb.mxu1 %v14801_v54  ;;  %v14711_v54 = vld [vmem:[%s15531_s19 + $0x94] sm:$0xf] }
  0x74   : > { %1218 = vmatmul.bf16.gmra.mxu0 %v11856_v24  ;;  %1396 = vmatmul.bf16.gmra.mxu2 %v11856_v24  ;;  %v14710_v24 = vld [vmem:[%s15531_s19 + $0x84] sm:$0xf0] }
  0x75   : > { %v11896_v26 = vor.u32 %v14710_v24, %v11895_v23  ;;  %v14715_v24 = vld [vmem:[%s15531_s19 + $0xb4] sm:$0xf] }
  0x76   : > { %1464 = vmatpush.bf16.msrb.mxu3 %v12068_v41 }
  0x77   : > { %2096 = vmatpush.bf16.msrb.mxu1 %v14800_v8  ;;  %v14713_v8 = vld [vmem:[%s15531_s19 + $0xa4] sm:$0xf] }
  0x78   : > { %v15904_v11 = vor.u32 %v14713_v8, %v11913_v9 }
  0x7a   : > { %1465 = vmatpush.bf16.msrb.mxu3 %v12060_v51  ;;  %v11873_v51 = vld [vmem:[%s15531_s19 + $0x58] sm:$0xf0] }
  0x7b   : > { %v15783_v53 = vor.u32 %v14703_v50, %v11873_v51 }
  0x7d   : > { %1357 = vmatmul.bf16.gmra.mxu3 %v15620_v19 }
  0x7e   : > { %1466 = vmatpush.bf16.msrb.mxu3 %v12052_v57 }
  0x82   : > { %1467 = vmatpush.bf16.msrb.mxu3 %v12044_v3 }
  0x84   : > { %1223 = vmatmul.bf16.gmra.mxu0 %v11864_v34  ;;  %1401 = vmatmul.bf16.gmra.mxu2 %v11864_v34  ;;  %v14799_v34 = vld [vmem:[%s21030_s3 + $0x50] sm:$0xff] }
  0x85   : > { %2097 = vmatpush.bf16.msrb.mxu1 %v14799_v34  ;;  %v14797_v34 = vld [vmem:[%s21030_s3 + $0x40] sm:$0xff] }
  0x86   : > { %1468 = vmatpush.bf16.msrb.mxu3 %v12036_v7  ;;  %v14792_v7 = vld [vmem:[%s21030_s3 + $0x18] sm:$0xff] }
  0x8a   : > { %1469 = vmatpush.bf16.msrb.mxu3 %v12028_v20 }
  0x8d   : > { %1362 = vmatmul.bf16.gmra.mxu3 %v15637_v28 }
  0x94   : > { %1228 = vmatmul.bf16.gmra.mxu0 %v11872_v46  ;;  %1406 = vmatmul.bf16.gmra.mxu2 %v11872_v46  ;;  %v11903_v46 = vld [vmem:[%s15531_s19 + $0x90] sm:$0xf] }
  0x9d   : > { %1367 = vmatmul.bf16.gmra.mxu3 %v15654_v37 }
  0xad   : > { %1441 = vmatmul.bf16.vlgmr.msra.gmra.mxu3 %v15535_v38  ;;  %v15695_v38 = vor.u32 %v14695_v62, %v11841_v63  ;;  %v11880_v62 = vor.u32 %v14706_v60, %v11879_v59  ;;  %v14790_v60 = vld [vmem:[%s21030_s3 + $0x8] sm:$0xff] }
  0xaf   : > { %1297 = vmatmul.bf16.gmra.mxu1 %v15695_v38  ;;  %1233 = vmatmul.bf16.gmra.mxu0 %v11880_v62 }
  0xb0   : > { %v15691_v61 = vpop.f32.mrf.mxu3  ;;  %1411 = vmatmul.bf16.gmra.mxu2 %v11880_v62  ;;  %v14798_v62 = vld [vmem:[%s21030_s3 + $0x48] sm:$0xff] }
  0xb1   : > { %2098 = vmatpush.bf16.msrb.mxu1 %v14798_v62 }
  0xb5   : > { %2099 = vmatpush.bf16.msrb.mxu1 %v14797_v34 }
  0xb8   : > { %v15704_v4 = vpop.f32.mrf.mxu3 }
  0xbd   : > { %1446 = vmatmul.bf16.gmra.mxu3 %v15552_v47  ;;  %v14795_v47 = vld [vmem:[%s21030_s3 + $0x30] sm:$0xff] }
  0xbe   : > { %2004 = vmatpush.bf16.msrb.mxu0 %v14795_v47  ;;  %v14707_v47 = vld [vmem:[%s15531_s19 + $0x74] sm:$0xf] }
  0xbf   : > { %1302 = vmatmul.bf16.gmra.mxu1 %v15722_v15  ;;  %1238 = vmatmul.bf16.gmra.mxu0 %v11888_v13  ;;  %v15827_v18 = vor.u32 %v14707_v47, %v11889_v16  ;;  %v11919_v16 = vld [vmem:[%s15531_s19 + $0xb0] sm:$0xf] }
  0xc0   : > { %v15715_v12 = vpop.f32.mrf.mxu3  ;;  %1416 = vmatmul.bf16.gmra.mxu2 %v11888_v13 }
  0xc1   : > { %v15835_v22 = vpop.f32.mrf.mxu0 }
  0xc8   : > { %v15734_v21 = vpop.f32.mrf.mxu3 }
  0xcd   : > { %1451 = vmatmul.bf16.gmra.mxu3 %v15569_v56  ;;  %v14794_v56 = vld [vmem:[%s21030_s3 + $0x28] sm:$0xff] }
  0xce   : > { %2005 = vmatpush.bf16.msrb.mxu0 %v14794_v56  ;;  %v15841_v56 = vpop.f32.mrf.mxu1 }
  0xcf   : > { %1307 = vmatmul.bf16.gmra.mxu1 %v15743_v29  ;;  %1243 = vmatmul.bf16.gmra.mxu0 %v11896_v26 }
  0xd0   : > { %v15739_v25 = vpop.f32.mrf.mxu3  ;;  %1421 = vmatmul.bf16.gmra.mxu2 %v11896_v26 }
  0xd6   : > { %v15860_v43 = vpop.f32.mrf.mxu1 }
  0xd8   : > { %v15746_v30 = vpop.f32.mrf.mxu3 }
  0xdd   : > { %1456 = vmatmul.bf16.gmra.mxu3 %v15586_v1  ;;  %v15767_v1 = vld [vmem:[%s21029_s2] sm:$0x3] }
  0xde   : > { %v15772_v42 = vperm.slane %v15767_v1, 0  ;;  %v15954_v62 = vperm.slane %v15767_v1, 1 }
  0xdf   : > { %1312 = vmatmul.bf16.gmra.mxu1 %v15761_v40 }
  0xe0   : > { %v15757_v35 = vpop.f32.mrf.mxu3  ;;  %v1265_v45 = vadd.f32 %v15691_v61, %v15772_v42  ;;  %v1267_v55 = vadd.f32 %v15704_v4, %v15772_v42  ;;  %v1270_v61 = vadd.f32 %v15715_v12, %v15772_v42  ;;  %v15805_v4 = vor.u32 %v14705_v0, %v11881_v2  ;;  %v14714_v0 = vld [vmem:[%s15531_s19 + $0xa4] sm:$0xf0] }
  0xe1   : > { %v1275_v12 = vadd.f32 %v15739_v25, %v15772_v42  ;;  %v1280_v25 = vadd.f32 %v15757_v35, %v15772_v42  ;;  %v15856_v35 = vpop.f32.mrf.mxu0 }
  0xe8   : > { %v15769_v41 = vpop.f32.mrf.mxu3 }
  0xe9   : > { %v1282_v36 = vadd.f32 %v15769_v41, %v15772_v42 }
  0xed   : > { %1470 = vmatmul.bf16.vlgmr.msrb.gmra.mxu3 %v15667_v48  ;;  %v14793_v48 = vld [vmem:[%s21030_s3 + $0x20] sm:$0xff] }
  0xee   : > { %2006 = vmatpush.bf16.msrb.mxu0 %v14793_v48 }
  0xef   : > { %1317 = vmatmul.bf16.gmra.mxu1 %v15783_v53 }
  0xf0   : > { %v1353_v49 = vpop.f32.mrf.mxu3 }
  0xf1   : > { %v15781_v52 = vadd.f32 %v1353_v49, %v1265_v45  ;;  %v15865_v45 = vpop.f32.mrf.mxu0  ;;  %v14712_v49 = vld [vmem:[%s15531_s19 + $0x94] sm:$0xf0] }
  0xf2   : > { %2007 = vmatpush.bf16.msrb.mxu0 %v14792_v7  ;;  %v11904_v50 = vor.u32 %v14712_v49, %v11903_v46 }
  0xf4   : > { %1248 = vmatmul.bf16.gmra.mxu0 %v11904_v50  ;;  %1426 = vmatmul.bf16.gmra.mxu2 %v11904_v50 }
  0xf8   : > { %v1355_v57 = vpop.f32.mrf.mxu3 }
  0xf9   : > { %v15794_v58 = vadd.f32 %v1355_v57, %v1267_v55  ;;  %v11905_v55 = vld [vmem:[%s15531_s19 + $0x98] sm:$0xf0] }
  0xfa   : > { %v15875_v41 = vor.u32 %v14711_v54, %v11905_v55 }
  0xfd   : > { %1475 = vmatmul.bf16.gmra.mxu3 %v15695_v38  ;;  %v1272_v38 = vadd.f32 %v15734_v21, %v15772_v42 }
  0xff   : > { %1322 = vmatmul.bf16.gmra.mxu1 %v15805_v4 }
 0x100   : > { %v1358_v63 = vpop.f32.mrf.mxu3 }
 0x101   : > { %v15803_v3 = vadd.f32 %v1358_v63, %v1270_v61  ;;  %v14860_v61 = vld [vmem:[%s21032_s5 + $0x38] sm:$0xff]  ;;  %v11911_v63 = vld [vmem:[%s15531_s19 + $0xa0] sm:$0xf] }
 0x102   : > { %3892 = vmatpush.bf16.msrb.mxu2 %v14860_v61 }
 0x108   : > { %v1360_v5 = vpop.f32.mrf.mxu3 }
 0x109   : > { %v15810_v6 = vadd.f32 %v1360_v5, %v1272_v38  ;;  %v11912_v38 = vor.u32 %v14714_v0, %v11911_v63 }
 0x10b   : > { %1253 = vmatmul.bf16.gmra.mxu0 %v11912_v38  ;;  %1431 = vmatmul.bf16.gmra.mxu2 %v11912_v38  ;;  %v14858_v38 = vld [vmem:[%s21032_s5 + $0x28] sm:$0xff] }
 0x10d   : > { %1480 = vmatmul.bf16.gmra.mxu3 %v15722_v15  ;;  %v1277_v15 = vadd.f32 %v15746_v30, %v15772_v42  ;;  %v15850_v30 = vor.u32 %v14709_v31, %v11897_v32 }
 0x10f   : > { %1327 = vmatmul.bf16.gmra.mxu1 %v15827_v18 }
 0x110   : > { %v1363_v14 = vpop.f32.mrf.mxu3 }
 0x111   : > { %v15825_v17 = vadd.f32 %v1363_v14, %v1275_v12 }
 0x118   : > { %v1365_v20 = vpop.f32.mrf.mxu3 }
 0x119   : > { %v15832_v21 = vadd.f32 %v1365_v20, %v1277_v15  ;;  %v14716_v15 = vld [vmem:[%s15531_s19 + $0xb4] sm:$0xf0] }
 0x11a   : > { %v11920_v20 = vor.u32 %v14716_v15, %v11919_v16 }
 0x11c   : > { %1258 = vmatmul.bf16.gmra.mxu0 %v11920_v20  ;;  %1436 = vmatmul.bf16.gmra.mxu2 %v11920_v20 }
 0x11d   : > { %1485 = vmatmul.bf16.gmra.mxu3 %v15743_v29  ;;  %v14791_v29 = vld [vmem:[%s21030_s3 + $0x10] sm:$0xff] }
 0x11e   : > { %2008 = vmatpush.bf16.msrb.mxu0 %v14791_v29  ;;  %v14859_v29 = vld [vmem:[%s21032_s5 + $0x30] sm:$0xff] }
 0x11f   : > { %1332 = vmatmul.bf16.gmra.mxu1 %v15850_v30  ;;  %3893 = vmatpush.bf16.msrb.mxu2 %v14859_v29 }
 0x120   : > { %v1368_v27 = vpop.f32.mrf.mxu3 }
 0x121   : > { %v15845_v33 = vadd.f32 %v1368_v27, %v1280_v25  ;;  %v11921_v25 = vld [vmem:[%s15531_s19 + $0xb8] sm:$0xf0] }
 0x122   : > { %2009 = vmatpush.bf16.msrb.mxu0 %v14790_v60  ;;  %v15920_v26 = vor.u32 %v14715_v24, %v11921_v25 }
 0x123   : > { %3894 = vmatpush.bf16.msrb.mxu2 %v14858_v38 }
 0x128   : > { %v1370_v39 = vpop.f32.mrf.mxu3 }
 0x129   : > { %v15862_v44 = vadd.f32 %v1370_v39, %v1282_v36 }
 0x12c   : > { %v15871_v48 = vpop.f32.mrf.mxu1 }
 0x12d   : > { %1490 = vmatmul.bf16.gmra.mxu3 %v15761_v40  ;;  %v15878_v40 = vpop.f32.mrf.mxu0 }
 0x12f   : > { %1337 = vmatmul.bf16.gmra.mxu1 %v15875_v41 }
 0x130   : > { %v15869_v51 = vpop.f32.mrf.mxu3 }
 0x134   : > { %v15882_v59 = vpop.f32.mrf.mxu1 }
 0x135   : > { %v15896_v2 = vpop.f32.mrf.mxu0 }
 0x138   : > { %v15880_v57 = vpop.f32.mrf.mxu3 }
 0x13c   : > { %v15900_v7 = vpop.f32.mrf.mxu1 }
 0x13d   : > { %1495 = vmatmul.bf16.gmra.mxu3 %v15783_v53  ;;  %v1382_v53 = vpop.f32.mrf.mxu2  ;;  %v15909_v13 = vpop.f32.mrf.mxu0 }
 0x13e   : > { %v1383_v63 = vadd.f32 %v1382_v53, %v15954_v62  ;;  %v1207_v53 = vadd.f32 %v15856_v35, %v15772_v42 }
 0x13f   : > { %1342 = vmatmul.bf16.gmra.mxu1 %v15904_v11 }
 0x140   : > { %v15898_v5 = vpop.f32.mrf.mxu3 }
 0x144   : > { %v15911_v14 = vpop.f32.mrf.mxu1 }
 0x145   : > { %v1384_v47 = vpop.f32.mrf.mxu2  ;;  %v15922_v27 = vpop.f32.mrf.mxu0 }
 0x146   : > { %v1385_v24 = vadd.f32 %v1384_v47, %v15954_v62 }
 0x148   : > { %v15907_v12 = vpop.f32.mrf.mxu3 }
 0x14c   : > { %v15925_v31 = vpop.f32.mrf.mxu1 }
 0x14d   : > { %1500 = vmatmul.bf16.gmra.mxu3 %v15805_v4  ;;  %v1387_v32 = vpop.f32.mrf.mxu2  ;;  %v14789_v4 = vld [vmem:[%s21030_s3] sm:$0xff]  ;;  %v15939_v39 = vpop.f32.mrf.mxu0 }
 0x14e   : > { %2010 = vmatpush.bf16.msrb.mxu0 %v14789_v4  ;;  %v1388_v35 = vadd.f32 %v1387_v32, %v15954_v62 }
 0x14f   : > { %1347 = vmatmul.bf16.gmra.mxu1 %v15920_v26 }
 0x150   : > { %v15916_v23 = vpop.f32.mrf.mxu3 }
 0x154   : > { %v15941_v46 = vpop.f32.mrf.mxu1 }
 0x155   : > { %v1389_v49 = vpop.f32.mrf.mxu2  ;;  %v15947_v55 = vpop.f32.mrf.mxu0 }
 0x158   : > { %v15936_v36 = vpop.f32.mrf.mxu3 }
 0x15c   : > { %v15951_v61 = vpop.f32.mrf.mxu1 }
 0x15d   : > { %1505 = vmatmul.bf16.gmra.mxu3 %v15827_v18  ;;  %v15945_v54 = vpop.f32.mrf.mxu2  ;;  %v1205_v18 = vadd.f32 %v15835_v22, %v15772_v42  ;;  %v15966_v15 = vpop.f32.mrf.mxu0 }
 0x15f   : > { %v1294_v0 = vadd.f32 %v15841_v56, %v1205_v18  ;;  %v1296_v56 = vadd.f32 %v15860_v43, %v1207_v53  ;;  %v1210_v18 = vadd.f32 %v15865_v45, %v15772_v42  ;;  %v1212_v53 = vadd.f32 %v15878_v40, %v15772_v42  ;;  %v14857_v40 = vld [vmem:[%s21032_s5 + $0x20] sm:$0xff] }
 0x160   : > { %v15943_v50 = vpop.f32.mrf.mxu3  ;;  %3895 = vmatpush.bf16.msrb.mxu2 %v14857_v40 }
 0x161   : > { %v1551_v22 = vmax.f32 %v1294_v0, 0.0  ;;  %v1553_v34 = vmax.f32 %v1296_v56, 0.0  ;;  %v1299_v43 = vadd.f32 %v15871_v48, %v1210_v18  ;;  %v1301_v48 = vadd.f32 %v15882_v59, %v1212_v53 }
 0x162   : > { %v1393_v59 = vadd.f32 %v15945_v54, %v15954_v62 }
 0x164   : > { %v15968_v1 = vpop.f32.mrf.mxu1 }
 0x165   : > { %v15964_v8 = vpop.f32.mrf.mxu2  ;;  %v15978_v0 = vpop.f32.mrf.mxu0 }
 0x166   : > { %v1395_v40 = vadd.f32 %v15964_v8, %v15954_v62 }
 0x168   : > { %v15949_v60 = vpop.f32.mrf.mxu3 }
 0x16c   : > { %v15980_v38 = vpop.f32.mrf.mxu1 }
 0x16d   : > { %1510 = vmatmul.bf16.gmra.mxu3 %v15850_v30  ;;  %v15974_v29 = vpop.f32.mrf.mxu2 }
 0x16e   : > { %v1398_v8 = vadd.f32 %v15974_v29, %v15954_v62 }
 0x170   : > { %v1471_v9 = vpop.f32.mrf.mxu3 }
 0x171   : > { %v1472_v16 = vadd.f32 %v1471_v9, %v1383_v63 }
 0x173   : > { %v1552_v30 = vmax.f32 %v1472_v16, 0.0 }
 0x175   : > { %v1615_v20 = vpack.c.bf16 %v1552_v30, %v1551_v22  ;;  %v1555_v22 = vmax.f32 %v1299_v43, 0.0  ;;  %v15987_v30 = vpop.f32.mrf.mxu2  ;;  %v1557_v43 = vmax.f32 %v1301_v48, 0.0 }
 0x177   : > { %1647 = vst [vmem:[#allocation2] sm:$0xff] %v1615_v20 }
 0x178   : > { %v1473_v25 = vpop.f32.mrf.mxu3 }
 0x179   : > { %v1474_v4 = vadd.f32 %v1473_v25, %v1385_v24  ;;  %v15989_v24 = vpop.f32.mrf.mxu0 }
 0x17b   : > { %v1554_v63 = vmax.f32 %v1474_v4, 0.0 }
 0x17d   : > { %v1616_v9 = vpack.c.bf16 %v1554_v63, %v1553_v34  ;;  %1515 = vmatmul.bf16.gmra.mxu3 %v15875_v41  ;;  %v15991_v41 = vpop.f32.mrf.mxu1  ;;  %v1390_v34 = vadd.f32 %v1389_v49, %v15954_v62 }
 0x17e   : > { %v12087_v56 = vld [vmem:[#allocation2] sm:$0xf]  ;;  %v14757_v25 = vld [vmem:[#allocation2 + $0x4] sm:$0xf] }
 0x17f   : > { %1648 = vst [vmem:[#allocation2 + $0x8] sm:$0xff] %v1616_v9 }
 0x180   : > { %v1476_v47 = vpop.f32.mrf.mxu3 }
 0x181   : > { %v1477_v16 = vadd.f32 %v1476_v47, %v1388_v35  ;;  %v1215_v47 = vadd.f32 %v15896_v2, %v15772_v42 }
 0x183   : > { %v1556_v45 = vmax.f32 %v1477_v16, 0.0  ;;  %v1304_v53 = vadd.f32 %v15900_v7, %v1215_v47 }
 0x185   : > { %v1617_v20 = vpack.c.bf16 %v1556_v45, %v1555_v22  ;;  %v16003_v22 = vpop.f32.mrf.mxu2  ;;  %v16006_v45 = vpop.f32.mrf.mxu0  ;;  %v1559_v54 = vmax.f32 %v1304_v53, 0.0 }
 0x186   : > { %v14758_v32 = vld [vmem:[#allocation2 + $0x4] sm:$0xf0]  ;;  %v12089_v4 = vld [vmem:[#allocation2 + $0x8] sm:$0xf0]  ;;  %v16011_v2 = vpop.f32.mrf.mxu1 }
 0x187   : > { %1649 = vst [vmem:[#allocation2 + $0x10] sm:$0xff] %v1617_v20  ;;  %v12088_v18 = vor.u32 %v14758_v32, %v12087_v56  ;;  %v12092_v63 = vor.u32 %v14757_v25, %v12089_v4  ;;  %v14868_v20 = vld [vmem:[%s21032_s5 + $0x78] sm:$0xff] }
 0x188   : > { %v1478_v35 = vpop.f32.mrf.mxu3  ;;  %3981 = vmatpush.bf16.msra.mxu3 %v14868_v20 }
 0x189   : > { %v1479_v9 = vadd.f32 %v1478_v35, %v1390_v34  ;;  %2011 = vmatmul.bf16.vlgmr.msrb.gmra.mxu0 %v12088_v18  ;;  %2100 = vmatmul.bf16.vlgmr.msrb.gmra.mxu1 %v12092_v63 }
 0x18b   : > { %v1558_v16 = vmax.f32 %v1479_v9, 0.0 }
 0x18d   : > { %v1618_v49 = vpack.c.bf16 %v1558_v16, %v1557_v43  ;;  %1520 = vmatmul.bf16.gmra.mxu3 %v15904_v11  ;;  %v1217_v11 = vadd.f32 %v15909_v13, %v15772_v42  ;;  %v16018_v43 = vpop.f32.mrf.mxu2  ;;  %v16020_v13 = vpop.f32.mrf.mxu0 }
 0x18e   : > { %v12095_v48 = vld [vmem:[#allocation2 + $0x10] sm:$0xf]  ;;  %v14759_v34 = vld [vmem:[#allocation2 + $0x14] sm:$0xf] }
 0x18f   : > { %1650 = vst [vmem:[#allocation2 + $0x18] sm:$0xff] %v1618_v49  ;;  %v1306_v63 = vadd.f32 %v15911_v14, %v1217_v11  ;;  %v1220_v14 = vadd.f32 %v15922_v27, %v15772_v42  ;;  %v1222_v27 = vadd.f32 %v15939_v39, %v15772_v42 }
 0x190   : > { %v1481_v56 = vpop.f32.mrf.mxu3 }
 0x191   : > { %v1482_v32 = vadd.f32 %v1481_v56, %v1393_v59  ;;  %v16022_v59 = vpop.f32.mrf.mxu1  ;;  %v1561_v49 = vmax.f32 %v1306_v63, 0.0  ;;  %v1309_v56 = vadd.f32 %v15925_v31, %v1220_v14  ;;  %v1225_v14 = vadd.f32 %v15947_v55, %v15772_v42 }
 0x193   : > { %v1560_v25 = vmax.f32 %v1482_v32, 0.0  ;;  %v14856_v32 = vld [vmem:[%s21032_s5 + $0x18] sm:$0xff] }
 0x194   : > { %3896 = vmatpush.bf16.msrb.mxu2 %v14856_v32  ;;  %v1314_v32 = vadd.f32 %v15951_v61, %v1225_v14 }
 0x195   : > { %v1619_v4 = vpack.c.bf16 %v1560_v25, %v1559_v54  ;;  %v1407_v25 = vpop.f32.mrf.mxu2  ;;  %v16035_v29 = vpop.f32.mrf.mxu0 }
 0x196   : > { %v14760_v7 = vld [vmem:[#allocation2 + $0x14] sm:$0xf0]  ;;  %v12097_v18 = vld [vmem:[#allocation2 + $0x18] sm:$0xf0]  ;;  %v1408_v14 = vadd.f32 %v1407_v25, %v15954_v62 }
 0x197   : > { %1651 = vst [vmem:[#allocation2 + $0x20] sm:$0xff] %v1619_v4  ;;  %v12096_v35 = vor.u32 %v14760_v7, %v12095_v48  ;;  %v12100_v9 = vor.u32 %v14759_v34, %v12097_v18  ;;  %v1563_v4 = vmax.f32 %v1309_v56, 0.0 }
 0x198   : > { %v1483_v47 = vpop.f32.mrf.mxu3 }
 0x199   : > { %v1484_v16 = vadd.f32 %v1483_v47, %v1395_v40  ;;  %2016 = vmatmul.bf16.gmra.mxu0 %v12096_v35  ;;  %2105 = vmatmul.bf16.gmra.mxu1 %v12100_v9  ;;  %v16037_v7 = vpop.f32.mrf.mxu1  ;;  %v1311_v40 = vadd.f32 %v15941_v46, %v1222_v27  ;;  %v1400_v35 = vadd.f32 %v15987_v30, %v15954_v62 }
 0x19b   : > { %v1562_v53 = vmax.f32 %v1484_v16, 0.0 }
 0x19d   : > { %v1620_v20 = vpack.c.bf16 %v1562_v53, %v1561_v49  ;;  %1525 = vmatmul.bf16.gmra.mxu3 %v15920_v26  ;;  %v1565_v49 = vmax.f32 %v1311_v40, 0.0  ;;  %v16047_v30 = vpop.f32.mrf.mxu0 }
 0x19e   : > { %v12103_v31 = vld [vmem:[#allocation2 + $0x20] sm:$0xf]  ;;  %v14761_v18 = vld [vmem:[#allocation2 + $0x24] sm:$0xf] }
 0x19f   : > { %1652 = vst [vmem:[#allocation2 + $0x28] sm:$0xff] %v1620_v20  ;;  %v1403_v20 = vadd.f32 %v16003_v22, %v15954_v62  ;;  %v1227_v22 = vadd.f32 %v15966_v15, %v15772_v42  ;;  %v14855_v15 = vld [vmem:[%s21032_s5 + $0x10] sm:$0xff] }
 0x1a0   : > { %v1486_v54 = vpop.f32.mrf.mxu3  ;;  %3897 = vmatpush.bf16.msrb.mxu2 %v14855_v15 }
 0x1a1   : > { %v1487_v11 = vadd.f32 %v1486_v54, %v1398_v8  ;;  %v1409_v8 = vpop.f32.mrf.mxu2  ;;  %v16049_v56 = vpop.f32.mrf.mxu1  ;;  %v14867_v54 = vld [vmem:[%s21032_s5 + $0x70] sm:$0xff]  ;;  %v1316_v61 = vadd.f32 %v15968_v1, %v1227_v22 }
 0x1a2   : > { %3982 = vmatpush.bf16.msra.mxu3 %v14867_v54 }
 0x1a3   : > { %v1564_v48 = vmax.f32 %v1487_v11, 0.0  ;;  %v1569_v1 = vmax.f32 %v1316_v61, 0.0 }
 0x1a5   : > { %v1621_v26 = vpack.c.bf16 %v1564_v48, %v1563_v4  ;;  %v1567_v4 = vmax.f32 %v1314_v32, 0.0 }
 0x1a6   : > { %v14762_v34 = vld [vmem:[#allocation2 + $0x24] sm:$0xf0]  ;;  %v12105_v63 = vld [vmem:[#allocation2 + $0x28] sm:$0xf0] }
 0x1a7   : > { %1653 = vst [vmem:[#allocation2 + $0x30] sm:$0xff] %v1621_v26  ;;  %v12104_v9 = vor.u32 %v14762_v34, %v12103_v31  ;;  %v12108_v47 = vor.u32 %v14761_v18, %v12105_v63  ;;  %v1405_v63 = vadd.f32 %v16018_v43, %v15954_v62  ;;  %v1230_v43 = vadd.f32 %v15978_v0, %v15772_v42 }
 0x1a8   : > { %v1488_v16 = vpop.f32.mrf.mxu3  ;;  %v1232_v0 = vadd.f32 %v15989_v24, %v15772_v42  ;;  %v1235_v24 = vadd.f32 %v16006_v45, %v15772_v42  ;;  %v14866_v45 = vld [vmem:[%s21032_s5 + $0x68] sm:$0xff] }
 0x1a9   : > { %v1489_v39 = vadd.f32 %v1488_v16, %v1400_v35  ;;  %2021 = vmatmul.bf16.gmra.mxu0 %v12104_v9  ;;  %2110 = vmatmul.bf16.gmra.mxu1 %v12108_v47  ;;  %v1412_v26 = vpop.f32.mrf.mxu2  ;;  %v16060_v9 = vpop.f32.mrf.mxu0 }
 0x1aa   : > { %v16065_v16 = vpop.f32.mrf.mxu1  ;;  %3983 = vmatpush.bf16.msra.mxu3 %v14866_v45 }
 0x1ab   : > { %v1566_v53 = vmax.f32 %v1489_v39, 0.0 }
 0x1ad   : > { %v1622_v46 = vpack.c.bf16 %v1566_v53, %v1565_v49  ;;  %1530 = vmatmul.bf16.gmra.mxu3 %v15603_v10 }
 0x1ae   : > { %v12111_v48 = vld [vmem:[#allocation2 + $0x30] sm:$0xf]  ;;  %v14763_v34 = vld [vmem:[#allocation2 + $0x34] sm:$0xf] }
 0x1af   : > { %1654 = vst [vmem:[#allocation2 + $0x38] sm:$0xff] %v1622_v46 }
 0x1b0   : > { %v1491_v55 = vpop.f32.mrf.mxu3 }
 0x1b1   : > { %v1492_v11 = vadd.f32 %v1491_v55, %v1403_v20  ;;  %v1319_v20 = vadd.f32 %v15980_v38, %v1230_v43  ;;  %v1414_v46 = vpop.f32.mrf.mxu2  ;;  %v16072_v55 = vpop.f32.mrf.mxu0  ;;  %v1321_v38 = vadd.f32 %v15991_v41, %v1232_v0  ;;  %v1413_v41 = vadd.f32 %v1412_v26, %v15954_v62  ;;  %v14854_v43 = vld [vmem:[%s21032_s5 + $0x8] sm:$0xff] }
 0x1b2   : > { %3898 = vmatpush.bf16.msrb.mxu2 %v14854_v43  ;;  %v1237_v26 = vadd.f32 %v16020_v13, %v15772_v42 }
 0x1b3   : > { %v1568_v27 = vmax.f32 %v1492_v11, 0.0  ;;  %v16074_v11 = vpop.f32.mrf.mxu1 }
 0x1b5   : > { %v1623_v10 = vpack.c.bf16 %v1568_v27, %v1567_v4  ;;  %v1571_v4 = vmax.f32 %v1319_v20, 0.0 }
 0x1b6   : > { %v14764_v31 = vld [vmem:[#allocation2 + $0x34] sm:$0xf0]  ;;  %v12113_v18 = vld [vmem:[#allocation2 + $0x38] sm:$0xf0] }
 0x1b7   : > { %1655 = vst [vmem:[#allocation2 + $0x40] sm:$0xff] %v1623_v10  ;;  %v12112_v40 = vor.u32 %v14764_v31, %v12111_v48  ;;  %v12116_v35 = vor.u32 %v14763_v34, %v12113_v18  ;;  %v1410_v31 = vadd.f32 %v1409_v8, %v15954_v62 }
 0x1b8   : > { %v1493_v47 = vpop.f32.mrf.mxu3 }
 0x1b9   : > { %v1494_v39 = vadd.f32 %v1493_v47, %v1405_v63  ;;  %2026 = vmatmul.bf16.gmra.mxu0 %v12112_v40  ;;  %2115 = vmatmul.bf16.gmra.mxu1 %v12116_v35  ;;  %v1417_v40 = vpop.f32.mrf.mxu2  ;;  %v1573_v35 = vmax.f32 %v1321_v38, 0.0  ;;  %v16082_v47 = vpop.f32.mrf.mxu0 }
 0x1bb   : > { %v1570_v49 = vmax.f32 %v1494_v39, 0.0  ;;  %v16084_v39 = vpop.f32.mrf.mxu1 }
 0x1bd   : > { %v1624_v53 = vpack.c.bf16 %v1570_v49, %v1569_v1  ;;  %1535 = vmatmul.bf16.gmra.mxu3 %v15620_v19  ;;  %v1324_v1 = vadd.f32 %v16011_v2, %v1235_v24 }
 0x1be   : > { %v12119_v25 = vld [vmem:[#allocation2 + $0x40] sm:$0xf]  ;;  %v14765_v48 = vld [vmem:[#allocation2 + $0x44] sm:$0xf] }
 0x1bf   : > { %1656 = vst [vmem:[#allocation2 + $0x48] sm:$0xff] %v1624_v53  ;;  %v1575_v53 = vmax.f32 %v1324_v1, 0.0 }
 0x1c0   : > { %v1496_v32 = vpop.f32.mrf.mxu3 }
 0x1c1   : > { %v1497_v54 = vadd.f32 %v1496_v32, %v1408_v14  ;;  %v1419_v20 = vpop.f32.mrf.mxu2  ;;  %v16097_v32 = vpop.f32.mrf.mxu0 }
 0x1c3   : > { %v1572_v22 = vmax.f32 %v1497_v54, 0.0 }
 0x1c5   : > { %v1625_v27 = vpack.c.bf16 %v1572_v22, %v1571_v4  ;;  %v16099_v4 = vpop.f32.mrf.mxu1 }
 0x1c6   : > { %v14766_v10 = vld [vmem:[#allocation2 + $0x44] sm:$0xf0]  ;;  %v12121_v19 = vld [vmem:[#allocation2 + $0x48] sm:$0xf0] }
 0x1c7   : > { %1657 = vst [vmem:[#allocation2 + $0x50] sm:$0xff] %v1625_v27  ;;  %v12120_v34 = vor.u32 %v14766_v10, %v12119_v25  ;;  %v12124_v18 = vor.u32 %v14765_v48, %v12121_v19  ;;  %v1326_v25 = vadd.f32 %v16022_v59, %v1237_v26  ;;  %v1415_v10 = vadd.f32 %v1414_v46, %v15954_v62 }
 0x1c8   : > { %v1498_v61 = vpop.f32.mrf.mxu3  ;;  %v1418_v59 = vadd.f32 %v1417_v40, %v15954_v62  ;;  %v1242_v40 = vadd.f32 %v16047_v30, %v15772_v42 }
 0x1c9   : > { %v1499_v63 = vadd.f32 %v1498_v61, %v1410_v31  ;;  %2031 = vmatmul.bf16.gmra.mxu0 %v12120_v34  ;;  %2120 = vmatmul.bf16.gmra.mxu1 %v12124_v18  ;;  %v1577_v31 = vmax.f32 %v1326_v25, 0.0  ;;  %v1240_v34 = vadd.f32 %v16035_v29, %v15772_v42  ;;  %v14865_v61 = vld [vmem:[%s21032_s5 + $0x60] sm:$0xff]  ;;  %v1422_v46 = vpop.f32.mrf.mxu2  ;;  %v16111_v24 = vpop.f32.mrf.mxu0 }
 0x1ca   : > { %3984 = vmatpush.bf16.msra.mxu3 %v14865_v61 }
 0x1cb   : > { %v1574_v15 = vmax.f32 %v1499_v63, 0.0 }
 0x1cd   : > { %v1626_v8 = vpack.c.bf16 %v1574_v15, %v1573_v35  ;;  %1540 = vmatmul.bf16.gmra.mxu3 %v15637_v28  ;;  %v1329_v35 = vadd.f32 %v16037_v7, %v1240_v34  ;;  %v16113_v15 = vpop.f32.mrf.mxu1  ;;  %v14863_v7 = vld [vmem:[%s21032_s5 + $0x50] sm:$0xff] }
 0x1ce   : > { %v12127_v54 = vld [vmem:[#allocation2 + $0x50] sm:$0xf]  ;;  %v14767_v22 = vld [vmem:[#allocation2 + $0x54] sm:$0xf] }
 0x1cf   : > { %1658 = vst [vmem:[#allocation2 + $0x58] sm:$0xff] %v1626_v8 }
 0x1d0   : > { %v1501_v49 = vpop.f32.mrf.mxu3 }
 0x1d1   : > { %v1502_v14 = vadd.f32 %v1501_v49, %v1413_v41  ;;  %v14864_v41 = vld [vmem:[%s21032_s5 + $0x58] sm:$0xff]  ;;  %v1331_v49 = vadd.f32 %v16049_v56, %v1242_v40  ;;  %v14862_v56 = vld [vmem:[%s21032_s5 + $0x48] sm:$0xff] }
 0x1d2   : > { %3985 = vmatpush.bf16.msra.mxu3 %v14864_v41 }
 0x1d3   : > { %v1576_v28 = vmax.f32 %v1502_v14, 0.0  ;;  %v1581_v25 = vmax.f32 %v1331_v49, 0.0 }
 0x1d5   : > { %v1627_v2 = vpack.c.bf16 %v1576_v28, %v1575_v53  ;;  %v1420_v28 = vadd.f32 %v1419_v20, %v15954_v62  ;;  %v16131_v20 = vpop.f32.mrf.mxu0 }
 0x1d6   : > { %v14768_v0 = vld [vmem:[#allocation2 + $0x54] sm:$0xf0]  ;;  %v12129_v27 = vld [vmem:[#allocation2 + $0x58] sm:$0xf0]  ;;  %3986 = vmatpush.bf16.msra.mxu3 %v14863_v7 }
 0x1d7   : > { %1659 = vst [vmem:[#allocation2 + $0x60] sm:$0xff] %v1627_v2  ;;  %v12128_v48 = vor.u32 %v14768_v0, %v12127_v54  ;;  %v12132_v19 = vor.u32 %v14767_v22, %v12129_v27  ;;  %v1424_v54 = vpop.f32.mrf.mxu2  ;;  %v14853_v0 = vld [vmem:[%s21032_s5] sm:$0xff] }
 0x1d8   : > { %v1503_v38 = vpop.f32.mrf.mxu3  ;;  %3899 = vmatpush.bf16.msrb.mxu2 %v14853_v0 }
 0x1d9   : > { %v1504_v13 = vadd.f32 %v1503_v38, %v1415_v10  ;;  %2036 = vmatmul.bf16.gmra.mxu0 %v12128_v48  ;;  %2125 = vmatmul.bf16.gmra.mxu1 %v12132_v19  ;;  %v16133_v10 = vpop.f32.mrf.mxu1  ;;  %v2978_v19 = vld [vmem:[#allocation3 + $0x14] sm:$0xf]  ;;  %v21044_v38 = vmov 0  }
 0x1da   : > { %2405 = vst [vmem:[#allocation3] sm:$0xf] %v21044_v38  ;;  %3987 = vmatpush.bf16.msra.mxu3 %v14862_v56  ;;  %v2979_v61 = vsel %vm16137_vm2, 0, %v2978_v19 }
 0x1db   : > { %v1578_v18 = vmax.f32 %v1504_v13, 0.0  ;;  %v1245_v13 = vadd.f32 %v16060_v9, %v15772_v42  ;;  %2406 = vst [vmem:[#allocation3 + $0xc] sm:$0xf] %v21044_v38 }
 0x1dc   : > { %2980 = vst [vmem:[#allocation3 + $0x14] sm:$0xf] %v2979_v61 }
 0x1dd   : > { %v1628_v63 = vpack.c.bf16 %v1578_v18, %v1577_v31  ;;  %1545 = vmatmul.bf16.gmra.mxu3 %v15654_v37  ;;  %v1579_v37 = vmax.f32 %v1329_v35, 0.0  ;;  %v2410_v18 = vld [vmem:[#allocation3 + $0x18] sm:$0x1]  ;;  %v14861_v35 = vld [vmem:[%s21032_s5 + $0x40] sm:$0xff]  ;;  %2778 = vst [vmem:[#allocation3 + $0x1a4] sm:$0xf] %v21044_v38 }
 0x1de   : > { %v12135_v45 = vld [vmem:[#allocation2 + $0x60] sm:$0xf]  ;;  %v14769_v53 = vld [vmem:[#allocation2 + $0x64] sm:$0xf]  ;;  %v2411_v9 = vsel %vm16146_vm5, 0, %v2410_v18  ;;  %3988 = vmatpush.bf16.msra.mxu3 %v14861_v35 }
 0x1df   : > { %1660 = vst [vmem:[#allocation2 + $0x68] sm:$0xff] %v1628_v63  ;;  %v1427_v40 = vpop.f32.mrf.mxu2 }
 0x1e0   : > { %v1506_v29 = vpop.f32.mrf.mxu3  ;;  %2412 = vst [vmem:[#allocation3 + $0x18] sm:$0x1] %v2411_v9  ;;  %v1428_v61 = vadd.f32 %v1427_v40, %v15954_v62  ;;  %v16191_v40 = vld [vmem:[%s21031_s4] ss:$0 sm:$0xff] }
 0x1e1   : > { %v1507_v8 = vadd.f32 %v1506_v29, %v1418_v59  ;;  %v1423_v59 = vadd.f32 %v1422_v46, %v15954_v62  ;;  %v1334_v29 = vadd.f32 %v16065_v16, %v1245_v13  ;;  %v12279_v46 = vld [vmem:[#allocation3] sm:$0xf]  ;;  %2779 = vst [vmem:[#allocation3 + $0x4] sm:$0xf] %v21044_v38  ;;  %v16166_v16 = vpop.f32.mrf.mxu0 }
 0x1e2   : > { %2780 = vst [vmem:[#allocation3 + $0x10] sm:$0xf] %v21044_v38 }
 0x1e3   : > { %v1580_v1 = vmax.f32 %v1507_v8, 0.0  ;;  %2813 = vst [vmem:[#allocation3 + $0x19c] sm:$0xf] %v21044_v38 }
 0x1e4   : > { %2814 = vst [vmem:[#allocation3 + $0x1a8] sm:$0xf] %v21044_v38 }
 0x1e5   : > { %v1629_v43 = vpack.c.bf16 %v1580_v1, %v1579_v37  ;;  %v1583_v37 = vmax.f32 %v1334_v29, 0.0  ;;  %v1247_v1 = vadd.f32 %v16072_v55, %v15772_v42  ;;  %v1425_v55 = vadd.f32 %v1424_v54, %v15954_v62  ;;  %2975 = vst [vmem:[#allocation3 + $0x8] sm:$0xf] %v21044_v38 }
 0x1e6   : > { %v14770_v14 = vld [vmem:[#allocation2 + $0x64] sm:$0xf0]  ;;  %v12137_v26 = vld [vmem:[#allocation2 + $0x68] sm:$0xf0]  ;;  %3378 = vst [vmem:[#allocation3 + $0x1a0] sm:$0xf] %v21044_v38 }
 0x1e7   : > { %1661 = vst [vmem:[#allocation2 + $0x70] sm:$0xff] %v1629_v43  ;;  %v12136_v2 = vor.u32 %v14770_v14, %v12135_v45  ;;  %v12140_v30 = vor.u32 %v14769_v53, %v12137_v26  ;;  %v14806_v43 = vld [vmem:[#allocation3 + $0x8] sm:$0xf0]  ;;  %v16168_v45 = vpop.f32.mrf.mxu1  ;;  %v1429_v18 = vpop.f32.mrf.mxu2 }
 0x1e8   : > { %v1508_v22 = vpop.f32.mrf.mxu3  ;;  %v12280_v49 = vor.u32 %v14806_v43, %v12279_v46  ;;  %v14805_v56 = vld [vmem:[#allocation3 + $0x4] sm:$0xf]  ;;  %3379 = vst [vmem:[#allocation3 + $0x1ac] sm:$0xf] %v21044_v38 }
 0x1e9   : > { %v1509_v27 = vadd.f32 %v1508_v22, %v1420_v28  ;;  %2041 = vmatmul.bf16.gmra.mxu0 %v12136_v2  ;;  %2130 = vmatmul.bf16.gmra.mxu1 %v12140_v30  ;;  %v1336_v30 = vadd.f32 %v16074_v11, %v1247_v1  ;;  %v12281_v19 = vld [vmem:[#allocation3 + $0xc] sm:$0xf0]  ;;  %v1250_v11 = vadd.f32 %v16082_v47, %v15772_v42  ;;  %v16179_v9 = vpop.f32.mrf.mxu0 }
 0x1ea   : > { %3900 = vmatmul.bf16.vlgmr.msrb.gmra.mxu2 %v12280_v49  ;;  %v12284_v13 = vor.u32 %v14805_v56, %v12281_v19  ;;  %v1252_v47 = vadd.f32 %v16097_v32, %v15772_v42  ;;  %v1430_v32 = vadd.f32 %v1429_v18, %v15954_v62  ;;  %v14932_v56 = vld [vmem:[%s21032_s5 + $0xf8] sm:$0xff] }
 0x1eb   : > { %v1582_v31 = vmax.f32 %v1509_v27, 0.0  ;;  %v1339_v29 = vadd.f32 %v16084_v39, %v1250_v11  ;;  %4704 = vmatpush.bf16.msra.mxu1 %v14932_v56 }
 0x1ed   : > { %v1630_v63 = vpack.c.bf16 %v1582_v31, %v1581_v25  ;;  %v1585_v31 = vmax.f32 %v1336_v30, 0.0  ;;  %3989 = vmatmul.bf16.vlgmr.msra.gmra.mxu3 %v12284_v13 }
 0x1ee   : > { %v12143_v53 = vld [vmem:[#allocation2 + $0x70] sm:$0xf]  ;;  %v14771_v28 = vld [vmem:[#allocation2 + $0x74] sm:$0xf] }
 0x1ef   : > { %1662 = vst [vmem:[#allocation2 + $0x78] sm:$0xff] %v1630_v63  ;;  %v388_v63 = vlaneseq  ;;  %v16181_v35 = vpop.f32.mrf.mxu1  ;;  %v1432_v43 = vpop.f32.mrf.mxu2 }
 0x1f0   : > { %v1511_v41 = vpop.f32.mrf.mxu3 }
 0x1f1   : > { %v1512_v8 = vadd.f32 %v1511_v41, %v1423_v59  ;;  %v16184_v46 = vshrl.u32 %v388_v63, 7 }
 0x1f3   : > { %v1584_v7 = vmax.f32 %v1512_v8, 0.0  ;;  %21287 = vst [vmem:[#allocation6_spill] sm:$0xff] %v16184_v46  ;;  %v21043_v49 = vand.u32 15, %v16184_v46  ;;  %v16207_v19 = vadd.s32 8, %v16184_v46 }
 0x1f5   : > { %v1631_v14 = vpack.c.bf16 %v1584_v7, %v1583_v37  ;;  %v1587_v37 = vmax.f32 %v1339_v29, 0.0  ;;  %21288 = vst [vmem:[#allocation7_spill] sm:$0xff] %v16207_v19  ;;  %vm16211_vm6 = vcmp.lt.s32.totalorder %v21043_v49, 1  ;;  %v21041_v29 = vand.u32 15, %v16207_v19 }
 0x1f6   : > { %v14772_v26 = vld [vmem:[#allocation2 + $0x74] sm:$0xf0]  ;;  %v12145_v2 = vld [vmem:[#allocation2 + $0x78] sm:$0xf0]  ;;  %vm21058_vm9 = vmpackc.low %vm16211_vm6, %vm16211_vm6 }
 0x1f7   : > { %1663 = vst [vmem:[#allocation2 + $0x80] sm:$0xff] %v1631_v14  ;;  %v12144_v0 = vor.u32 %v14772_v26, %v12143_v53  ;;  %v12148_v22 = vor.u32 %v14771_v28, %v12145_v2  ;;  %v1341_v14 = vadd.f32 %v16099_v4, %v1252_v47  ;;  %v14876_v4 = vld [vmem:[%s21032_s5 + $0xb8] sm:$0xff]  ;;  %v16227_v47 = vadd.s32 16, %v16184_v46 }
 0x1f8   : > { %v1513_v27 = vpop.f32.mrf.mxu3  ;;  %4070 = vmatpush.bf16.msra.mxu0 %v14876_v4  ;;  %vm16242_vm13 = vcmp.ge.s32.totalorder %v21041_v29, 15  ;;  %v16254_v4 = vadd.s32 24, %v16184_v46 }
 0x1f9   : > { %v1514_v25 = vadd.f32 %v1513_v27, %v1425_v55  ;;  %2046 = vmatmul.bf16.gmra.mxu0 %v12144_v0  ;;  %2135 = vmatmul.bf16.gmra.mxu1 %v12148_v22  ;;  %v14940_v27 = vld [vmem:[%s21032_s5 + $0x138] sm:$0xff]  ;;  %v1589_v18 = vmax.f32 %v1341_v14, 0.0  ;;  %21295 = vst [vmem:[#allocation10_spill] sm:$0xff] %v16227_v47  ;;  %vm21054_vm7 = vmpackc.low %vm16242_vm13, %vm16242_vm13 }
 0x1fa   : > { %4793 = vmatpush.bf16.msra.mxu2 %v14940_v27  ;;  %v21042_v27 = vand.u32 15, %v16227_v47  ;;  %21301 = vst [vmem:[#allocation12_spill] sm:$0xff] %v16254_v4 }
 0x1fb   : > { %v1586_v54 = vmax.f32 %v1514_v25, 0.0 }
 0x1fc   : > { %vm16277_vm12 = vcmp.lt.s32.totalorder %v21042_v27, 1 }
 0x1fd   : > { %v1632_v59 = vpack.c.bf16 %v1586_v54, %v1585_v31  ;;  %v21289_v31 = vmov 0  ;;  %v1255_v54 = vadd.f32 %v16111_v24, %v15772_v42  ;;  %vm21051_vm1 = vmpackc.low %vm16277_vm12, %vm16277_vm12 }
 0x1fe   : > { %v12151_v39 = vld [vmem:[#allocation2 + $0x80] sm:$0xf]  ;;  %v14773_v2 = vld [vmem:[#allocation2 + $0x84] sm:$0xf]  ;;  %v21290_v31 = vsel %vm16211_vm6, 4294967295, %v21289_v31 }
 0x1ff   : > { %1664 = vst [vmem:[#allocation2 + $0x88] sm:$0xff] %v1632_v59  ;;  %v21292_v59 = vmov 0 }
 0x200   : > { %v1516_v41 = vpop.f32.mrf.mxu3  ;;  %21291 = vst [vmem:[#allocation8_spill] sm:$0xff] %v21290_v31  ;;  %v21293_v59 = vsel %vm16217_vm8, 4294967295, %v21292_v59 }
 0x201   : > { %v1517_v8 = vadd.f32 %v1516_v41, %v1428_v61  ;;  %21294 = vst [vmem:[#allocation9_spill] sm:$0xff] %v21293_v59  ;;  %v1433_v41 = vadd.f32 %v1432_v43, %v15954_v62 }
 0x203   : > { %v1588_v1 = vmax.f32 %v1517_v8, 0.0 }
 0x205   : > { %v1633_v7 = vpack.c.bf16 %v1588_v1, %v1587_v37  ;;  %v1344_v37 = vadd.f32 %v16113_v15, %v1255_v54  ;;  %v1257_v1 = vadd.f32 %v16131_v20, %v15772_v42 }
 0x206   : > { %v2012_v53 = vpop.f32.mrf.mxu0  ;;  %v2101_v26 = vpop.f32.mrf.mxu1  ;;  %v14774_v28 = vld [vmem:[#allocation2 + $0x84] sm:$0xf0]  ;;  %v12153_v30 = vld [vmem:[#allocation2 + $0x88] sm:$0xf0] }
 0x207   : > { %1665 = vst [vmem:[#allocation2 + $0x90] sm:$0xff] %v1633_v7  ;;  %v2013_v55 = vadd.f32 %v16191_v40, %v2012_v53  ;;  %v12152_v0 = vor.u32 %v14774_v28, %v12151_v39  ;;  %v12156_v22 = vor.u32 %v14773_v2, %v12153_v30  ;;  %v1434_v53 = vpop.f32.mrf.mxu2  ;;  %v21296_v2 = vmov 0 }
 0x208   : > { %v1518_v25 = vpop.f32.mrf.mxu3  ;;  %v21297_v2 = vsel %vm16242_vm13, 4294967295, %v21296_v2  ;;  %v1591_v54 = vmax.f32 %v1344_v37, 0.0 }
 0x209   : > { %v2102_v13 = vadd.f32 %v2101_v26, %v2013_v55  ;;  %v1519_v11 = vadd.f32 %v1518_v25, %v1430_v32  ;;  %2051 = vmatmul.bf16.gmra.mxu0 %v12152_v0  ;;  %2140 = vmatmul.bf16.gmra.mxu1 %v12156_v22  ;;  %21298 = vst [vmem:[#allocation11_spill] sm:$0xff] %v21297_v2  ;;  %v3338_v55 = vld [vmem:[#allocation3 + $0x14] sm:$0x8] }
 0x20a   : > { %v15011_v32 = vld [vmem:[%s21032_s5 + $0x1f0] sm:$0xff] }
 0x20b   : > { %v2181_v61 = vmax.f32 %v2102_v13, 0.0  ;;  %v1590_v63 = vmax.f32 %v1519_v11, 0.0 }
 0x20d   : > { %v2213_v24 = vpack.c.bf16 %v2181_v61, %v2181_v61  ;;  %v1634_v8 = vpack.c.bf16 %v1590_v63, %v1589_v18  ;;  %v1346_v18 = vadd.f32 %v16133_v10, %v1257_v1  ;;  %v2738_v63 = vld [vmem:[#allocation3 + $0x18] sm:$0xf]  ;;  %v15003_v61 = vld [vmem:[%s21032_s5 + $0x1b0] sm:$0xff] }
 0x20e   : > { %v2014_v7 = vpop.f32.mrf.mxu0  ;;  %v2103_v39 = vpop.f32.mrf.mxu1 }
 0x20f   : > { %v2373_v14 = vsel %vm16217_vm8, 0, %v2213_v24  ;;  %2781 = vst [vmem:[#allocation3 + $0x1c] sm:$0xf] %v2213_v24  ;;  %v2943_v43 = vsel %vm21058_vm9, 0, %v2213_v24  ;;  %v2015_v15 = vadd.f32 %v16191_v40, %v2014_v7  ;;  %v1593_v38 = vmax.f32 %v1346_v18, 0.0 }
 0x210   : > { %v2416_v26 = vshrl.u32 %v2373_v14, 16  ;;  %v2984_v20 = vshll.u32 %v2943_v43, 16  ;;  %v2987_v28 = vshrl.u32 %v2943_v43, 16  ;;  %1666 = vst [vmem:[#allocation2 + $0x98] sm:$0xff] %v1634_v8  ;;  %v1521_v30 = vpop.f32.mrf.mxu3  ;;  %v2419_v25 = vshll.u32 %v2373_v14, 16 }
 0x211   : > { %v2104_v0 = vadd.f32 %v2103_v39, %v2015_v15  ;;  %v1522_v22 = vadd.f32 %v1521_v30, %v1433_v41  ;;  %v1260_v8 = vadd.f32 %v16166_v16, %v15772_v42  ;;  %v21304_v15 = vmov 0 }
 0x212   : > { %v16256_v56 = vrot.slane %v2416_v26, 7  ;;  %v2986_v13 = vrot.slane %v2984_v20, 5  ;;  %v2989_v11 = vrot.slane %v2987_v28, 4  ;;  %v21305_v15 = vsel %vm16277_vm12, 4294967295, %v21304_v15  ;;  %v12159_v26 = vld [vmem:[#allocation2 + $0x90] sm:$0xf] }
 0x213   : > { %v2182_v41 = vmax.f32 %v2104_v0, 0.0  ;;  %v1592_v24 = vmax.f32 %v1522_v22, 0.0  ;;  %21306 = vst [vmem:[#allocation13_spill] sm:$0xff] %v21305_v15  ;;  %v16283_v28 = vadd.s32 32, %v16184_v46  ;;  %v1435_v30 = vadd.f32 %v1434_v53, %v15954_v62 }
 0x214   : > { %v2421_v7 = vor.u32 %v2419_v25, %v16256_v56  ;;  %v2990_v39 = vor.u32 %v2989_v11, %v2986_v13  ;;  %v3339_v37 = vsel %vm16248_vm14, %v2986_v13, %v3338_v55  ;;  %v21308_v53 = vmov 0 }
 0x215   : > { %3340 = vst [vmem:[#allocation3 + $0x14] sm:$0x8] %v3339_v37  ;;  %v2214_v10 = vpack.c.bf16 %v2182_v41, %v2182_v41  ;;  %v1635_v1 = vpack.c.bf16 %v1592_v24, %v1591_v54  ;;  %v21309_v53 = vsel %vm16296_vm11, 4294967295, %v21308_v53  ;;  %v21311_v20 = vmov 0 }
 0x216   : > { %v2739_v14 = vsel %vm16261_vm15, %v2421_v7, %v2738_v63  ;;  %v2017_v43 = vpop.f32.mrf.mxu0  ;;  %v2106_v16 = vpop.f32.mrf.mxu1  ;;  %21307 = vst [vmem:[#allocation14_spill] sm:$0xff] %v16283_v28  ;;  %v2991_v13 = vrot.slane %v2990_v39, 4  ;;  %v21312_v20 = vsel %vm16304_vm10, 4294967295, %v21311_v20 }
 0x217   : > { %2740 = vst [vmem:[#allocation3 + $0x18] sm:$0xf] %v2739_v14  ;;  %v2374_v55 = vsel %vm21054_vm7, 0, %v2214_v10  ;;  %v2944_v0 = vsel %vm16217_vm8, 0, %v2214_v10  ;;  %v2018_v22 = vadd.f32 %v16191_v40, %v2017_v43  ;;  %v14776_v25 = vld [vmem:[#allocation2 + $0x94] sm:$0xf0]  ;;  %v1437_v7 = vpop.f32.mrf.mxu2 }
 0x218   : > { %v2424_v11 = vshrl.u32 %v2374_v55, 16  ;;  %2782 = vst [vmem:[#allocation3 + $0x28] sm:$0xf] %v2214_v10  ;;  %v2993_v54 = vshll.u32 %v2944_v0, 16  ;;  %v2997_v63 = vshrl.u32 %v2944_v0, 16  ;;  %v1523_v41 = vpop.f32.mrf.mxu3  ;;  %v2427_v24 = vshll.u32 %v2374_v55, 16 }
 0x219   : > { %21310 = vst [vmem:[#allocation15_spill] sm:$0xff] %v21309_v53  ;;  %v2107_v37 = vadd.f32 %v2106_v16, %v2018_v22  ;;  %v1524_v14 = vadd.f32 %v1523_v41, %v1435_v30  ;;  %v12160_v29 = vor.u32 %v14776_v25, %v12159_v26  ;;  %v14775_v43 = vld [vmem:[#allocation2 + $0x94] sm:$0xf]  ;;  %v12161_v27 = vld [vmem:[#allocation2 + $0x98] sm:$0xf0]  ;;  %v2422_v16 = vrot.slane %v16256_v56, 4 }
 0x21a   : > { %1667 = vst [vmem:[#allocation2 + $0xa0] sm:$0xff] %v1635_v1  ;;  %v16300_v39 = vrot.slane %v2424_v11, 7  ;;  %v2995_v10 = vrot.slane %v2993_v54, 5  ;;  %v2999_v49 = vrot.slane %v2997_v63, 4  ;;  %v12164_v0 = vor.u32 %v14775_v43, %v12161_v27  ;;  %v14808_v41 = vld [vmem:[#allocation3 + $0x1c] sm:$0xf] }
 0x21b   : > { %21313 = vst [vmem:[#allocation16_spill] sm:$0xff] %v21312_v20  ;;  %v2183_v55 = vmax.f32 %v2107_v37, 0.0  ;;  %v1594_v1 = vmax.f32 %v1524_v14, 0.0  ;;  %2056 = vmatmul.bf16.gmra.mxu0 %v12160_v29  ;;  %v1438_v18 = vadd.f32 %v1437_v7, %v15954_v62  ;;  %v1349_v29 = vadd.f32 %v16168_v45, %v1260_v8 }
 0x21c   : > { %v2429_v26 = vor.u32 %v2427_v24, %v16300_v39  ;;  %v2996_v30 = vsel %vm16296_vm11, %v2991_v13, %v2995_v10  ;;  %2145 = vmatmul.bf16.gmra.mxu1 %v12164_v0  ;;  %v3000_v27 = vor.u32 %v2999_v49, %v2995_v10  ;;  %v21314_v13 = vand.u32 15, %v16254_v4 }
 0x21d   : > { %3341 = vst [vmem:[#allocation3 + $0x20] sm:$0xf] %v2996_v30  ;;  %v2215_v22 = vpack.c.bf16 %v2183_v55, %v2183_v55  ;;  %v1636_v25 = vpack.c.bf16 %v1594_v1, %v1593_v38  ;;  %v21315_v63 = vmov 0  ;;  %v1262_v24 = vadd.f32 %v16179_v9, %v15772_v42 }
 0x21e   : > { %v2430_v56 = vsel %vm16304_vm10, %v2422_v16, %v2429_v26  ;;  %v2019_v11 = vpop.f32.mrf.mxu0  ;;  %v2108_v54 = vpop.f32.mrf.mxu1  ;;  %vm16321_vm0 = vcmp.ge.s32.totalorder %v21314_v13, 15  ;;  %v16337_v42 = vadd.s32 40, %v16184_v46  ;;  %v3001_v9 = vrot.slane %v3000_v27, 4 }
 0x21f   : > { %v21316_v63 = vsel %vm16321_vm0, 4294967295, %v21315_v63  ;;  %2741 = vst [vmem:[#allocation3 + $0x24] sm:$0xf] %v2430_v56  ;;  %v2375_v38 = vsel %vm16217_vm8, 0, %v2215_v22  ;;  %v2945_v45 = vsel %vm21051_vm1, 0, %v2215_v22  ;;  %v2020_v8 = vadd.f32 %v16191_v40, %v2019_v11  ;;  %vm21050_vm3 = vmpackc.low %vm16321_vm0, %vm16321_vm0 }
 0x220   : > { %21317 = vst [vmem:[#allocation17_spill] sm:$0xff] %v21316_v63  ;;  %v12293_v7 = vld [vmem:[#allocation3 + $0x24] sm:$0xf0]  ;;  %v2433_v37 = vshrl.u32 %v2375_v38, 16  ;;  %v3003_v14 = vshll.u32 %v2945_v45, 16  ;;  %v3007_v43 = vshrl.u32 %v2945_v45, 16  ;;  %v1526_v10 = vpop.f32.mrf.mxu3  ;;  %v16342_v13 = vadd.f32 %v16181_v35, %v1262_v24 }
 0x221   : > { %2783 = vst [vmem:[#allocation3 + $0x34] sm:$0xf] %v2215_v22  ;;  %v2109_v0 = vadd.f32 %v2108_v54, %v2020_v8  ;;  %v1527_v55 = vadd.f32 %v1526_v10, %v1438_v18  ;;  %v12296_v1 = vor.u32 %v14808_v41, %v12293_v7  ;;  %v2436_v26 = vshll.u32 %v2375_v38, 16  ;;  %v1439_v22 = vpop.f32.mrf.mxu2 }
 0x222   : > { %21318 = vst [vmem:[#allocation18_spill] sm:$0xff] %v16337_v42  ;;  %v16339_v16 = vrot.slane %v2433_v37, 7  ;;  %v3005_v30 = vrot.slane %v3003_v14, 5  ;;  %v3009_v56 = vrot.slane %v3007_v43, 4  ;;  %v1595_v11 = vmax.f32 %v1349_v29, 0.0 }
 0x223   : > { %1668 = vst [vmem:[#allocation2 + $0xa8] sm:$0xff] %v1636_v25  ;;  %v2184_v45 = vmax.f32 %v2109_v0, 0.0  ;;  %v1596_v49 = vmax.f32 %v1527_v55, 0.0  ;;  %3994 = vmatmul.bf16.gmra.mxu3 %v12296_v1  ;;  %v2431_v4 = vrot.slane %v16300_v39, 4  ;;  %v21319_v54 = vand.u32 15, %v16283_v28  ;;  %v14997_v28 = vld [vmem:[%s21032_s5 + $0x180] sm:$0xff] }
 0x224   : > { %v2438_v27 = vor.u32 %v2436_v26, %v16339_v16  ;;  %v3006_v18 = vsel %vm16296_vm11, %v3001_v9, %v3005_v30  ;;  %v3010_v25 = vor.u32 %v3009_v56, %v3005_v30  ;;  %v21320_v41 = vmov 0  ;;  %v12291_v14 = vld [vmem:[#allocation3 + $0x18] sm:$0xf]  ;;  %v12167_v0 = vld [vmem:[#allocation2 + $0xa0] sm:$0xf] }
 0x225   : > { %3342 = vst [vmem:[#allocation3 + $0x2c] sm:$0xf] %v3006_v18  ;;  %v2216_v29 = vpack.c.bf16 %v2184_v45, %v2184_v45  ;;  %v1637_v35 = vpack.c.bf16 %v1596_v49, %v1595_v11  ;;  %vm16353_vm4 = vcmp.lt.s32.totalorder %v21319_v54, 1  ;;  %v21052_v39 = vand.u32 15, %v16337_v42  ;;  %v14939_v54 = vld [vmem:[%s21032_s5 + $0x130] sm:$0xff] }
 0x226   : > { %v21321_v41 = vsel %vm16353_vm4, 4294967295, %v21320_v41  ;;  %v2439_v24 = vsel %vm16304_vm10, %v2431_v4, %v2438_v27  ;;  %v3011_v38 = vrot.slane %v3010_v25, 4  ;;  %v1440_v8 = vadd.f32 %v1439_v22, %v15954_v62  ;;  %v2022_v7 = vpop.f32.mrf.mxu0  ;;  %v2111_v37 = vpop.f32.mrf.mxu1  ;;  %v14809_v43 = vld [vmem:[#allocation3 + $0x20] sm:$0xf0]  ;;  %4794 = vmatpush.bf16.msra.mxu2 %v14939_v54 }
 0x227   : > { %21322 = vst [vmem:[#allocation19_spill] sm:$0xff] %v21321_v41  ;;  %v16362_v49 = vadd.s32 48, %v16184_v46  ;;  %v2376_v10 = vsel %vm21050_vm3, 0, %v2216_v29  ;;  %v2946_v4 = vsel %vm16217_vm8, 0, %v2216_v29  ;;  %v2023_v9 = vadd.f32 %v16191_v40, %v2022_v7  ;;  %v14777_v22 = vld [vmem:[#allocation2 + $0xa4] sm:$0xf]  ;;  %vm21053_vm3 = vmpackc.low %vm16353_vm4, %vm16353_vm4 }
 0x228   : > { %2742 = vst [vmem:[#allocation3 + $0x30] sm:$0xf] %v2439_v24  ;;  %v12292_v55 = vor.u32 %v14809_v43, %v12291_v14  ;;  %v2442_v1 = vshrl.u32 %v2376_v10, 16  ;;  %v2445_v26 = vshll.u32 %v2376_v10, 16  ;;  %v3013_v30 = vshll.u32 %v2946_v4, 16  ;;  %v1528_v11 = vpop.f32.mrf.mxu3 }
 0x229   : > { %21323 = vst [vmem:[#allocation20_spill] sm:$0xff] %v16362_v49  ;;  %v3017_v56 = vshrl.u32 %v2946_v4, 16  ;;  %v2112_v45 = vadd.f32 %v2111_v37, %v2023_v9  ;;  %v1529_v27 = vadd.f32 %v1528_v11, %v1440_v8  ;;  %v1597_v8 = vmax.f32 %v16342_v13, 0.0  ;;  %v14811_v11 = vld [vmem:[#allocation3 + $0x34] sm:$0xf] }
 0x22a   : > { %2784 = vst [vmem:[#allocation3 + $0x40] sm:$0xf] %v2216_v29  ;;  %v14778_v18 = vld [vmem:[#allocation2 + $0xa4] sm:$0xf0]  ;;  %v12169_v25 = vld [vmem:[#allocation2 + $0xa8] sm:$0xf0]  ;;  %3905 = vmatmul.bf16.gmra.mxu2 %v12292_v55 }
 0x22b   : > { %1669 = vst [vmem:[#allocation2 + $0xb0] sm:$0xff] %v1637_v35  ;;  %v16375_v24 = vrot.slane %v2442_v1, 7  ;;  %v3015_v7 = vrot.slane %v3013_v30, 5  ;;  %v3019_v14 = vrot.slane %v3017_v56, 4  ;;  %v12168_v43 = vor.u32 %v14778_v18, %v12167_v0  ;;  %v14875_v29 = vld [vmem:[%s21032_s5 + $0xb0] sm:$0xff] }
 0x22c   : > { %v14931_v35 = vld [vmem:[%s21032_s5 + $0xf0] sm:$0xff]  ;;  %v2185_v37 = vmax.f32 %v2112_v45, 0.0  ;;  %v1598_v10 = vmax.f32 %v1529_v27, 0.0  ;;  %v12172_v4 = vor.u32 %v14777_v22, %v12169_v25  ;;  %v2440_v9 = vrot.slane %v16339_v16, 4  ;;  %4071 = vmatpush.bf16.msra.mxu0 %v14875_v29 }
 0x22d   : > { %v2447_v55 = vor.u32 %v2445_v26, %v16375_v24  ;;  %v3016_v0 = vsel %vm16296_vm11, %v3011_v38, %v3015_v7  ;;  %2061 = vmatmul.bf16.gmra.mxu0 %v12168_v43  ;;  %4705 = vmatpush.bf16.msra.mxu1 %v14931_v35  ;;  %v3020_v1 = vor.u32 %v3019_v14, %v3015_v7  ;;  %vm16395_vm1 = vcmp.ge.s32.totalorder %v21052_v39, 15 }
 0x22e   : > { %3343 = vst [vmem:[#allocation3 + $0x38] sm:$0xf] %v3016_v0  ;;  %v2217_v13 = vpack.c.bf16 %v2185_v37, %v2185_v37  ;;  %v1638_v30 = vpack.c.bf16 %v1598_v10, %v1597_v8  ;;  %2150 = vmatmul.bf16.gmra.mxu1 %v12172_v4  ;;  %v2024_v56 = vpop.f32.mrf.mxu0  ;;  %v2113_v26 = vpop.f32.mrf.mxu1  ;;  %v21324_v38 = vmov 0  ;;  %v21055_v22 = vand.u32 15, %v16362_v49 }
 0x22f   : > { %v2448_v16 = vsel %vm16304_vm10, %v2440_v9, %v2447_v55  ;;  %v21325_v38 = vsel %vm16395_vm1, 4294967295, %v21324_v38  ;;  %v1443_v45 = vadd.f32 %v15869_v51, %v15954_v62  ;;  %v2025_v25 = vadd.f32 %v16191_v40, %v2024_v56 }
 0x230   : > { %21326 = vst [vmem:[#allocation21_spill] sm:$0xff] %v21325_v38  ;;  %v2377_v27 = vsel %vm16217_vm8, 0, %v2217_v13  ;;  %v2947_v18 = vsel %vm21053_vm3, 0, %v2217_v13  ;;  %v1531_v29 = vpop.f32.mrf.mxu3  ;;  %v16411_v51 = vadd.s32 56, %v16184_v46  ;;  %v3021_v35 = vrot.slane %v3020_v1, 4  ;;  %vm21057_vm3 = vmpackc.low %vm16395_vm1, %vm16395_vm1 }
 0x231   : > { %2743 = vst [vmem:[#allocation3 + $0x3c] sm:$0xf] %v2448_v16  ;;  %v12305_v54 = vld [vmem:[#allocation3 + $0x3c] sm:$0xf0]  ;;  %v2451_v7 = vshrl.u32 %v2377_v27, 16  ;;  %v3023_v14 = vshll.u32 %v2947_v18, 16  ;;  %v2114_v8 = vadd.f32 %v2113_v26, %v2025_v25  ;;  %v1532_v37 = vadd.f32 %v1531_v29, %v1443_v45 }
 0x232   : > { %2785 = vst [vmem:[#allocation3 + $0x4c] sm:$0xf] %v2217_v13  ;;  %v3027_v43 = vshrl.u32 %v2947_v18, 16  ;;  %v12308_v10 = vor.u32 %v14811_v11, %v12305_v54  ;;  %v2454_v9 = vshll.u32 %v2377_v27, 16  ;;  %v1599_v16 = vmax.f32 %v15781_v52, 0.0 }
 0x233   : > { %21327 = vst [vmem:[#allocation22_spill] sm:$0xff] %v16411_v51  ;;  %v16413_v4 = vrot.slane %v2451_v7, 7  ;;  %v3025_v55 = vrot.slane %v3023_v14, 5  ;;  %v2186_v56 = vmax.f32 %v2114_v8, 0.0  ;;  %v1600_v13 = vmax.f32 %v1532_v37, 0.0 }
 0x234   : > { %1670 = vst [vmem:[#allocation2 + $0xb8] sm:$0xff] %v1638_v30  ;;  %v3029_v0 = vrot.slane %v3027_v43, 4  ;;  %3999 = vmatmul.bf16.gmra.mxu3 %v12308_v10  ;;  %v2449_v18 = vrot.slane %v16375_v24, 4  ;;  %vm16425_vm7 = vcmp.lt.s32.totalorder %v21055_v22, 1  ;;  %v21328_v52 = vmov 0 }
 0x235   : > { %v2456_v39 = vor.u32 %v2454_v9, %v16413_v4  ;;  %v3026_v1 = vsel %vm16296_vm11, %v3021_v35, %v3025_v55  ;;  %v2218_v26 = vpack.c.bf16 %v2186_v56, %v2186_v56  ;;  %v1639_v11 = vpack.c.bf16 %v1600_v13, %v1599_v16  ;;  %v12303_v54 = vld [vmem:[#allocation3 + $0x30] sm:$0xf]  ;;  %v14779_v42 = vld [vmem:[#allocation2 + $0xb4] sm:$0xf] }
 0x236   : > { %v3030_v30 = vor.u32 %v3029_v0, %v3025_v55  ;;  %3344 = vst [vmem:[#allocation3 + $0x44] sm:$0xf] %v3026_v1  ;;  %v21329_v52 = vsel %vm16425_vm7, 4294967295, %v21328_v52  ;;  %v1445_v24 = vadd.f32 %v15880_v57, %v15954_v62  ;;  %v2027_v27 = vpop.f32.mrf.mxu0  ;;  %v2116_v25 = vpop.f32.mrf.mxu1  ;;  %v16435_v43 = vadd.s32 64, %v16184_v46  ;;  %v12175_v35 = vld [vmem:[#allocation2 + $0xb0] sm:$0xf] }
 0x237   : > { %21330 = vst [vmem:[#allocation23_spill] sm:$0xff] %v21329_v52  ;;  %v2457_v45 = vsel %vm16304_vm10, %v2449_v18, %v2456_v39  ;;  %v2378_v29 = vsel %vm21057_vm3, 0, %v2218_v26  ;;  %v2948_v57 = vsel %vm16217_vm8, 0, %v2218_v26  ;;  %v2028_v39 = vadd.f32 %v16191_v40, %v2027_v27  ;;  %vm21059_vm3 = vmpackc.low %vm16425_vm7, %vm16425_vm7 }
 0x238   : > { %v14812_v7 = vld [vmem:[#allocation3 + $0x38] sm:$0xf0]  ;;  %21331 = vst [vmem:[#allocation24_spill] sm:$0xff] %v16435_v43  ;;  %v3031_v37 = vrot.slane %v3030_v30, 4  ;;  %v2460_v10 = vshrl.u32 %v2378_v29, 16  ;;  %v3033_v9 = vshll.u32 %v2948_v57, 16  ;;  %v1533_v0 = vpop.f32.mrf.mxu3 }
 0x239   : > { %2744 = vst [vmem:[#allocation3 + $0x48] sm:$0xf] %v2457_v45  ;;  %v12304_v8 = vor.u32 %v14812_v7, %v12303_v54  ;;  %v3037_v55 = vshrl.u32 %v2948_v57, 16  ;;  %v2463_v16 = vshll.u32 %v2378_v29, 16  ;;  %v2117_v56 = vadd.f32 %v2116_v25, %v2028_v39 }
 0x23a   : > { %2786 = vst [vmem:[#allocation3 + $0x58] sm:$0xf] %v2218_v26  ;;  %v1534_v13 = vadd.f32 %v1533_v0, %v1445_v24  ;;  %v16445_v45 = vrot.slane %v2460_v10, 7  ;;  %v3035_v22 = vrot.slane %v3033_v9, 5  ;;  %v1601_v30 = vmax.f32 %v15794_v58, 0.0 }
 0x23b   : > { %1671 = vst [vmem:[#allocation2 + $0xc0] sm:$0xff] %v1639_v11  ;;  %v14780_v18 = vld [vmem:[#allocation2 + $0xb4] sm:$0xf0]  ;;  %v12177_v1 = vld [vmem:[#allocation2 + $0xb8] sm:$0xf0]  ;;  %3910 = vmatmul.bf16.gmra.mxu2 %v12304_v8  ;;  %v3039_v14 = vrot.slane %v3037_v55, 4 }
 0x23c   : > { %v12176_v27 = vor.u32 %v14780_v18, %v12175_v35  ;;  %v2187_v54 = vmax.f32 %v2117_v56, 0.0  ;;  %v1602_v26 = vmax.f32 %v1534_v13, 0.0  ;;  %v12180_v7 = vor.u32 %v14779_v42, %v12177_v1 }
 0x23d   : > { %v2458_v57 = vrot.slane %v16413_v4, 4  ;;  %v2465_v11 = vor.u32 %v2463_v16, %v16445_v45  ;;  %v3036_v24 = vsel %vm16296_vm11, %v3031_v37, %v3035_v22  ;;  %v3040_v25 = vor.u32 %v3039_v14, %v3035_v22  ;;  %v14814_v37 = vld [vmem:[#allocation3 + $0x4c] sm:$0xf] }
 0x23e   : > { %2066 = vmatmul.bf16.gmra.mxu0 %v12176_v27  ;;  %3345 = vst [vmem:[#allocation3 + $0x50] sm:$0xf] %v3036_v24  ;;  %v2219_v29 = vpack.c.bf16 %v2187_v54, %v2187_v54  ;;  %v1640_v39 = vpack.c.bf16 %v1602_v26, %v1601_v30  ;;  %2155 = vmatmul.bf16.gmra.mxu1 %v12180_v7  ;;  %v2029_v42 = vpop.f32.mrf.mxu0  ;;  %v2118_v4 = vpop.f32.mrf.mxu1  ;;  %v21332_v35 = vand.u32 15, %v16411_v51  ;;  %v21333_v8 = vmov 0 }
 0x23f   : > { %v2466_v58 = vsel %vm16304_vm10, %v2458_v57, %v2465_v11  ;;  %v21070_v10 = vand.u32 15, %v16435_v43  ;;  %v1448_v22 = vadd.f32 %v15898_v5, %v15954_v62  ;;  %v2030_v55 = vadd.f32 %v16191_v40, %v2029_v42 }
 0x240   : > { %vm16459_vm9 = vcmp.ge.s32.totalorder %v21332_v35, 15  ;;  %2745 = vst [vmem:[#allocation3 + $0x54] sm:$0xf] %v2466_v58  ;;  %v2379_v14 = vsel %vm16217_vm8, 0, %v2219_v29  ;;  %v2949_v9 = vsel %vm21059_vm3, 0, %v2219_v29  ;;  %v1536_v18 = vpop.f32.mrf.mxu3  ;;  %v16475_v5 = vadd.s32 72, %v16184_v46 }
 0x241   : > { %v21334_v8 = vsel %vm16459_vm9, 4294967295, %v21333_v8  ;;  %v12317_v0 = vld [vmem:[#allocation3 + $0x54] sm:$0xf0]  ;;  %v2469_v16 = vshrl.u32 %v2379_v14, 16  ;;  %2787 = vst [vmem:[#allocation3 + $0x64] sm:$0xf] %v2219_v29  ;;  %v2119_v27 = vadd.f32 %v2118_v4, %v2030_v55  ;;  %v1537_v30 = vadd.f32 %v1536_v18, %v1448_v22  ;;  %vm21062_vm3 = vmpackc.low %vm16459_vm9, %vm16459_vm9 }
 0x242   : > { %21335 = vst [vmem:[#allocation25_spill] sm:$0xff] %v21334_v8  ;;  %v3043_v56 = vshll.u32 %v2949_v9, 16  ;;  %v3047_v13 = vshrl.u32 %v2949_v9, 16  ;;  %v3041_v1 = vrot.slane %v3040_v25, 4  ;;  %v12320_v54 = vor.u32 %v14814_v37, %v12317_v0 }
 0x243   : > { %21336 = vst [vmem:[#allocation26_spill] sm:$0xff] %v16475_v5  ;;  %v16477_v26 = vrot.slane %v2469_v16, 7  ;;  %v2472_v7 = vshll.u32 %v2379_v14, 16  ;;  %v1603_v24 = vmax.f32 %v15803_v3, 0.0  ;;  %v2188_v58 = vmax.f32 %v2119_v27, 0.0 }
 0x244   : > { %1672 = vst [vmem:[#allocation2 + $0xc8] sm:$0xff] %v1640_v39  ;;  %v3045_v57 = vrot.slane %v3043_v56, 5  ;;  %v3049_v11 = vrot.slane %v3047_v13, 4  ;;  %v1604_v29 = vmax.f32 %v1537_v30, 0.0  ;;  %4004 = vmatmul.bf16.gmra.mxu3 %v12320_v54  ;;  %v2467_v42 = vrot.slane %v16445_v45, 4 }
 0x245   : > { %v2474_v35 = vor.u32 %v2472_v7, %v16477_v26  ;;  %v2220_v4 = vpack.c.bf16 %v2188_v58, %v2188_v58  ;;  %vm16489_vm7 = vcmp.lt.s32.totalorder %v21070_v10, 1  ;;  %v21337_v3 = vmov 0  ;;  %v12315_v16 = vld [vmem:[#allocation3 + $0x48] sm:$0xf]  ;;  %v12183_v27 = vld [vmem:[#allocation2 + $0xc0] sm:$0xf] }
 0x246   : > { %v3046_v25 = vsel %vm16296_vm11, %v3041_v1, %v3045_v57  ;;  %v3050_v39 = vor.u32 %v3049_v11, %v3045_v57  ;;  %v1641_v37 = vpack.c.bf16 %v1604_v29, %v1603_v24  ;;  %v21338_v3 = vsel %vm16489_vm7, 4294967295, %v21337_v3  ;;  %v2032_v55 = vpop.f32.mrf.mxu0  ;;  %v2121_v0 = vpop.f32.mrf.mxu1  ;;  %v14781_v58 = vld [vmem:[#allocation2 + $0xc4] sm:$0xf] }
 0x247   : > { %3346 = vst [vmem:[#allocation3 + $0x5c] sm:$0xf] %v3046_v25  ;;  %v21065_v45 = vand.u32 15, %v16475_v5  ;;  %v1450_v22 = vadd.f32 %v15907_v12, %v15954_v62  ;;  %v2475_v14 = vsel %vm16304_vm10, %v2467_v42, %v2474_v35  ;;  %v14815_v56 = vld [vmem:[#allocation3 + $0x50] sm:$0xf0]  ;;  %v16499_v13 = vadd.s32 80, %v16184_v46 }
 0x248   : > { %21339 = vst [vmem:[#allocation27_spill] sm:$0xff] %v21338_v3  ;;  %v3051_v9 = vrot.slane %v3050_v39, 4  ;;  %v2380_v18 = vsel %vm21062_vm3, 0, %v2220_v4  ;;  %v2950_v12 = vsel %vm16217_vm8, 0, %v2220_v4  ;;  %v2033_v1 = vadd.f32 %v16191_v40, %v2032_v55  ;;  %v1538_v24 = vpop.f32.mrf.mxu3  ;;  %v14938_v39 = vld [vmem:[%s21032_s5 + $0x128] sm:$0xff]  ;;  %vm21066_vm3 = vmpackc.low %vm16489_vm7, %vm16489_vm7 }
 0x249   : > { %21340 = vst [vmem:[#allocation28_spill] sm:$0xff] %v16499_v13  ;;  %v12316_v30 = vor.u32 %v14815_v56, %v12315_v16  ;;  %v2478_v54 = vshrl.u32 %v2380_v18, 16  ;;  %v2481_v7 = vshll.u32 %v2380_v18, 16  ;;  %v3053_v57 = vshll.u32 %v2950_v12, 16  ;;  %4795 = vmatpush.bf16.msra.mxu2 %v14938_v39 }
 0x24a   : > { %2746 = vst [vmem:[#allocation3 + $0x60] sm:$0xf] %v2475_v14  ;;  %v3057_v11 = vshrl.u32 %v2950_v12, 16  ;;  %v2122_v29 = vadd.f32 %v2121_v0, %v2033_v1  ;;  %v1539_v42 = vadd.f32 %v1538_v24, %v1450_v22  ;;  %v1605_v22 = vmax.f32 %v15810_v6, 0.0  ;;  %v14817_v24 = vld [vmem:[#allocation3 + $0x64] sm:$0xf] }
 0x24b   : > { %2788 = vst [vmem:[#allocation3 + $0x70] sm:$0xf] %v2220_v4  ;;  %v14782_v35 = vld [vmem:[#allocation2 + $0xc4] sm:$0xf0]  ;;  %v12185_v25 = vld [vmem:[#allocation2 + $0xc8] sm:$0xf0]  ;;  %3915 = vmatmul.bf16.gmra.mxu2 %v12316_v30 }
 0x24c   : > { %1673 = vst [vmem:[#allocation2 + $0xd0] sm:$0xff] %v1641_v37  ;;  %v16512_v14 = vrot.slane %v2478_v54, 7  ;;  %v3055_v55 = vrot.slane %v3053_v57, 5  ;;  %v3059_v16 = vrot.slane %v3057_v11, 4  ;;  %v12184_v56 = vor.u32 %v14782_v35, %v12183_v27  ;;  %v14874_v4 = vld [vmem:[%s21032_s5 + $0xa8] sm:$0xff] }
 0x24d   : > { %v14930_v37 = vld [vmem:[%s21032_s5 + $0xe8] sm:$0xff]  ;;  %v2189_v0 = vmax.f32 %v2122_v29, 0.0  ;;  %v1606_v18 = vmax.f32 %v1539_v42, 0.0  ;;  %v12188_v12 = vor.u32 %v14781_v58, %v12185_v25  ;;  %v2476_v1 = vrot.slane %v16477_v26, 4  ;;  %4072 = vmatpush.bf16.msra.mxu0 %v14874_v4 }
 0x24e   : > { %v2483_v30 = vor.u32 %v2481_v7, %v16512_v14  ;;  %v3056_v27 = vsel %vm16296_vm11, %v3051_v9, %v3055_v55  ;;  %2071 = vmatmul.bf16.gmra.mxu0 %v12184_v56  ;;  %4706 = vmatpush.bf16.msra.mxu1 %v14930_v37  ;;  %v3060_v54 = vor.u32 %v3059_v16, %v3055_v55  ;;  %v2034_v11 = vpop.f32.mrf.mxu0  ;;  %v2123_v7 = vpop.f32.mrf.mxu1  ;;  %vm16532_vm9 = vcmp.ge.s32.totalorder %v21065_v45, 15 }
 0x24f   : > { %3347 = vst [vmem:[#allocation3 + $0x68] sm:$0xf] %v3056_v27  ;;  %v2221_v6 = vpack.c.bf16 %v2189_v0, %v2189_v0  ;;  %v1642_v57 = vpack.c.bf16 %v1606_v18, %v1605_v22  ;;  %2160 = vmatmul.bf16.gmra.mxu1 %v12188_v12  ;;  %v21341_v9 = vmov 0  ;;  %v21069_v58 = vand.u32 15, %v16499_v13 }
 0x250   : > { %v2484_v26 = vsel %vm16304_vm10, %v2476_v1, %v2483_v30  ;;  %v21342_v9 = vsel %vm16532_vm9, 4294967295, %v21341_v9  ;;  %v1453_v29 = vadd.f32 %v15916_v23, %v15954_v62  ;;  %v2035_v25 = vadd.f32 %v16191_v40, %v2034_v11  ;;  %v1541_v4 = vpop.f32.mrf.mxu3 }
 0x251   : > { %21343 = vst [vmem:[#allocation29_spill] sm:$0xff] %v21342_v9  ;;  %v2381_v42 = vsel %vm16217_vm8, 0, %v2221_v6  ;;  %v2951_v35 = vsel %vm21066_vm3, 0, %v2221_v6  ;;  %v16548_v23 = vadd.s32 88, %v16184_v46  ;;  %v3061_v37 = vrot.slane %v3060_v54, 4  ;;  %vm21071_vm3 = vmpackc.low %vm16532_vm9, %vm16532_vm9 }
 0x252   : > { %2747 = vst [vmem:[#allocation3 + $0x6c] sm:$0xf] %v2484_v26  ;;  %v12329_v39 = vld [vmem:[#allocation3 + $0x6c] sm:$0xf0]  ;;  %v2487_v55 = vshrl.u32 %v2381_v42, 16  ;;  %v3063_v16 = vshll.u32 %v2951_v35, 16  ;;  %v2124_v22 = vadd.f32 %v2123_v7, %v2035_v25  ;;  %v1542_v0 = vadd.f32 %v1541_v4, %v1453_v29 }
 0x253   : > { %2789 = vst [vmem:[#allocation3 + $0x7c] sm:$0xf] %v2221_v6  ;;  %v3067_v56 = vshrl.u32 %v2951_v35, 16  ;;  %v12332_v18 = vor.u32 %v14817_v24, %v12329_v39  ;;  %v2490_v1 = vshll.u32 %v2381_v42, 16  ;;  %v1607_v26 = vmax.f32 %v15825_v17, 0.0 }
 0x254   : > { %21344 = vst [vmem:[#allocation30_spill] sm:$0xff] %v16548_v23  ;;  %v16550_v12 = vrot.slane %v2487_v55, 7  ;;  %v3065_v30 = vrot.slane %v3063_v16, 5  ;;  %v2190_v11 = vmax.f32 %v2124_v22, 0.0  ;;  %v1608_v6 = vmax.f32 %v1542_v0, 0.0 }
 0x255   : > { %1674 = vst [vmem:[#allocation2 + $0xd8] sm:$0xff] %v1642_v57  ;;  %v3069_v27 = vrot.slane %v3067_v56, 4  ;;  %4009 = vmatmul.bf16.gmra.mxu3 %v12332_v18  ;;  %v2485_v35 = vrot.slane %v16512_v14, 4  ;;  %v1455_v17 = vadd.f32 %v15936_v36, %v15954_v62  ;;  %vm16566_vm7 = vcmp.lt.s32.totalorder %v21069_v58, 1  ;;  %v12327_v39 = vld [vmem:[#allocation3 + $0x60] sm:$0xf] }
 0x256   : > { %v2492_v45 = vor.u32 %v2490_v1, %v16550_v12  ;;  %v3066_v54 = vsel %vm16296_vm11, %v3061_v37, %v3065_v30  ;;  %v2222_v7 = vpack.c.bf16 %v2190_v11, %v2190_v11  ;;  %v1643_v24 = vpack.c.bf16 %v1608_v6, %v1607_v26  ;;  %v2037_v14 = vpop.f32.mrf.mxu0  ;;  %v2126_v42 = vpop.f32.mrf.mxu1  ;;  %v12191_v4 = vld [vmem:[#allocation2 + $0xd0] sm:$0xf]  ;;  %vm21352_vm9 = vmpackc.low %vm16566_vm7, %vm16566_vm7 }
 0x257   : > { %v3070_v57 = vor.u32 %v3069_v27, %v3065_v30  ;;  %3348 = vst [vmem:[#allocation3 + $0x74] sm:$0xf] %v3066_v54  ;;  %v21345_v25 = vmov 0  ;;  %v21083_v16 = vand.u32 15, %v16548_v23  ;;  %v2038_v56 = vadd.f32 %v16191_v40, %v2037_v14  ;;  %v14783_v27 = vld [vmem:[#allocation2 + $0xd4] sm:$0xf] }
 0x258   : > { %v2493_v29 = vsel %vm16304_vm10, %v2485_v35, %v2492_v45  ;;  %v21346_v25 = vsel %vm16566_vm7, 4294967295, %v21345_v25  ;;  %v2382_v36 = vsel %vm21071_vm3, 0, %v2222_v7  ;;  %v2952_v45 = vsel %vm16217_vm8, 0, %v2222_v7  ;;  %2790 = vst [vmem:[#allocation3 + $0x88] sm:$0xf] %v2222_v7  ;;  %v1543_v30 = vpop.f32.mrf.mxu3  ;;  %v14929_v7 = vld [vmem:[%s21032_s5 + $0xe0] sm:$0xff] }
 0x259   : > { %21347 = vst [vmem:[#allocation31_spill] sm:$0xff] %v21346_v25  ;;  %v14818_v55 = vld [vmem:[#allocation3 + $0x68] sm:$0xf0]  ;;  %v3071_v22 = vrot.slane %v3070_v57, 4  ;;  %v2496_v0 = vshrl.u32 %v2382_v36, 16  ;;  %v3073_v18 = vshll.u32 %v2952_v45, 16  ;;  %v2127_v11 = vadd.f32 %v2126_v42, %v2038_v56  ;;  %4707 = vmatpush.bf16.msra.mxu1 %v14929_v7 }
 0x25a   : > { %2748 = vst [vmem:[#allocation3 + $0x78] sm:$0xf] %v2493_v29  ;;  %v12328_v37 = vor.u32 %v14818_v55, %v12327_v39  ;;  %v3077_v1 = vshrl.u32 %v2952_v45, 16  ;;  %v2499_v26 = vshll.u32 %v2382_v36, 16  ;;  %v1544_v6 = vadd.f32 %v1543_v30, %v1455_v17  ;;  %v14873_v57 = vld [vmem:[%s21032_s5 + $0xa0] sm:$0xff] }
 0x25b   : > { %1675 = vst [vmem:[#allocation2 + $0xe0] sm:$0xff] %v1643_v24  ;;  %v16579_v29 = vrot.slane %v2496_v0, 7  ;;  %v3075_v58 = vrot.slane %v3073_v18, 5  ;;  %v1609_v24 = vmax.f32 %v15832_v21, 0.0  ;;  %v2191_v42 = vmax.f32 %v2127_v11, 0.0  ;;  %v14928_v21 = vld [vmem:[%s21032_s5 + $0xd8] sm:$0xff]  ;;  %4073 = vmatpush.bf16.msra.mxu0 %v14873_v57 }
 0x25c   : > { %v14784_v35 = vld [vmem:[#allocation2 + $0xd4] sm:$0xf0]  ;;  %v12193_v54 = vld [vmem:[#allocation2 + $0xd8] sm:$0xf0]  ;;  %3920 = vmatmul.bf16.gmra.mxu2 %v12328_v37  ;;  %v3079_v14 = vrot.slane %v3077_v1, 4  ;;  %v1610_v17 = vmax.f32 %v1544_v6, 0.0  ;;  %v1458_v30 = vadd.f32 %v15943_v50, %v15954_v62 }
 0x25d   : > { %v12192_v10 = vor.u32 %v14784_v35, %v12191_v4  ;;  %v12196_v39 = vor.u32 %v14783_v27, %v12193_v54  ;;  %v2494_v55 = vrot.slane %v16550_v12, 4  ;;  %v2501_v36 = vor.u32 %v2499_v26, %v16579_v29  ;;  %4708 = vmatpush.bf16.msra.mxu1 %v14928_v21 }
 0x25e   : > { %v3076_v45 = vsel %vm16296_vm11, %v3071_v22, %v3075_v58  ;;  %v16596_v56 = vadd.s32 96, %v16184_v46  ;;  %v3080_v4 = vor.u32 %v3079_v14, %v3075_v58  ;;  %v2223_v12 = vpack.c.bf16 %v2191_v42, %v2191_v42  ;;  %v14872_v22 = vld [vmem:[%s21032_s5 + $0x98] sm:$0xff]  ;;  %v2039_v0 = vpop.f32.mrf.mxu0  ;;  %v2128_v18 = vpop.f32.mrf.mxu1 }
 0x25f   : > { %2076 = vmatmul.bf16.gmra.mxu0 %v12192_v10  ;;  %3349 = vst [vmem:[#allocation3 + $0x80] sm:$0xf] %v3076_v45  ;;  %v1644_v37 = vpack.c.bf16 %v1610_v17, %v1609_v24  ;;  %2165 = vmatmul.bf16.gmra.mxu1 %v12196_v39  ;;  %v2502_v10 = vsel %vm16304_vm10, %v2494_v55, %v2501_v36  ;;  %vm16608_vm3 = vcmp.ge.s32.totalorder %v21083_v16, 15  ;;  %v21349_v1 = vmov 0  ;;  %v14820_v58 = vld [vmem:[#allocation3 + $0x7c] sm:$0xf] }
 0x260   : > { %21348 = vst [vmem:[#allocation32_spill] sm:$0xff] %v16596_v56  ;;  %v21350_v1 = vsel %vm16608_vm3, 4294967295, %v21349_v1  ;;  %v2383_v27 = vsel %vm16217_vm8, 0, %v2223_v12  ;;  %v2953_v26 = vsel %vm21352_vm9, 0, %v2223_v12  ;;  %v2040_v11 = vadd.f32 %v16191_v40, %v2039_v0  ;;  %v12341_v6 = vld [vmem:[#allocation3 + $0x84] sm:$0xf0]  ;;  %v1546_v57 = vpop.f32.mrf.mxu3  ;;  %4074 = vmatpush.bf16.msra.mxu0 %v14872_v22  ;;  %vm21076_vm9 = vmpackc.low %vm16608_vm3, %vm16608_vm3 }
 0x261   : > { %21351 = vst [vmem:[#allocation33_spill] sm:$0xff] %v21350_v1  ;;  %v2505_v35 = vshrl.u32 %v2383_v27, 16  ;;  %v3083_v54 = vshll.u32 %v2953_v26, 16  ;;  %v3087_v14 = vshrl.u32 %v2953_v26, 16  ;;  %v21085_v50 = vand.u32 15, %v16596_v56  ;;  %v14871_v45 = vld [vmem:[%s21032_s5 + $0x90] sm:$0xff] }
 0x262   : > { %2749 = vst [vmem:[#allocation3 + $0x84] sm:$0xf] %v2502_v10  ;;  %v3081_v7 = vrot.slane %v3080_v4, 4  ;;  %v2129_v24 = vadd.f32 %v2128_v18, %v2040_v11  ;;  %v1547_v42 = vadd.f32 %v1546_v57, %v1458_v30  ;;  %v12344_v17 = vor.u32 %v14820_v58, %v12341_v6  ;;  %v14870_v26 = vld [vmem:[%s21032_s5 + $0x88] sm:$0xff] }
 0x263   : > { %2791 = vst [vmem:[#allocation3 + $0x94] sm:$0xf] %v2223_v12  ;;  %v16623_v39 = vrot.slane %v2505_v35, 7  ;;  %v2508_v55 = vshll.u32 %v2383_v27, 16  ;;  %v3085_v36 = vrot.slane %v3083_v54, 5  ;;  %v3089_v40 = vrot.slane %v3087_v14, 4 }
 0x264   : > { %1676 = vst [vmem:[#allocation2 + $0xe8] sm:$0xff] %v1644_v37  ;;  %v14927_v12 = vld [vmem:[%s21032_s5 + $0xd0] sm:$0xff]  ;;  %v1611_v21 = vmax.f32 %v15845_v33, 0.0  ;;  %v2192_v4 = vmax.f32 %v2129_v24, 0.0  ;;  %v1612_v37 = vmax.f32 %v1547_v42, 0.0  ;;  %v2503_v22 = vrot.slane %v16579_v29, 4  ;;  %4075 = vmatpush.bf16.msra.mxu0 %v14871_v45 }
 0x265   : > { %4014 = vmatmul.bf16.gmra.mxu3 %v12344_v17  ;;  %v2510_v10 = vor.u32 %v2508_v55, %v16623_v39  ;;  %v3086_v0 = vsel %vm16296_vm11, %v3081_v7, %v3085_v36  ;;  %v3090_v18 = vor.u32 %v3089_v40, %v3085_v36  ;;  %4709 = vmatpush.bf16.msra.mxu1 %v14927_v12  ;;  %v14926_v33 = vld [vmem:[%s21032_s5 + $0xc8] sm:$0xff]  ;;  %v1613_v58 = vmax.f32 %v15862_v44, 0.0  ;;  %v12339_v14 = vld [vmem:[#allocation3 + $0x78] sm:$0xf]  ;;  %v12199_v17 = vld [vmem:[#allocation2 + $0xe0] sm:$0xf] }
 0x266   : > { %3350 = vst [vmem:[#allocation3 + $0x8c] sm:$0xf] %v3086_v0  ;;  %v2224_v30 = vpack.c.bf16 %v2192_v4, %v2192_v4  ;;  %v1645_v29 = vpack.c.bf16 %v1612_v37, %v1611_v21  ;;  %vm16645_vm7 = vcmp.lt.s32.totalorder %v21085_v50, 1  ;;  %v21353_v27 = vmov 0  ;;  %v2042_v35 = vpop.f32.mrf.mxu0  ;;  %v2131_v54 = vpop.f32.mrf.mxu1  ;;  %v14785_v4 = vld [vmem:[#allocation2 + $0xe4] sm:$0xf] }
 0x267   : > { %v21354_v27 = vsel %vm16645_vm7, 4294967295, %v21353_v27  ;;  %v1460_v11 = vadd.f32 %v15949_v60, %v15954_v62  ;;  %v2511_v44 = vsel %vm16304_vm10, %v2503_v22, %v2510_v10  ;;  %v3091_v6 = vrot.slane %v3090_v18, 4  ;;  %v16669_v62 = vld [vmem:[%s21031_s4] ss:$0 sm:$0xff] }
 0x268   : > { %21355 = vst [vmem:[#allocation34_spill] sm:$0xff] %v21354_v27  ;;  %v16657_v7 = vadd.s32 104, %v16184_v46  ;;  %v2384_v24 = vsel %vm21076_vm9, 0, %v2224_v30  ;;  %v2954_v60 = vsel %vm16217_vm8, 0, %v2224_v30  ;;  %v2043_v42 = vadd.f32 %v16669_v62, %v2042_v35  ;;  %v1548_v21 = vpop.f32.mrf.mxu3  ;;  %v14937_v18 = vld [vmem:[%s21032_s5 + $0x120] sm:$0xff]  ;;  %4076 = vmatpush.bf16.msra.mxu0 %v14870_v26  ;;  %vm21079_vm9 = vmpackc.low %vm16645_vm7, %vm16645_vm7 }
 0x269   : > { %v14821_v57 = vld [vmem:[#allocation3 + $0x80] sm:$0xf0]  ;;  %2750 = vst [vmem:[#allocation3 + $0x90] sm:$0xf] %v2511_v44  ;;  %v2514_v36 = vshrl.u32 %v2384_v24, 16  ;;  %v2517_v40 = vshll.u32 %v2384_v24, 16  ;;  %4710 = vmatpush.bf16.msra.mxu1 %v14926_v33  ;;  %v1549_v22 = vadd.f32 %v1548_v21, %v1460_v11  ;;  %4796 = vmatpush.bf16.msra.mxu2 %v14937_v18 }
 0x26a   : > { %21356 = vst [vmem:[#allocation35_spill] sm:$0xff] %v16657_v7  ;;  %v12340_v55 = vor.u32 %v14821_v57, %v12339_v14  ;;  %v3093_v45 = vshll.u32 %v2954_v60, 16  ;;  %v3097_v12 = vshrl.u32 %v2954_v60, 16  ;;  %v2132_v37 = vadd.f32 %v2131_v54, %v2043_v42  ;;  %v14869_v57 = vld [vmem:[%s21032_s5 + $0x80] sm:$0xff] }
 0x26b   : > { %2792 = vst [vmem:[#allocation3 + $0xa0] sm:$0xf] %v2224_v30  ;;  %v14786_v10 = vld [vmem:[#allocation2 + $0xe4] sm:$0xf0]  ;;  %v12201_v0 = vld [vmem:[#allocation2 + $0xe8] sm:$0xf0] }
 0x26c   : > { %1677 = vst [vmem:[#allocation2 + $0xf0] sm:$0xff] %v1645_v29  ;;  %3925 = vmatmul.bf16.gmra.mxu2 %v12340_v55  ;;  %v2516_v44 = vrot.slane %v2514_v36, 7  ;;  %v3095_v35 = vrot.slane %v3093_v45, 5  ;;  %v3099_v14 = vrot.slane %v3097_v12, 4  ;;  %v12200_v30 = vor.u32 %v14786_v10, %v12199_v17  ;;  %v14925_v33 = vld [vmem:[%s21032_s5 + $0xc0] sm:$0xff]  ;;  %4077 = vmatpush.bf16.msra.mxu0 %v14869_v57 }
 0x26d   : > { %v2193_v29 = vmax.f32 %v2132_v37, 0.0  ;;  %v1614_v11 = vmax.f32 %v1549_v22, 0.0  ;;  %v12204_v54 = vor.u32 %v14785_v4, %v12201_v0  ;;  %v21082_v24 = vand.u32 15, %v16657_v7  ;;  %4711 = vmatpush.bf16.msra.mxu1 %v14925_v33  ;;  %v14823_v12 = vld [vmem:[#allocation3 + $0x94] sm:$0xf] }
 0x26e   : > { %v2512_v26 = vrot.slane %v16623_v39, 4  ;;  %v2519_v60 = vor.u32 %v2517_v40, %v2516_v44  ;;  %v3096_v42 = vsel %vm16296_vm11, %v3091_v6, %v3095_v35  ;;  %v16689_v17 = vadd.s32 112, %v16184_v46  ;;  %v2044_v40 = vpop.f32.mrf.mxu0  ;;  %v2133_v6 = vpop.f32.mrf.mxu1  ;;  %v12671_v38 = vld [vmem:[#allocation3 + $0x80] sm:$0xf] }
 0x26f   : > { %2081 = vmatmul.bf16.gmra.mxu0 %v12200_v30  ;;  %v3100_v55 = vor.u32 %v3099_v14, %v3095_v35  ;;  %3351 = vst [vmem:[#allocation3 + $0x98] sm:$0xf] %v3096_v42  ;;  %v2225_v36 = vpack.c.bf16 %v2193_v29, %v2193_v29  ;;  %v1646_v45 = vpack.c.bf16 %v1614_v11, %v1613_v58  ;;  %vm16703_vm3 = vcmp.ge.s32.totalorder %v21082_v24, 15 }
 0x270   : > { %21357 = vst [vmem:[#allocation36_spill] sm:$0xff] %v16689_v17  ;;  %2170 = vmatmul.bf16.gmra.mxu1 %v12204_v54  ;;  %v2520_v39 = vsel %vm16304_vm10, %v2512_v26, %v2519_v60  ;;  %v2045_v58 = vadd.f32 %v16669_v62, %v2044_v40  ;;  %v21358_v18 = vmov 0  ;;  %v21084_v57 = vand.u32 15, %v16689_v17 }
 0x271   : > { %2751 = vst [vmem:[#allocation3 + $0x9c] sm:$0xf] %v2520_v39  ;;  %v2385_v21 = vsel %vm16217_vm8, 0, %v2225_v36  ;;  %v2955_v4 = vsel %vm21079_vm9, 0, %v2225_v36  ;;  %v21359_v18 = vsel %vm16703_vm3, 4294967295, %v21358_v18  ;;  %v3101_v35 = vrot.slane %v3100_v55, 4  ;;  %vm21086_vm9 = vmpackc.low %vm16703_vm3, %vm16703_vm3 }
 0x272   : > { %v12353_v37 = vld [vmem:[#allocation3 + $0x9c] sm:$0xf0]  ;;  %v2523_v22 = vshrl.u32 %v2385_v21, 16  ;;  %2793 = vst [vmem:[#allocation3 + $0xac] sm:$0xf] %v2225_v36  ;;  %v3103_v10 = vshll.u32 %v2955_v4, 16  ;;  %v2134_v14 = vadd.f32 %v2133_v6, %v2045_v58 }
 0x273   : > { %v3107_v0 = vshrl.u32 %v2955_v4, 16  ;;  %21360 = vst [vmem:[#allocation37_spill] sm:$0xff] %v21359_v18  ;;  %v12356_v30 = vor.u32 %v14823_v12, %v12353_v37  ;;  %v2526_v29 = vshll.u32 %v2385_v21, 16  ;;  %v2521_v60 = vrot.slane %v2516_v44, 4  ;;  %v12351_v21 = vld [vmem:[#allocation3 + $0x90] sm:$0xf] }
 0x274   : > { %1678 = vst [vmem:[#allocation2 + $0xf8] sm:$0xff] %v1646_v45  ;;  %v2525_v33 = vrot.slane %v2523_v22, 7  ;;  %v3105_v11 = vrot.slane %v3103_v10, 5  ;;  %v2194_v26 = vmax.f32 %v2134_v14, 0.0  ;;  %v16714_v55 = vadd.s32 120, %v16184_v46 }
 0x275   : > { %v3109_v54 = vrot.slane %v3107_v0, 4  ;;  %4019 = vmatmul.bf16.gmra.mxu3 %v12356_v30  ;;  %vm16720_vm7 = vcmp.lt.s32.totalorder %v21084_v57, 1  ;;  %v21362_v44 = vmov 0  ;;  %v12207_v10 = vld [vmem:[#allocation2 + $0xf0] sm:$0xf] }
 0x276   : > { %v2528_v42 = vor.u32 %v2526_v29, %v2525_v33  ;;  %v3106_v36 = vsel %vm16296_vm11, %v3101_v35, %v3105_v11  ;;  %21361 = vst [vmem:[#allocation38_spill] sm:$0xff] %v16714_v55  ;;  %v2226_v39 = vpack.c.bf16 %v2194_v26, %v2194_v26  ;;  %v2047_v6 = vpop.f32.mrf.mxu0  ;;  %v2136_v12 = vpop.f32.mrf.mxu1  ;;  %v21363_v44 = vsel %vm16720_vm7, 4294967295, %v21362_v44  ;;  %v14787_v57 = vld [vmem:[#allocation2 + $0xf4] sm:$0xf] }
 0x277   : > { %v3110_v45 = vor.u32 %v3109_v54, %v3105_v11  ;;  %3352 = vst [vmem:[#allocation3 + $0xa4] sm:$0xf] %v3106_v36  ;;  %v2048_v22 = vadd.f32 %v16669_v62, %v2047_v6  ;;  %v21093_v29 = vand.u32 15, %v16714_v55  ;;  %v16810_v55 = vadd.s32 144, %v16184_v46 }
 0x278   : > { %v2529_v40 = vsel %vm16304_vm10, %v2521_v60, %v2528_v42  ;;  %21364 = vst [vmem:[#allocation39_spill] sm:$0xff] %v21363_v44  ;;  %v14824_v4 = vld [vmem:[#allocation3 + $0x98] sm:$0xf0]  ;;  %v2386_v58 = vsel %vm21086_vm9, 0, %v2226_v39  ;;  %v2956_v37 = vsel %vm16217_vm8, 0, %v2226_v39  ;;  %vm21089_vm9 = vmpackc.low %vm16720_vm7, %vm16720_vm7 }
 0x279   : > { %2752 = vst [vmem:[#allocation3 + $0xa8] sm:$0xf] %v2529_v40  ;;  %v12352_v0 = vor.u32 %v14824_v4, %v12351_v21  ;;  %v2532_v35 = vshrl.u32 %v2386_v58, 16  ;;  %v3113_v14 = vshll.u32 %v2956_v37, 16  ;;  %v3117_v30 = vshrl.u32 %v2956_v37, 16 }
 0x27a   : > { %2794 = vst [vmem:[#allocation3 + $0xb8] sm:$0xf] %v2226_v39  ;;  %v3111_v11 = vrot.slane %v3110_v45, 4  ;;  %v2535_v54 = vshll.u32 %v2386_v58, 16  ;;  %v2137_v26 = vadd.f32 %v2136_v12, %v2048_v22  ;;  %v2530_v21 = vrot.slane %v2525_v33, 4 }
 0x27b   : > { %v14788_v60 = vld [vmem:[#allocation2 + $0xf4] sm:$0xf0]  ;;  %v12209_v42 = vld [vmem:[#allocation2 + $0xf8] sm:$0xf0]  ;;  %v2534_v36 = vrot.slane %v2532_v35, 7  ;;  %v3115_v40 = vrot.slane %v3113_v14, 5 }
 0x27c   : > { %3930 = vmatmul.bf16.gmra.mxu2 %v12352_v0  ;;  %v3119_v24 = vrot.slane %v3117_v30, 4  ;;  %v12208_v16 = vor.u32 %v14788_v60, %v12207_v10  ;;  %v2195_v6 = vmax.f32 %v2137_v26, 0.0  ;;  %v12212_v50 = vor.u32 %v14787_v57, %v12209_v42  ;;  %v14826_v33 = vld [vmem:[#allocation3 + $0xac] sm:$0xf]  ;;  %21376 = vst [vmem:[#allocation45_spill] sm:$0xff] %v16810_v55 }
 0x27d   : > { %v2537_v4 = vor.u32 %v2535_v54, %v2534_v36  ;;  %v3116_v39 = vsel %vm16296_vm11, %v3111_v11, %v3115_v40  ;;  %vm16742_vm3 = vcmp.ge.s32.totalorder %v21093_v29, 15  ;;  %v21365_v57 = vmov 0  ;;  %v3901_v11 = vpop.f32.mrf.mxu2  ;;  %v3990_v54 = vpop.f32.mrf.mxu3 }
 0x27e   : > { %v3120_v45 = vor.u32 %v3119_v24, %v3115_v40  ;;  %3353 = vst [vmem:[#allocation3 + $0xb0] sm:$0xf] %v3116_v39  ;;  %v2227_v12 = vpack.c.bf16 %v2195_v6, %v2195_v6  ;;  %v2049_v37 = vpop.f32.mrf.mxu0  ;;  %v2138_v22 = vpop.f32.mrf.mxu1  ;;  %v21366_v57 = vsel %vm16742_vm3, 4294967295, %v21365_v57  ;;  %v16755_v30 = vadd.s32 128, %v16184_v46  ;;  %v14825_v1 = vld [vmem:[#allocation3 + $0xa0] sm:$0xf0] }
 0x27f   : > { %2086 = vmatmul.bf16.gmra.mxu0 %v12208_v16  ;;  %v2538_v58 = vsel %vm16304_vm10, %v2530_v21, %v2537_v4  ;;  %21367 = vst [vmem:[#allocation40_spill] sm:$0xff] %v21366_v57  ;;  %v2050_v24 = vadd.f32 %v16669_v62, %v2049_v37  ;;  %v16757_v40 = vadd.f32 %v3990_v54, %v3901_v11  ;;  %v2539_v37 = vrot.slane %v2534_v36, 4 }
 0x280   : > { %2175 = vmatmul.bf16.gmra.mxu1 %v12212_v50  ;;  %2753 = vst [vmem:[#allocation3 + $0xb4] sm:$0xf] %v2538_v58  ;;  %v2387_v16 = vsel %vm16217_vm8, 0, %v2227_v12  ;;  %v2957_v50 = vsel %vm21089_vm9, 0, %v2227_v12  ;;  %v3121_v26 = vrot.slane %v3120_v45, 4  ;;  %vm21092_vm9 = vmpackc.low %vm16742_vm3, %vm16742_vm3 }
 0x281   : > { %v12365_v10 = vld [vmem:[#allocation3 + $0xb4] sm:$0xf0]  ;;  %v2541_v0 = vshrl.u32 %v2387_v16, 16  ;;  %2795 = vst [vmem:[#allocation3 + $0xc4] sm:$0xf] %v2227_v12  ;;  %v3123_v35 = vshll.u32 %v2957_v50, 16  ;;  %v2139_v60 = vadd.f32 %v2138_v22, %v2050_v24 }
 0x282   : > { %v3127_v14 = vshrl.u32 %v2957_v50, 16  ;;  %21368 = vst [vmem:[#allocation41_spill] sm:$0xff] %v16755_v30  ;;  %v12368_v42 = vor.u32 %v14826_v33, %v12365_v10  ;;  %v2544_v21 = vshll.u32 %v2387_v16, 16  ;;  %v12287_v45 = vld [vmem:[#allocation3 + $0x8] sm:$0xf]  ;;  %v21096_v24 = vand.u32 15, %v16755_v30 }
 0x283   : > { %v2543_v6 = vrot.slane %v2541_v0, 7  ;;  %v3125_v4 = vrot.slane %v3123_v35, 5  ;;  %v2196_v58 = vmax.f32 %v2139_v60, 0.0  ;;  %v14807_v16 = vld [vmem:[#allocation3 + $0x10] sm:$0xf0] }
 0x284   : > { %v3129_v39 = vrot.slane %v3127_v14, 4  ;;  %v12363_v35 = vld [vmem:[#allocation3 + $0xa8] sm:$0xf]  ;;  %vm16777_vm7 = vcmp.lt.s32.totalorder %v21096_v24, 1  ;;  %v12651_v30 = vld [vmem:[#allocation3 + $0x60] sm:$0xf] }
 0x285   : > { %4024 = vmatmul.bf16.gmra.mxu3 %v12368_v42  ;;  %v2546_v12 = vor.u32 %v2544_v21, %v2543_v6  ;;  %v3126_v50 = vsel %vm16296_vm11, %v3121_v26, %v3125_v4  ;;  %v2228_v33 = vpack.c.bf16 %v2196_v58, %v2196_v58  ;;  %v14878_v42 = vld [vmem:[#allocation3 + $0x20] sm:$0xf0]  ;;  %v12288_v58 = vor.u32 %v14807_v16, %v12287_v45  ;;  %v12695_v20 = vld [vmem:[#allocation3 + $0xb0] sm:$0xf] }
 0x286   : > { %v3130_v22 = vor.u32 %v3129_v39, %v3125_v4  ;;  %3354 = vst [vmem:[#allocation3 + $0xbc] sm:$0xf] %v3126_v50  ;;  %v2052_v0 = vpop.f32.mrf.mxu0  ;;  %v2141_v36 = vpop.f32.mrf.mxu1  ;;  %v21369_v50 = vmov 0 }
 0x287   : > { %v2547_v10 = vsel %vm16304_vm10, %v2539_v37, %v2546_v12  ;;  %v14827_v14 = vld [vmem:[#allocation3 + $0xb0] sm:$0xf0]  ;;  %v2388_v11 = vsel %vm21092_vm9, 0, %v2228_v33  ;;  %v2958_v54 = vsel %vm16217_vm8, 0, %v2228_v33  ;;  %v2053_v26 = vadd.f32 %v16669_v62, %v2052_v0  ;;  %2796 = vst [vmem:[#allocation3 + $0xd0] sm:$0xf] %v2228_v33  ;;  %vm21098_vm9 = vmpackc.low %vm16777_vm7, %vm16777_vm7 }
 0x288   : > { %2754 = vst [vmem:[#allocation3 + $0xc0] sm:$0xf] %v2547_v10  ;;  %v12364_v60 = vor.u32 %v14827_v14, %v12363_v35  ;;  %v2550_v21 = vshrl.u32 %v2388_v11, 16  ;;  %v3133_v4 = vshll.u32 %v2958_v54, 16  ;;  %v3137_v39 = vshrl.u32 %v2958_v54, 16  ;;  %v14936_v0 = vld [vmem:[%s21032_s5 + $0x118] sm:$0xff] }
 0x289   : > { %v3131_v37 = vrot.slane %v3130_v22, 4  ;;  %v2142_v12 = vadd.f32 %v2141_v36, %v2053_v26  ;;  %v21370_v50 = vsel %vm16777_vm7, 4294967295, %v21369_v50  ;;  %v16782_v10 = vadd.s32 136, %v16184_v46  ;;  %v12615_v22 = vld [vmem:[#allocation3 + $0x18] sm:$0xf]  ;;  %4797 = vmatpush.bf16.msra.mxu2 %v14936_v0 }
 0x28a   : > { %21371 = vst [vmem:[#allocation42_spill] sm:$0xff] %v21370_v50  ;;  %v2552_v33 = vrot.slane %v2550_v21, 7  ;;  %v2553_v35 = vshll.u32 %v2388_v11, 16  ;;  %v3135_v14 = vrot.slane %v3133_v4, 5  ;;  %v3139_v45 = vrot.slane %v3137_v39, 4 }
 0x28b   : > { %21372 = vst [vmem:[#allocation43_spill] sm:$0xff] %v16782_v10  ;;  %v2197_v16 = vmax.f32 %v2142_v12, 0.0  ;;  %v12616_v36 = vor.u32 %v14878_v42, %v12615_v22  ;;  %v2548_v54 = vrot.slane %v2543_v6, 4  ;;  %v21099_v11 = vand.u32 15, %v16782_v10  ;;  %v14829_v6 = vld [vmem:[#allocation3 + $0xc4] sm:$0xf] }
 0x28c   : > { %3935 = vmatmul.bf16.gmra.mxu2 %v12364_v60  ;;  %v2555_v26 = vor.u32 %v2553_v35, %v2552_v33  ;;  %v3136_v60 = vsel %vm16296_vm11, %v3131_v37, %v3135_v14  ;;  %v3140_v29 = vor.u32 %v3139_v45, %v3135_v14 }
 0x28d   : > { %3355 = vst [vmem:[#allocation3 + $0xc8] sm:$0xf] %v3136_v60  ;;  %v2229_v21 = vpack.c.bf16 %v2197_v16, %v2197_v16  ;;  %vm16805_vm3 = vcmp.ge.s32.totalorder %v21099_v11, 15  ;;  %v14897_v15 = vld [vmem:[#allocation3 + $0xb8] sm:$0xf0] }
 0x28e   : > { %v2556_v42 = vsel %vm16304_vm10, %v2548_v54, %v2555_v26  ;;  %v2054_v4 = vpop.f32.mrf.mxu0  ;;  %v2143_v12 = vpop.f32.mrf.mxu1  ;;  %v12377_v0 = vld [vmem:[#allocation3 + $0xcc] sm:$0xf0]  ;;  %v3141_v22 = vrot.slane %v3140_v29, 4  ;;  %v12696_v2 = vor.u32 %v14897_v15, %v12695_v20 }
 0x28f   : > { %4078 = vmatmul.bf16.vlgmr.msra.gmra.mxu0 %v12288_v58  ;;  %2755 = vst [vmem:[#allocation3 + $0xcc] sm:$0xf] %v2556_v42  ;;  %v2389_v39 = vsel %vm16217_vm8, 0, %v2229_v21  ;;  %v2959_v58 = vsel %vm21098_vm9, 0, %v2229_v21  ;;  %v2055_v37 = vadd.f32 %v16669_v62, %v2054_v4  ;;  %v12380_v54 = vor.u32 %v14829_v6, %v12377_v0  ;;  %vm21105_vm9 = vmpackc.low %vm16805_vm3, %vm16805_vm3  ;;  %v12375_v0 = vld [vmem:[#allocation3 + $0xc0] sm:$0xf] }
 0x290   : > { %4712 = vmatmul.bf16.vlgmr.msra.gmra.mxu1 %v12616_v36  ;;  %v2559_v35 = vshrl.u32 %v2389_v39, 16  ;;  %2797 = vst [vmem:[#allocation3 + $0xdc] sm:$0xf] %v2229_v21  ;;  %v3143_v14 = vshll.u32 %v2959_v58, 16  ;;  %v3147_v45 = vshrl.u32 %v2959_v58, 16  ;;  %v21373_v36 = vmov 0 }
 0x291   : > { %v2144_v16 = vadd.f32 %v2143_v12, %v2055_v37  ;;  %v21374_v36 = vsel %vm16805_vm3, 4294967295, %v21373_v36  ;;  %v2562_v60 = vshll.u32 %v2389_v39, 16  ;;  %v2557_v21 = vrot.slane %v2552_v33, 4  ;;  %v14810_v37 = vld [vmem:[#allocation3 + $0x28] sm:$0xf0] }
 0x292   : > { %21375 = vst [vmem:[#allocation44_spill] sm:$0xff] %v21374_v36  ;;  %v2561_v26 = vrot.slane %v2559_v35, 7  ;;  %v3145_v42 = vrot.slane %v3143_v14, 5  ;;  %v3149_v24 = vrot.slane %v3147_v45, 4  ;;  %v12299_v14 = vld [vmem:[#allocation3 + $0x20] sm:$0xf] }
 0x293   : > { %v2198_v4 = vmax.f32 %v2144_v16, 0.0  ;;  %v14881_v45 = vld [vmem:[#allocation3 + $0x38] sm:$0xf0]  ;;  %v12627_v36 = vld [vmem:[#allocation3 + $0x30] sm:$0xf] }
 0x294   : > { %v2564_v58 = vor.u32 %v2562_v60, %v2561_v26  ;;  %v3146_v29 = vsel %vm16296_vm11, %v3141_v22, %v3145_v42  ;;  %v3150_v12 = vor.u32 %v3149_v24, %v3145_v42 }
 0x295   : > { %4029 = vmatmul.bf16.gmra.mxu3 %v12380_v54  ;;  %3356 = vst [vmem:[#allocation3 + $0xd4] sm:$0xf] %v3146_v29  ;;  %v2230_v6 = vpack.c.bf16 %v2198_v4, %v2198_v4  ;;  %v12300_v29 = vor.u32 %v14810_v37, %v12299_v14 }
 0x296   : > { %v2565_v39 = vsel %vm16304_vm10, %v2557_v21, %v2564_v58  ;;  %v14830_v35 = vld [vmem:[#allocation3 + $0xc8] sm:$0xf0]  ;;  %v3151_v11 = vrot.slane %v3150_v12, 4  ;;  %v16839_v12 = vpop.f32.mrf.mxu3 }
 0x297   : > { %2756 = vst [vmem:[#allocation3 + $0xd8] sm:$0xf] %v2565_v39  ;;  %v2390_v33 = vsel %vm21105_vm9, 0, %v2230_v6  ;;  %v2960_v22 = vsel %vm16217_vm8, 0, %v2230_v6  ;;  %v12376_v54 = vor.u32 %v14830_v35, %v12375_v0  ;;  %v16829_v39 = vadd.s32 152, %v16184_v46 }
 0x298   : > { %v2568_v60 = vshrl.u32 %v2390_v33, 16  ;;  %2798 = vst [vmem:[#allocation3 + $0xe8] sm:$0xf] %v2230_v6  ;;  %v3153_v24 = vshll.u32 %v2960_v22, 16  ;;  %v3157_v42 = vshrl.u32 %v2960_v22, 16  ;;  %v2057_v4 = vpop.f32.mrf.mxu0  ;;  %v2571_v7 = vshll.u32 %v2390_v33, 16 }
 0x299   : > { %v2058_v21 = vadd.f32 %v16669_v62, %v2057_v4  ;;  %v2146_v58 = vpop.f32.mrf.mxu1  ;;  %21377 = vst [vmem:[#allocation46_spill] sm:$0xff] %v16829_v39  ;;  %v21378_v6 = vand.u32 15, %v16810_v55  ;;  %v21379_v35 = vmov 0  ;;  %v12628_v22 = vor.u32 %v14881_v45, %v12627_v36  ;;  %v14832_v45 = vld [vmem:[#allocation3 + $0xdc] sm:$0xf] }
 0x29a   : > { %v2570_v10 = vrot.slane %v2568_v60, 7  ;;  %v3155_v23 = vrot.slane %v3153_v24, 5  ;;  %v3159_v16 = vrot.slane %v3157_v42, 4  ;;  %v2566_v4 = vrot.slane %v2561_v26, 4  ;;  %v14899_v9 = vld [vmem:[#allocation3 + $0xc8] sm:$0xf0] }
 0x29b   : > { %v2147_v0 = vadd.f32 %v2146_v58, %v2058_v21  ;;  %vm16833_vm9 = vcmp.lt.s32.totalorder %v21378_v6, 1  ;;  %v21111_v36 = vand.u32 15, %v16829_v39 }
 0x29c   : > { %3940 = vmatmul.bf16.gmra.mxu2 %v12376_v54  ;;  %v21380_v35 = vsel %vm16833_vm9, 4294967295, %v21379_v35  ;;  %v2573_v54 = vor.u32 %v2571_v7, %v2570_v10  ;;  %v3156_v37 = vsel %vm16296_vm11, %v3151_v11, %v3155_v23  ;;  %vm21110_vm3 = vmpackc.low %vm16833_vm9, %vm16833_vm9  ;;  %v3160_v7 = vor.u32 %v3159_v16, %v3155_v23 }
 0x29d   : > { %21381 = vst [vmem:[#allocation47_spill] sm:$0xff] %v21380_v35  ;;  %v2199_v14 = vmax.f32 %v2147_v0, 0.0  ;;  %vm16857_vm7 = vcmp.ge.s32.totalorder %v21111_v36, 15  ;;  %v14884_v36 = vld [vmem:[#allocation3 + $0x50] sm:$0xf0] }
 0x29e   : > { %3357 = vst [vmem:[#allocation3 + $0xe0] sm:$0xf] %v3156_v37  ;;  %v2574_v33 = vsel %vm16304_vm10, %v2566_v4, %v2573_v54  ;;  %v3161_v6 = vrot.slane %v3160_v7, 4  ;;  %v21382_v4 = vmov 0  ;;  %v14948_v54 = vld [vmem:[%s21032_s5 + $0x178] sm:$0xff]  ;;  %v16867_v7 = vadd.s32 160, %v16184_v46 }
 0x29f   : > { %4083 = vmatmul.bf16.gmra.mxu0 %v12300_v29  ;;  %2757 = vst [vmem:[#allocation3 + $0xe4] sm:$0xf] %v2574_v33  ;;  %v2231_v26 = vpack.c.bf16 %v2199_v14, %v2199_v14  ;;  %v12389_v11 = vld [vmem:[#allocation3 + $0xe4] sm:$0xf0]  ;;  %v21383_v4 = vsel %vm16857_vm7, 4294967295, %v21382_v4  ;;  %4882 = vmatpush.bf16.msrb.mxu3 %v14948_v54  ;;  %v14935_v35 = vld [vmem:[%s21032_s5 + $0x110] sm:$0xff] }
 0x2a0   : > { %4717 = vmatmul.bf16.gmra.mxu1 %v12628_v22  ;;  %v2059_v60 = vpop.f32.mrf.mxu0  ;;  %v12392_v24 = vor.u32 %v14832_v45, %v12389_v11  ;;  %21384 = vst [vmem:[#allocation48_spill] sm:$0xff] %v21383_v4  ;;  %v16864_v45 = vpop.f32.mrf.mxu2  ;;  %v16886_v4 = vadd.s32 168, %v16184_v46  ;;  %4798 = vmatpush.bf16.msra.mxu2 %v14935_v35 }
 0x2a1   : > { %v2391_v42 = vsel %vm16217_vm8, 0, %v2231_v26  ;;  %2799 = vst [vmem:[#allocation3 + $0xf4] sm:$0xf] %v2231_v26  ;;  %v2961_v21 = vsel %vm21110_vm3, 0, %v2231_v26  ;;  %v2060_v58 = vadd.f32 %v16669_v62, %v2059_v60  ;;  %v2148_v29 = vpop.f32.mrf.mxu1  ;;  %v2575_v60 = vrot.slane %v2570_v10, 4  ;;  %vm21121_vm3 = vmpackc.low %vm16857_vm7, %vm16857_vm7 }
 0x2a2   : > { %v2577_v0 = vshrl.u32 %v2391_v42, 16  ;;  %v3163_v23 = vshll.u32 %v2961_v21, 16  ;;  %v3167_v16 = vshrl.u32 %v2961_v21, 16  ;;  %v2580_v14 = vshll.u32 %v2391_v42, 16  ;;  %21385 = vst [vmem:[#allocation49_spill] sm:$0xff] %v16867_v7 }
 0x2a3   : > { %v2149_v22 = vadd.f32 %v2148_v29, %v2060_v58  ;;  %v12387_v42 = vld [vmem:[#allocation3 + $0xd8] sm:$0xf]  ;;  %21386 = vst [vmem:[#allocation50_spill] sm:$0xff] %v16886_v4 }
 0x2a4   : > { %v2579_v37 = vrot.slane %v2577_v0, 7  ;;  %v3165_v33 = vrot.slane %v3163_v23, 5  ;;  %v3169_v26 = vrot.slane %v3167_v16, 4  ;;  %v14813_v16 = vld [vmem:[#allocation3 + $0x40] sm:$0xf0] }
 0x2a5   : > { %4034 = vmatmul.bf16.gmra.mxu3 %v12392_v24  ;;  %v2200_v11 = vmax.f32 %v2149_v22, 0.0  ;;  %v12311_v10 = vld [vmem:[#allocation3 + $0x38] sm:$0xf] }
 0x2a6   : > { %v2582_v21 = vor.u32 %v2580_v14, %v2579_v37  ;;  %v3166_v24 = vsel %vm16296_vm11, %v3161_v6, %v3165_v33  ;;  %v3995_v58 = vpop.f32.mrf.mxu3  ;;  %v14833_v29 = vld [vmem:[#allocation3 + $0xe0] sm:$0xf0]  ;;  %v3170_v54 = vor.u32 %v3169_v26, %v3165_v33  ;;  %v12639_v14 = vld [vmem:[#allocation3 + $0x48] sm:$0xf] }
 0x2a7   : > { %3358 = vst [vmem:[#allocation3 + $0xec] sm:$0xf] %v3166_v24  ;;  %v2232_v0 = vpack.c.bf16 %v2200_v11, %v2200_v11  ;;  %v12388_v23 = vor.u32 %v14833_v29, %v12387_v42  ;;  %v12640_v39 = vor.u32 %v14884_v36, %v12639_v14  ;;  %v21388_v36 = vmov 0 }
 0x2a8   : > { %v2583_v22 = vsel %vm16304_vm10, %v2575_v60, %v2582_v21  ;;  %v12312_v21 = vor.u32 %v14813_v16, %v12311_v10  ;;  %v3171_v55 = vrot.slane %v3170_v54, 4  ;;  %v21387_v16 = vand.u32 15, %v16867_v7  ;;  %v14887_v7 = vld [vmem:[#allocation3 + $0x68] sm:$0xf0] }
 0x2a9   : > { %2758 = vst [vmem:[#allocation3 + $0xf0] sm:$0xf] %v2583_v22  ;;  %v2392_v6 = vsel %vm21121_vm3, 0, %v2232_v0  ;;  %v2962_v24 = vsel %vm16217_vm8, 0, %v2232_v0  ;;  %v2584_v14 = vrot.slane %v2579_v37, 4 }
 0x2aa   : > { %v2062_v11 = vpop.f32.mrf.mxu0  ;;  %v2586_v29 = vshrl.u32 %v2392_v6, 16  ;;  %2800 = vst [vmem:[#allocation3 + $0x100] sm:$0xf] %v2232_v0  ;;  %v3173_v33 = vshll.u32 %v2962_v24, 16  ;;  %v3177_v26 = vshrl.u32 %v2962_v24, 16  ;;  %vm16895_vm3 = vcmp.lt.s32.totalorder %v21387_v16, 1 }
 0x2ab   : > { %v2151_v60 = vpop.f32.mrf.mxu1  ;;  %v2063_v22 = vadd.f32 %v16669_v62, %v2062_v11  ;;  %v21389_v36 = vsel %vm16895_vm3, 4294967295, %v21388_v36  ;;  %vm21131_vm7 = vmpackc.low %vm16895_vm3, %vm16895_vm3 }
 0x2ac   : > { %3945 = vmatmul.bf16.gmra.mxu2 %v12388_v23  ;;  %v16891_v50 = vrot.slane %v2586_v29, 7  ;;  %v2589_v23 = vshll.u32 %v2392_v6, 16  ;;  %v3175_v42 = vrot.slane %v3173_v33, 5  ;;  %v3179_v24 = vrot.slane %v3177_v26, 4  ;;  %21390 = vst [vmem:[#allocation51_spill] sm:$0xff] %v21389_v36 }
 0x2ad   : > { %v3906_v0 = vpop.f32.mrf.mxu2  ;;  %v2152_v5 = vadd.f32 %v2151_v60, %v2063_v22  ;;  %v14835_v26 = vld [vmem:[#allocation3 + $0xf4] sm:$0xf]  ;;  %v14816_v36 = vld [vmem:[#allocation3 + $0x58] sm:$0xf0] }
 0x2ae   : > { %v16899_v10 = vadd.f32 %v3995_v58, %v3906_v0  ;;  %v2591_v54 = vor.u32 %v2589_v23, %v16891_v50  ;;  %v3176_v6 = vsel %vm16296_vm11, %v3171_v55, %v3175_v42  ;;  %v3997_v11 = vpop.f32.mrf.mxu3  ;;  %v3180_v35 = vor.u32 %v3179_v24, %v3175_v42 }
 0x2af   : > { %4088 = vmatmul.bf16.gmra.mxu0 %v12312_v21  ;;  %3359 = vst [vmem:[#allocation3 + $0xf8] sm:$0xf] %v3176_v6  ;;  %v2201_v29 = vmax.f32 %v2152_v5, 0.0  ;;  %v2593_v57 = vrot.slane %v16891_v50, 4  ;;  %v16937_v50 = vadd.s32 184, %v16184_v46 }
 0x2b0   : > { %4722 = vmatmul.bf16.gmra.mxu1 %v12640_v39  ;;  %v2592_v33 = vsel %vm16304_vm10, %v2584_v14, %v2591_v54  ;;  %v21132_v39 = vand.u32 15, %v16886_v4  ;;  %v16919_v14 = vadd.s32 176, %v16184_v46  ;;  %v3181_v54 = vrot.slane %v3180_v35, 4 }
 0x2b1   : > { %2759 = vst [vmem:[#allocation3 + $0xfc] sm:$0xf] %v2592_v33  ;;  %v2233_v37 = vpack.c.bf16 %v2201_v29, %v2201_v29  ;;  %v12401_v60 = vld [vmem:[#allocation3 + $0xfc] sm:$0xf0]  ;;  %v21392_v29 = vmov 0 }
 0x2b2   : > { %v2064_v58 = vpop.f32.mrf.mxu0  ;;  %v12404_v22 = vor.u32 %v14835_v26, %v12401_v60  ;;  %21391 = vst [vmem:[#allocation52_spill] sm:$0xff] %v16919_v14  ;;  %vm16923_vm9 = vcmp.ge.s32.totalorder %v21132_v39, 15 }
 0x2b3   : > { %v2065_v55 = vadd.f32 %v16669_v62, %v2064_v58  ;;  %v2153_v21 = vpop.f32.mrf.mxu1  ;;  %v2393_v5 = vsel %vm16217_vm8, 0, %v2233_v37  ;;  %2801 = vst [vmem:[#allocation3 + $0x10c] sm:$0xf] %v2233_v37  ;;  %v2963_v23 = vsel %vm21131_vm7, 0, %v2233_v37  ;;  %v21393_v29 = vsel %vm16923_vm9, 4294967295, %v21392_v29  ;;  %vm21143_vm7 = vmpackc.low %vm16923_vm9, %vm16923_vm9 }
 0x2b4   : > { %v2595_v0 = vshrl.u32 %v2393_v5, 16  ;;  %v3183_v42 = vshll.u32 %v2963_v23, 16  ;;  %v3187_v24 = vshrl.u32 %v2963_v23, 16  ;;  %21394 = vst [vmem:[#allocation53_spill] sm:$0xff] %v21393_v29  ;;  %v2598_v37 = vshll.u32 %v2393_v5, 16 }
 0x2b5   : > { %4039 = vmatmul.bf16.gmra.mxu3 %v12404_v22  ;;  %v3908_v16 = vpop.f32.mrf.mxu2  ;;  %v2154_v6 = vadd.f32 %v2153_v21, %v2065_v55  ;;  %v12399_v21 = vld [vmem:[#allocation3 + $0xf0] sm:$0xf]  ;;  %21395 = vst [vmem:[#allocation54_spill] sm:$0xff] %v16937_v50 }
 0x2b6   : > { %v16927_v33 = vadd.f32 %v3997_v11, %v3908_v16  ;;  %v2597_v58 = vrot.slane %v2595_v0, 7  ;;  %v3185_v26 = vrot.slane %v3183_v42, 5  ;;  %v3189_v60 = vrot.slane %v3187_v24, 4 }
 0x2b7   : > { %v4000_v23 = vpop.f32.mrf.mxu3  ;;  %v2202_v22 = vmax.f32 %v2154_v6, 0.0  ;;  %v21140_v11 = vand.u32 15, %v16919_v14  ;;  %v12323_v6 = vld [vmem:[#allocation3 + $0x50] sm:$0xf] }
 0x2b8   : > { %v2600_v35 = vor.u32 %v2598_v37, %v2597_v58  ;;  %v3186_v55 = vsel %vm16296_vm11, %v3181_v54, %v3185_v26  ;;  %v14836_v5 = vld [vmem:[#allocation3 + $0xf8] sm:$0xf0]  ;;  %v3190_v0 = vor.u32 %v3189_v60, %v3185_v26  ;;  %v12324_v4 = vor.u32 %v14816_v36, %v12323_v6 }
 0x2b9   : > { %3360 = vst [vmem:[#allocation3 + $0x104] sm:$0xf] %v3186_v55  ;;  %v2234_v42 = vpack.c.bf16 %v2202_v22, %v2202_v22  ;;  %v12400_v16 = vor.u32 %v14836_v5, %v12399_v21  ;;  %v12652_v22 = vor.u32 %v14887_v7, %v12651_v30  ;;  %vm16951_vm3 = vcmp.lt.s32.totalorder %v21140_v11, 1  ;;  %v14905_v34 = vld [vmem:[#allocation3 + $0xf8] sm:$0xf0] }
 0x2ba   : > { %v2601_v54 = vsel %vm16304_vm10, %v2593_v57, %v2600_v35  ;;  %v21396_v36 = vmov 0  ;;  %v3191_v5 = vrot.slane %v3190_v0, 4  ;;  %v2602_v14 = vrot.slane %v2597_v58, 4 }
 0x2bb   : > { %v2067_v24 = vpop.f32.mrf.mxu0  ;;  %v2156_v39 = vpop.f32.mrf.mxu1  ;;  %2760 = vst [vmem:[#allocation3 + $0x108] sm:$0xf] %v2601_v54  ;;  %v2394_v26 = vsel %vm21143_vm7, 0, %v2234_v42  ;;  %v2964_v60 = vsel %vm16217_vm8, 0, %v2234_v42  ;;  %v21397_v36 = vsel %vm16951_vm3, 4294967295, %v21396_v36  ;;  %vm21151_vm7 = vmpackc.low %vm16951_vm3, %vm16951_vm3  ;;  %v21399_v58 = vmov 0 }
 0x2bc   : > { %v2068_v37 = vadd.f32 %v16669_v62, %v2067_v24  ;;  %3950 = vmatmul.bf16.gmra.mxu2 %v12400_v16  ;;  %v2604_v55 = vshrl.u32 %v2394_v26, 16  ;;  %2802 = vst [vmem:[#allocation3 + $0x118] sm:$0xf] %v2234_v42  ;;  %v3193_v57 = vshll.u32 %v2964_v60, 16  ;;  %v3197_v35 = vshrl.u32 %v2964_v60, 16 }
 0x2bd   : > { %21398 = vst [vmem:[#allocation55_spill] sm:$0xff] %v21397_v36  ;;  %v21146_v16 = vand.u32 15, %v16937_v50  ;;  %v2607_v7 = vshll.u32 %v2394_v26, 16  ;;  %v14819_v36 = vld [vmem:[#allocation3 + $0x70] sm:$0xf0] }
 0x2be   : > { %v3911_v21 = vpop.f32.mrf.mxu2  ;;  %v2157_v24 = vadd.f32 %v2156_v39, %v2068_v37  ;;  %v2606_v30 = vrot.slane %v2604_v55, 7  ;;  %v3195_v42 = vrot.slane %v3193_v57, 5  ;;  %v3199_v54 = vrot.slane %v3197_v35, 4 }
 0x2bf   : > { %4093 = vmatmul.bf16.gmra.mxu0 %v12324_v4  ;;  %v16955_v6 = vadd.f32 %v4000_v23, %v3911_v21  ;;  %v4002_v60 = vpop.f32.mrf.mxu3  ;;  %vm16968_vm9 = vcmp.ge.s32.totalorder %v21146_v16, 15  ;;  %v16980_v21 = vadd.s32 192, %v16184_v46 }
 0x2c0   : > { %4727 = vmatmul.bf16.gmra.mxu1 %v12652_v22  ;;  %v2203_v29 = vmax.f32 %v2157_v24, 0.0  ;;  %v2609_v11 = vor.u32 %v2607_v7, %v2606_v30  ;;  %v3196_v44 = vsel %vm16296_vm11, %v3191_v5, %v3195_v42  ;;  %v3200_v4 = vor.u32 %v3199_v54, %v3195_v42  ;;  %v14838_v22 = vld [vmem:[#allocation3 + $0x10c] sm:$0xf]  ;;  %v14947_v54 = vld [vmem:[%s21032_s5 + $0x170] sm:$0xff] }
 0x2c1   : > { %3361 = vst [vmem:[#allocation3 + $0x110] sm:$0xf] %v3196_v44  ;;  %v21400_v58 = vsel %vm16968_vm9, 4294967295, %v21399_v58  ;;  %v2611_v51 = vrot.slane %v2606_v30, 4  ;;  %4883 = vmatpush.bf16.msrb.mxu3 %v14947_v54  ;;  %v16997_v30 = vadd.s32 200, %v16184_v46 }
 0x2c2   : > { %v2235_v39 = vpack.c.bf16 %v2203_v29, %v2203_v29  ;;  %v2610_v0 = vsel %vm16304_vm10, %v2602_v14, %v2609_v11  ;;  %21401 = vst [vmem:[#allocation56_spill] sm:$0xff] %v21400_v58  ;;  %v3201_v5 = vrot.slane %v3200_v4, 4 }
 0x2c3   : > { %v2069_v23 = vpop.f32.mrf.mxu0  ;;  %v2158_v26 = vpop.f32.mrf.mxu1  ;;  %2761 = vst [vmem:[#allocation3 + $0x114] sm:$0xf] %v2610_v0  ;;  %v12413_v14 = vld [vmem:[#allocation3 + $0x114] sm:$0xf0] }
 0x2c4   : > { %v2070_v37 = vadd.f32 %v16669_v62, %v2069_v23  ;;  %v2395_v55 = vsel %vm16217_vm8, 0, %v2235_v39  ;;  %v2965_v44 = vsel %vm21151_vm7, 0, %v2235_v39  ;;  %2803 = vst [vmem:[#allocation3 + $0x124] sm:$0xf] %v2235_v39  ;;  %v12416_v7 = vor.u32 %v14838_v22, %v12413_v14  ;;  %vm21158_vm7 = vmpackc.low %vm16968_vm9, %vm16968_vm9 }
 0x2c5   : > { %v2613_v29 = vshrl.u32 %v2395_v55, 16  ;;  %v3203_v11 = vshll.u32 %v2965_v44, 16  ;;  %v3207_v57 = vshrl.u32 %v2965_v44, 16  ;;  %21402 = vst [vmem:[#allocation57_spill] sm:$0xff] %v16980_v21  ;;  %v2616_v0 = vshll.u32 %v2395_v55, 16 }
 0x2c6   : > { %v3913_v35 = vpop.f32.mrf.mxu2  ;;  %v2159_v24 = vadd.f32 %v2158_v26, %v2070_v37  ;;  %4044 = vmatmul.bf16.gmra.mxu3 %v12416_v7  ;;  %v21156_v37 = vand.u32 15, %v16980_v21  ;;  %v14890_v26 = vld [vmem:[#allocation3 + $0x80] sm:$0xf0]  ;;  %21403 = vst [vmem:[#allocation58_spill] sm:$0xff] %v16997_v30 }
 0x2c7   : > { %v16982_v42 = vadd.f32 %v4002_v60, %v3913_v35  ;;  %v16987_v23 = vrot.slane %v2613_v29, 7  ;;  %v3205_v16 = vrot.slane %v3203_v11, 5  ;;  %v3209_v39 = vrot.slane %v3207_v57, 4  ;;  %v4005_v50 = vpop.f32.mrf.mxu3  ;;  %v12335_v29 = vld [vmem:[#allocation3 + $0x68] sm:$0xf] }
 0x2c8   : > { %v2204_v44 = vmax.f32 %v2159_v24, 0.0  ;;  %v12336_v7 = vor.u32 %v14819_v36, %v12335_v29  ;;  %vm17011_vm3 = vcmp.lt.s32.totalorder %v21156_v37, 1  ;;  %v21404_v36 = vmov 0 }
 0x2c9   : > { %v2618_v4 = vor.u32 %v2616_v0, %v16987_v23  ;;  %v3206_v60 = vsel %vm16296_vm11, %v3201_v5, %v3205_v16  ;;  %v3210_v22 = vor.u32 %v3209_v39, %v3205_v16  ;;  %v12411_v5 = vld [vmem:[#allocation3 + $0x108] sm:$0xf]  ;;  %v12663_v0 = vld [vmem:[#allocation3 + $0x78] sm:$0xf]  ;;  %v21405_v36 = vsel %vm17011_vm3, 4294967295, %v21404_v36 }
 0x2ca   : > { %3362 = vst [vmem:[#allocation3 + $0x11c] sm:$0xf] %v3206_v60  ;;  %v2236_v55 = vpack.c.bf16 %v2204_v44, %v2204_v44  ;;  %v14839_v24 = vld [vmem:[#allocation3 + $0x110] sm:$0xf0]  ;;  %v12664_v44 = vor.u32 %v14890_v26, %v12663_v0  ;;  %v21161_v26 = vand.u32 15, %v16997_v30 }
 0x2cb   : > { %v2072_v14 = vpop.f32.mrf.mxu0  ;;  %v2619_v11 = vsel %vm16304_vm10, %v2611_v51, %v2618_v4  ;;  %v12412_v39 = vor.u32 %v14839_v24, %v12411_v5  ;;  %21406 = vst [vmem:[#allocation59_spill] sm:$0xff] %v21405_v36  ;;  %v3211_v29 = vrot.slane %v3210_v22, 4  ;;  %v2620_v22 = vrot.slane %v16987_v23, 4 }
 0x2cc   : > { %v2073_v57 = vadd.f32 %v16669_v62, %v2072_v14  ;;  %v2161_v35 = vpop.f32.mrf.mxu1  ;;  %2762 = vst [vmem:[#allocation3 + $0x120] sm:$0xf] %v2619_v11  ;;  %v2396_v16 = vsel %vm21158_vm7, 0, %v2236_v55  ;;  %v2966_v54 = vsel %vm16217_vm8, 0, %v2236_v55  ;;  %vm21168_vm7 = vmpackc.low %vm17011_vm3, %vm17011_vm3  ;;  %vm17032_vm9 = vcmp.ge.s32.totalorder %v21161_v26, 15 }
 0x2cd   : > { %v2622_v51 = vshrl.u32 %v2396_v16, 16  ;;  %2804 = vst [vmem:[#allocation3 + $0x130] sm:$0xf] %v2236_v55  ;;  %v3213_v4 = vshll.u32 %v2966_v54, 16  ;;  %v3217_v60 = vshrl.u32 %v2966_v54, 16  ;;  %3955 = vmatmul.bf16.gmra.mxu2 %v12412_v39  ;;  %v14934_v55 = vld [vmem:[%s21032_s5 + $0x108] sm:$0xff] }
 0x2ce   : > { %v3916_v14 = vpop.f32.mrf.mxu2  ;;  %v2162_v11 = vadd.f32 %v2161_v35, %v2073_v57  ;;  %v2625_v24 = vshll.u32 %v2396_v16, 16  ;;  %4799 = vmatpush.bf16.msra.mxu2 %v14934_v55  ;;  %v21407_v23 = vmov 0 }
 0x2cf   : > { %4098 = vmatmul.bf16.gmra.mxu0 %v12336_v7  ;;  %v17015_v58 = vadd.f32 %v4005_v50, %v3916_v14  ;;  %v2624_v5 = vrot.slane %v2622_v51, 7  ;;  %v3215_v0 = vrot.slane %v3213_v4, 5  ;;  %v3219_v54 = vrot.slane %v3217_v60, 4  ;;  %v4007_v37 = vpop.f32.mrf.mxu3  ;;  %v14841_v4 = vld [vmem:[#allocation3 + $0x124] sm:$0xf] }
 0x2d0   : > { %4732 = vmatmul.bf16.gmra.mxu1 %v12664_v44  ;;  %v2205_v21 = vmax.f32 %v2162_v11, 0.0  ;;  %v21408_v23 = vsel %vm17032_vm9, 4294967295, %v21407_v23 }
 0x2d1   : > { %v2627_v57 = vor.u32 %v2625_v24, %v2624_v5  ;;  %v3216_v50 = vsel %vm16296_vm11, %v3211_v29, %v3215_v0  ;;  %v3220_v35 = vor.u32 %v3219_v54, %v3215_v0  ;;  %21409 = vst [vmem:[#allocation60_spill] sm:$0xff] %v21408_v23  ;;  %v17044_v24 = vadd.s32 208, %v16184_v46 }
 0x2d2   : > { %3363 = vst [vmem:[#allocation3 + $0x128] sm:$0xf] %v3216_v50  ;;  %v2237_v7 = vpack.c.bf16 %v2205_v21, %v2205_v21  ;;  %v2629_v18 = vrot.slane %v2624_v5, 4 }
 0x2d3   : > { %v2074_v39 = vpop.f32.mrf.mxu0  ;;  %v2628_v16 = vsel %vm16304_vm10, %v2620_v22, %v2627_v57  ;;  %21410 = vst [vmem:[#allocation61_spill] sm:$0xff] %v17044_v24  ;;  %v3221_v0 = vrot.slane %v3220_v35, 4  ;;  %v14893_v35 = vld [vmem:[#allocation3 + $0x98] sm:$0xf0] }
 0x2d4   : > { %v2075_v44 = vadd.f32 %v16669_v62, %v2074_v39  ;;  %v2163_v51 = vpop.f32.mrf.mxu1  ;;  %2763 = vst [vmem:[#allocation3 + $0x12c] sm:$0xf] %v2628_v16  ;;  %v2397_v60 = vsel %vm16217_vm8, 0, %v2237_v7  ;;  %v2967_v21 = vsel %vm21168_vm7, 0, %v2237_v7  ;;  %v12425_v14 = vld [vmem:[#allocation3 + $0x12c] sm:$0xf0]  ;;  %vm21175_vm7 = vmpackc.low %vm17032_vm9, %vm17032_vm9 }
 0x2d5   : > { %v2631_v62 = vshrl.u32 %v2397_v60, 16  ;;  %2805 = vst [vmem:[#allocation3 + $0x13c] sm:$0xf] %v2237_v7  ;;  %v3223_v29 = vshll.u32 %v2967_v21, 16  ;;  %v3227_v11 = vshrl.u32 %v2967_v21, 16  ;;  %v12428_v22 = vor.u32 %v14841_v4, %v12425_v14 }
 0x2d6   : > { %v3918_v55 = vpop.f32.mrf.mxu2  ;;  %v2164_v54 = vadd.f32 %v2163_v51, %v2075_v44  ;;  %v2634_v39 = vshll.u32 %v2397_v60, 16  ;;  %v14822_v7 = vld [vmem:[#allocation3 + $0x88] sm:$0xf0]  ;;  %v12347_v60 = vld [vmem:[#allocation3 + $0x80] sm:$0xf]  ;;  %v17058_v14 = vadd.s32 216, %v16184_v46 }
 0x2d7   : > { %v17046_v57 = vadd.f32 %v4007_v37, %v3918_v55  ;;  %v17048_v50 = vrot.slane %v2631_v62, 7  ;;  %v3225_v16 = vrot.slane %v3223_v29, 5  ;;  %v3229_v26 = vrot.slane %v3227_v11, 4  ;;  %4049 = vmatmul.bf16.gmra.mxu3 %v12428_v22  ;;  %v17065_v62 = vld [vmem:[%s21031_s4] ss:$0 sm:$0xff] }
 0x2d8   : > { %v4010_v30 = vpop.f32.mrf.mxu3  ;;  %v2206_v36 = vmax.f32 %v2164_v54, 0.0  ;;  %v21173_v37 = vand.u32 15, %v17044_v24  ;;  %21411 = vst [vmem:[#allocation62_spill] sm:$0xff] %v17058_v14  ;;  %v12423_v55 = vld [vmem:[#allocation3 + $0x120] sm:$0xf] }
 0x2d9   : > { %v2636_v21 = vor.u32 %v2634_v39, %v17048_v50  ;;  %v3226_v17 = vsel %vm16296_vm11, %v3221_v0, %v3225_v16  ;;  %v3230_v44 = vor.u32 %v3229_v26, %v3225_v16 }
 0x2da   : > { %3364 = vst [vmem:[#allocation3 + $0x134] sm:$0xf] %v3226_v17  ;;  %v2238_v51 = vpack.c.bf16 %v2206_v36, %v2206_v36  ;;  %v12348_v17 = vor.u32 %v14822_v7, %v12347_v60  ;;  %v12675_v36 = vld [vmem:[#allocation3 + $0x90] sm:$0xf]  ;;  %vm17077_vm3 = vcmp.lt.s32.totalorder %v21173_v37, 1  ;;  %v21412_v7 = vmov 0 }
 0x2db   : > { %v2637_v5 = vsel %vm16304_vm10, %v2629_v18, %v2636_v21  ;;  %v14842_v26 = vld [vmem:[#allocation3 + $0x128] sm:$0xf0]  ;;  %v12676_v22 = vor.u32 %v14893_v35, %v12675_v36  ;;  %v21413_v7 = vsel %vm17077_vm3, 4294967295, %v21412_v7  ;;  %v3231_v60 = vrot.slane %v3230_v44, 4 }
 0x2dc   : > { %v2077_v4 = vpop.f32.mrf.mxu0  ;;  %v2166_v11 = vpop.f32.mrf.mxu1  ;;  %2764 = vst [vmem:[#allocation3 + $0x138] sm:$0xf] %v2637_v5  ;;  %v2398_v0 = vsel %vm21175_vm7, 0, %v2238_v51  ;;  %v2968_v18 = vsel %vm16217_vm8, 0, %v2238_v51  ;;  %v12424_v54 = vor.u32 %v14842_v26, %v12423_v55  ;;  %v21178_v35 = vand.u32 15, %v17058_v14  ;;  %v14946_v37 = vld [vmem:[%s21032_s5 + $0x168] sm:$0xff]  ;;  %vm21187_vm7 = vmpackc.low %vm17077_vm3, %vm17077_vm3 }
 0x2dd   : > { %v2078_v29 = vadd.f32 %v17065_v62, %v2077_v4  ;;  %v2640_v39 = vshrl.u32 %v2398_v0, 16  ;;  %2806 = vst [vmem:[#allocation3 + $0x148] sm:$0xf] %v2238_v51  ;;  %v3233_v16 = vshll.u32 %v2968_v18, 16  ;;  %v3237_v21 = vshrl.u32 %v2968_v18, 16  ;;  %4884 = vmatpush.bf16.msrb.mxu3 %v14946_v37  ;;  %v14945_v37 = vld [vmem:[%s21032_s5 + $0x160] sm:$0xff] }
 0x2de   : > { %21414 = vst [vmem:[#allocation63_spill] sm:$0xff] %v21413_v7  ;;  %3960 = vmatmul.bf16.gmra.mxu2 %v12424_v54  ;;  %v2643_v51 = vshll.u32 %v2398_v0, 16  ;;  %vm17098_vm9 = vcmp.ge.s32.totalorder %v21178_v35, 15 }
 0x2df   : > { %4103 = vmatmul.bf16.gmra.mxu0 %v12348_v17  ;;  %v3921_v4 = vpop.f32.mrf.mxu2  ;;  %v2167_v5 = vadd.f32 %v2166_v11, %v2078_v29  ;;  %v2642_v55 = vrot.slane %v2640_v39, 7  ;;  %v3235_v26 = vrot.slane %v3233_v16, 5  ;;  %v3239_v36 = vrot.slane %v3237_v21, 4  ;;  %v14844_v16 = vld [vmem:[#allocation3 + $0x13c] sm:$0xf] }
 0x2e0   : > { %4737 = vmatmul.bf16.gmra.mxu1 %v12676_v22  ;;  %v17081_v23 = vadd.f32 %v4010_v30, %v3921_v4  ;;  %v4012_v18 = vpop.f32.mrf.mxu3  ;;  %v2638_v17 = vrot.slane %v17048_v50, 4  ;;  %v21415_v50 = vmov 0 }
 0x2e1   : > { %v2207_v24 = vmax.f32 %v2167_v5, 0.0  ;;  %v2645_v44 = vor.u32 %v2643_v51, %v2642_v55  ;;  %v3236_v29 = vsel %vm16296_vm11, %v3231_v60, %v3235_v26  ;;  %v3240_v30 = vor.u32 %v3239_v36, %v3235_v26  ;;  %4885 = vmatpush.bf16.msrb.mxu3 %v14945_v37 }
 0x2e2   : > { %3365 = vst [vmem:[#allocation3 + $0x140] sm:$0xf] %v3236_v29  ;;  %v21416_v50 = vsel %vm17098_vm9, 4294967295, %v21415_v50  ;;  %v17113_v36 = vadd.s32 224, %v16184_v46  ;;  %v2647_v56 = vrot.slane %v2642_v55, 4 }
 0x2e3   : > { %v2239_v11 = vpack.c.bf16 %v2207_v24, %v2207_v24  ;;  %v2646_v54 = vsel %vm16304_vm10, %v2638_v17, %v2645_v44  ;;  %21417 = vst [vmem:[#allocation64_spill] sm:$0xff] %v21416_v50  ;;  %v3241_v17 = vrot.slane %v3240_v30, 4  ;;  %v12759_v43 = vld [vmem:[#allocation3 + $0x138] sm:$0xf] }
 0x2e4   : > { %v2079_v0 = vpop.f32.mrf.mxu0  ;;  %v2168_v39 = vpop.f32.mrf.mxu1  ;;  %2765 = vst [vmem:[#allocation3 + $0x144] sm:$0xf] %v2646_v54  ;;  %v12437_v4 = vld [vmem:[#allocation3 + $0x144] sm:$0xf0] }
 0x2e5   : > { %v2080_v22 = vadd.f32 %v17065_v62, %v2079_v0  ;;  %v2399_v24 = vsel %vm16217_vm8, 0, %v2239_v11  ;;  %v2969_v21 = vsel %vm21187_vm7, 0, %v2239_v11  ;;  %2807 = vst [vmem:[#allocation3 + $0x154] sm:$0xf] %v2239_v11  ;;  %v12440_v29 = vor.u32 %v14844_v16, %v12437_v4  ;;  %v14944_v11 = vld [vmem:[%s21032_s5 + $0x158] sm:$0xff]  ;;  %vm21188_vm7 = vmpackc.low %vm17098_vm9, %vm17098_vm9 }
 0x2e6   : > { %v2649_v60 = vshrl.u32 %v2399_v24, 16  ;;  %v3243_v5 = vshll.u32 %v2969_v21, 16  ;;  %v3247_v51 = vshrl.u32 %v2969_v21, 16  ;;  %21418 = vst [vmem:[#allocation65_spill] sm:$0xff] %v17113_v36  ;;  %v2652_v35 = vshll.u32 %v2399_v24, 16  ;;  %4886 = vmatpush.bf16.msrb.mxu3 %v14944_v11 }
 0x2e7   : > { %v3923_v26 = vpop.f32.mrf.mxu2  ;;  %v2169_v44 = vadd.f32 %v2168_v39, %v2080_v22  ;;  %4054 = vmatmul.bf16.gmra.mxu3 %v12440_v29  ;;  %v12359_v22 = vld [vmem:[#allocation3 + $0x98] sm:$0xf]  ;;  %v14896_v39 = vld [vmem:[#allocation3 + $0xb0] sm:$0xf0]  ;;  %v21193_v4 = vand.u32 15, %v17113_v36 }
 0x2e8   : > { %v17115_v0 = vadd.f32 %v4012_v18, %v3923_v26  ;;  %v17117_v54 = vrot.slane %v2649_v60, 7  ;;  %v3245_v14 = vrot.slane %v3243_v5, 5  ;;  %v3249_v7 = vrot.slane %v3247_v51, 4  ;;  %v4015_v27 = vpop.f32.mrf.mxu3  ;;  %v12687_v60 = vld [vmem:[#allocation3 + $0xa8] sm:$0xf] }
 0x2e9   : > { %v2208_v21 = vmax.f32 %v2169_v44, 0.0  ;;  %v12435_v51 = vld [vmem:[#allocation3 + $0x138] sm:$0xf]  ;;  %v14943_v44 = vld [vmem:[%s21032_s5 + $0x150] sm:$0xff]  ;;  %v12688_v29 = vor.u32 %v14896_v39, %v12687_v60 }
 0x2ea   : > { %v2654_v30 = vor.u32 %v2652_v35, %v17117_v54  ;;  %v3246_v18 = vsel %vm16296_vm11, %v3241_v17, %v3245_v14  ;;  %v3250_v16 = vor.u32 %v3249_v7, %v3245_v14  ;;  %v12360_v17 = vor.u32 %v14825_v1, %v12359_v22  ;;  %4887 = vmatpush.bf16.msrb.mxu3 %v14943_v44 }
 0x2eb   : > { %3366 = vst [vmem:[#allocation3 + $0x14c] sm:$0xf] %v3246_v18  ;;  %v2240_v37 = vpack.c.bf16 %v2208_v21, %v2208_v21  ;;  %v14845_v26 = vld [vmem:[#allocation3 + $0x140] sm:$0xf0]  ;;  %v17143_v18 = vadd.s32 232, %v16184_v46  ;;  %v2656_v44 = vrot.slane %v17117_v54, 4 }
 0x2ec   : > { %v2082_v24 = vpop.f32.mrf.mxu0  ;;  %v2655_v35 = vsel %vm16304_vm10, %v2647_v56, %v2654_v30  ;;  %v12436_v7 = vor.u32 %v14845_v26, %v12435_v51  ;;  %v3251_v22 = vrot.slane %v3250_v16, 4 }
 0x2ed   : > { %v2083_v55 = vadd.f32 %v17065_v62, %v2082_v24  ;;  %v2171_v5 = vpop.f32.mrf.mxu1  ;;  %2766 = vst [vmem:[#allocation3 + $0x150] sm:$0xf] %v2655_v35  ;;  %v2400_v14 = vsel %vm21188_vm7, 0, %v2240_v37  ;;  %v2970_v56 = vsel %vm16217_vm8, 0, %v2240_v37  ;;  %vm17147_vm7 = vcmp.lt.s32.totalorder %v21193_v4, 1 }
 0x2ee   : > { %v2658_v11 = vshrl.u32 %v2400_v14, 16  ;;  %2808 = vst [vmem:[#allocation3 + $0x160] sm:$0xf] %v2240_v37  ;;  %v3253_v21 = vshll.u32 %v2970_v56, 16  ;;  %v3257_v1 = vshrl.u32 %v2970_v56, 16  ;;  %v21420_v35 = vmov 0  ;;  %3965 = vmatmul.bf16.gmra.mxu2 %v12436_v7  ;;  %vm21206_vm9 = vmpackc.low %vm17147_vm7, %vm17147_vm7 }
 0x2ef   : > { %4108 = vmatmul.bf16.gmra.mxu0 %v12360_v17  ;;  %v3926_v30 = vpop.f32.mrf.mxu2  ;;  %21419 = vst [vmem:[#allocation66_spill] sm:$0xff] %v17143_v18  ;;  %v2172_v24 = vadd.f32 %v2171_v5, %v2083_v55  ;;  %v21421_v35 = vsel %vm17147_vm7, 4294967295, %v21420_v35  ;;  %v14933_v37 = vld [vmem:[%s21032_s5 + $0x100] sm:$0xff]  ;;  %v2661_v51 = vshll.u32 %v2400_v14, 16  ;;  %v14942_v55 = vld [vmem:[%s21032_s5 + $0x148] sm:$0xff]  ;;  %v21201_v14 = vand.u32 15, %v17143_v18 }
 0x2f0   : > { %21422 = vst [vmem:[#allocation67_spill] sm:$0xff] %v21421_v35  ;;  %4742 = vmatmul.bf16.gmra.mxu1 %v12688_v29  ;;  %v17151_v39 = vadd.f32 %v4015_v27, %v3926_v30  ;;  %v2660_v60 = vrot.slane %v2658_v11, 7  ;;  %v3255_v26 = vrot.slane %v3253_v21, 5  ;;  %v3259_v17 = vrot.slane %v3257_v1, 4  ;;  %v4017_v16 = vpop.f32.mrf.mxu3  ;;  %4800 = vmatpush.bf16.msra.mxu2 %v14933_v37  ;;  %v14847_v30 = vld [vmem:[#allocation3 + $0x154] sm:$0xf] }
 0x2f1   : > { %v2209_v5 = vmax.f32 %v2172_v24, 0.0  ;;  %4888 = vmatpush.bf16.msrb.mxu3 %v14942_v55  ;;  %v14941_v24 = vld [vmem:[%s21032_s5 + $0x140] sm:$0xff]  ;;  %vm17184_vm3 = vcmp.ge.s32.totalorder %v21201_v14, 15  ;;  %v14828_v18 = vld [vmem:[#allocation3 + $0xb8] sm:$0xf0] }
 0x2f2   : > { %v2663_v56 = vor.u32 %v2661_v51, %v2660_v60  ;;  %v3256_v27 = vsel %vm16296_vm11, %v3251_v22, %v3255_v26  ;;  %v3260_v7 = vor.u32 %v3259_v17, %v3255_v26  ;;  %v17170_v22 = vadd.s32 240, %v16184_v46 }
 0x2f3   : > { %3367 = vst [vmem:[#allocation3 + $0x158] sm:$0xf] %v3256_v27  ;;  %v2241_v29 = vpack.c.bf16 %v2209_v5, %v2209_v5  ;;  %v2665_v13 = vrot.slane %v2660_v60, 4 }
 0x2f4   : > { %v2084_v11 = vpop.f32.mrf.mxu0  ;;  %v2664_v21 = vsel %vm16304_vm10, %v2656_v44, %v2663_v56  ;;  %21423 = vst [vmem:[#allocation68_spill] sm:$0xff] %v17170_v22  ;;  %v21424_v44 = vmov 0  ;;  %v3261_v27 = vrot.slane %v3260_v7, 4  ;;  %v21209_v14 = vand.u32 15, %v17170_v22  ;;  %v2772_v22 = vld [vmem:[#allocation3 + $0x198] sm:$0x1] }
 0x2f5   : > { %v2085_v54 = vadd.f32 %v17065_v62, %v2084_v11  ;;  %v2173_v1 = vpop.f32.mrf.mxu1  ;;  %2767 = vst [vmem:[#allocation3 + $0x15c] sm:$0xf] %v2664_v21  ;;  %v2401_v37 = vsel %vm16217_vm8, 0, %v2241_v29  ;;  %v2971_v51 = vsel %vm21206_vm9, 0, %v2241_v29  ;;  %v12449_v26 = vld [vmem:[#allocation3 + $0x15c] sm:$0xf0]  ;;  %4889 = vmatpush.bf16.msrb.mxu3 %v14941_v24  ;;  %vm21210_vm9 = vmpackc.low %vm17184_vm3, %vm17184_vm3 }
 0x2f6   : > { %v2667_v17 = vshrl.u32 %v2401_v37, 16  ;;  %2809 = vst [vmem:[#allocation3 + $0x16c] sm:$0xf] %v2241_v29  ;;  %v3263_v55 = vshll.u32 %v2971_v51, 16  ;;  %v3267_v5 = vshrl.u32 %v2971_v51, 16  ;;  %v21425_v44 = vsel %vm17184_vm3, 4294967295, %v21424_v44 }
 0x2f7   : > { %21426 = vst [vmem:[#allocation69_spill] sm:$0xff] %v21425_v44  ;;  %v3928_v56 = vpop.f32.mrf.mxu2  ;;  %v2174_v11 = vadd.f32 %v2173_v1, %v2085_v54  ;;  %v12452_v21 = vor.u32 %v14847_v30, %v12449_v26  ;;  %v2670_v50 = vshll.u32 %v2401_v37, 16  ;;  %v12371_v30 = vld [vmem:[#allocation3 + $0xb0] sm:$0xf]  ;;  %v12699_v37 = vld [vmem:[#allocation3 + $0xc0] sm:$0xf] }
 0x2f8   : > { %v17188_v4 = vadd.f32 %v4017_v16, %v3928_v56  ;;  %v17190_v35 = vrot.slane %v2667_v17, 7  ;;  %v3265_v36 = vrot.slane %v3263_v55, 5  ;;  %v3269_v29 = vrot.slane %v3267_v5, 4  ;;  %v4020_v25 = vpop.f32.mrf.mxu3  ;;  %v12771_v49 = vld [vmem:[#allocation3 + $0x150] sm:$0xf] }
 0x2f9   : > { %v2210_v51 = vmax.f32 %v2174_v11, 0.0  ;;  %4059 = vmatmul.bf16.gmra.mxu3 %v12452_v21  ;;  %v12372_v5 = vor.u32 %v14828_v18, %v12371_v30  ;;  %v12700_v56 = vor.u32 %v14899_v9, %v12699_v37  ;;  %vm17211_vm7 = vcmp.lt.s32.totalorder %v21209_v14, 1 }
 0x2fa   : > { %v2672_v24 = vor.u32 %v2670_v50, %v17190_v35  ;;  %v3266_v7 = vsel %vm16296_vm11, %v3261_v27, %v3265_v36  ;;  %v3270_v16 = vor.u32 %v3269_v29, %v3265_v36  ;;  %v12447_v50 = vld [vmem:[#allocation3 + $0x150] sm:$0xf]  ;;  %v12455_v41 = vld [vmem:[#allocation3 + $0x158] sm:$0xf] }
 0x2fb   : > { %3368 = vst [vmem:[#allocation3 + $0x164] sm:$0xf] %v3266_v7  ;;  %v2242_v54 = vpack.c.bf16 %v2210_v51, %v2210_v51  ;;  %v17216_v51 = vadd.s32 248, %v16184_v46  ;;  %v14949_v46 = vld [vmem:[#allocation3 + $0x34] sm:$0xf] }
 0x2fc   : > { %v2087_v1 = vpop.f32.mrf.mxu0  ;;  %v2673_v26 = vsel %vm16304_vm10, %v2665_v13, %v2672_v24  ;;  %v14848_v55 = vld [vmem:[#allocation3 + $0x158] sm:$0xf0]  ;;  %v21427_v13 = vmov 0  ;;  %v3271_v24 = vrot.slane %v3270_v16, 4 }
 0x2fd   : > { %v2088_v60 = vadd.f32 %v17065_v62, %v2087_v1  ;;  %v2176_v17 = vpop.f32.mrf.mxu1  ;;  %2768 = vst [vmem:[#allocation3 + $0x168] sm:$0xf] %v2673_v26  ;;  %v2402_v36 = vsel %vm21210_vm9, 0, %v2242_v54  ;;  %v2972_v27 = vsel %vm16217_vm8, 0, %v2242_v54  ;;  %v21428_v13 = vsel %vm17211_vm7, 4294967295, %v21427_v13  ;;  %v15012_v16 = vld [vmem:[%s21032_s5 + $0x1f8] sm:$0xff]  ;;  %vm21219_vm9 = vmpackc.low %vm17211_vm7, %vm17211_vm7 }
 0x2fe   : > { %21429 = vst [vmem:[#allocation70_spill] sm:$0xff] %v21428_v13  ;;  %v12448_v11 = vor.u32 %v14848_v55, %v12447_v50  ;;  %v2676_v21 = vshrl.u32 %v2402_v36, 16  ;;  %v3273_v9 = vshll.u32 %v2972_v27, 16  ;;  %v3277_v18 = vshrl.u32 %v2972_v27, 16  ;;  %v15004_v55 = vld [vmem:[%s21032_s5 + $0x1b8] sm:$0xff]  ;;  %5669 = vmatpush.bf16.msrb.mxu1 %v15012_v16 }
 0x2ff   : > { %2810 = vst [vmem:[#allocation3 + $0x178] sm:$0xf] %v2242_v54  ;;  %4113 = vmatmul.bf16.gmra.mxu0 %v12372_v5  ;;  %v3931_v29 = vpop.f32.mrf.mxu2  ;;  %v2679_v7 = vshll.u32 %v2402_v36, 16  ;;  %v2177_v1 = vadd.f32 %v2176_v17, %v2088_v60  ;;  %v15020_v54 = vld [vmem:[%s21032_s5 + $0x238] sm:$0xff] }
 0x300   : > { %21430 = vst [vmem:[#allocation71_spill] sm:$0xff] %v17216_v51  ;;  %3970 = vmatmul.bf16.gmra.mxu2 %v12448_v11  ;;  %4747 = vmatmul.bf16.gmra.mxu1 %v12700_v56  ;;  %v17218_v30 = vadd.f32 %v4020_v25, %v3931_v29  ;;  %v2678_v37 = vrot.slane %v2676_v21, 7  ;;  %v3275_v26 = vrot.slane %v3273_v9, 5  ;;  %v3279_v14 = vrot.slane %v3277_v18, 4  ;;  %v4022_v50 = vpop.f32.mrf.mxu3  ;;  %v14850_v18 = vld [vmem:[#allocation3 + $0x16c] sm:$0xf] }
 0x301   : > { %v2211_v60 = vmax.f32 %v2177_v1, 0.0  ;;  %v2674_v25 = vrot.slane %v17190_v35, 4  ;;  %v21218_v56 = vand.u32 15, %v17216_v51  ;;  %5758 = vmatpush.bf16.msrb.mxu2 %v15020_v54  ;;  %5580 = vmatpush.bf16.msrb.mxu0 %v15004_v55 }
 0x302   : > { %v2681_v17 = vor.u32 %v2679_v7, %v2678_v37  ;;  %v3276_v5 = vsel %vm16296_vm11, %v3271_v24, %v3275_v26  ;;  %v3280_v36 = vor.u32 %v3279_v14, %v3275_v26  ;;  %v2683_v44 = vrot.slane %v2678_v37, 4  ;;  %5670 = vmatpush.bf16.msrb.mxu1 %v15011_v32 }
 0x303   : > { %3369 = vst [vmem:[#allocation3 + $0x170] sm:$0xf] %v3276_v5  ;;  %v2243_v27 = vpack.c.bf16 %v2211_v60, %v2211_v60  ;;  %vm17248_vm3 = vcmp.ge.s32.totalorder %v21218_v56, 15 }
 0x304   : > { %v2089_v11 = vpop.f32.mrf.mxu0  ;;  %v2682_v35 = vsel %vm16304_vm10, %v2674_v25, %v2681_v17  ;;  %v3281_v55 = vrot.slane %v3280_v36, 4  ;;  %v14902_v36 = vld [vmem:[#allocation3 + $0xe0] sm:$0xf0]  ;;  %v12783_v63 = vld [vmem:[#allocation3 + $0x168] sm:$0xf] }
 0x305   : > { %v2090_v21 = vadd.f32 %v17065_v62, %v2089_v11  ;;  %v2178_v9 = vpop.f32.mrf.mxu1  ;;  %2769 = vst [vmem:[#allocation3 + $0x174] sm:$0xf] %v2682_v35  ;;  %v2403_v29 = vsel %vm16217_vm8, 0, %v2243_v27  ;;  %v2973_v14 = vsel %vm21219_vm9, 0, %v2243_v27  ;;  %v21431_v62 = vmov 0  ;;  %vm21254_vm9 = vmpackc.low %vm17248_vm3, %vm17248_vm3  ;;  %5581 = vmatpush.bf16.msrb.mxu0 %v15003_v61 }
 0x306   : > { %v12461_v24 = vld [vmem:[#allocation3 + $0x174] sm:$0xf0]  ;;  %v2685_v7 = vshrl.u32 %v2403_v29, 16  ;;  %2811 = vst [vmem:[#allocation3 + $0x184] sm:$0xf] %v2243_v27  ;;  %v3283_v1 = vshll.u32 %v2973_v14, 16 }
 0x307   : > { %v3287_v26 = vshrl.u32 %v2973_v14, 16  ;;  %v21432_v62 = vsel %vm17248_vm3, 4294967295, %v21431_v62  ;;  %v3933_v54 = vpop.f32.mrf.mxu2  ;;  %v2179_v16 = vadd.f32 %v2178_v9, %v2090_v21  ;;  %v12464_v60 = vor.u32 %v14850_v18, %v12461_v24  ;;  %v14831_v14 = vld [vmem:[#allocation3 + $0xd0] sm:$0xf0]  ;;  %v12383_v18 = vld [vmem:[#allocation3 + $0xc8] sm:$0xf] }
 0x308   : > { %21433 = vst [vmem:[#allocation72_spill] sm:$0xff] %v21432_v62  ;;  %v17252_v25 = vadd.f32 %v4022_v50, %v3933_v54  ;;  %v2687_v17 = vrot.slane %v2685_v7, 7  ;;  %v2688_v5 = vshll.u32 %v2403_v29, 16  ;;  %v3285_v11 = vrot.slane %v3283_v1, 5  ;;  %v4025_v13 = vpop.f32.mrf.mxu3  ;;  %v12459_v7 = vld [vmem:[#allocation3 + $0x168] sm:$0xf] }
 0x309   : > { %v3289_v35 = vrot.slane %v3287_v26, 4  ;;  %v2212_v27 = vmax.f32 %v2179_v16, 0.0  ;;  %4064 = vmatmul.bf16.gmra.mxu3 %v12464_v60  ;;  %v12384_v26 = vor.u32 %v14831_v14, %v12383_v18  ;;  %v12711_v54 = vld [vmem:[#allocation3 + $0xd8] sm:$0xf] }
 0x30a   : > { %v2690_v51 = vor.u32 %v2688_v5, %v2687_v17  ;;  %v3286_v56 = vsel %vm16296_vm11, %v3281_v55, %v3285_v11  ;;  %v2692_v62 = vrot.slane %v2687_v17, 4  ;;  %v14879_v17 = vld [vmem:[#allocation3 + $0x28] sm:$0xf0] }
 0x30b   : > { %v3290_v50 = vor.u32 %v3289_v35, %v3285_v11  ;;  %3370 = vst [vmem:[#allocation3 + $0x17c] sm:$0xf] %v3286_v56  ;;  %v2244_v21 = vpack.c.bf16 %v2212_v27, %v2212_v27 }
 0x30c   : > { %v4079_v9 = vpop.f32.mrf.mxu0  ;;  %v2691_v29 = vsel %vm16304_vm10, %v2683_v44, %v2690_v51  ;;  %v14851_v1 = vld [vmem:[#allocation3 + $0x170] sm:$0xf0]  ;;  %v12712_v51 = vor.u32 %v14902_v36, %v12711_v54 }
 0x30d   : > { %v17262_v24 = vadd.f32 %v4079_v9, %v16757_v40  ;;  %v17264_v37 = vpop.f32.mrf.mxu1  ;;  %2770 = vst [vmem:[#allocation3 + $0x180] sm:$0xf] %v2691_v29  ;;  %v2404_v56 = vsel %vm21254_vm9, 0, %v2244_v21  ;;  %v2974_v55 = vsel %vm16217_vm8, 0, %v2244_v21  ;;  %v12460_v44 = vor.u32 %v14851_v1, %v12459_v7  ;;  %vm21491_vm9 = vmpackc.low %vm16242_vm13, %vm16242_vm13 }
 0x30e   : > { %v2694_v40 = vshrl.u32 %v2404_v56, 16  ;;  %2812 = vst [vmem:[#allocation3 + $0x190] sm:$0xf] %v2244_v21  ;;  %v3293_v16 = vshll.u32 %v2974_v55, 16  ;;  %v3297_v60 = vshrl.u32 %v2974_v55, 16  ;;  %v3291_v11 = vrot.slane %v3290_v50, 4 }
 0x30f   : > { %4118 = vmatmul.bf16.gmra.mxu0 %v12384_v26  ;;  %v3936_v5 = vpop.f32.mrf.mxu2  ;;  %v2697_v14 = vshll.u32 %v2404_v56, 16  ;;  %v3372_v26 = vld [vmem:[#allocation3 + $0x194] sm:$0xf] }
 0x310   : > { %3975 = vmatmul.bf16.gmra.mxu2 %v12460_v44  ;;  %4752 = vmatmul.bf16.gmra.mxu1 %v12712_v51  ;;  %v17273_v35 = vadd.f32 %v4025_v13, %v3936_v5  ;;  %v2696_v27 = vrot.slane %v2694_v40, 7  ;;  %v3295_v9 = vrot.slane %v3293_v16, 5  ;;  %v3299_v18 = vrot.slane %v3297_v60, 4  ;;  %v4027_v29 = vpop.f32.mrf.mxu3  ;;  %v12623_v51 = vld [vmem:[#allocation3 + $0x20] sm:$0xf] }
 0x311   : > { %v12624_v16 = vor.u32 %v14879_v17, %v12623_v51 }
 0x312   : > { %v2699_v7 = vor.u32 %v2697_v14, %v2696_v27  ;;  %v2701_v36 = vrot.slane %v2696_v27, 4  ;;  %v3296_v21 = vsel %vm16296_vm11, %v3291_v11, %v3295_v9  ;;  %v3300_v1 = vor.u32 %v3299_v18, %v3295_v9  ;;  %v12395_v27 = vld [vmem:[#allocation3 + $0xe0] sm:$0xf]  ;;  %v12723_v18 = vld [vmem:[#allocation3 + $0xf0] sm:$0xf] }
 0x313   : > { %3371 = vst [vmem:[#allocation3 + $0x188] sm:$0xf] %v3296_v21  ;;  %v12724_v21 = vor.u32 %v14905_v34, %v12723_v18  ;;  %v12629_v18 = vld [vmem:[#allocation3 + $0x3c] sm:$0xf0] }
 0x314   : > { %v17277_v50 = vpop.f32.mrf.mxu0  ;;  %v2700_v13 = vsel %vm16304_vm10, %v2692_v62, %v2699_v7  ;;  %v2773_v54 = vsel %vm16146_vm5, %v2701_v36, %v2772_v22  ;;  %v3301_v56 = vrot.slane %v3300_v1, 4  ;;  %v14834_v62 = vld [vmem:[#allocation3 + $0xe8] sm:$0xf0]  ;;  %v12617_v22 = vld [vmem:[#allocation3 + $0x24] sm:$0xf0]  ;;  %vm6440_vm5 = vcmask 519168  }
 0x315   : > { %v17283_v55 = vpop.f32.mrf.mxu1  ;;  %2771 = vst [vmem:[#allocation3 + $0x18c] sm:$0xf] %v2700_v13  ;;  %v12396_v48 = vor.u32 %v14834_v62, %v12395_v27  ;;  %v14877_v7 = vld [vmem:[#allocation3 + $0x1c] sm:$0xf]  ;;  %v14837_v27 = vld [vmem:[#allocation3 + $0x100] sm:$0xf0] }
 0x316   : > { %2774 = vst [vmem:[#allocation3 + $0x198] sm:$0x1] %v2773_v54  ;;  %v3373_v44 = vsel %vm16137_vm2, %v3301_v56, %v3372_v26  ;;  %v12620_v1 = vor.u32 %v14877_v7, %v12617_v22  ;;  %v15019_v56 = vld [vmem:[%s21032_s5 + $0x230] sm:$0xff]  ;;  %vm7991_vm2 = vcmask 519171  }
 0x317   : > { %v3938_v40 = vpop.f32.mrf.mxu2  ;;  %3374 = vst [vmem:[#allocation3 + $0x194] sm:$0xf] %v3373_v44  ;;  %5759 = vmatpush.bf16.msrb.mxu2 %v15019_v56 }
 0x318   : > { %v17287_v60 = vadd.f32 %v4027_v29, %v3938_v40  ;;  %v4030_v5 = vpop.f32.mrf.mxu3 }
 0x319   : > { %4890 = vmatmul.bf16.vlgmr.msrb.gmra.mxu3 %v12624_v16  ;;  %v14882_v16 = vld [vmem:[#allocation3 + $0x40] sm:$0xf0] }
 0x31c   : > { %v4084_v11 = vpop.f32.mrf.mxu0 }
 0x31d   : > { %v17290_v14 = vadd.f32 %v4084_v11, %v16899_v10  ;;  %v17292_v9 = vpop.f32.mrf.mxu1  ;;  %v2775_v36 = vld [vmem:[#allocation3 + $0x198] sm:$0xf] }
 0x31e   : > { %v2776_v29 = vsel %vm16261_vm15, 0, %v2775_v36  ;;  %v3375_v26 = vld [vmem:[#allocation3 + $0x194] sm:$0x8]  ;;  %v12407_v36 = vld [vmem:[#allocation3 + $0xf8] sm:$0xf] }
 0x31f   : > { %4123 = vmatmul.bf16.gmra.mxu0 %v12396_v48  ;;  %v3941_v13 = vpop.f32.mrf.mxu2  ;;  %2777 = vst [vmem:[#allocation3 + $0x198] sm:$0xf] %v2776_v29  ;;  %v3376_v54 = vsel %vm16248_vm14, 0, %v3375_v26  ;;  %v14908_v48 = vld [vmem:[#allocation3 + $0x110] sm:$0xf0]  ;;  %vm21253_vm14 = vcmask 518144  }
 0x320   : > { %4757 = vmatmul.bf16.gmra.mxu1 %v12724_v21  ;;  %4801 = vmatmul.bf16.vlgmr.msra.gmra.mxu2 %v12620_v1  ;;  %v17298_v10 = vadd.f32 %v4030_v5, %v3941_v13  ;;  %3377 = vst [vmem:[#allocation3 + $0x194] sm:$0x8] %v3376_v54  ;;  %v4032_v17 = vpop.f32.mrf.mxu3  ;;  %v12635_v5 = vld [vmem:[#allocation3 + $0x38] sm:$0xf]  ;;  %v12408_v1 = vor.u32 %v14837_v27, %v12407_v36  ;;  %v12735_v29 = vld [vmem:[#allocation3 + $0x108] sm:$0xf] }
 0x321   : > { %v12636_v34 = vor.u32 %v14882_v16, %v12635_v5  ;;  %v14880_v26 = vld [vmem:[#allocation3 + $0x34] sm:$0xf]  ;;  %v12736_v13 = vor.u32 %v14908_v48, %v12735_v29  ;;  %v14885_v16 = vld [vmem:[#allocation3 + $0x58] sm:$0xf0]  ;;  %v12647_v5 = vld [vmem:[#allocation3 + $0x50] sm:$0xf] }
 0x322   : > { %v12632_v54 = vor.u32 %v14880_v26, %v12629_v18  ;;  %v14840_v18 = vld [vmem:[#allocation3 + $0x118] sm:$0xf0]  ;;  %v12641_v36 = vld [vmem:[#allocation3 + $0x54] sm:$0xf0] }
 0x324   : > { %v4086_v44 = vpop.f32.mrf.mxu0 }
 0x325   : > { %v17310_v51 = vadd.f32 %v4086_v44, %v16927_v33  ;;  %v17312_v40 = vpop.f32.mrf.mxu1 }
 0x327   : > { %v3943_v62 = vpop.f32.mrf.mxu2 }
 0x328   : > { %v17314_v22 = vadd.f32 %v4032_v17, %v3943_v62  ;;  %v4035_v11 = vpop.f32.mrf.mxu3 }
 0x329   : > { %4895 = vmatmul.bf16.gmra.mxu3 %v12636_v34  ;;  %v12648_v34 = vor.u32 %v14885_v16, %v12647_v5 }
 0x32c   : > { %v4089_v7 = vpop.f32.mrf.mxu0 }
 0x32d   : > { %v17317_v21 = vadd.f32 %v4089_v7, %v16955_v6  ;;  %v17319_v33 = vpop.f32.mrf.mxu1  ;;  %v14911_v7 = vld [vmem:[#allocation3 + $0x128] sm:$0xf0] }
 0x32f   : > { %4128 = vmatmul.bf16.gmra.mxu0 %v12408_v1  ;;  %v3946_v56 = vpop.f32.mrf.mxu2  ;;  %v12419_v1 = vld [vmem:[#allocation3 + $0x110] sm:$0xf] }
 0x330   : > { %4762 = vmatmul.bf16.gmra.mxu1 %v12736_v13  ;;  %4806 = vmatmul.bf16.gmra.mxu2 %v12632_v54  ;;  %v17321_v17 = vadd.f32 %v4035_v11, %v3946_v56  ;;  %v4037_v61 = vpop.f32.mrf.mxu3  ;;  %v12420_v26 = vor.u32 %v14840_v18, %v12419_v1  ;;  %v12747_v13 = vld [vmem:[#allocation3 + $0x120] sm:$0xf]  ;;  %v14883_v54 = vld [vmem:[#allocation3 + $0x4c] sm:$0xf]  ;;  %v12659_v1 = vld [vmem:[#allocation3 + $0x68] sm:$0xf] }
 0x331   : > { %v12748_v56 = vor.u32 %v14911_v7, %v12747_v13  ;;  %v14888_v7 = vld [vmem:[#allocation3 + $0x70] sm:$0xf0] }
 0x334   : > { %v4091_v32 = vpop.f32.mrf.mxu0 }
 0x335   : > { %v17324_v44 = vadd.f32 %v4091_v32, %v16982_v42  ;;  %v17326_v6 = vpop.f32.mrf.mxu1  ;;  %v12644_v32 = vor.u32 %v14883_v54, %v12641_v36  ;;  %v15002_v36 = vld [vmem:[%s21032_s5 + $0x1a8] sm:$0xff]  ;;  %v14914_v54 = vld [vmem:[#allocation3 + $0x140] sm:$0xf0] }
 0x336   : > { %5582 = vmatpush.bf16.msrb.mxu0 %v15002_v36  ;;  %v14886_v36 = vld [vmem:[#allocation3 + $0x64] sm:$0xf] }
 0x337   : > { %v3948_v62 = vpop.f32.mrf.mxu2 }
 0x338   : > { %v17328_v27 = vadd.f32 %v4037_v61, %v3948_v62  ;;  %v4040_v48 = vpop.f32.mrf.mxu3  ;;  %v15018_v61 = vld [vmem:[%s21032_s5 + $0x228] sm:$0xff] }
 0x339   : > { %4900 = vmatmul.bf16.gmra.mxu3 %v12648_v34  ;;  %5760 = vmatpush.bf16.msrb.mxu2 %v15018_v61  ;;  %v12431_v61 = vld [vmem:[#allocation3 + $0x128] sm:$0xf] }
 0x33c   : > { %v4094_v11 = vpop.f32.mrf.mxu0 }
 0x33d   : > { %v17331_v29 = vadd.f32 %v4094_v11, %v17015_v58  ;;  %v17333_v42 = vpop.f32.mrf.mxu1  ;;  %v15010_v11 = vld [vmem:[%s21032_s5 + $0x1e8] sm:$0xff] }
 0x33e   : > { %5671 = vmatpush.bf16.msrb.mxu1 %v15010_v11  ;;  %v12760_v11 = vor.u32 %v14914_v54, %v12759_v43  ;;  %v14917_v54 = vld [vmem:[#allocation3 + $0x158] sm:$0xf0] }
 0x33f   : > { %4133 = vmatmul.bf16.gmra.mxu0 %v12420_v26  ;;  %v3951_v16 = vpop.f32.mrf.mxu2 }
 0x340   : > { %4767 = vmatmul.bf16.gmra.mxu1 %v12748_v56  ;;  %4811 = vmatmul.bf16.gmra.mxu2 %v12644_v32  ;;  %v17338_v5 = vadd.f32 %v4040_v48, %v3951_v16  ;;  %v4042_v58 = vpop.f32.mrf.mxu3  ;;  %v12660_v48 = vor.u32 %v14888_v7, %v12659_v1  ;;  %v12653_v56 = vld [vmem:[#allocation3 + $0x6c] sm:$0xf0] }
 0x341   : > { %v12656_v7 = vor.u32 %v14886_v36, %v12653_v56 }
 0x344   : > { %v4096_v62 = vpop.f32.mrf.mxu0 }
 0x345   : > { %v17341_v34 = vadd.f32 %v4096_v62, %v17046_v57  ;;  %v17343_v18 = vpop.f32.mrf.mxu1  ;;  %v14843_v57 = vld [vmem:[#allocation3 + $0x130] sm:$0xf0] }
 0x346   : > { %v12432_v8 = vor.u32 %v14843_v57, %v12431_v61  ;;  %v14846_v61 = vld [vmem:[#allocation3 + $0x148] sm:$0xf0] }
 0x347   : > { %v3953_v26 = vpop.f32.mrf.mxu2 }
 0x348   : > { %v17351_v13 = vadd.f32 %v4042_v58, %v3953_v26 }
 0x349   : > { %4905 = vmatmul.bf16.gmra.mxu3 %v12660_v48  ;;  %v4045_v16 = vpop.f32.mrf.mxu3 }
 0x34c   : > { %v4099_v32 = vpop.f32.mrf.mxu0 }
 0x34d   : > { %v17354_v62 = vadd.f32 %v4099_v32, %v17081_v23  ;;  %v17356_v3 = vpop.f32.mrf.mxu1  ;;  %v14891_v32 = vld [vmem:[#allocation3 + $0x88] sm:$0xf0] }
 0x34e   : > { %v12672_v57 = vor.u32 %v14891_v32, %v12671_v38  ;;  %v15001_v38 = vld [vmem:[%s21032_s5 + $0x1a0] sm:$0xff]  ;;  %v12772_v32 = vor.u32 %v14917_v54, %v12771_v49 }
 0x34f   : > { %4138 = vmatmul.bf16.gmra.mxu0 %v12432_v8  ;;  %v12665_v8 = vld [vmem:[#allocation3 + $0x84] sm:$0xf0] }
 0x350   : > { %4772 = vmatmul.bf16.gmra.mxu1 %v12760_v11  ;;  %4816 = vmatmul.bf16.gmra.mxu2 %v12656_v7  ;;  %v3956_v58 = vpop.f32.mrf.mxu2  ;;  %v14889_v11 = vld [vmem:[#allocation3 + $0x7c] sm:$0xf] }
 0x351   : > { %v17358_v1 = vadd.f32 %v4045_v16, %v3956_v58  ;;  %v4047_v26 = vpop.f32.mrf.mxu3  ;;  %v12443_v16 = vld [vmem:[#allocation3 + $0x140] sm:$0xf]  ;;  %5583 = vmatpush.bf16.msrb.mxu0 %v15001_v38  ;;  %v14999_v38 = vld [vmem:[%s21032_s5 + $0x190] sm:$0xff] }
 0x354   : > { %v4101_v48 = vpop.f32.mrf.mxu0 }
 0x355   : > { %v17361_v52 = vadd.f32 %v4101_v48, %v17115_v0  ;;  %v17363_v23 = vpop.f32.mrf.mxu1  ;;  %v12444_v48 = vor.u32 %v14846_v61, %v12443_v16  ;;  %v15008_v61 = vld [vmem:[%s21032_s5 + $0x1d8] sm:$0xff] }
 0x358   : > { %v3958_v43 = vpop.f32.mrf.mxu2 }
 0x359   : > { %4910 = vmatmul.bf16.gmra.mxu3 %v12672_v57  ;;  %v17365_v56 = vadd.f32 %v4047_v26, %v3958_v43  ;;  %v15009_v26 = vld [vmem:[%s21032_s5 + $0x1e0] sm:$0xff]  ;;  %v12668_v57 = vor.u32 %v14889_v11, %v12665_v8  ;;  %v15000_v43 = vld [vmem:[%s21032_s5 + $0x198] sm:$0xff] }
 0x35a   : > { %v4050_v7 = vpop.f32.mrf.mxu3  ;;  %5672 = vmatpush.bf16.msrb.mxu1 %v15009_v26  ;;  %5584 = vmatpush.bf16.msrb.mxu0 %v15000_v43  ;;  %v15007_v26 = vld [vmem:[%s21032_s5 + $0x1d0] sm:$0xff] }
 0x35b   : > { %v14920_v43 = vld [vmem:[#allocation3 + $0x170] sm:$0xf0] }
 0x35c   : > { %v4104_v36 = vpop.f32.mrf.mxu0 }
 0x35d   : > { %v17368_v58 = vadd.f32 %v4104_v36, %v17151_v39  ;;  %v17370_v0 = vpop.f32.mrf.mxu1  ;;  %v15017_v39 = vld [vmem:[%s21032_s5 + $0x220] sm:$0xff] }
 0x35e   : > { %5761 = vmatpush.bf16.msrb.mxu2 %v15017_v39  ;;  %5673 = vmatpush.bf16.msrb.mxu1 %v15008_v61  ;;  %v15006_v39 = vld [vmem:[%s21032_s5 + $0x1c8] sm:$0xff] }
 0x35f   : > { %4143 = vmatmul.bf16.gmra.mxu0 %v12444_v48  ;;  %v14894_v48 = vld [vmem:[#allocation3 + $0xa0] sm:$0xf0] }
 0x360   : > { %4777 = vmatmul.bf16.gmra.mxu1 %v12772_v32  ;;  %4821 = vmatmul.bf16.gmra.mxu2 %v12668_v57  ;;  %v12683_v32 = vld [vmem:[#allocation3 + $0x98] sm:$0xf]  ;;  %v14849_v57 = vld [vmem:[#allocation3 + $0x160] sm:$0xf0] }
 0x361   : > { %v3961_v49 = vpop.f32.mrf.mxu2  ;;  %5585 = vmatpush.bf16.msrb.mxu0 %v14999_v38 }
 0x362   : > { %v17387_v54 = vadd.f32 %v4050_v7, %v3961_v49  ;;  %v4052_v36 = vpop.f32.mrf.mxu3  ;;  %5674 = vmatpush.bf16.msrb.mxu1 %v15007_v26  ;;  %v12684_v7 = vor.u32 %v14894_v48, %v12683_v32  ;;  %v12677_v49 = vld [vmem:[#allocation3 + $0x9c] sm:$0xf0]  ;;  %v14892_v26 = vld [vmem:[#allocation3 + $0x94] sm:$0xf] }
 0x363   : > { %v12680_v53 = vor.u32 %v14892_v26, %v12677_v49  ;;  %v14923_v49 = vld [vmem:[#allocation3 + $0x188] sm:$0xf0] }
 0x364   : > { %v4106_v8 = vpop.f32.mrf.mxu0 }
 0x365   : > { %v17390_v16 = vadd.f32 %v4106_v8, %v17188_v4  ;;  %v17392_v11 = vpop.f32.mrf.mxu1  ;;  %v14998_v4 = vld [vmem:[%s21032_s5 + $0x188] sm:$0xff] }
 0x366   : > { %5675 = vmatpush.bf16.msrb.mxu1 %v15006_v39  ;;  %5586 = vmatpush.bf16.msrb.mxu0 %v14998_v4 }
 0x369   : > { %4915 = vmatmul.bf16.gmra.mxu3 %v12684_v7  ;;  %v3963_v61 = vpop.f32.mrf.mxu2  ;;  %v12456_v7 = vor.u32 %v14849_v57, %v12455_v41 }
 0x36a   : > { %v17406_v8 = vadd.f32 %v4052_v36, %v3963_v61  ;;  %v4055_v48 = vpop.f32.mrf.mxu3  ;;  %v15005_v36 = vld [vmem:[%s21032_s5 + $0x1c0] sm:$0xff]  ;;  %v12784_v61 = vor.u32 %v14920_v43, %v12783_v63  ;;  %5587 = vmatpush.bf16.msrb.mxu0 %v14997_v28  ;;  %v14852_v63 = vld [vmem:[#allocation3 + $0x178] sm:$0xf0] }
 0x36b   : > { %5676 = vmatpush.bf16.msrb.mxu1 %v15005_v36 }
 0x36c   : > { %v4109_v19 = vpop.f32.mrf.mxu0 }
 0x36d   : > { %v17409_v38 = vadd.f32 %v4109_v19, %v17218_v30  ;;  %v17411_v32 = vpop.f32.mrf.mxu1 }
 0x36f   : > { %4148 = vmatmul.bf16.gmra.mxu0 %v12456_v7 }
 0x370   : > { %4782 = vmatmul.bf16.gmra.mxu1 %v12784_v61  ;;  %4826 = vmatmul.bf16.gmra.mxu2 %v12680_v53  ;;  %v12689_v53 = vld [vmem:[#allocation3 + $0xb4] sm:$0xf0] }
 0x371   : > { %v3966_v19 = vpop.f32.mrf.mxu2 }
 0x372   : > { %v17419_v30 = vadd.f32 %v4055_v48, %v3966_v19  ;;  %v4057_v57 = vpop.f32.mrf.mxu3  ;;  %v12467_v48 = vld [vmem:[#allocation3 + $0x170] sm:$0xf]  ;;  %v12795_v19 = vld [vmem:[#allocation3 + $0x180] sm:$0xf] }
 0x373   : > { %v12468_v61 = vor.u32 %v14852_v63, %v12467_v48  ;;  %v12796_v47 = vor.u32 %v14923_v49, %v12795_v19  ;;  %v14900_v49 = vld [vmem:[#allocation3 + $0xd0] sm:$0xf0]  ;;  %v12701_v19 = vld [vmem:[#allocation3 + $0xcc] sm:$0xf0] }
 0x374   : > { %v4111_v41 = vpop.f32.mrf.mxu0 }
 0x375   : > { %v17422_v4 = vadd.f32 %v4111_v41, %v17252_v25  ;;  %v17424_v39 = vpop.f32.mrf.mxu1  ;;  %v14895_v41 = vld [vmem:[#allocation3 + $0xac] sm:$0xf] }
 0x376   : > { %v12692_v15 = vor.u32 %v14895_v41, %v12689_v53  ;;  %v12707_v53 = vld [vmem:[#allocation3 + $0xc8] sm:$0xf]  ;;  %v12953_v41 = vld [vmem:[#allocation3 + $0x3c] sm:$0xf0] }
 0x377   : > { %v12708_v48 = vor.u32 %v14900_v49, %v12707_v53  ;;  %v12956_v49 = vor.u32 %v14949_v46, %v12953_v41  ;;  %v12713_v41 = vld [vmem:[#allocation3 + $0xe4] sm:$0xf0] }
 0x379   : > { %4920 = vmatmul.bf16.gmra.mxu3 %v12696_v2  ;;  %v3968_v43 = vpop.f32.mrf.mxu2  ;;  %v15016_v2 = vld [vmem:[%s21032_s5 + $0x218] sm:$0xff] }
 0x37a   : > { %v17426_v28 = vadd.f32 %v4057_v57, %v3968_v43  ;;  %5762 = vmatpush.bf16.msrb.mxu2 %v15016_v2 }
 0x37c   : > { %v4114_v26 = vpop.f32.mrf.mxu0  ;;  %v4060_v7 = vpop.f32.mrf.mxu3 }
 0x37d   : > { %v17429_v36 = vadd.f32 %v4114_v26, %v17273_v35  ;;  %v17431_v25 = vpop.f32.mrf.mxu1 }
 0x37f   : > { %21434 = vst [vmem:[#allocation73_spill] sm:$0xff] %v17429_v36  ;;  %4153 = vmatmul.bf16.gmra.mxu0 %v12468_v61 }
 0x380   : > { %4787 = vmatmul.bf16.gmra.mxu1 %v12796_v47  ;;  %4831 = vmatmul.bf16.gmra.mxu2 %v12692_v15  ;;  %v14950_v47 = vld [vmem:[#allocation3 + $0x38] sm:$0xf0] }
 0x383   : > { %v3971_v20 = vpop.f32.mrf.mxu2 }
 0x384   : > { %v17436_v57 = vadd.f32 %v4060_v7, %v3971_v20  ;;  %v4116_v35 = vpop.f32.mrf.mxu0  ;;  %v4062_v43 = vpop.f32.mrf.mxu3  ;;  %v12951_v7 = vld [vmem:[#allocation3 + $0x30] sm:$0xf] }
 0x385   : > { %v17439_v26 = vadd.f32 %v4116_v35, %v17287_v60  ;;  %v17441_v63 = vpop.f32.mrf.mxu1  ;;  %v14898_v35 = vld [vmem:[#allocation3 + $0xc4] sm:$0xf]  ;;  %v12952_v31 = vor.u32 %v14950_v47, %v12951_v7  ;;  %v15028_v47 = vld [vmem:[%s21034_s7 + $0x38] sm:$0xff] }
 0x386   : > { %21436 = vst [vmem:[#allocation75_spill] sm:$0xff] %v17441_v63  ;;  %6127 = vmatpush.bf16.msra.mxu3 %v15028_v47  ;;  %v12965_v7 = vld [vmem:[#allocation3 + $0x54] sm:$0xf0] }
 0x387   : > { %21435 = vst [vmem:[#allocation74_spill] sm:$0xff] %v17439_v26  ;;  %v12704_v26 = vor.u32 %v14898_v35, %v12701_v19  ;;  %v12719_v19 = vld [vmem:[#allocation3 + $0xe0] sm:$0xf] }
 0x389   : > { %4925 = vmatmul.bf16.gmra.mxu3 %v12708_v48 }
 0x38b   : > { %v3973_v61 = vpop.f32.mrf.mxu2 }
 0x38c   : > { %v17443_v15 = vadd.f32 %v4062_v43, %v3973_v61  ;;  %v4119_v2 = vpop.f32.mrf.mxu0  ;;  %v4065_v20 = vpop.f32.mrf.mxu3 }
 0x38d   : > { %v17446_v59 = vadd.f32 %v4119_v2, %v17298_v10  ;;  %v17448_v60 = vpop.f32.mrf.mxu1  ;;  %v14903_v2 = vld [vmem:[#allocation3 + $0xe8] sm:$0xf0] }
 0x38e   : > { %v12720_v46 = vor.u32 %v14903_v2, %v12719_v19 }
 0x38f   : > { %21437 = vst [vmem:[#allocation76_spill] sm:$0xff] %v17446_v59  ;;  %5588 = vmatmul.bf16.vlgmr.msrb.gmra.mxu0 %v12952_v31  ;;  %v14953_v31 = vld [vmem:[#allocation3 + $0x50] sm:$0xf0] }
 0x390   : > { %4836 = vmatmul.bf16.gmra.mxu2 %v12704_v26  ;;  %5677 = vmatmul.bf16.vlgmr.msrb.gmra.mxu1 %v12956_v49 }
 0x393   : > { %v3976_v53 = vpop.f32.mrf.mxu2 }
 0x394   : > { %v17450_v48 = vadd.f32 %v4065_v20, %v3976_v53  ;;  %v4121_v43 = vpop.f32.mrf.mxu0  ;;  %v4067_v61 = vpop.f32.mrf.mxu3 }
 0x395   : > { %v17453_v36 = vadd.f32 %v4121_v43, %v17314_v22  ;;  %v17455_v10 = vpop.f32.mrf.mxu1  ;;  %v12963_v22 = vld [vmem:[#allocation3 + $0x48] sm:$0xf] }
 0x396   : > { %21439 = vst [vmem:[#allocation78_spill] sm:$0xff] %v17455_v10  ;;  %v12964_v59 = vor.u32 %v14953_v31, %v12963_v22  ;;  %v14952_v10 = vld [vmem:[#allocation3 + $0x4c] sm:$0xf] }
 0x397   : > { %21438 = vst [vmem:[#allocation77_spill] sm:$0xff] %v17453_v36  ;;  %v14901_v36 = vld [vmem:[#allocation3 + $0xdc] sm:$0xf]  ;;  %v12968_v47 = vor.u32 %v14952_v10, %v12965_v7  ;;  %v14956_v7 = vld [vmem:[#allocation3 + $0x68] sm:$0xf0] }
 0x398   : > { %v12716_v2 = vor.u32 %v14901_v36, %v12713_v41  ;;  %v14906_v36 = vld [vmem:[#allocation3 + $0x100] sm:$0xf0] }
 0x399   : > { %4930 = vmatmul.bf16.gmra.mxu3 %v12720_v46 }
 0x39b   : > { %v3978_v26 = vpop.f32.mrf.mxu2 }
 0x39c   : > { %v17460_v20 = vadd.f32 %v4067_v61, %v3978_v26  ;;  %v4124_v35 = vpop.f32.mrf.mxu0  ;;  %v4891_v49 = vpop.f32.mrf.mxu3  ;;  %v15015_v61 = vld [vmem:[%s21032_s5 + $0x210] sm:$0xff] }
 0x39d   : > { %v17463_v53 = vadd.f32 %v4124_v35, %v17321_v17  ;;  %v17465_v43 = vpop.f32.mrf.mxu1  ;;  %5763 = vmatpush.bf16.msrb.mxu2 %v15015_v61 }
 0x39f   : > { %21440 = vst [vmem:[#allocation79_spill] sm:$0xff] %v17463_v53  ;;  %5593 = vmatmul.bf16.gmra.mxu0 %v12964_v59  ;;  %v12731_v59 = vld [vmem:[#allocation3 + $0xf8] sm:$0xf] }
 0x3a0   : > { %4841 = vmatmul.bf16.gmra.mxu2 %v12716_v2  ;;  %5682 = vmatmul.bf16.gmra.mxu1 %v12968_v47  ;;  %v12732_v41 = vor.u32 %v14906_v36, %v12731_v59  ;;  %v12725_v2 = vld [vmem:[#allocation3 + $0xfc] sm:$0xf0]  ;;  %v12977_v47 = vld [vmem:[#allocation3 + $0x6c] sm:$0xf0] }
 0x3a3   : > { %v4802_v19 = vpop.f32.mrf.mxu2 }
 0x3a4   : > { %v4803_v46 = vadd.f32 %v4802_v19, %v17264_v37  ;;  %v4126_v17 = vpop.f32.mrf.mxu0  ;;  %v4893_v26 = vpop.f32.mrf.mxu3  ;;  %v12975_v19 = vld [vmem:[#allocation3 + $0x60] sm:$0xf] }
 0x3a5   : > { %v17472_v35 = vadd.f32 %v4126_v17, %v17328_v27  ;;  %v17474_v31 = vpop.f32.mrf.mxu1 }
 0x3a6   : > { %21442 = vst [vmem:[#allocation81_spill] sm:$0xff] %v17474_v31  ;;  %v17476_v10 = vadd.f32 %v4891_v49, %v4803_v46  ;;  %v12976_v49 = vor.u32 %v14956_v7, %v12975_v19  ;;  %v14955_v46 = vld [vmem:[#allocation3 + $0x64] sm:$0xf]  ;;  %v12989_v19 = vld [vmem:[#allocation3 + $0x84] sm:$0xf0] }
 0x3a7   : > { %21441 = vst [vmem:[#allocation80_spill] sm:$0xff] %v17472_v35  ;;  %v14904_v35 = vld [vmem:[#allocation3 + $0xf4] sm:$0xf]  ;;  %v12980_v59 = vor.u32 %v14955_v46, %v12977_v47  ;;  %v14959_v47 = vld [vmem:[#allocation3 + $0x80] sm:$0xf0] }
 0x3a8   : > { %v12728_v36 = vor.u32 %v14904_v35, %v12725_v2  ;;  %v12743_v35 = vld [vmem:[#allocation3 + $0x110] sm:$0xf]  ;;  %v12987_v46 = vld [vmem:[#allocation3 + $0x78] sm:$0xf] }
 0x3a9   : > { %4935 = vmatmul.bf16.gmra.mxu3 %v12732_v41 }
 0x3ab   : > { %v4804_v22 = vpop.f32.mrf.mxu2 }
 0x3ac   : > { %v4805_v61 = vadd.f32 %v4804_v22, %v17283_v55  ;;  %v4129_v37 = vpop.f32.mrf.mxu0  ;;  %v4896_v53 = vpop.f32.mrf.mxu3 }
 0x3ad   : > { %v17480_v27 = vadd.f32 %v4129_v37, %v17338_v5  ;;  %v17482_v17 = vpop.f32.mrf.mxu1 }
 0x3ae   : > { %v17484_v31 = vadd.f32 %v4893_v26, %v4805_v61  ;;  %v15027_v26 = vld [vmem:[%s21034_s7 + $0x30] sm:$0xff]  ;;  %v12737_v61 = vld [vmem:[#allocation3 + $0x114] sm:$0xf0] }
 0x3af   : > { %21443 = vst [vmem:[#allocation82_spill] sm:$0xff] %v17480_v27  ;;  %5598 = vmatmul.bf16.gmra.mxu0 %v12976_v49  ;;  %v14909_v27 = vld [vmem:[#allocation3 + $0x118] sm:$0xf0]  ;;  %6128 = vmatpush.bf16.msra.mxu3 %v15027_v26 }
 0x3b0   : > { %4846 = vmatmul.bf16.gmra.mxu2 %v12728_v36  ;;  %5687 = vmatmul.bf16.gmra.mxu1 %v12980_v59  ;;  %v12744_v2 = vor.u32 %v14909_v27, %v12743_v35 }
 0x3b3   : > { %v4807_v41 = vpop.f32.mrf.mxu2 }
 0x3b4   : > { %v4808_v55 = vadd.f32 %v4807_v41, %v17292_v9  ;;  %v4131_v22 = vpop.f32.mrf.mxu0  ;;  %v4898_v63 = vpop.f32.mrf.mxu3  ;;  %v14907_v41 = vld [vmem:[#allocation3 + $0x10c] sm:$0xf] }
 0x3b5   : > { %v17488_v5 = vadd.f32 %v4131_v22, %v17351_v13  ;;  %v17490_v37 = vpop.f32.mrf.mxu1  ;;  %v14958_v22 = vld [vmem:[#allocation3 + $0x7c] sm:$0xf]  ;;  %v12740_v26 = vor.u32 %v14907_v41, %v12737_v61  ;;  %v14912_v61 = vld [vmem:[#allocation3 + $0x130] sm:$0xf0] }
 0x3b6   : > { %v17492_v7 = vadd.f32 %v4896_v53, %v4808_v55  ;;  %v12988_v55 = vor.u32 %v14959_v47, %v12987_v46  ;;  %v12992_v35 = vor.u32 %v14958_v22, %v12989_v19  ;;  %v14962_v41 = vld [vmem:[#allocation3 + $0x98] sm:$0xf0]  ;;  %v12749_v22 = vld [vmem:[#allocation3 + $0x12c] sm:$0xf0] }
 0x3b9   : > { %4940 = vmatmul.bf16.gmra.mxu3 %v12744_v2 }
 0x3bb   : > { %v4809_v9 = vpop.f32.mrf.mxu2 }
 0x3bc   : > { %v4810_v13 = vadd.f32 %v4809_v9, %v17312_v40  ;;  %v4134_v49 = vpop.f32.mrf.mxu0  ;;  %v4901_v36 = vpop.f32.mrf.mxu3  ;;  %v15014_v40 = vld [vmem:[%s21032_s5 + $0x208] sm:$0xff] }
 0x3bd   : > { %v17499_v53 = vadd.f32 %v4134_v49, %v17358_v1  ;;  %v17501_v59 = vpop.f32.mrf.mxu1  ;;  %5764 = vmatpush.bf16.msrb.mxu2 %v15014_v40  ;;  %v12999_v40 = vld [vmem:[#allocation3 + $0x90] sm:$0xf] }
 0x3be   : > { %v17503_v27 = vadd.f32 %v4898_v63, %v4810_v13  ;;  %v12755_v13 = vld [vmem:[#allocation3 + $0x128] sm:$0xf] }
 0x3bf   : > { %21444 = vst [vmem:[#allocation83_spill] sm:$0xff] %v17499_v53  ;;  %5603 = vmatmul.bf16.gmra.mxu0 %v12988_v55  ;;  %v12756_v46 = vor.u32 %v14912_v61, %v12755_v13 }
 0x3c0   : > { %4851 = vmatmul.bf16.gmra.mxu2 %v12740_v26  ;;  %5692 = vmatmul.bf16.gmra.mxu1 %v12992_v35  ;;  %v13001_v26 = vld [vmem:[#allocation3 + $0x9c] sm:$0xf0] }
 0x3c3   : > { %v4812_v2 = vpop.f32.mrf.mxu2 }
 0x3c4   : > { %v4813_v1 = vadd.f32 %v4812_v2, %v17319_v33  ;;  %v4136_v9 = vpop.f32.mrf.mxu0  ;;  %v4903_v49 = vpop.f32.mrf.mxu3 }
 0x3c5   : > { %v17510_v47 = vadd.f32 %v4136_v9, %v17365_v56  ;;  %v17512_v63 = vpop.f32.mrf.mxu1 }
 0x3c6   : > { %21446 = vst [vmem:[#allocation85_spill] sm:$0xff] %v17512_v63  ;;  %v17514_v19 = vadd.f32 %v4901_v36, %v4813_v1  ;;  %v13000_v36 = vor.u32 %v14962_v41, %v12999_v40  ;;  %v14961_v1 = vld [vmem:[#allocation3 + $0x94] sm:$0xf]  ;;  %v13013_v40 = vld [vmem:[#allocation3 + $0xb4] sm:$0xf0] }
 0x3c7   : > { %21445 = vst [vmem:[#allocation84_spill] sm:$0xff] %v17510_v47  ;;  %v14910_v47 = vld [vmem:[#allocation3 + $0x124] sm:$0xf]  ;;  %v13004_v13 = vor.u32 %v14961_v1, %v13001_v26  ;;  %v14965_v26 = vld [vmem:[#allocation3 + $0xb0] sm:$0xf0] }
 0x3c8   : > { %v12752_v61 = vor.u32 %v14910_v47, %v12749_v22  ;;  %v12767_v47 = vld [vmem:[#allocation3 + $0x140] sm:$0xf]  ;;  %v13011_v1 = vld [vmem:[#allocation3 + $0xa8] sm:$0xf] }
 0x3c9   : > { %4945 = vmatmul.bf16.gmra.mxu3 %v12756_v46 }
 0x3cb   : > { %v4814_v55 = vpop.f32.mrf.mxu2 }
 0x3cc   : > { %v4815_v35 = vadd.f32 %v4814_v55, %v17326_v6  ;;  %v4139_v33 = vpop.f32.mrf.mxu0  ;;  %v4906_v2 = vpop.f32.mrf.mxu3 }
 0x3cd   : > { %v17518_v56 = vadd.f32 %v4139_v33, %v17387_v54  ;;  %v17520_v9 = vpop.f32.mrf.mxu1 }
 0x3ce   : > { %v17522_v53 = vadd.f32 %v4903_v49, %v4815_v35  ;;  %v15026_v49 = vld [vmem:[%s21034_s7 + $0x28] sm:$0xff] }
 0x3cf   : > { %21447 = vst [vmem:[#allocation86_spill] sm:$0xff] %v17518_v56  ;;  %5608 = vmatmul.bf16.gmra.mxu0 %v13000_v36  ;;  %v14915_v56 = vld [vmem:[#allocation3 + $0x148] sm:$0xf0]  ;;  %6129 = vmatpush.bf16.msra.mxu3 %v15026_v49  ;;  %v12761_v35 = vld [vmem:[#allocation3 + $0x144] sm:$0xf0] }
 0x3d0   : > { %4856 = vmatmul.bf16.gmra.mxu2 %v12752_v61  ;;  %5697 = vmatmul.bf16.gmra.mxu1 %v13004_v13  ;;  %v12768_v22 = vor.u32 %v14915_v56, %v12767_v47  ;;  %v14913_v56 = vld [vmem:[#allocation3 + $0x13c] sm:$0xf] }
 0x3d1   : > { %v12764_v47 = vor.u32 %v14913_v56, %v12761_v35 }
 0x3d3   : > { %v4817_v46 = vpop.f32.mrf.mxu2 }
 0x3d4   : > { %v4818_v6 = vadd.f32 %v4817_v46, %v17333_v42  ;;  %v4141_v55 = vpop.f32.mrf.mxu0  ;;  %v4908_v63 = vpop.f32.mrf.mxu3 }
 0x3d5   : > { %v17526_v54 = vadd.f32 %v4141_v55, %v17406_v8  ;;  %v17528_v33 = vpop.f32.mrf.mxu1  ;;  %v17537_v8 = vadd.f32 %v17476_v10, %v17262_v24  ;;  %v14964_v55 = vld [vmem:[#allocation3 + $0xac] sm:$0xf]  ;;  %v3993_v24 = vadd.f32 %v16839_v12, %v16864_v45 }
 0x3d6   : > { %v17530_v41 = vadd.f32 %v4906_v2, %v4818_v6  ;;  %v13012_v6 = vor.u32 %v14965_v26, %v13011_v1  ;;  %v14968_v1 = vld [vmem:[#allocation3 + $0xc8] sm:$0xf0] }
 0x3d9   : > { %4950 = vmatmul.bf16.gmra.mxu3 %v12768_v22  ;;  %v13016_v22 = vor.u32 %v14964_v55, %v13013_v40  ;;  %v14918_v40 = vld [vmem:[#allocation3 + $0x160] sm:$0xf0] }
 0x3db   : > { %v4819_v42 = vpop.f32.mrf.mxu2 }
 0x3dc   : > { %v4820_v36 = vadd.f32 %v4819_v42, %v17343_v18  ;;  %v4144_v2 = vpop.f32.mrf.mxu0  ;;  %v4911_v61 = vpop.f32.mrf.mxu3  ;;  %v15013_v18 = vld [vmem:[%s21032_s5 + $0x200] sm:$0xff] }
 0x3dd   : > { %v17541_v13 = vadd.f32 %v4144_v2, %v17419_v30  ;;  %v17543_v46 = vpop.f32.mrf.mxu1  ;;  %v4082_v30 = vadd.f32 %v17277_v50, %v3993_v24  ;;  %5765 = vmatpush.bf16.msrb.mxu2 %v15013_v18  ;;  %v12779_v2 = vld [vmem:[#allocation3 + $0x158] sm:$0xf]  ;;  %v14916_v24 = vld [vmem:[#allocation3 + $0x154] sm:$0xf] }
 0x3de   : > { %v17545_v49 = vadd.f32 %v4908_v63, %v4820_v36  ;;  %v12780_v50 = vor.u32 %v14918_v40, %v12779_v2 }
 0x3df   : > { %5613 = vmatmul.bf16.gmra.mxu0 %v13012_v6  ;;  %v17554_v26 = vadd.f32 %v17484_v31, %v4082_v30  ;;  %v12773_v31 = vld [vmem:[#allocation3 + $0x15c] sm:$0xf0]  ;;  %v13025_v6 = vld [vmem:[#allocation3 + $0xcc] sm:$0xf0]  ;;  %v14967_v30 = vld [vmem:[#allocation3 + $0xc4] sm:$0xf] }
 0x3e0   : > { %4861 = vmatmul.bf16.gmra.mxu2 %v12764_v47  ;;  %5702 = vmatmul.bf16.gmra.mxu1 %v13016_v22 }
 0x3e3   : > { %v4822_v10 = vpop.f32.mrf.mxu2 }
 0x3e4   : > { %v4823_v63 = vadd.f32 %v4822_v10, %v17356_v3  ;;  %v4146_v42 = vpop.f32.mrf.mxu0  ;;  %v17557_v35 = vpop.f32.mrf.mxu3  ;;  %v17570_v3 = vadd.f32 %v17492_v7, %v17290_v14  ;;  %v12776_v10 = vor.u32 %v14916_v24, %v12773_v31  ;;  %v17579_v14 = vadd.f32 %v17503_v27, %v17310_v51  ;;  %v13037_v24 = vld [vmem:[#allocation3 + $0xe4] sm:$0xf0] }
 0x3e5   : > { %v17560_v12 = vadd.f32 %v4146_v42, %v17426_v28  ;;  %v17562_v45 = vpop.f32.mrf.mxu1  ;;  %v13023_v28 = vld [vmem:[#allocation3 + $0xc0] sm:$0xf] }
 0x3e6   : > { %v17564_v36 = vadd.f32 %v4911_v61, %v4823_v63  ;;  %v13024_v18 = vor.u32 %v14968_v1, %v13023_v28  ;;  %v13028_v63 = vor.u32 %v14967_v30, %v13025_v6  ;;  %v14921_v1 = vld [vmem:[#allocation3 + $0x178] sm:$0xf0]  ;;  %v15025_v6 = vld [vmem:[%s21034_s7 + $0x20] sm:$0xff]  ;;  %v12785_v28 = vld [vmem:[#allocation3 + $0x174] sm:$0xf0] }
 0x3e7   : > { %6130 = vmatpush.bf16.msra.mxu3 %v15025_v6 }
 0x3e9   : > { %4955 = vmatmul.bf16.gmra.mxu3 %v12780_v50 }
 0x3eb   : > { %v17566_v56 = vpop.f32.mrf.mxu2 }
 0x3ec   : > { %v4149_v55 = vpop.f32.mrf.mxu0  ;;  %v4916_v47 = vpop.f32.mrf.mxu3 }
 0x3ed   : > { %v17573_v22 = vadd.f32 %v4149_v55, %v17436_v57  ;;  %v17575_v61 = vpop.f32.mrf.mxu1  ;;  %v12791_v55 = vld [vmem:[#allocation3 + $0x170] sm:$0xf] }
 0x3ee   : > { %v12792_v51 = vor.u32 %v14921_v1, %v12791_v55 }
 0x3ef   : > { %5618 = vmatmul.bf16.gmra.mxu0 %v13024_v18 }
 0x3f0   : > { %4866 = vmatmul.bf16.gmra.mxu2 %v12776_v10  ;;  %5707 = vmatmul.bf16.gmra.mxu1 %v13028_v63 }
 0x3f3   : > { %v4827_v42 = vpop.f32.mrf.mxu2 }
 0x3f4   : > { %v4828_v7 = vadd.f32 %v4827_v42, %v17370_v0  ;;  %v4151_v40 = vpop.f32.mrf.mxu0  ;;  %v17582_v57 = vpop.f32.mrf.mxu3  ;;  %v14971_v0 = vld [vmem:[#allocation3 + $0xe0] sm:$0xf0]  ;;  %v14919_v42 = vld [vmem:[#allocation3 + $0x16c] sm:$0xf] }
 0x3f5   : > { %v17585_v2 = vadd.f32 %v4151_v40, %v17443_v15  ;;  %v17587_v50 = vpop.f32.mrf.mxu1  ;;  %v17598_v15 = vadd.f32 %v17514_v19, %v17317_v21  ;;  %v14970_v40 = vld [vmem:[#allocation3 + $0xdc] sm:$0xf]  ;;  %v12788_v1 = vor.u32 %v14919_v42, %v12785_v28  ;;  %v17607_v21 = vadd.f32 %v17522_v53, %v17324_v44  ;;  %v14924_v28 = vld [vmem:[#allocation3 + $0x190] sm:$0xf0]  ;;  %v12797_v44 = vld [vmem:[#allocation3 + $0x18c] sm:$0xf0] }
 0x3f6   : > { %v17589_v31 = vadd.f32 %v4916_v47, %v4828_v7  ;;  %v13035_v47 = vld [vmem:[#allocation3 + $0xd8] sm:$0xf]  ;;  %v13040_v6 = vor.u32 %v14970_v40, %v13037_v24  ;;  %v13049_v53 = vld [vmem:[#allocation3 + $0xfc] sm:$0xf0] }
 0x3f7   : > { %v13036_v7 = vor.u32 %v14971_v0, %v13035_v47  ;;  %21449 = vst [vmem:[#allocation88_spill] sm:$0xff] %v17607_v21  ;;  %v12803_v47 = vld [vmem:[#allocation3 + $0x188] sm:$0xf]  ;;  %v17629_v21 = vadd.f32 %v17545_v49, %v17341_v34  ;;  %v4825_v34 = vadd.f32 %v17566_v56, %v17363_v23 }
 0x3f8   : > { %v12804_v42 = vor.u32 %v14924_v28, %v12803_v47 }
 0x3f9   : > { %4960 = vmatmul.bf16.gmra.mxu3 %v12792_v51  ;;  %v4914_v23 = vadd.f32 %v17557_v35, %v4825_v34 }
 0x3fb   : > { %v17594_v27 = vpop.f32.mrf.mxu2 }
 0x3fc   : > { %v4154_v18 = vpop.f32.mrf.mxu0  ;;  %v4921_v30 = vpop.f32.mrf.mxu3  ;;  %v4830_v35 = vadd.f32 %v17594_v27, %v17392_v11 }
 0x3fd   : > { %v17601_v10 = vadd.f32 %v4154_v18, %v17450_v48  ;;  %v17603_v63 = vpop.f32.mrf.mxu1 }
 0x3fe   : > { %v4919_v11 = vadd.f32 %v17582_v57, %v4830_v35  ;;  %v15023_v57 = vld [vmem:[%s21034_s7 + $0x10] sm:$0xff]  ;;  %v14983_v35 = vld [vmem:[#allocation3 + $0x140] sm:$0xf0] }
 0x3ff   : > { %21448 = vst [vmem:[#allocation87_spill] sm:$0xff] %v17601_v10  ;;  %5623 = vmatmul.bf16.gmra.mxu0 %v13036_v7  ;;  %v14974_v7 = vld [vmem:[#allocation3 + $0xf8] sm:$0xf0] }
 0x400   : > { %4871 = vmatmul.bf16.gmra.mxu2 %v12788_v1  ;;  %5712 = vmatmul.bf16.gmra.mxu1 %v13040_v6 }
 0x403   : > { %v4832_v55 = vpop.f32.mrf.mxu2 }
 0x404   : > { %v4833_v19 = vadd.f32 %v4832_v55, %v17411_v32  ;;  %v4156_v51 = vpop.f32.mrf.mxu0  ;;  %v17610_v48 = vpop.f32.mrf.mxu3  ;;  %v17623_v32 = vadd.f32 %v17530_v41, %v17331_v29 }
 0x405   : > { %v17613_v18 = vadd.f32 %v4156_v51, %v17460_v20  ;;  %v17615_v0 = vpop.f32.mrf.mxu1  ;;  %v13047_v20 = vld [vmem:[#allocation3 + $0xf0] sm:$0xf]  ;;  %v14922_v51 = vld [vmem:[#allocation3 + $0x184] sm:$0xf] }
 0x406   : > { %v17617_v24 = vadd.f32 %v4921_v30, %v4833_v19  ;;  %21451 = vst [vmem:[#allocation90_spill] sm:$0xff] %v17623_v32  ;;  %v14973_v30 = vld [vmem:[#allocation3 + $0xf4] sm:$0xf]  ;;  %v12800_v28 = vor.u32 %v14922_v51, %v12797_v44 }
 0x407   : > { %21450 = vst [vmem:[#allocation89_spill] sm:$0xff] %v17613_v18  ;;  %v13048_v18 = vor.u32 %v14974_v7, %v13047_v20  ;;  %v13052_v47 = vor.u32 %v14973_v30, %v13049_v53  ;;  %v14977_v44 = vld [vmem:[#allocation3 + $0x110] sm:$0xf0]  ;;  %v14951_v53 = vld [vmem:[#allocation3 + $0x40] sm:$0xf0]  ;;  %v17647_v20 = vadd.f32 %v17564_v36, %v17354_v62  ;;  %v17653_v62 = vadd.f32 %v4914_v23, %v17361_v52 }
 0x408   : > { %v17668_v52 = vadd.f32 %v17589_v31, %v17368_v58  ;;  %v17674_v58 = vadd.f32 %v4919_v11, %v17390_v16  ;;  %v12983_v11 = vld [vmem:[#allocation3 + $0x68] sm:$0xf] }
 0x409   : > { %4965 = vmatmul.bf16.gmra.mxu3 %v12804_v42  ;;  %21452 = vst [vmem:[#allocation91_spill] sm:$0xff] %v17647_v20 }
 0x40b   : > { %v17619_v40 = vpop.f32.mrf.mxu2 }
 0x40c   : > { %v5589_v1 = vpop.f32.mrf.mxu0  ;;  %v4926_v6 = vpop.f32.mrf.mxu3  ;;  %v4835_v16 = vadd.f32 %v17619_v40, %v17424_v39 }
 0x40d   : > { %v5678_v55 = vpop.f32.mrf.mxu1 }
 0x40e   : > { %v17625_v19 = vadd.f32 %v5678_v55, %v5589_v1  ;;  %v4924_v39 = vadd.f32 %v17610_v48, %v4835_v16 }
 0x40f   : > { %5628 = vmatmul.bf16.gmra.mxu0 %v13048_v18  ;;  %v15024_v18 = vld [vmem:[%s21034_s7 + $0x18] sm:$0xff] }
 0x410   : > { %4876 = vmatmul.bf16.gmra.mxu2 %v12800_v28  ;;  %5717 = vmatmul.bf16.gmra.mxu1 %v13052_v47  ;;  %v14976_v28 = vld [vmem:[#allocation3 + $0x10c] sm:$0xf]  ;;  %v12959_v47 = vld [vmem:[#allocation3 + $0x38] sm:$0xf] }
 0x411   : > { %6131 = vmatpush.bf16.msra.mxu3 %v15024_v18 }
 0x413   : > { %v4837_v42 = vpop.f32.mrf.mxu2 }
 0x414   : > { %v4838_v29 = vadd.f32 %v4837_v42, %v17431_v25  ;;  %v5591_v41 = vpop.f32.mrf.mxu0  ;;  %v17632_v32 = vpop.f32.mrf.mxu3  ;;  %v13061_v25 = vld [vmem:[#allocation3 + $0x114] sm:$0xf0] }
 0x415   : > { %v5680_v10 = vpop.f32.mrf.mxu1  ;;  %6132 = vmatpush.bf16.msra.mxu3 %v15023_v57 }
 0x416   : > { %v17634_v7 = vadd.f32 %v4926_v6, %v4838_v29  ;;  %v17636_v1 = vadd.f32 %v5680_v10, %v5591_v41  ;;  %v13059_v10 = vld [vmem:[#allocation3 + $0x108] sm:$0xf]  ;;  %v13064_v29 = vor.u32 %v14976_v28, %v13061_v25  ;;  %v12960_v41 = vor.u32 %v14951_v53, %v12959_v47  ;;  %v14980_v25 = vld [vmem:[#allocation3 + $0x128] sm:$0xf0]  ;;  %v13073_v53 = vld [vmem:[#allocation3 + $0x12c] sm:$0xf0] }
 0x417   : > { %v13060_v30 = vor.u32 %v14977_v44, %v13059_v10 }
 0x41b   : > { %v17643_v49 = vpop.f32.mrf.mxu2 }
 0x41c   : > { %v5594_v6 = vpop.f32.mrf.mxu0  ;;  %v4931_v55 = vpop.f32.mrf.mxu3 }
 0x41d   : > { %v5683_v51 = vpop.f32.mrf.mxu1 }
 0x41e   : > { %v17649_v42 = vadd.f32 %v5683_v51, %v5594_v6  ;;  %v14954_v51 = vld [vmem:[#allocation3 + $0x58] sm:$0xf0] }
 0x41f   : > { %5633 = vmatmul.bf16.gmra.mxu0 %v13060_v30  ;;  %v13071_v30 = vld [vmem:[#allocation3 + $0x120] sm:$0xf] }
 0x420   : > { %5722 = vmatmul.bf16.gmra.mxu1 %v13064_v29  ;;  %5766 = vmatmul.bf16.vlgmr.msrb.gmra.mxu2 %v12960_v41  ;;  %v14979_v29 = vld [vmem:[#allocation3 + $0x124] sm:$0xf]  ;;  %v12971_v41 = vld [vmem:[#allocation3 + $0x50] sm:$0xf] }
 0x423   : > { %v4842_v56 = vpop.f32.mrf.mxu2 }
 0x424   : > { %v4843_v36 = vadd.f32 %v4842_v56, %v17448_v60  ;;  %v5596_v18 = vpop.f32.mrf.mxu0  ;;  %v17656_v20 = vpop.f32.mrf.mxu3  ;;  %v13076_v56 = vor.u32 %v14979_v29, %v13073_v53 }
 0x425   : > { %v5685_v44 = vpop.f32.mrf.mxu1 }
 0x426   : > { %v17658_v10 = vadd.f32 %v4931_v55, %v4843_v36  ;;  %v17660_v6 = vadd.f32 %v5685_v44, %v5596_v18  ;;  %v13072_v55 = vor.u32 %v14980_v25, %v13071_v30  ;;  %v12972_v36 = vor.u32 %v14954_v51, %v12971_v41  ;;  %v14957_v51 = vld [vmem:[#allocation3 + $0x70] sm:$0xf0] }
 0x42b   : > { %v17664_v34 = vpop.f32.mrf.mxu2 }
 0x42c   : > { %v5599_v60 = vpop.f32.mrf.mxu0  ;;  %v4936_v28 = vpop.f32.mrf.mxu3 }
 0x42d   : > { %v5688_v47 = vpop.f32.mrf.mxu1 }
 0x42e   : > { %v17670_v23 = vadd.f32 %v5688_v47, %v5599_v60  ;;  %v17692_v47 = vadd.f32 %v17617_v24, %v17409_v38  ;;  %v17698_v38 = vadd.f32 %v4924_v39, %v17422_v4  ;;  %v21454_v4 = vld [vmem:[#allocation73_spill] sm:$0xff] }
 0x42f   : > { %5638 = vmatmul.bf16.gmra.mxu0 %v13072_v55  ;;  %v13083_v55 = vld [vmem:[#allocation3 + $0x138] sm:$0xf] }
 0x430   : > { %5727 = vmatmul.bf16.gmra.mxu1 %v13076_v56  ;;  %5771 = vmatmul.bf16.gmra.mxu2 %v12972_v36  ;;  %v13084_v56 = vor.u32 %v14983_v35, %v13083_v55  ;;  %v14982_v36 = vld [vmem:[#allocation3 + $0x13c] sm:$0xf] }
 0x433   : > { %v4847_v27 = vpop.f32.mrf.mxu2 }
 0x434   : > { %v4848_v31 = vadd.f32 %v4847_v27, %v17465_v43  ;;  %v5601_v18 = vpop.f32.mrf.mxu0  ;;  %v17677_v44 = vpop.f32.mrf.mxu3  ;;  %v13085_v43 = vld [vmem:[#allocation3 + $0x144] sm:$0xf0] }
 0x435   : > { %v5690_v25 = vpop.f32.mrf.mxu1 }
 0x436   : > { %v17679_v30 = vadd.f32 %v4936_v28, %v4848_v31  ;;  %v17681_v60 = vadd.f32 %v5690_v25, %v5601_v18  ;;  %v13088_v31 = vor.u32 %v14982_v36, %v13085_v43  ;;  %v12984_v18 = vor.u32 %v14957_v51, %v12983_v11  ;;  %v14986_v43 = vld [vmem:[#allocation3 + $0x158] sm:$0xf0] }
 0x437   : > { %v21453_v51 = vld [vmem:[#allocation75_spill] sm:$0xff]  ;;  %v17713_v36 = vadd.f32 %v17634_v7, %v21454_v4 }
 0x438   : > { %v4840_v48 = vadd.f32 %v17643_v49, %v21453_v51 }
 0x43b   : > { %v17688_v53 = vpop.f32.mrf.mxu2 }
 0x43c   : > { %v5604_v28 = vpop.f32.mrf.mxu0  ;;  %v4941_v29 = vpop.f32.mrf.mxu3 }
 0x43d   : > { %v5693_v41 = vpop.f32.mrf.mxu1 }
 0x43e   : > { %v17694_v27 = vadd.f32 %v5693_v41, %v5604_v28  ;;  %v13097_v41 = vld [vmem:[#allocation3 + $0x15c] sm:$0xf0] }
 0x43f   : > { %5643 = vmatmul.bf16.gmra.mxu0 %v13084_v56  ;;  %v14960_v56 = vld [vmem:[#allocation3 + $0x88] sm:$0xf0] }
 0x440   : > { %5732 = vmatmul.bf16.gmra.mxu1 %v13088_v31  ;;  %5776 = vmatmul.bf16.gmra.mxu2 %v12984_v18  ;;  %v14985_v18 = vld [vmem:[#allocation3 + $0x154] sm:$0xf] }
 0x441   : > { %v13100_v39 = vor.u32 %v14985_v18, %v13097_v41  ;;  %v14989_v41 = vld [vmem:[#allocation3 + $0x170] sm:$0xf0]  ;;  %v21458_v18 = vld [vmem:[#allocation76_spill] sm:$0xff] }
 0x443   : > { %v4852_v40 = vpop.f32.mrf.mxu2 }
 0x444   : > { %v4853_v24 = vadd.f32 %v4852_v40, %v17482_v17  ;;  %v5606_v25 = vpop.f32.mrf.mxu0  ;;  %v17701_v57 = vpop.f32.mrf.mxu3  ;;  %v13095_v17 = vld [vmem:[#allocation3 + $0x150] sm:$0xf] }
 0x445   : > { %v5695_v35 = vpop.f32.mrf.mxu1  ;;  %v13096_v31 = vor.u32 %v14986_v43, %v13095_v17  ;;  %v15022_v43 = vld [vmem:[%s21034_s7 + $0x8] sm:$0xff]  ;;  %v13109_v17 = vld [vmem:[#allocation3 + $0x174] sm:$0xf0] }
 0x446   : > { %v17703_v55 = vadd.f32 %v4941_v29, %v4853_v24  ;;  %v17705_v28 = vadd.f32 %v5695_v35, %v5606_v25  ;;  %v12995_v29 = vld [vmem:[#allocation3 + $0x80] sm:$0xf]  ;;  %v4929_v24 = vadd.f32 %v17632_v32, %v4840_v48  ;;  %v21455_v25 = vld [vmem:[#allocation74_spill] sm:$0xff]  ;;  %6133 = vmatpush.bf16.msra.mxu3 %v15022_v43  ;;  %v21459_v43 = vld [vmem:[#allocation77_spill] sm:$0xff] }
 0x447   : > { %v12996_v40 = vor.u32 %v14960_v56, %v12995_v29  ;;  %v21457_v32 = vld [vmem:[#allocation78_spill] sm:$0xff]  ;;  %v13107_v29 = vld [vmem:[#allocation3 + $0x168] sm:$0xf] }
 0x448   : > { %v17717_v35 = vadd.f32 %v4929_v24, %v21455_v25  ;;  %v4845_v48 = vadd.f32 %v17664_v34, %v21457_v32  ;;  %v13007_v24 = vld [vmem:[#allocation3 + $0x98] sm:$0xf] }
 0x44a   : > { %21456 = vst [vmem:[#allocation75_spill] sm:$0xff] %v17717_v35 }
 0x44b   : > { %v17709_v16 = vpop.f32.mrf.mxu2 }
 0x44c   : > { %v4946_v11 = vpop.f32.mrf.mxu3 }
 0x44f   : > { %5648 = vmatmul.bf16.gmra.mxu0 %v13096_v31  ;;  %v14963_v31 = vld [vmem:[#allocation3 + $0xa0] sm:$0xf0] }
 0x450   : > { %5737 = vmatmul.bf16.gmra.mxu1 %v13100_v39  ;;  %5781 = vmatmul.bf16.gmra.mxu2 %v12996_v40  ;;  %v13108_v39 = vor.u32 %v14989_v41, %v13107_v29  ;;  %v14988_v40 = vld [vmem:[#allocation3 + $0x16c] sm:$0xf]  ;;  %v13008_v25 = vor.u32 %v14963_v31, %v13007_v24  ;;  %v13119_v24 = vld [vmem:[#allocation3 + $0x180] sm:$0xf] }
 0x451   : > { %v14992_v41 = vld [vmem:[#allocation3 + $0x188] sm:$0xf0] }
 0x452   : > { %v21461_v29 = vld [vmem:[#allocation81_spill] sm:$0xff] }
 0x453   : > { %v4857_v49 = vpop.f32.mrf.mxu2 }
 0x454   : > { %v4858_v51 = vadd.f32 %v4857_v49, %v17501_v59  ;;  %v17720_v7 = vpop.f32.mrf.mxu3  ;;  %v17733_v59 = vadd.f32 %v17658_v10, %v21458_v18  ;;  %v13112_v49 = vor.u32 %v14988_v40, %v13109_v17  ;;  %v4850_v17 = vadd.f32 %v17688_v53, %v21461_v29  ;;  %v13121_v40 = vld [vmem:[#allocation3 + $0x18c] sm:$0xf0] }
 0x456   : > { %v17722_v4 = vadd.f32 %v4946_v11, %v4858_v51  ;;  %v4934_v51 = vadd.f32 %v17656_v20, %v4845_v48  ;;  %v14966_v20 = vld [vmem:[#allocation3 + $0xb8] sm:$0xf0] }
 0x457   : > { %v21462_v48 = vld [vmem:[#allocation79_spill] sm:$0xff] }
 0x458   : > { %v17737_v32 = vadd.f32 %v4934_v51, %v21459_v43  ;;  %v14991_v51 = vld [vmem:[#allocation3 + $0x184] sm:$0xf] }
 0x45a   : > { %21460 = vst [vmem:[#allocation73_spill] sm:$0xff] %v17737_v32 }
 0x45b   : > { %v17729_v56 = vpop.f32.mrf.mxu2 }
 0x45c   : > { %v4951_v11 = vpop.f32.mrf.mxu3 }
 0x45f   : > { %5653 = vmatmul.bf16.gmra.mxu0 %v13108_v39  ;;  %v17748_v39 = vadd.f32 %v17679_v30, %v21462_v48 }
 0x460   : > { %5742 = vmatmul.bf16.gmra.mxu1 %v13112_v49  ;;  %5786 = vmatmul.bf16.gmra.mxu2 %v13008_v25  ;;  %v13120_v25 = vor.u32 %v14992_v41, %v13119_v24  ;;  %v15021_v41 = vld [vmem:[%s21034_s7] sm:$0xff]  ;;  %v4855_v24 = vadd.f32 %v17709_v16, %v17490_v37 }
 0x461   : > { %6134 = vmatpush.bf16.msra.mxu3 %v15021_v41 }
 0x463   : > { %v4862_v34 = vpop.f32.mrf.mxu2 }
 0x464   : > { %v4863_v35 = vadd.f32 %v4862_v34, %v17520_v9  ;;  %v17740_v10 = vpop.f32.mrf.mxu3  ;;  %v13019_v9 = vld [vmem:[#allocation3 + $0xb0] sm:$0xf]  ;;  %v13124_v34 = vor.u32 %v14991_v51, %v13121_v40  ;;  %v14994_v40 = vld [vmem:[#allocation3 + $0x19c] sm:$0xf]  ;;  %v14969_v51 = vld [vmem:[#allocation3 + $0xd0] sm:$0xf0] }
 0x465   : > { %v13020_v43 = vor.u32 %v14966_v20, %v13019_v9  ;;  %v13133_v20 = vld [vmem:[#allocation3 + $0x1a4] sm:$0xf0]  ;;  %v21465_v9 = vld [vmem:[#allocation82_spill] sm:$0xff] }
 0x466   : > { %v17742_v18 = vadd.f32 %v4951_v11, %v4863_v35  ;;  %v4939_v35 = vadd.f32 %v17677_v44, %v4850_v17  ;;  %v21463_v11 = vld [vmem:[#allocation80_spill] sm:$0xff]  ;;  %v13131_v44 = vld [vmem:[#allocation3 + $0x198] sm:$0xf] }
 0x467   : > { %v14995_v17 = vld [vmem:[#allocation3 + $0x1a0] sm:$0xf0] }
 0x468   : > { %v17752_v29 = vadd.f32 %v4939_v35, %v21463_v11  ;;  %v4944_v35 = vadd.f32 %v17701_v57, %v4855_v24  ;;  %v13043_v24 = vld [vmem:[#allocation3 + $0xe0] sm:$0xf] }
 0x46a   : > { %21464 = vst [vmem:[#allocation74_spill] sm:$0xff] %v17752_v29  ;;  %v17768_v41 = vadd.f32 %v4944_v35, %v17488_v5  ;;  %v21466_v29 = vld [vmem:[#allocation85_spill] sm:$0xff]  ;;  %v21469_v35 = vld [vmem:[#allocation86_spill] sm:$0xff] }
 0x46b   : > { %v4864_v31 = vpop.f32.mrf.mxu2 }
 0x46c   : > { %v4956_v49 = vpop.f32.mrf.mxu3 }
 0x46f   : > { %5658 = vmatmul.bf16.gmra.mxu0 %v13120_v25 }
 0x470   : > { %5747 = vmatmul.bf16.gmra.mxu1 %v13124_v34  ;;  %5791 = vmatmul.bf16.gmra.mxu2 %v13020_v43  ;;  %v13031_v34 = vld [vmem:[#allocation3 + $0xc8] sm:$0xf] }
 0x471   : > { %v13032_v43 = vor.u32 %v14969_v51, %v13031_v34  ;;  %v4865_v34 = vadd.f32 %v4864_v31, %v17528_v33 }
 0x473   : > { %v4867_v53 = vpop.f32.mrf.mxu2 }
 0x474   : > { %v4868_v32 = vadd.f32 %v4867_v53, %v17543_v46  ;;  %v17758_v48 = vpop.f32.mrf.mxu3  ;;  %v17764_v46 = vadd.f32 %v17703_v55, %v21465_v9  ;;  %v4860_v55 = vadd.f32 %v17729_v56, %v21466_v29 }
 0x476   : > { %v4957_v30 = vadd.f32 %v4956_v49, %v4868_v32  ;;  %v13136_v32 = vor.u32 %v14994_v40, %v13133_v20  ;;  %v13132_v49 = vor.u32 %v14995_v17, %v13131_v44  ;;  %v14972_v44 = vld [vmem:[#allocation3 + $0xe8] sm:$0xf0]  ;;  %v21467_v17 = vld [vmem:[#allocation83_spill] sm:$0xff]  ;;  %v4949_v9 = vadd.f32 %v17720_v7, %v4860_v55 }
 0x477   : > { %v17777_v57 = vadd.f32 %v17722_v4, %v21467_v17  ;;  %v13044_v51 = vor.u32 %v14972_v44, %v13043_v24  ;;  %v14975_v4 = vld [vmem:[#allocation3 + $0x100] sm:$0xf0]  ;;  %v13055_v7 = vld [vmem:[#allocation3 + $0xf8] sm:$0xf] }
 0x478   : > { %v15115_v17 = vld [vmem:[%s21036_s9 + $0x118] sm:$0xff] }
 0x479   : > { %8677 = vmatpush.bf16.msra.mxu1 %v15115_v17 }
 0x47b   : > { %v4869_v25 = vpop.f32.mrf.mxu2 }
 0x47c   : > { %v4961_v53 = vpop.f32.mrf.mxu3 }
 0x47f   : > { %5663 = vmatmul.bf16.gmra.mxu0 %v13132_v49 }
 0x480   : > { %5752 = vmatmul.bf16.gmra.mxu1 %v13136_v32  ;;  %5796 = vmatmul.bf16.gmra.mxu2 %v13032_v43  ;;  %v21468_v32 = vld [vmem:[#allocation84_spill] sm:$0xff] }
 0x483   : > { %v4872_v11 = vpop.f32.mrf.mxu2 }
 0x484   : > { %v4873_v37 = vadd.f32 %v4872_v11, %v17575_v61  ;;  %v17773_v40 = vpop.f32.mrf.mxu3  ;;  %v17781_v61 = vadd.f32 %v4949_v9, %v21468_v32  ;;  %v13056_v11 = vor.u32 %v14975_v4, %v13055_v7  ;;  %v13067_v9 = vld [vmem:[#allocation3 + $0x110] sm:$0xf] }
 0x486   : > { %v4962_v16 = vadd.f32 %v4961_v53, %v4873_v37  ;;  %v17791_v53 = vadd.f32 %v17742_v18, %v21469_v35  ;;  %v4954_v37 = vadd.f32 %v17740_v10, %v4865_v34  ;;  %v17805_v18 = vld [vmem:[%s21033_s6] ss:$0 sm:$0xff]  ;;  %v15107_v10 = vld [vmem:[%s21036_s9 + $0xd8] sm:$0xff] }
 0x487   : > { %8588 = vmatpush.bf16.msra.mxu0 %v15107_v10 }
 0x488   : > { %v17798_v33 = vadd.f32 %v4954_v37, %v17526_v54  ;;  %v4870_v54 = vadd.f32 %v4869_v25, %v17562_v45  ;;  %v17823_v45 = vpop.f32.mrf.mxu1 }
 0x48a   : > { %v4959_v34 = vadd.f32 %v17758_v48, %v4870_v54 }
 0x48b   : > { %v4874_v20 = vpop.f32.mrf.mxu2 }
 0x48c   : > { %v4966_v56 = vpop.f32.mrf.mxu3  ;;  %v17827_v4 = vadd.f32 %v4959_v34, %v17560_v12  ;;  %v4875_v37 = vadd.f32 %v4874_v20, %v17587_v50 }
 0x48e   : > { %v4964_v17 = vadd.f32 %v17773_v40, %v4875_v37  ;;  %v15106_v40 = vld [vmem:[%s21036_s9 + $0xd0] sm:$0xff] }
 0x48f   : > { %8589 = vmatpush.bf16.msra.mxu0 %v15106_v40  ;;  %v15118_v40 = vld [vmem:[%s21036_s9 + $0x130] sm:$0xff] }
 0x490   : > { %5801 = vmatmul.bf16.gmra.mxu2 %v13044_v51  ;;  %v14978_v51 = vld [vmem:[#allocation3 + $0x118] sm:$0xf0]  ;;  %v17833_v48 = vpop.f32.mrf.mxu1 }
 0x493   : > { %v4877_v5 = vpop.f32.mrf.mxu2 }
 0x494   : > { %v4878_v49 = vadd.f32 %v4877_v5, %v17603_v63  ;;  %v15119_v63 = vld [vmem:[%s21036_s9 + $0x138] sm:$0xff] }
 0x495   : > { %8770 = vmatpush.bf16.msra.mxu2 %v15119_v63 }
 0x496   : > { %v17784_v29 = vadd.f32 %v4966_v56, %v4878_v49  ;;  %v13068_v49 = vor.u32 %v14978_v51, %v13067_v9  ;;  %v17820_v56 = vpop.f32.mrf.mxu0  ;;  %v15114_v9 = vld [vmem:[%s21036_s9 + $0x110] sm:$0xff] }
 0x497   : > { %8678 = vmatpush.bf16.msra.mxu1 %v15114_v9 }
 0x499   : > { %8771 = vmatpush.bf16.msra.mxu2 %v15118_v40 }
 0x49b   : > { %v17787_v43 = vpop.f32.mrf.mxu2 }
 0x4a0   : > { %5806 = vmatmul.bf16.gmra.mxu2 %v13056_v11  ;;  %v17831_v11 = vpop.f32.mrf.mxu0 }
 0x4a3   : > { %v5767_v55 = vpop.f32.mrf.mxu2 }
 0x4a4   : > { %v5768_v31 = vadd.f32 %v5767_v55, %v17625_v19  ;;  %v17815_v19 = vadd.f32 %v4957_v30, %v17541_v13  ;;  %v14981_v55 = vld [vmem:[#allocation3 + $0x130] sm:$0xf0] }
 0x4a6   : > { %v5879_v44 = vadd.f32 %v5768_v31, %v17537_v8  ;;  %v17837_v31 = vadd.f32 %v4962_v16, %v17573_v22  ;;  %v17847_v22 = vadd.f32 %v4964_v17, %v17585_v2  ;;  %v4880_v2 = vadd.f32 %v17787_v43, %v17615_v0 }
 0x4a8   : > { %v5979_v5 = vadd.f32 %v17805_v18, %v5879_v44  ;;  %v13079_v44 = vld [vmem:[#allocation3 + $0x128] sm:$0xf]  ;;  %v17844_v20 = vpop.f32.mrf.mxu0 }
 0x4aa   : > { %v6011_v13 = vmax.f32 %v5979_v5, 0.0 }
 0x4ab   : > { %v5769_v24 = vpop.f32.mrf.mxu2 }
 0x4ac   : > { %v5770_v8 = vadd.f32 %v5769_v24, %v17636_v1 }
 0x4ae   : > { %v5880_v32 = vadd.f32 %v5770_v8, %v17554_v26 }
 0x4b0   : > { %v5980_v25 = vadd.f32 %v17805_v18, %v5880_v32  ;;  %5811 = vmatmul.bf16.gmra.mxu2 %v13068_v49  ;;  %v14984_v32 = vld [vmem:[#allocation3 + $0x148] sm:$0xf0]  ;;  %v21470_v49 = vld [vmem:[#allocation87_spill] sm:$0xff]  ;;  %v17866_v34 = vpop.f32.mrf.mxu0 }
 0x4b2   : > { %v6012_v30 = vmax.f32 %v5980_v25, 0.0  ;;  %v13091_v25 = vld [vmem:[#allocation3 + $0x140] sm:$0xf] }
 0x4b3   : > { %v5772_v1 = vpop.f32.mrf.mxu2  ;;  %v13092_v43 = vor.u32 %v14984_v32, %v13091_v25 }
 0x4b4   : > { %v6043_v35 = vpack.c.bf16 %v6012_v30, %v6011_v13  ;;  %v5773_v7 = vadd.f32 %v5772_v1, %v17649_v42  ;;  %v4968_v30 = vpop.f32.mrf.mxu3 }
 0x4b6   : > { %v5881_v26 = vadd.f32 %v5773_v7, %v17570_v3  ;;  %6135 = vmatmul.bf16.vlgmr.msra.gmra.mxu3 %v6043_v35  ;;  %v13080_v3 = vor.u32 %v14981_v55, %v13079_v44  ;;  %v21471_v35 = vld [vmem:[#allocation88_spill] sm:$0xff]  ;;  %v4969_v7 = vadd.f32 %v4968_v30, %v4880_v2  ;;  %v21474_v30 = vld [vmem:[#allocation91_spill] sm:$0xff] }
 0x4b8   : > { %v5981_v10 = vadd.f32 %v17805_v18, %v5881_v26 }
 0x4ba   : > { %v6013_v24 = vmax.f32 %v5981_v10, 0.0  ;;  %v21473_v10 = vld [vmem:[#allocation90_spill] sm:$0xff] }
 0x4bb   : > { %v5774_v63 = vpop.f32.mrf.mxu2 }
 0x4bc   : > { %v5775_v12 = vadd.f32 %v5774_v63, %v17660_v6  ;;  %v17849_v6 = vpop.f32.mrf.mxu1  ;;  %v21472_v63 = vld [vmem:[#allocation89_spill] sm:$0xff] }
 0x4bd   : > { %v17874_v55 = vadd.f32 %v4969_v7, %v21472_v63  ;;  %v14990_v7 = vld [vmem:[#allocation3 + $0x178] sm:$0xf0] }
 0x4be   : > { %v5882_v42 = vadd.f32 %v5775_v12, %v17579_v14 }
 0x4c0   : > { %v5982_v54 = vadd.f32 %v17805_v18, %v5882_v42  ;;  %5816 = vmatmul.bf16.gmra.mxu2 %v13080_v3  ;;  %v17878_v3 = vpop.f32.mrf.mxu0 }
 0x4c2   : > { %v6014_v50 = vmax.f32 %v5982_v54, 0.0 }
 0x4c3   : > { %v5777_v51 = vpop.f32.mrf.mxu2 }
 0x4c4   : > { %v5778_v16 = vadd.f32 %v5777_v51, %v17670_v23  ;;  %v6044_v8 = vpack.c.bf16 %v6014_v50, %v6013_v24  ;;  %v17863_v23 = vadd.f32 %v17784_v29, %v21470_v49  ;;  %v17868_v13 = vpop.f32.mrf.mxu1  ;;  %v14987_v24 = vld [vmem:[#allocation3 + $0x160] sm:$0xf0]  ;;  %v13103_v51 = vld [vmem:[#allocation3 + $0x158] sm:$0xf] }
 0x4c6   : > { %v5883_v14 = vadd.f32 %v5778_v16, %v17598_v15  ;;  %6140 = vmatmul.bf16.gmra.mxu3 %v6044_v8 }
 0x4c8   : > { %v5983_v1 = vadd.f32 %v17805_v18, %v5883_v14  ;;  %v13104_v14 = vor.u32 %v14987_v24, %v13103_v51  ;;  %v5621_v9 = vpop.f32.mrf.mxu0  ;;  %v5706_v51 = vadd.f32 %v17868_v13, %v17866_v34 }
 0x4ca   : > { %v6015_v29 = vmax.f32 %v5983_v1, 0.0 }
 0x4cb   : > { %v5779_v5 = vpop.f32.mrf.mxu2 }
 0x4cc   : > { %v5780_v15 = vadd.f32 %v5779_v5, %v17681_v60  ;;  %v17880_v17 = vpop.f32.mrf.mxu1 }
 0x4ce   : > { %v5884_v0 = vadd.f32 %v5780_v15, %v21471_v35  ;;  %v15105_v35 = vld [vmem:[%s21036_s9 + $0xc8] sm:$0xff] }
 0x4cf   : > { %8590 = vmatpush.bf16.msra.mxu0 %v15105_v35 }
 0x4d0   : > { %v5984_v26 = vadd.f32 %v17805_v18, %v5884_v0  ;;  %5821 = vmatmul.bf16.gmra.mxu2 %v13092_v43  ;;  %v15113_v0 = vld [vmem:[%s21036_s9 + $0x108] sm:$0xff] }
 0x4d1   : > { %8679 = vmatpush.bf16.msra.mxu1 %v15113_v0 }
 0x4d2   : > { %v6016_v37 = vmax.f32 %v5984_v26, 0.0  ;;  %v5624_v26 = vpop.f32.mrf.mxu0 }
 0x4d3   : > { %v5782_v60 = vpop.f32.mrf.mxu2 }
 0x4d4   : > { %v5783_v12 = vadd.f32 %v5782_v60, %v17694_v27  ;;  %v6045_v44 = vpack.c.bf16 %v6016_v37, %v6015_v29  ;;  %v5710_v2 = vpop.f32.mrf.mxu1  ;;  %v13115_v29 = vld [vmem:[#allocation3 + $0x170] sm:$0xf] }
 0x4d5   : > { %v13116_v37 = vor.u32 %v14990_v7, %v13115_v29  ;;  %v15112_v7 = vld [vmem:[%s21036_s9 + $0x100] sm:$0xff] }
 0x4d6   : > { %v5885_v42 = vadd.f32 %v5783_v12, %v21473_v10  ;;  %6145 = vmatmul.bf16.gmra.mxu3 %v6045_v44  ;;  %v5704_v10 = vadd.f32 %v17849_v6, %v17844_v20  ;;  %8680 = vmatpush.bf16.msra.mxu1 %v15112_v7  ;;  %v15116_v7 = vld [vmem:[%s21036_s9 + $0x120] sm:$0xff] }
 0x4d8   : > { %v5985_v16 = vadd.f32 %v17805_v18, %v5885_v42 }
 0x4da   : > { %v6017_v5 = vmax.f32 %v5985_v16, 0.0 }
 0x4db   : > { %v5784_v54 = vpop.f32.mrf.mxu2 }
 0x4dc   : > { %v5785_v50 = vadd.f32 %v5784_v54, %v17705_v28  ;;  %v5699_v28 = vadd.f32 %v17823_v45, %v17820_v56  ;;  %v5713_v56 = vpop.f32.mrf.mxu1  ;;  %v5626_v54 = vpop.f32.mrf.mxu0 }
 0x4de   : > { %v5886_v8 = vadd.f32 %v5785_v50, %v17629_v21  ;;  %v5701_v21 = vadd.f32 %v17833_v48, %v17831_v11 }
 0x4e0   : > { %v5986_v27 = vadd.f32 %v17805_v18, %v5886_v8  ;;  %5826 = vmatmul.bf16.gmra.mxu2 %v13104_v14  ;;  %v14993_v8 = vld [vmem:[#allocation3 + $0x190] sm:$0xf0] }
 0x4e2   : > { %v6018_v32 = vmax.f32 %v5986_v27, 0.0  ;;  %v13127_v27 = vld [vmem:[#allocation3 + $0x188] sm:$0xf] }
 0x4e3   : > { %v5787_v49 = vpop.f32.mrf.mxu2 }
 0x4e4   : > { %v6046_v15 = vpack.c.bf16 %v6018_v32, %v6017_v5  ;;  %v5788_v25 = vadd.f32 %v5787_v49, %v5699_v28  ;;  %v5715_v24 = vpop.f32.mrf.mxu1  ;;  %v13128_v32 = vor.u32 %v14993_v8, %v13127_v27  ;;  %v5629_v20 = vpop.f32.mrf.mxu0  ;;  %v21475_v8 = vld [vmem:[#allocation75_spill] sm:$0xff] }
 0x4e6   : > { %6150 = vmatmul.bf16.gmra.mxu3 %v6046_v15  ;;  %v5887_v1 = vadd.f32 %v5788_v25, %v21474_v30  ;;  %v14996_v30 = vld [vmem:[#allocation3 + $0x1a8] sm:$0xf0] }
 0x4e8   : > { %v5987_v11 = vadd.f32 %v17805_v18, %v5887_v1  ;;  %v5711_v1 = vadd.f32 %v5710_v2, %v5621_v9 }
 0x4ea   : > { %v6019_v63 = vmax.f32 %v5987_v11, 0.0 }
 0x4eb   : > { %v5789_v43 = vpop.f32.mrf.mxu2 }
 0x4ec   : > { %v5790_v45 = vadd.f32 %v5789_v43, %v5701_v21  ;;  %v5718_v6 = vpop.f32.mrf.mxu1  ;;  %v13139_v21 = vld [vmem:[#allocation3 + $0x1a0] sm:$0xf]  ;;  %v5631_v35 = vpop.f32.mrf.mxu0 }
 0x4ed   : > { %v15104_v43 = vld [vmem:[%s21036_s9 + $0xc0] sm:$0xff] }
 0x4ee   : > { %v5888_v48 = vadd.f32 %v5790_v45, %v17653_v62  ;;  %8591 = vmatpush.bf16.msra.mxu0 %v15104_v43 }
 0x4f0   : > { %v5988_v60 = vadd.f32 %v17805_v18, %v5888_v48  ;;  %5831 = vmatmul.bf16.gmra.mxu2 %v13116_v37  ;;  %v5714_v37 = vadd.f32 %v5713_v56, %v5624_v26 }
 0x4f2   : > { %v6020_v12 = vmax.f32 %v5988_v60, 0.0 }
 0x4f3   : > { %v5792_v44 = vpop.f32.mrf.mxu2 }
 0x4f4   : > { %v6047_v42 = vpack.c.bf16 %v6020_v12, %v6019_v63  ;;  %v5793_v50 = vadd.f32 %v5792_v44, %v5704_v10  ;;  %v5634_v60 = vpop.f32.mrf.mxu0  ;;  %v5716_v10 = vadd.f32 %v5715_v24, %v5626_v54 }
 0x4f6   : > { %6155 = vmatmul.bf16.gmra.mxu3 %v6047_v42  ;;  %v5889_v62 = vadd.f32 %v5793_v50, %v17668_v52  ;;  %v5709_v52 = vadd.f32 %v17880_v17, %v17878_v3  ;;  %v13140_v17 = vor.u32 %v14996_v30, %v13139_v21  ;;  %v21477_v21 = vld [vmem:[#allocation73_spill] sm:$0xff] }
 0x4f8   : > { %v5989_v40 = vadd.f32 %v17805_v18, %v5889_v62 }
 0x4fa   : > { %v6021_v28 = vmax.f32 %v5989_v40, 0.0 }
 0x4fb   : > { %v5794_v16 = vpop.f32.mrf.mxu2 }
 0x4fc   : > { %v5795_v14 = vadd.f32 %v5794_v16, %v5706_v51  ;;  %v5636_v62 = vpop.f32.mrf.mxu0 }
 0x4fe   : > { %v5890_v5 = vadd.f32 %v5795_v14, %v17674_v58  ;;  %v5720_v58 = vpop.f32.mrf.mxu1 }
 0x500   : > { %v5990_v49 = vadd.f32 %v17805_v18, %v5890_v5  ;;  %5836 = vmatmul.bf16.gmra.mxu2 %v13128_v32  ;;  %v5719_v5 = vadd.f32 %v5718_v6, %v5629_v20  ;;  %v15103_v20 = vld [vmem:[%s21036_s9 + $0xb8] sm:$0xff] }
 0x501   : > { %v15111_v6 = vld [vmem:[%s21036_s9 + $0xf8] sm:$0xff]  ;;  %8592 = vmatpush.bf16.msra.mxu0 %v15103_v20 }
 0x502   : > { %v6022_v15 = vmax.f32 %v5990_v49, 0.0  ;;  %v21476_v49 = vmov 0   ;;  %8681 = vmatpush.bf16.msra.mxu1 %v15111_v6 }
 0x503   : > { %v5797_v25 = vpop.f32.mrf.mxu2  ;;  %8025 = vst.msk [vmem:[#allocation4 + $0x1ac] sm:$0x8] %vm7991_vm2, %v21476_v49 }
 0x504   : > { %v6048_v34 = vpack.c.bf16 %v6022_v15, %v6021_v28  ;;  %v5798_v13 = vadd.f32 %v5797_v25, %v5709_v52  ;;  %v17929_v54 = vpop.f32.mrf.mxu0  ;;  %v15117_v28 = vld [vmem:[%s21036_s9 + $0x128] sm:$0xff]  ;;  %v5721_v15 = vadd.f32 %v5720_v58, %v5631_v35  ;;  %7825 = vst.msk [vmem:[#allocation4 + $0x20] sm:$0xf] %vm6440_vm5, %v21476_v49 }
 0x505   : > { %8772 = vmatpush.bf16.msra.mxu2 %v15117_v28  ;;  %7827 = vst.msk [vmem:[#allocation4 + $0x2c] sm:$0x7] %vm21253_vm14, %v21476_v49 }
 0x506   : > { %6160 = vmatmul.bf16.gmra.mxu3 %v6048_v34  ;;  %v5891_v0 = vadd.f32 %v5798_v13, %v17692_v47  ;;  %v5723_v63 = vpop.f32.mrf.mxu1  ;;  %6441 = vst.msk [vmem:[#allocation4] sm:$0xf] %vm6440_vm5, %v21476_v49 }
 0x507   : > { %6442 = vst.msk [vmem:[#allocation4 + $0xc] sm:$0xf] %vm6440_vm5, %v21476_v49 }
 0x508   : > { %v5991_v29 = vadd.f32 %v17805_v18, %v5891_v0  ;;  %6443 = vst.msk [vmem:[#allocation4 + $0x18] sm:$0xf] %vm6440_vm5, %v21476_v49 }
 0x509   : > { %8773 = vmatpush.bf16.msra.mxu2 %v15116_v7  ;;  %6444 = vst.msk [vmem:[#allocation4 + $0x24] sm:$0xf] %vm6440_vm5, %v21476_v49 }
 0x50a   : > { %v6023_v47 = vmax.f32 %v5991_v29, 0.0  ;;  %v17960_v29 = vld [vmem:[%s21035_s8] ss:$0 sm:$0xff]  ;;  %6644 = vst.msk [vmem:[#allocation4 + $0x1bc] sm:$0xf] %vm6440_vm5, %v21476_v49 }
 0x50b   : > { %v5799_v45 = vpop.f32.mrf.mxu2  ;;  %6645 = vst.msk [vmem:[#allocation4 + $0x1c8] sm:$0xf] %vm6440_vm5, %v21476_v49 }
 0x50c   : > { %v5800_v3 = vadd.f32 %v5799_v45, %v5711_v1  ;;  %v5724_v45 = vadd.f32 %v5723_v63, %v5634_v60  ;;  %6646 = vst.msk [vmem:[#allocation4 + $0x1d4] sm:$0xf] %vm6440_vm5, %v21476_v49 }
 0x50d   : > { %7120 = vst.msk [vmem:[#allocation4 + $0x4] sm:$0xf] %vm6440_vm5, %v21476_v49 }
 0x50e   : > { %v5892_v9 = vadd.f32 %v5800_v3, %v17698_v38  ;;  %v5725_v16 = vpop.f32.mrf.mxu1  ;;  %7121 = vst.msk [vmem:[#allocation4 + $0x10] sm:$0xf] %vm6440_vm5, %v21476_v49 }
 0x50f   : > { %7122 = vst.msk [vmem:[#allocation4 + $0x1c] sm:$0xf] %vm6440_vm5, %v21476_v49 }
 0x510   : > { %v5992_v2 = vadd.f32 %v17805_v18, %v5892_v9  ;;  %5841 = vmatmul.bf16.gmra.mxu2 %v13140_v17  ;;  %7123 = vst.msk [vmem:[#allocation4 + $0x28] sm:$0xf] %vm6440_vm5, %v21476_v49 }
 0x511   : > { %7156 = vst.msk [vmem:[#allocation4 + $0x1b4] sm:$0xf] %vm6440_vm5, %v21476_v49 }
 0x512   : > { %v6024_v11 = vmax.f32 %v5992_v2, 0.0  ;;  %v5726_v2 = vadd.f32 %v5725_v16, %v5636_v62  ;;  %7157 = vst.msk [vmem:[#allocation4 + $0x1c0] sm:$0xf] %vm6440_vm5, %v21476_v49 }
 0x513   : > { %v5802_v48 = vpop.f32.mrf.mxu2  ;;  %7158 = vst.msk [vmem:[#allocation4 + $0x1cc] sm:$0xf] %vm6440_vm5, %v21476_v49 }
 0x514   : > { %v6049_v12 = vpack.c.bf16 %v6024_v11, %v6023_v47  ;;  %v5803_v44 = vadd.f32 %v5802_v48, %v5714_v37  ;;  %v21478_v48 = vld [vmem:[#allocation6_spill] sm:$0xff]  ;;  %7159 = vst.msk [vmem:[#allocation4 + $0x1d8] sm:$0xf] %vm6440_vm5, %v21476_v49 }
 0x515   : > { %v21479_v37 = vand.u32 15, %v21478_v48  ;;  %7823 = vst.msk [vmem:[#allocation4 + $0x8] sm:$0xf] %vm6440_vm5, %v21476_v49 }
 0x516   : > { %6165 = vmatmul.bf16.gmra.mxu3 %v6049_v12  ;;  %v5893_v42 = vadd.f32 %v5803_v44, %v17713_v36  ;;  %v17931_v24 = vpop.f32.mrf.mxu1  ;;  %7824 = vst.msk [vmem:[#allocation4 + $0x14] sm:$0xf] %vm6440_vm5, %v21476_v49 }
 0x517   : > { %vm17974_vm15 = vcmp.lt.s32.totalorder %v21479_v37, 2  ;;  %v5729_v6 = vadd.f32 %v17931_v24, %v17929_v54  ;;  %8026 = vst.msk [vmem:[#allocation4 + $0x1b8] sm:$0xf] %vm6440_vm5, %v21476_v49 }
 0x518   : > { %v5993_v38 = vadd.f32 %v17805_v18, %v5893_v42  ;;  %vm7759_vm14 = vmpackc.low %vm17974_vm15, %vm17974_vm15  ;;  %8027 = vst.msk [vmem:[#allocation4 + $0x1c4] sm:$0xf] %vm6440_vm5, %v21476_v49 }
 0x519   : > { %vm21484_vm15 = vmpackc.low %vm16211_vm6, %vm16211_vm6  ;;  %8028 = vst.msk [vmem:[#allocation4 + $0x1d0] sm:$0xf] %vm6440_vm5, %v21476_v49 }
 0x51a   : > { %v6025_v40 = vmax.f32 %v5993_v38, 0.0  ;;  %8029 = vst.msk [vmem:[#allocation4 + $0x1dc] sm:$0xf] %vm6440_vm5, %v21476_v49 }
 0x51b   : > { %v5804_v50 = vpop.f32.mrf.mxu2 }
 0x51c   : > { %v5805_v51 = vadd.f32 %v5804_v50, %v5716_v10 }
 0x51e   : > { %v5894_v14 = vadd.f32 %v5805_v51, %v21475_v8  ;;  %v17948_v35 = vpop.f32.mrf.mxu1  ;;  %v21482_v51 = vld [vmem:[#allocation74_spill] sm:$0xff] }
 0x51f   : > { %v15102_v8 = vld [vmem:[%s21036_s9 + $0xb0] sm:$0xff] }
 0x520   : > { %v5994_v27 = vadd.f32 %v17805_v18, %v5894_v14  ;;  %8593 = vmatpush.bf16.msra.mxu0 %v15102_v8 }
 0x522   : > { %v6026_v26 = vmax.f32 %v5994_v27, 0.0 }
 0x523   : > { %v5807_v56 = vpop.f32.mrf.mxu2 }
 0x524   : > { %v6050_v32 = vpack.c.bf16 %v6026_v26, %v6025_v40  ;;  %v5808_v36 = vadd.f32 %v5807_v56, %v5719_v5 }
 0x526   : > { %6170 = vmatmul.bf16.gmra.mxu3 %v6050_v32  ;;  %v5895_v25 = vadd.f32 %v5808_v36, %v17733_v59  ;;  %v17946_v59 = vpop.f32.mrf.mxu0  ;;  %v17984_v44 = vpop.f32.mrf.mxu1 }
 0x527   : > { %v5731_v7 = vadd.f32 %v17948_v35, %v17946_v59 }
 0x528   : > { %v5995_v13 = vadd.f32 %v17805_v18, %v5895_v25 }
 0x52a   : > { %v6027_v58 = vmax.f32 %v5995_v13, 0.0 }
 0x52b   : > { %v5809_v52 = vpop.f32.mrf.mxu2 }
 0x52c   : > { %v5810_v34 = vadd.f32 %v5809_v52, %v5721_v15 }
 0x52e   : > { %v5896_v30 = vadd.f32 %v5810_v34, %v21477_v21  ;;  %v17982_v12 = vpop.f32.mrf.mxu0  ;;  %v21486_v21 = vld [vmem:[#allocation10_spill] sm:$0xff] }
 0x530   : > { %v5996_v1 = vadd.f32 %v17805_v18, %v5896_v30  ;;  %v21487_v30 = vand.u32 15, %v21486_v21 }
 0x532   : > { %v6028_v0 = vmax.f32 %v5996_v1, 0.0  ;;  %vm18030_vm6 = vcmp.lt.s32.totalorder %v21487_v30, 2 }
 0x533   : > { %v5812_v43 = vpop.f32.mrf.mxu2 }
 0x534   : > { %v6051_v3 = vpack.c.bf16 %v6028_v0, %v6027_v58  ;;  %v5813_v17 = vadd.f32 %v5812_v43, %v5724_v45  ;;  %v18038_v58 = vpop.f32.mrf.mxu1  ;;  %v13319_v45 = vld [vmem:[#allocation4 + $0x20] sm:$0xf] }
 0x536   : > { %6175 = vmatmul.bf16.gmra.mxu3 %v6051_v3  ;;  %v5897_v47 = vadd.f32 %v5813_v17, %v17748_v39  ;;  %v18036_v24 = vpop.f32.mrf.mxu0 }
 0x538   : > { %v5997_v42 = vadd.f32 %v17805_v18, %v5897_v47 }
 0x539   : > { %v6136_v9 = vpop.f32.mrf.mxu3 }
 0x53a   : > { %v6137_v11 = vadd.f32 %v17960_v29, %v6136_v9  ;;  %v6029_v36 = vmax.f32 %v5997_v42, 0.0 }
 0x53b   : > { %v5814_v63 = vpop.f32.mrf.mxu2 }
 0x53c   : > { %v6216_v39 = vmax.f32 %v6137_v11, 0.0  ;;  %v5815_v10 = vadd.f32 %v5814_v63, %v5726_v2  ;;  %v18118_v30 = vpop.f32.mrf.mxu1 }
 0x53e   : > { %v6248_v50 = vpack.c.bf16 %v6216_v39, %v6216_v39  ;;  %v5898_v62 = vadd.f32 %v5815_v10, %v21482_v51 }
 0x540   : > { %v17999_v16 = vsel %vm7759_vm14, 0, %v6248_v50  ;;  %v5998_v38 = vadd.f32 %v17805_v18, %v5898_v62  ;;  %v7160_v14 = vsel %vm21484_vm15, 0, %v6248_v50  ;;  %v18011_v40 = vsel %vm16217_vm8, 0, %v6248_v50  ;;  %7124 = vst.msk [vmem:[#allocation4 + $0x34] sm:$0xf] %vm6440_vm5, %v6248_v50 }
 0x541   : > { %v7863_v26 = vrot.slane %v17999_v16, 5  ;;  %v6138_v56 = vpop.f32.mrf.mxu3  ;;  %v7200_v5 = vshll.u32 %v7160_v14, 16  ;;  %v6690_v32 = vshrl.u32 %v18011_v40, 16  ;;  %v7203_v13 = vshrl.u32 %v7160_v14, 16 }
 0x542   : > { %v6139_v28 = vadd.f32 %v17960_v29, %v6138_v56  ;;  %v6030_v15 = vmax.f32 %v5998_v38, 0.0  ;;  %v6693_v3 = vshll.u32 %v18011_v40, 16  ;;  %vm7860_vm15 = vcmask 1042432  }
 0x543   : > { %7992 = vst.msk [vmem:[#allocation4 + $0x2c] sm:$0x8] %vm7991_vm2, %v7863_v26  ;;  %v5817_v25 = vpop.f32.mrf.mxu2  ;;  %v18020_v20 = vrot.slane %v7200_v5, 5  ;;  %v6692_v54 = vrot.slane %v6690_v32, 7  ;;  %vm21256_vm2 = vcmask 523264   ;;  %v6481_v17 = vrot.slane %v18011_v40, 7 }
 0x544   : > { %v6217_v52 = vmax.f32 %v6139_v28, 0.0  ;;  %v6052_v34 = vpack.c.bf16 %v6030_v15, %v6029_v36  ;;  %v5818_v43 = vadd.f32 %v5817_v25, %v5729_v6  ;;  %vm7861_vm14 = vcmask 1046532   ;;  %v15110_v36 = vld [vmem:[%s21036_s9 + $0xf0] sm:$0xff] }
 0x545   : > { %7518 = vrot.lane.b32.xlu0 %v18020_v20, %s15378_s16  ;;  %v18061_v35 = vrot.slane %v7203_v13, 4  ;;  %v6695_v11 = vor.u32 %v6693_v3, %v6692_v54  ;;  %vm18079_vm13 = vmor %vm7860_vm15, %vm7861_vm14  ;;  %v7864_v14 = vrot.slane %v7863_v26, 4  ;;  %v5734_v28 = vadd.f32 %v17984_v44, %v17982_v12  ;;  %8682 = vmatpush.bf16.msra.mxu1 %v15110_v36 }
 0x546   : > { %v18040_v0 = vpack.c.bf16 %v6217_v52, %v6217_v52  ;;  %6180 = vmatmul.bf16.gmra.mxu3 %v6052_v34  ;;  %v5899_v60 = vadd.f32 %v5818_v43, %v17764_v46  ;;  %v6696_v26 = vrot.slane %v6692_v54, 4  ;;  %vm21494_vm14 = vcmask 519169  }
 0x547   : > { %6643 = vst.msk [vmem:[#allocation4 + $0x1b0] sm:$0xe] %vm21494_vm14, %v21476_v49  ;;  %v7206_v52 = vor.u32 %v18061_v35, %v18020_v20  ;;  %vm21495_vm15 = vmmov %vm21494_vm14 }
 0x548   : > { %7125 = vst.msk [vmem:[#allocation4 + $0x40] sm:$0xf] %vm6440_vm5, %v18040_v0  ;;  %v6648_v2 = vsel %vm21491_vm9, 0, %v18040_v0  ;;  %v7161_v59 = vsel %vm16217_vm8, 0, %v18040_v0  ;;  %vm7761_vm9 = vmpackc.low %vm18030_vm6, %vm18030_vm6  ;;  %v5999_v25 = vadd.f32 %v17805_v18, %v5899_v60 }
 0x549   : > { %v6141_v47 = vpop.f32.mrf.mxu3  ;;  %v6698_v48 = vshrl.u32 %v6648_v2, 16  ;;  %v7209_v37 = vshll.u32 %v7161_v59, 16  ;;  %v6701_v10 = vshll.u32 %v6648_v2, 16  ;;  %v7213_v42 = vshrl.u32 %v7161_v59, 16  ;;  %6610 = vst.msk [vmem:[#allocation4 + $0x30] sm:$0xe] %vm21495_vm15, %v6481_v17  ;;  %vm21498_vm14 = vmpackc.low %vm16277_vm12, %vm16277_vm12 }
 0x54a   : > { %v6142_v63 = vadd.f32 %v17960_v29, %v6141_v47  ;;  %v15034_v39 = vld [vmem:[#allocation4 + $0x28] sm:$0xf0]  ;;  %v7865_v38 = vrot.slane %v7161_v59, 5  ;;  %v6031_v1 = vmax.f32 %v5999_v25, 0.0  ;;  %vm21505_vm6 = vmpackc.low %vm16321_vm0, %vm16321_vm0 }
 0x54b   : > { %v5819_v50 = vpop.f32.mrf.mxu2  ;;  %v18069_v51 = vor.u32 %v15034_v39, %v13319_v45  ;;  %v18073_v62 = vrot.slane %v6698_v48, 7  ;;  %v18075_v16 = vrot.slane %v7209_v37, 5  ;;  %v7215_v32 = vrot.slane %v7213_v42, 4 }
 0x54c   : > { %v6218_v56 = vmax.f32 %v6142_v63, 0.0  ;;  %v5820_v5 = vadd.f32 %v5819_v50, %v5731_v7  ;;  %v7866_v44 = vsel %vm18079_vm13, %v7864_v14, %v7865_v38  ;;  %v7867_v35 = vrot.slane %v7865_v38, 4 }
 0x54d   : > { %13581 = vmatmul.msk.bf16.vlgmr.msra.gmra.mxu2 %vm21256_vm2, %v18069_v51  ;;  %6976 = vrot.lane.b32.xlu0 %v6695_v11, %s15378_s16  ;;  %v6703_v15 = vor.u32 %v6701_v10, %v18073_v62  ;;  %v7216_v21 = vor.u32 %v7215_v32, %v18075_v16  ;;  %7993 = vst.msk [vmem:[#allocation4 + $0x38] sm:$0xf] %vm6440_vm5, %v7866_v44  ;;  %v7207_v38 = vrot.slane %v7206_v52, 4 }
 0x54e   : > { %v6250_v6 = vpack.c.bf16 %v6218_v56, %v6218_v56  ;;  %v5900_v12 = vadd.f32 %v5820_v5, %v17768_v41  ;;  %v18116_v41 = vpop.f32.mrf.mxu0 }
 0x54f   : > { %v6704_v13 = vsel %vm16304_vm10, %v6696_v26, %v6703_v15  ;;  %v7217_v60 = vrot.slane %v7216_v21, 4  ;;  %v5736_v26 = vadd.f32 %v18038_v58, %v18036_v24  ;;  %v21500_v15 = vld [vmem:[#allocation14_spill] sm:$0xff] }
 0x550   : > { %v18122_v54 = vsel %vm16217_vm8, 0, %v6250_v6  ;;  %v7793_v20 = vsel %vm7761_vm9, 0, %v6250_v6  ;;  %v6000_v43 = vadd.f32 %v17805_v18, %v5900_v12  ;;  %7126 = vst.msk [vmem:[#allocation4 + $0x4c] sm:$0xf] %vm6440_vm5, %v6250_v6  ;;  %6978 = vrot.lane.b32.xlu1 %v6704_v13, %s15378_s16  ;;  %v7162_v45 = vsel %vm21498_vm14, 0, %v6250_v6  ;;  %vm21507_vm9 = vmpackc.low %vm16353_vm4, %vm16353_vm4 }
 0x551   : > { %v7868_v3 = vrot.slane %v7793_v20, 5  ;;  %v6143_v9 = vpop.f32.mrf.mxu3  ;;  %v7219_v2 = vshll.u32 %v7162_v45, 16  ;;  %v7223_v59 = vshrl.u32 %v7162_v45, 16  ;;  %v6707_v48 = vshrl.u32 %v18122_v54, 16  ;;  %v18175_v45 = vpop.f32.mrf.mxu1  ;;  %vm21517_vm14 = vmpackc.low %vm16395_vm1, %vm16395_vm1 }
 0x552   : > { %v6144_v47 = vadd.f32 %v17960_v29, %v6143_v9  ;;  %v6032_v11 = vmax.f32 %v6000_v43, 0.0  ;;  %v21501_v25 = vand.u32 15, %v21500_v15  ;;  %v6710_v12 = vshll.u32 %v18122_v54, 16 }
 0x553   : > { %v5822_v37 = vpop.f32.mrf.mxu2  ;;  %v7221_v63 = vrot.slane %v7219_v2, 5  ;;  %v7869_v39 = vsel %vm18079_vm13, %v7867_v35, %v7868_v3  ;;  %v7225_v8 = vrot.slane %v7223_v59, 4  ;;  %v6709_v5 = vrot.slane %v6707_v48, 7 }
 0x554   : > { %v6219_v10 = vmax.f32 %v6144_v47, 0.0  ;;  %v5823_v42 = vadd.f32 %v5822_v37, %v5734_v28  ;;  %v6053_v50 = vpack.c.bf16 %v6032_v11, %v6031_v1  ;;  %7994 = vst.msk [vmem:[#allocation4 + $0x44] sm:$0xf] %vm6440_vm5, %v7869_v39  ;;  %v7212_v28 = vsel %vm16296_vm11, %v7207_v38, %v18075_v16  ;;  %v13331_v59 = vld [vmem:[#allocation4 + $0x38] sm:$0xf] }
 0x555   : > { %v7222_v56 = vsel %vm16296_vm11, %v7217_v60, %v7221_v63  ;;  %vm18156_vm12 = vcmp.lt.s32.totalorder %v21501_v25, 2  ;;  %v7870_v44 = vrot.slane %v7868_v3, 4  ;;  %v7226_v24 = vor.u32 %v7225_v8, %v7221_v63 }
 0x556   : > { %v18145_v32 = vpack.c.bf16 %v6219_v10, %v6219_v10  ;;  %v5901_v36 = vadd.f32 %v5823_v42, %v17777_v57  ;;  %6185 = vmatmul.bf16.gmra.mxu3 %v6053_v50  ;;  %7522 = vrot.lane.b32.xlu2 %v7222_v56, %s15378_s16  ;;  %v6712_v13 = vor.u32 %v6710_v12, %v6709_v5  ;;  %v18173_v7 = vpop.f32.mrf.mxu0  ;;  %v6705_v2 = vrot.slane %v18073_v62, 4  ;;  %vm7763_vm0 = vmpackc.low %vm18156_vm12, %vm18156_vm12 }
 0x557   : > { %v7227_v50 = vrot.slane %v7226_v24, 4  ;;  %v6714_v8 = vrot.slane %v6709_v5, 4 }
 0x558   : > { %7127 = vst.msk [vmem:[#allocation4 + $0x58] sm:$0xf] %vm6440_vm5, %v18145_v32  ;;  %7520 = vrot.lane.b32.xlu1 %v7212_v28, %s15378_s16  ;;  %v7163_v57 = vsel %vm16217_vm8, 0, %v18145_v32  ;;  %v6650_v16 = vsel %vm21505_vm6, 0, %v18145_v32  ;;  %v6001_v3 = vadd.f32 %v17805_v18, %v5901_v36  ;;  %v6713_v62 = vsel %vm16304_vm10, %v6705_v2, %v6712_v13 }
 0x559   : > { %v6146_v52 = vpop.f32.mrf.mxu3  ;;  %v7229_v21 = vshll.u32 %v7163_v57, 16  ;;  %v7871_v20 = vrot.slane %v7163_v57, 5  ;;  %v6716_v43 = vshrl.u32 %v6650_v16, 16  ;;  %v7233_v35 = vshrl.u32 %v7163_v57, 16 }
 0x55a   : > { %v6147_v9 = vadd.f32 %v17960_v29, %v6146_v52  ;;  %v6719_v60 = vshll.u32 %v6650_v16, 16  ;;  %v5739_v28 = vadd.f32 %v18118_v30, %v18116_v41  ;;  %v6033_v15 = vmax.f32 %v6001_v3, 0.0 }
 0x55b   : > { %v5824_v1 = vpop.f32.mrf.mxu2  ;;  %v15037_v47 = vld [vmem:[#allocation4 + $0x40] sm:$0xf0]  ;;  %v7231_v11 = vrot.slane %v7229_v21, 5  ;;  %v7872_v48 = vsel %vm18079_vm13, %v7870_v44, %v7871_v20  ;;  %v6718_v37 = vrot.slane %v6716_v43, 7  ;;  %v7235_v42 = vrot.slane %v7233_v35, 4 }
 0x55c   : > { %v6220_v63 = vmax.f32 %v6147_v9, 0.0  ;;  %v5825_v39 = vadd.f32 %v5824_v1, %v5736_v26  ;;  %v18182_v10 = vor.u32 %v15037_v47, %v13331_v59  ;;  %7995 = vst.msk [vmem:[#allocation4 + $0x50] sm:$0xf] %vm6440_vm5, %v7872_v48  ;;  %v7873_v57 = vrot.slane %v7871_v20, 4  ;;  %v5743_v47 = vpop.f32.mrf.mxu1 }
 0x55d   : > { %v6721_v38 = vor.u32 %v6719_v60, %v6718_v37  ;;  %v7236_v26 = vor.u32 %v7235_v42, %v7231_v11  ;;  %v7232_v25 = vsel %vm16296_vm11, %v7227_v50, %v7231_v11  ;;  %v6723_v50 = vrot.slane %v6718_v37, 4 }
 0x55e   : > { %v6252_v56 = vpack.c.bf16 %v6220_v63, %v6220_v63  ;;  %v5902_v36 = vadd.f32 %v5825_v39, %v17781_v61  ;;  %6980 = vrot.lane.b32.xlu2 %v6713_v62, %s15378_s16  ;;  %13582 = vmatmul.msk.bf16.gmra.mxu2 %vm21256_vm2, %v18182_v10  ;;  %v5654_v1 = vpop.f32.mrf.mxu0  ;;  %vm21255_vm6 = vcmask 516096  }
 0x55f   : > { %v6722_v5 = vsel %vm16304_vm10, %v6714_v8, %v6721_v38  ;;  %v7237_v21 = vrot.slane %v7236_v26, 4  ;;  %v5741_v38 = vadd.f32 %v18175_v45, %v18173_v7  ;;  %6446 = vst.msk [vmem:[#allocation4 + $0x30] sm:$0x1] %vm21255_vm6, %v21476_v49 }
 0x560   : > { %v18202_v6 = vsel %vm16217_vm8, 0, %v6252_v56  ;;  %v7795_v61 = vsel %vm7763_vm0, 0, %v6252_v56  ;;  %7128 = vst.msk [vmem:[#allocation4 + $0x64] sm:$0xf] %vm6440_vm5, %v6252_v56  ;;  %v6002_v12 = vadd.f32 %v17805_v18, %v5902_v36  ;;  %7524 = vrot.lane.b32.xlu1 %v7232_v25, %s15378_s16  ;;  %6982 = vrot.lane.b32.xlu0 %v6722_v5, %s15378_s16  ;;  %v7164_v30 = vsel %vm21507_vm9, 0, %v6252_v56  ;;  %v21508_v56 = vld [vmem:[#allocation7_spill] sm:$0xff] }
 0x561   : > { %v7874_v44 = vrot.slane %v7795_v61, 5  ;;  %v6148_v24 = vpop.f32.mrf.mxu3  ;;  %v7239_v58 = vshll.u32 %v7164_v30, 16  ;;  %v7243_v16 = vshrl.u32 %v7164_v30, 16  ;;  %v6725_v43 = vshrl.u32 %v18202_v6, 16 }
 0x562   : > { %v6149_v52 = vadd.f32 %v17960_v29, %v6148_v24  ;;  %v6034_v13 = vmax.f32 %v6002_v12, 0.0  ;;  %v6728_v59 = vshll.u32 %v18202_v6, 16  ;;  %v21509_v36 = vand.u32 15, %v21508_v56 }
 0x563   : > { %v7875_v3 = vsel %vm18079_vm13, %v7873_v57, %v7874_v44  ;;  %v5827_v9 = vpop.f32.mrf.mxu2  ;;  %v7241_v2 = vrot.slane %v7239_v58, 5  ;;  %v7245_v35 = vrot.slane %v7243_v16, 4  ;;  %v6727_v60 = vrot.slane %v6725_v43, 7  ;;  %v13343_v16 = vld [vmem:[#allocation4 + $0x50] sm:$0xf] }
 0x564   : > { %7996 = vst.msk [vmem:[#allocation4 + $0x5c] sm:$0xf] %vm6440_vm5, %v7875_v3  ;;  %v6221_v20 = vmax.f32 %v6149_v52, 0.0  ;;  %v5828_v11 = vadd.f32 %v5827_v9, %v5739_v28  ;;  %v6054_v48 = vpack.c.bf16 %v6034_v13, %v6033_v15  ;;  %vm18229_vm4 = vcmp.ge.s32.totalorder %v21509_v36, 14  ;;  %v21512_v28 = vld [vmem:[#allocation20_spill] sm:$0xff]  ;;  %v15101_v13 = vld [vmem:[%s21036_s9 + $0xa8] sm:$0xff] }
 0x565   : > { %v7242_v63 = vsel %vm16296_vm11, %v7237_v21, %v7241_v2  ;;  %v7246_v39 = vor.u32 %v7245_v35, %v7241_v2  ;;  %v6730_v8 = vor.u32 %v6728_v59, %v6727_v60  ;;  %v21513_v15 = vand.u32 15, %v21512_v28  ;;  %vm6377_vm1 = vmpackc.low %vm18229_vm4, %vm18229_vm4  ;;  %8594 = vmatpush.bf16.msra.mxu0 %v15101_v13 }
 0x566   : > { %v18221_v42 = vpack.c.bf16 %v6221_v20, %v6221_v20  ;;  %v5903_v62 = vadd.f32 %v5828_v11, %v17791_v53  ;;  %6190 = vmatmul.bf16.gmra.mxu3 %v6054_v48  ;;  %7526 = vrot.lane.b32.xlu2 %v7242_v63, %s15378_s16  ;;  %v7876_v5 = vrot.slane %v7874_v44, 4  ;;  %v15109_v44 = vld [vmem:[%s21036_s9 + $0xe8] sm:$0xff]  ;;  %vm6684_vm4 = vcmask 1040896  }
 0x567   : > { %v6731_v53 = vsel %vm16304_vm10, %v6723_v50, %v6730_v8  ;;  %vm18239_vm15 = vcmp.lt.s32.totalorder %v21513_v15, 2  ;;  %v7247_v58 = vrot.slane %v7246_v39, 4  ;;  %8683 = vmatpush.bf16.msra.mxu1 %v15109_v44  ;;  %v6732_v39 = vrot.slane %v6727_v60, 4  ;;  %v5656_v50 = vpop.f32.mrf.mxu0  ;;  %v5745_v8 = vpop.f32.mrf.mxu1 }
 0x568   : > { %7129 = vst.msk [vmem:[#allocation4 + $0x70] sm:$0xf] %vm6440_vm5, %v18221_v42  ;;  %v7165_v7 = vsel %vm16217_vm8, 0, %v18221_v42  ;;  %v6652_v25 = vsel %vm21517_vm14, 0, %v18221_v42  ;;  %6984 = vrot.lane.b32.xlu0 %v6731_v53, %s15378_s16  ;;  %v6003_v57 = vadd.f32 %v17805_v18, %v5903_v62  ;;  %vm7765_vm12 = vmpackc.low %vm18239_vm15, %vm18239_vm15  ;;  %v5744_v53 = vadd.f32 %v5743_v47, %v5654_v1 }
 0x569   : > { %v6151_v61 = vpop.f32.mrf.mxu3  ;;  %v7249_v12 = vshll.u32 %v7165_v7, 16  ;;  %v7877_v41 = vrot.slane %v7165_v7, 5  ;;  %v6734_v30 = vshrl.u32 %v6652_v25, 16  ;;  %v7253_v52 = vshrl.u32 %v7165_v7, 16 }
 0x56a   : > { %v6152_v24 = vadd.f32 %v17960_v29, %v6151_v61  ;;  %v6737_v59 = vshll.u32 %v6652_v25, 16  ;;  %v18289_v60 = vsel %vm6377_vm1, 0, %v18040_v0  ;;  %v6035_v28 = vmax.f32 %v6003_v57, 0.0  ;;  %v21518_v0 = vld [vmem:[#allocation23_spill] sm:$0xff] }
 0x56b   : > { %v5829_v21 = vpop.f32.mrf.mxu2  ;;  %v7251_v43 = vrot.slane %v7249_v12, 5  ;;  %v7878_v3 = vsel %vm18079_vm13, %v7876_v5, %v7877_v41  ;;  %v15040_v9 = vld [vmem:[#allocation4 + $0x58] sm:$0xf0]  ;;  %v18263_v2 = vrot.slane %v6734_v30, 7  ;;  %v7255_v48 = vrot.slane %v7253_v52, 4 }
 0x56c   : > { %v6222_v35 = vmax.f32 %v6152_v24, 0.0  ;;  %v5830_v20 = vadd.f32 %v5829_v21, %v5741_v38  ;;  %7997 = vst.msk [vmem:[#allocation4 + $0x68] sm:$0xf] %vm6440_vm5, %v7878_v3  ;;  %v18269_v11 = vor.u32 %v15040_v9, %v13343_v16  ;;  %vm21519_vm0 = vnez %v21518_v0 }
 0x56d   : > { %v7252_v63 = vsel %vm16296_vm11, %v7247_v58, %v7251_v43  ;;  %v6739_v62 = vor.u32 %v6737_v59, %v18263_v2  ;;  %v7256_v36 = vor.u32 %v7255_v48, %v7251_v43  ;;  %vm21520_vm9 = vmpackc.low %vm21519_vm0, %vm21519_vm0  ;;  %v7879_v45 = vrot.slane %v7877_v41, 4 }
 0x56e   : > { %v6254_v38 = vpack.c.bf16 %v6222_v35, %v6222_v35  ;;  %v5904_v56 = vadd.f32 %v5830_v20, %v17798_v33  ;;  %7528 = vrot.lane.b32.xlu2 %v7252_v63, %s15378_s16  ;;  %13583 = vmatmul.msk.bf16.gmra.mxu2 %vm21256_vm2, %v18269_v11  ;;  %v6741_v35 = vrot.slane %v18263_v2, 4  ;;  %vm6479_vm15 = vcmask 1044484  }
 0x56f   : > { %v6740_v33 = vsel %vm16304_vm10, %v6732_v39, %v6739_v62  ;;  %v7257_v30 = vrot.slane %v7256_v36, 4  ;;  %v5746_v48 = vadd.f32 %v5745_v8, %v5656_v50  ;;  %v6483_v63 = vrot.slane %v18289_v60, 7  ;;  %v21521_v39 = vld [vmem:[#allocation24_spill] sm:$0xff]  ;;  %v5659_v36 = vpop.f32.mrf.mxu0  ;;  %v5748_v2 = vpop.f32.mrf.mxu1 }
 0x570   : > { %v18295_v15 = vsel %vm16217_vm8, 0, %v6254_v38  ;;  %v7797_v1 = vsel %vm7765_vm12, 0, %v6254_v38  ;;  %7130 = vst.msk [vmem:[#allocation4 + $0x7c] sm:$0xf] %vm6440_vm5, %v6254_v38  ;;  %v6004_v47 = vadd.f32 %v17805_v18, %v5904_v56  ;;  %6986 = vrot.lane.b32.xlu1 %v6740_v33, %s15378_s16  ;;  %v7166_v26 = vsel %vm21520_vm9, 0, %v6254_v38 }
 0x571   : > { %v7880_v7 = vrot.slane %v7797_v1, 5  ;;  %v6153_v25 = vpop.f32.mrf.mxu3  ;;  %v7259_v5 = vshll.u32 %v7166_v26, 16  ;;  %v7263_v61 = vshrl.u32 %v7166_v26, 16  ;;  %v6743_v57 = vshrl.u32 %v18295_v15, 16  ;;  %v6686_v56 = vld [vmem:[#allocation4 + $0x30] sm:$0x1] }
 0x572   : > { %v6154_v37 = vadd.f32 %v17960_v29, %v6153_v25  ;;  %v6036_v12 = vmax.f32 %v6004_v47, 0.0  ;;  %v6746_v16 = vshll.u32 %v18295_v15, 16  ;;  %v21522_v62 = vand.u32 15, %v21521_v39 }
 0x573   : > { %v7881_v18 = vsel %vm18079_vm13, %v7879_v45, %v7880_v7  ;;  %v5832_v24 = vpop.f32.mrf.mxu2  ;;  %v7261_v58 = vrot.slane %v7259_v5, 5  ;;  %v7265_v52 = vrot.slane %v7263_v61, 4  ;;  %v18316_v21 = vrot.slane %v6743_v57, 7  ;;  %v18355_v45 = vld [vmem:[%s21033_s6] ss:$0 sm:$0xff] }
 0x574   : > { %7998 = vst.msk [vmem:[#allocation4 + $0x74] sm:$0xf] %vm6440_vm5, %v7881_v18  ;;  %v6223_v41 = vmax.f32 %v6154_v37, 0.0  ;;  %v5833_v13 = vadd.f32 %v5832_v24, %v5744_v53  ;;  %v6055_v44 = vpack.c.bf16 %v6036_v12, %v6035_v28  ;;  %vm18329_vm14 = vcmp.lt.s32.totalorder %v21522_v62, 2  ;;  %v21528_v28 = vld [vmem:[#allocation25_spill] sm:$0xff]  ;;  %v15084_v12 = vld [vmem:[%s21036_s9 + $0x38] sm:$0xff] }
 0x575   : > { %v7262_v43 = vsel %vm16296_vm11, %v7257_v30, %v7261_v58  ;;  %v7266_v3 = vor.u32 %v7265_v52, %v7261_v58  ;;  %v6748_v20 = vor.u32 %v6746_v16, %v18316_v21  ;;  %vm21525_vm1 = vsmask.f32 256  ;;  %v13355_v61 = vld [vmem:[#allocation4 + $0x68] sm:$0xf]  ;;  %8993 = vmatpush.bf16.msrb.mxu3 %v15084_v12 }
 0x576   : > { %v18320_v9 = vpack.c.bf16 %v6223_v41, %v6223_v41  ;;  %v5905_v59 = vadd.f32 %v5833_v13, %v17815_v19  ;;  %6195 = vmatmul.bf16.gmra.mxu3 %v6055_v44  ;;  %7530 = vrot.lane.b32.xlu0 %v7262_v43, %s15378_s16  ;;  %vm18334_vm12 = vmand %vm6684_vm4, %vm21525_vm1  ;;  %v7882_v53 = vrot.slane %v7880_v7, 4  ;;  %vm21529_vm0 = vnez %v21528_v28 }
 0x577   : > { %v6749_v50 = vsel %vm16304_vm10, %v6741_v35, %v6748_v20  ;;  %vm21530_vm9 = vmpackc.low %vm21529_vm0, %vm21529_vm0  ;;  %v7267_v47 = vrot.slane %v7266_v3, 4  ;;  %v6687_v30 = vsel %vm18334_vm12, 0, %v6686_v56  ;;  %vm21531_vm4 = vcmask 1040384   ;;  %v5661_v38 = vpop.f32.mrf.mxu0 }
 0x578   : > { %7131 = vst.msk [vmem:[#allocation4 + $0x88] sm:$0xf] %vm6440_vm5, %v18320_v9  ;;  %v7167_v8 = vsel %vm16217_vm8, 0, %v18320_v9  ;;  %v6654_v33 = vsel %vm21530_vm9, 0, %v18320_v9  ;;  %6988 = vrot.lane.b32.xlu1 %v6749_v50, %s15378_s16  ;;  %v6005_v25 = vadd.f32 %v18355_v45, %v5905_v59  ;;  %vm18370_vm1 = vmor %vm21531_vm4, %vm6479_vm15  ;;  %v6750_v35 = vrot.slane %v18316_v21, 4 }
 0x579   : > { %v6156_v1 = vpop.f32.mrf.mxu3  ;;  %v7269_v0 = vshll.u32 %v7167_v8, 16  ;;  %v7883_v26 = vrot.slane %v7167_v8, 5  ;;  %v6752_v7 = vshrl.u32 %v6654_v33, 16  ;;  %v7273_v37 = vshrl.u32 %v7167_v8, 16  ;;  %vm7767_vm0 = vmpackc.low %vm18329_vm14, %vm18329_vm14  ;;  %6688 = vst [vmem:[#allocation4 + $0x30] sm:$0x1] %v6687_v30 }
 0x57a   : > { %v6157_v5 = vadd.f32 %v17960_v29, %v6156_v1  ;;  %v6755_v52 = vshll.u32 %v6654_v33, 16  ;;  %v6037_v50 = vmax.f32 %v6005_v25, 0.0 }
 0x57b   : > { %v5834_v57 = vpop.f32.mrf.mxu2  ;;  %v15043_v18 = vld [vmem:[#allocation4 + $0x70] sm:$0xf0]  ;;  %v7271_v24 = vrot.slane %v7269_v0, 5  ;;  %v7884_v58 = vsel %vm18079_vm13, %v7882_v53, %v7883_v26  ;;  %v18366_v16 = vrot.slane %v6752_v7, 7  ;;  %v7275_v3 = vrot.slane %v7273_v37, 4  ;;  %v5750_v7 = vpop.f32.mrf.mxu1 }
 0x57c   : > { %v6224_v13 = vmax.f32 %v6157_v5, 0.0  ;;  %v5835_v44 = vadd.f32 %v5834_v57, %v5746_v48  ;;  %v18374_v43 = vor.u32 %v15043_v18, %v13355_v61  ;;  %7999 = vst.msk [vmem:[#allocation4 + $0x80] sm:$0xf] %vm6440_vm5, %v7884_v58  ;;  %v6482_v48 = vrot.slane %v6481_v17, 4 }
 0x57d   : > { %v7272_v59 = vsel %vm16296_vm11, %v7267_v47, %v7271_v24  ;;  %v6757_v20 = vor.u32 %v6755_v52, %v18366_v16  ;;  %v7276_v56 = vor.u32 %v7275_v3, %v7271_v24  ;;  %v5749_v53 = vadd.f32 %v5748_v2, %v5659_v36  ;;  %v21535_v2 = vld [vmem:[#allocation27_spill] sm:$0xff]  ;;  %v15083_v24 = vld [vmem:[%s21036_s9 + $0x30] sm:$0xff] }
 0x57e   : > { %21534 = vst [vmem:[#allocation78_spill] sm:$0xff] %v18374_v43  ;;  %v6256_v39 = vpack.c.bf16 %v6224_v13, %v6224_v13  ;;  %v5906_v62 = vadd.f32 %v5835_v44, %v17827_v4  ;;  %13584 = vmatmul.msk.bf16.gmra.mxu2 %vm21256_vm2, %v18374_v43  ;;  %7532 = vrot.lane.b32.xlu0 %v7272_v59, %s15378_s16  ;;  %vm21536_vm15 = vnez %v21535_v2  ;;  %v7885_v33 = vrot.slane %v7883_v26, 4 }
 0x57f   : > { %v6758_v21 = vsel %vm16304_vm10, %v6750_v35, %v6757_v20  ;;  %v6484_v40 = vsel %vm18370_vm1, %v6482_v48, %v6483_v63  ;;  %vm21537_vm9 = vmpackc.low %vm21536_vm15, %vm21536_vm15  ;;  %v7277_v61 = vrot.slane %v7276_v56, 4  ;;  %8994 = vmatpush.bf16.msrb.mxu3 %v15083_v24  ;;  %v15082_v35 = vld [vmem:[%s21036_s9 + $0x28] sm:$0xff]  ;;  %v6486_v20 = vrot.slane %v18122_v54, 7 }
 0x580   : > { %v18398_v17 = vsel %vm16217_vm8, 0, %v6256_v39  ;;  %v7799_v4 = vsel %vm7767_vm0, 0, %v6256_v39  ;;  %7132 = vst.msk [vmem:[#allocation4 + $0x94] sm:$0xf] %vm6440_vm5, %v6256_v39  ;;  %v6006_v36 = vadd.f32 %v18355_v45, %v5906_v62  ;;  %6990 = vrot.lane.b32.xlu2 %v6758_v21, %s15378_s16  ;;  %v7168_v8 = vsel %vm21537_vm9, 0, %v6256_v39  ;;  %v21538_v21 = vld [vmem:[#allocation28_spill] sm:$0xff] }
 0x581   : > { %v7886_v28 = vrot.slane %v7799_v4, 5  ;;  %v6158_v1 = vpop.f32.mrf.mxu3  ;;  %v7279_v47 = vshll.u32 %v7168_v8, 16  ;;  %v7283_v0 = vshrl.u32 %v7168_v8, 16  ;;  %6611 = vst.msk [vmem:[#allocation4 + $0x3c] sm:$0xf] %vm6440_vm5, %v6484_v40  ;;  %v6761_v37 = vshrl.u32 %v18398_v17, 16 }
 0x582   : > { %v6159_v25 = vadd.f32 %v17960_v29, %v6158_v1  ;;  %v6038_v5 = vmax.f32 %v6006_v36, 0.0  ;;  %v6764_v26 = vshll.u32 %v18398_v17, 16  ;;  %v6485_v48 = vrot.slane %v6483_v63, 4  ;;  %v21542_v36 = vld [vmem:[#allocation29_spill] sm:$0xff]  ;;  %v15100_v8 = vld [vmem:[%s21036_s9 + $0xa0] sm:$0xff] }
 0x583   : > { %v7887_v12 = vsel %vm18079_vm13, %v7885_v33, %v7886_v28  ;;  %v5837_v30 = vpop.f32.mrf.mxu2  ;;  %v7281_v57 = vrot.slane %v7279_v47, 5  ;;  %v7285_v18 = vrot.slane %v7283_v0, 4  ;;  %v18423_v44 = vrot.slane %v6761_v37, 7  ;;  %8995 = vmatpush.bf16.msrb.mxu3 %v15082_v35  ;;  %8595 = vmatpush.bf16.msra.mxu0 %v15100_v8 }
 0x584   : > { %8000 = vst.msk [vmem:[#allocation4 + $0x8c] sm:$0xf] %vm6440_vm5, %v7887_v12  ;;  %v6225_v58 = vmax.f32 %v6159_v25, 0.0  ;;  %v5838_v52 = vadd.f32 %v5837_v30, %v5749_v53  ;;  %v6056_v13 = vpack.c.bf16 %v6038_v5, %v6037_v50  ;;  %v6759_v56 = vrot.slane %v18366_v16, 4  ;;  %v21545_v12 = vld [vmem:[#allocation12_spill] sm:$0xff] }
 0x585   : > { %v7282_v3 = vsel %vm16296_vm11, %v7277_v61, %v7281_v57  ;;  %v7286_v59 = vor.u32 %v7285_v18, %v7281_v57  ;;  %v6766_v53 = vor.u32 %v6764_v26, %v18423_v44  ;;  %v5751_v50 = vadd.f32 %v5750_v7, %v5661_v38  ;;  %v15081_v38 = vld [vmem:[%s21036_s9 + $0x20] sm:$0xff]  ;;  %v13367_v61 = vld [vmem:[#allocation4 + $0x80] sm:$0xf] }
 0x586   : > { %v18433_v39 = vpack.c.bf16 %v6225_v58, %v6225_v58  ;;  %v5907_v62 = vadd.f32 %v5838_v52, %v17837_v31  ;;  %6200 = vmatmul.bf16.gmra.mxu3 %v6056_v13  ;;  %7534 = vrot.lane.b32.xlu1 %v7282_v3, %s15378_s16  ;;  %v21539_v40 = vand.u32 15, %v21538_v21  ;;  %v6487_v60 = vsel %vm18370_vm1, %v6485_v48, %v6486_v20  ;;  %v15108_v7 = vld [vmem:[%s21036_s9 + $0xe0] sm:$0xff]  ;;  %v5664_v3 = vpop.f32.mrf.mxu0 }
 0x587   : > { %v7888_v31 = vrot.slane %v7886_v28, 4  ;;  %v6767_v63 = vsel %vm16304_vm10, %v6759_v56, %v6766_v53  ;;  %vm21543_vm4 = vnez %v21542_v36  ;;  %v7287_v33 = vrot.slane %v7286_v59, 4  ;;  %6612 = vst.msk [vmem:[#allocation4 + $0x48] sm:$0xf] %vm6440_vm5, %v6487_v60  ;;  %8684 = vmatpush.bf16.msra.mxu1 %v15108_v7  ;;  %v5753_v59 = vpop.f32.mrf.mxu1  ;;  %8996 = vmatpush.bf16.msrb.mxu3 %v15081_v38 }
 0x588   : > { %vm18441_vm14 = vcmp.lt.s32.totalorder %v21539_v40, 2  ;;  %7133 = vst.msk [vmem:[#allocation4 + $0xa0] sm:$0xf] %vm6440_vm5, %v18433_v39  ;;  %v7169_v16 = vsel %vm16217_vm8, 0, %v18433_v39  ;;  %vm21544_vm0 = vmpackc.low %vm21543_vm4, %vm21543_vm4  ;;  %6992 = vrot.lane.b32.xlu2 %v6767_v63, %s15378_s16  ;;  %v18473_v25 = vadd.f32 %v18355_v45, %v5907_v62  ;;  %v21546_v30 = vand.u32 15, %v21545_v12 }
 0x589   : > { %v6656_v2 = vsel %vm21544_vm0, 0, %v18433_v39  ;;  %v6161_v28 = vpop.f32.mrf.mxu3  ;;  %v7289_v1 = vshll.u32 %v7169_v16, 16  ;;  %v7889_v47 = vrot.slane %v7169_v16, 5  ;;  %v7293_v37 = vshrl.u32 %v7169_v16, 16  ;;  %vm7769_vm4 = vmpackc.low %vm18441_vm14, %vm18441_vm14 }
 0x58a   : > { %v6770_v0 = vshrl.u32 %v6656_v2, 16  ;;  %v6162_v5 = vadd.f32 %v17960_v29, %v6161_v28  ;;  %vm18479_vm15 = vcmp.ge.s32.totalorder %v21546_v30, 14  ;;  %v6773_v13 = vshll.u32 %v6656_v2, 16 }
 0x58b   : > { %v5839_v26 = vpop.f32.mrf.mxu2  ;;  %v15046_v18 = vld [vmem:[#allocation4 + $0x88] sm:$0xf0]  ;;  %v7291_v24 = vrot.slane %v7289_v1, 5  ;;  %v7890_v58 = vsel %vm18079_vm13, %v7888_v31, %v7889_v47  ;;  %vm6379_vm9 = vmpackc.low %vm18479_vm15, %vm18479_vm15  ;;  %v7295_v56 = vrot.slane %v7293_v37, 4  ;;  %v6768_v21 = vrot.slane %v18423_v44, 4 }
 0x58c   : > { %v18485_v52 = vrot.slane %v6770_v0, 7  ;;  %v6226_v35 = vmax.f32 %v6162_v5, 0.0  ;;  %v5840_v48 = vadd.f32 %v5839_v26, %v5751_v50  ;;  %v18490_v62 = vor.u32 %v15046_v18, %v13367_v61  ;;  %8001 = vst.msk [vmem:[#allocation4 + $0x98] sm:$0xf] %vm6440_vm5, %v7890_v58  ;;  %v15080_v50 = vld [vmem:[%s21036_s9 + $0x18] sm:$0xff] }
 0x58d   : > { %v7292_v53 = vsel %vm16296_vm11, %v7287_v33, %v7291_v24  ;;  %v7296_v63 = vor.u32 %v7295_v56, %v7291_v24  ;;  %v18513_v44 = vsel %vm6379_vm9, 0, %v18145_v32  ;;  %v5754_v16 = vadd.f32 %v5753_v59, %v5664_v3  ;;  %v21550_v33 = vld [vmem:[#allocation31_spill] sm:$0xff]  ;;  %8997 = vmatpush.bf16.msrb.mxu3 %v15080_v50  ;;  %v15079_v24 = vld [vmem:[%s21036_s9 + $0x10] sm:$0xff] }
 0x58e   : > { %21549 = vst [vmem:[#allocation76_spill] sm:$0xff] %v18490_v62  ;;  %v6775_v40 = vor.u32 %v6773_v13, %v18485_v52  ;;  %v6258_v60 = vpack.c.bf16 %v6226_v35, %v6226_v35  ;;  %v5908_v31 = vadd.f32 %v5840_v48, %v17847_v22  ;;  %13585 = vmatmul.msk.bf16.gmra.mxu2 %vm21256_vm2, %v18490_v62  ;;  %v6039_v36 = vmax.f32 %v18473_v25, 0.0  ;;  %v15078_v48 = vld [vmem:[%s21036_s9 + $0x8] sm:$0xff]  ;;  %v5666_v56 = vpop.f32.mrf.mxu0 }
 0x58f   : > { %7536 = vrot.lane.b32.xlu1 %v7292_v53, %s15378_s16  ;;  %v7891_v2 = vrot.slane %v7889_v47, 4  ;;  %vm21551_vm0 = vnez %v21550_v33  ;;  %v6489_v4 = vrot.slane %v18513_v44, 7  ;;  %v7297_v61 = vrot.slane %v7296_v63, 4  ;;  %v5755_v53 = vpop.f32.mrf.mxu1  ;;  %v21553_v63 = vld [vmem:[#allocation32_spill] sm:$0xff] }
 0x590   : > { %v6776_v22 = vsel %vm16304_vm10, %v6768_v21, %v6775_v40  ;;  %v18520_v8 = vsel %vm16217_vm8, 0, %v6258_v60  ;;  %v7801_v28 = vsel %vm7769_vm4, 0, %v6258_v60  ;;  %7134 = vst.msk [vmem:[#allocation4 + $0xac] sm:$0xf] %vm6440_vm5, %v6258_v60  ;;  %v6008_v32 = vadd.f32 %v18355_v45, %v5908_v31  ;;  %vm21552_vm15 = vmpackc.low %vm21551_vm0, %vm21551_vm0 }
 0x591   : > { %6994 = vrot.lane.b32.xlu0 %v6776_v22, %s15378_s16  ;;  %v7170_v1 = vsel %vm21552_vm15, 0, %v6258_v60  ;;  %v7892_v47 = vrot.slane %v7801_v28, 5  ;;  %v6163_v0 = vpop.f32.mrf.mxu3  ;;  %v6779_v37 = vshrl.u32 %v18520_v8, 16  ;;  %v6782_v26 = vshll.u32 %v18520_v8, 16  ;;  %8998 = vmatpush.bf16.msrb.mxu3 %v15079_v24  ;;  %v21557_v28 = vld [vmem:[#allocation33_spill] sm:$0xff] }
 0x592   : > { %v7299_v38 = vshll.u32 %v7170_v1, 16  ;;  %v7303_v7 = vshrl.u32 %v7170_v1, 16  ;;  %v6164_v25 = vadd.f32 %v17960_v29, %v6163_v0  ;;  %v6040_v5 = vmax.f32 %v6008_v32, 0.0 }
 0x593   : > { %v7893_v12 = vsel %vm18079_vm13, %v7891_v2, %v7892_v47  ;;  %v5842_v30 = vpop.f32.mrf.mxu2  ;;  %v18545_v3 = vrot.slane %v6779_v37, 7  ;;  %vm6679_vm14 = vcmask 1043968   ;;  %v6777_v50 = vrot.slane %v18485_v52, 4 }
 0x594   : > { %v7301_v57 = vrot.slane %v7299_v38, 5  ;;  %v7305_v18 = vrot.slane %v7303_v7, 4  ;;  %8002 = vst.msk [vmem:[#allocation4 + $0xa4] sm:$0xf] %vm6440_vm5, %v7893_v12  ;;  %v6227_v58 = vmax.f32 %v6164_v25, 0.0  ;;  %v5843_v29 = vadd.f32 %v5842_v30, %v5754_v16  ;;  %v15077_v25 = vld [vmem:[%s21036_s9] sm:$0xff] }
 0x595   : > { %v6057_v13 = vpack.c.bf16 %v6040_v5, %v6039_v36  ;;  %v6784_v60 = vor.u32 %v6782_v26, %v18545_v3  ;;  %v7894_v31 = vrot.slane %v7892_v47, 4  ;;  %v21554_v16 = vand.u32 15, %v21553_v63  ;;  %6680 = vst.msk [vmem:[#allocation4] sm:$0xf] %vm6679_vm14, %v21476_v49  ;;  %8999 = vmatpush.bf16.msrb.mxu3 %v15078_v48  ;;  %v13379_v12 = vld [vmem:[#allocation4 + $0x98] sm:$0xf] }
 0x596   : > { %v7302_v59 = vsel %vm16296_vm11, %v7297_v61, %v7301_v57  ;;  %v7306_v35 = vor.u32 %v7305_v18, %v7301_v57  ;;  %v18552_v21 = vpack.c.bf16 %v6227_v58, %v6227_v58  ;;  %v5909_v40 = vadd.f32 %v5843_v29, %v17863_v23  ;;  %6681 = vst.msk [vmem:[#allocation4 + $0xc] sm:$0xf] %vm6679_vm14, %v21476_v49  ;;  %v18592_v61 = vld [vmem:[%s21035_s8] ss:$0 sm:$0xff] }
 0x597   : > { %6205 = vmatmul.bf16.gmra.mxu3 %v6057_v13  ;;  %7538 = vrot.lane.b32.xlu2 %v7302_v59, %s15378_s16  ;;  %vm18560_vm9 = vcmp.lt.s32.totalorder %v21554_v16, 2  ;;  %v6492_v23 = vrot.slane %v18202_v6, 7  ;;  %v6785_v52 = vsel %vm16304_vm10, %v6777_v50, %v6784_v60  ;;  %vm21558_vm4 = vnez %v21557_v28  ;;  %6682 = vst.msk [vmem:[#allocation4 + $0x18] sm:$0xf] %vm6679_vm14, %v21476_v49 }
 0x598   : > { %v7307_v2 = vrot.slane %v7306_v35, 4  ;;  %7135 = vst.msk [vmem:[#allocation4 + $0xb8] sm:$0xf] %vm6440_vm5, %v18552_v21  ;;  %v7171_v22 = vsel %vm16217_vm8, 0, %v18552_v21  ;;  %vm21559_vm0 = vmpackc.low %vm21558_vm4, %vm21558_vm4  ;;  %v6491_v33 = vrot.slane %v6489_v4, 4  ;;  %v5756_v1 = vadd.f32 %v5755_v53, %v5666_v56 }
 0x599   : > { %v6658_v32 = vsel %vm21559_vm0, 0, %v18552_v21  ;;  %6996 = vrot.lane.b32.xlu0 %v6785_v52, %s15378_s16  ;;  %v6166_v47 = vpop.f32.mrf.mxu3  ;;  %v7309_v0 = vshll.u32 %v7171_v22, 16  ;;  %v7895_v38 = vrot.slane %v7171_v22, 5  ;;  %v6009_v5 = vadd.f32 %v18355_v45, %v5909_v40  ;;  %vm7771_vm15 = vmpackc.low %vm18560_vm9, %vm18560_vm9  ;;  %6683 = vst.msk [vmem:[#allocation4 + $0x24] sm:$0xf] %vm6679_vm14, %v21476_v49  ;;  %9000 = vmatpush.bf16.msrb.mxu3 %v15077_v25  ;;  %v21564_v25 = vld [vmem:[#allocation18_spill] sm:$0xff] }
 0x59a   : > { %v6788_v7 = vshrl.u32 %v6658_v32, 16  ;;  %v6167_v37 = vadd.f32 %v18592_v61, %v6166_v47  ;;  %v7313_v30 = vshrl.u32 %v7171_v22, 16  ;;  %v18601_v57 = vsel %vm18370_vm1, %v6491_v33, %v6492_v23  ;;  %7117 = vst.msk [vmem:[#allocation4 + $0x1bc] sm:$0xf] %vm6679_vm14, %v21476_v49  ;;  %v21561_v22 = vld [vmem:[#allocation34_spill] sm:$0xff] }
 0x59b   : > { %v5844_v26 = vpop.f32.mrf.mxu2  ;;  %v7311_v18 = vrot.slane %v7309_v0, 5  ;;  %v7896_v24 = vsel %vm18079_vm13, %v7894_v31, %v7895_v38  ;;  %v15049_v58 = vld [vmem:[#allocation4 + $0xa0] sm:$0xf0]  ;;  %v6791_v13 = vshll.u32 %v6658_v32, 16  ;;  %v6786_v40 = vrot.slane %v18545_v3, 4 }
 0x59c   : > { %v18605_v29 = vrot.slane %v6788_v7, 7  ;;  %v6228_v59 = vmax.f32 %v6167_v37, 0.0  ;;  %v5845_v35 = vadd.f32 %v5844_v26, %v5756_v1  ;;  %8003 = vst.msk [vmem:[#allocation4 + $0xb0] sm:$0xf] %vm6440_vm5, %v7896_v24  ;;  %v18608_v48 = vor.u32 %v15049_v58, %v13379_v12 }
 0x59d   : > { %v7315_v56 = vrot.slane %v7313_v30, 4  ;;  %v7312_v53 = vsel %vm16296_vm11, %v7307_v2, %v7311_v18  ;;  %v6041_v63 = vmax.f32 %v6009_v5, 0.0  ;;  %7118 = vst.msk [vmem:[#allocation4 + $0x1c8] sm:$0xf] %vm6679_vm14, %v21476_v49  ;;  %vm21562_vm4 = vnez %v21561_v22 }
 0x59e   : > { %21560 = vst [vmem:[#allocation77_spill] sm:$0xff] %v18608_v48  ;;  %v6793_v50 = vor.u32 %v6791_v13, %v18605_v29  ;;  %v6260_v60 = vpack.c.bf16 %v6228_v59, %v6228_v59  ;;  %v5910_v31 = vadd.f32 %v5845_v35, %v17874_v55  ;;  %13586 = vmatmul.msk.bf16.gmra.mxu2 %vm21256_vm2, %v18608_v48  ;;  %vm21563_vm0 = vmpackc.low %vm21562_vm4, %vm21562_vm4  ;;  %v7897_v33 = vrot.slane %v7895_v38, 4 }
 0x59f   : > { %7540 = vrot.lane.b32.xlu2 %v7312_v53, %s15378_s16  ;;  %v7316_v16 = vor.u32 %v7315_v56, %v7311_v18  ;;  %7119 = vst.msk [vmem:[#allocation4 + $0x1d4] sm:$0xf] %vm6679_vm14, %v21476_v49  ;;  %v21565_v5 = vand.u32 15, %v21564_v25  ;;  %v18660_v18 = vld [vmem:[#allocation4 + $0x28] sm:$0xf]  ;;  %v21569_v35 = vmov 0 }
 0x5a0   : > { %v6794_v3 = vsel %vm16304_vm10, %v6786_v40, %v6793_v50  ;;  %v18631_v2 = vsel %vm16217_vm8, 0, %v6260_v60  ;;  %v7803_v55 = vsel %vm7771_vm15, 0, %v6260_v60  ;;  %7136 = vst.msk [vmem:[#allocation4 + $0xc4] sm:$0xf] %vm6440_vm5, %v6260_v60  ;;  %v6010_v52 = vadd.f32 %v18355_v45, %v5910_v31  ;;  %v13311_v40 = vld [vmem:[#allocation4 + $0x18] sm:$0xf] }
 0x5a1   : > { %6998 = vrot.lane.b32.xlu1 %v6794_v3, %s15378_s16  ;;  %v7172_v28 = vsel %vm21563_vm0, 0, %v6260_v60  ;;  %v7898_v32 = vrot.slane %v7803_v55, 5  ;;  %v6168_v1 = vpop.f32.mrf.mxu3  ;;  %v6797_v45 = vshrl.u32 %v18631_v2, 16  ;;  %7192 = vst.msk [vmem:[#allocation4 + $0x4] sm:$0xf] %vm6679_vm14, %v21476_v49  ;;  %vm18654_vm9 = vcmp.ge.s32.totalorder %v21565_v5, 14 }
 0x5a2   : > { %v7319_v47 = vshll.u32 %v7172_v28, 16  ;;  %v7323_v0 = vshrl.u32 %v7172_v28, 16  ;;  %v6169_v36 = vadd.f32 %v18592_v61, %v6168_v1  ;;  %v6042_v7 = vmax.f32 %v6010_v52, 0.0  ;;  %7193 = vst.msk [vmem:[#allocation4 + $0x10] sm:$0xf] %vm6679_vm14, %v21476_v49  ;;  %v21571_v3 = vld [vmem:[#allocation36_spill] sm:$0xff] }
 0x5a3   : > { %v7899_v38 = vsel %vm18079_vm13, %v7897_v33, %v7898_v32  ;;  %v7317_v12 = vrot.slane %v7316_v16, 4  ;;  %v18663_v13 = vrot.slane %v6797_v45, 7  ;;  %v6800_v59 = vshll.u32 %v18631_v2, 16  ;;  %7194 = vst.msk [vmem:[#allocation4 + $0x1c] sm:$0xf] %vm6679_vm14, %v21476_v49  ;;  %v21575_v33 = vld [vmem:[#allocation37_spill] sm:$0xff] }
 0x5a4   : > { %v7321_v30 = vrot.slane %v7319_v47, 5  ;;  %v7325_v26 = vrot.slane %v7323_v0, 4  ;;  %8004 = vst.msk [vmem:[#allocation4 + $0xbc] sm:$0xf] %vm6440_vm5, %v7899_v38  ;;  %v6229_v24 = vmax.f32 %v6169_v36, 0.0  ;;  %v6058_v58 = vpack.c.bf16 %v6042_v7, %v6041_v63  ;;  %v15175_v47 = vld [vmem:[%s21036_s9 + $0x178] sm:$0xff] }
 0x5a5   : > { %vm21568_vm15 = vsmask.f32 3328  ;;  %v6488_v50 = vrot.slane %v6486_v20, 4  ;;  %v6795_v31 = vrot.slane %v18605_v29, 4  ;;  %v6802_v63 = vor.u32 %v6800_v59, %v18663_v13  ;;  %v15033_v54 = vld [vmem:[#allocation4 + $0x20] sm:$0xf0]  ;;  %9773 = vmatpush.bf16.msrb.mxu2 %v15175_v47 }
 0x5a6   : > { %vm18668_vm4 = vmand %vm6679_vm14, %vm21568_vm15  ;;  %v7322_v56 = vsel %vm16296_vm11, %v7317_v12, %v7321_v30  ;;  %v7326_v53 = vor.u32 %v7325_v26, %v7321_v30  ;;  %v18678_v60 = vpack.c.bf16 %v6229_v24, %v6229_v24  ;;  %v21572_v16 = vand.u32 15, %v21571_v3  ;;  %7659 = vst.msk [vmem:[#allocation4 + $0x1b4] sm:$0xf] %vm6679_vm14, %v21476_v49  ;;  %v15092_v0 = vld [vmem:[%s21036_s9 + $0x78] sm:$0xff]  ;;  %v13391_v7 = vld [vmem:[#allocation4 + $0xb0] sm:$0xf] }
 0x5a7   : > { %v21570_v35 = vsel %vm18668_vm4, 4294967295, %v21569_v35  ;;  %7542 = vrot.lane.b32.xlu0 %v7322_v56, %s15378_s16  ;;  %6210 = vmatmul.bf16.gmra.mxu3 %v6058_v58  ;;  %v7900_v20 = vrot.slane %v7898_v32, 4  ;;  %v7197_v29 = vsel %vm18668_vm4, 0, %v18660_v18  ;;  %v18696_v52 = vor.u32 %v15033_v54, %v13311_v40  ;;  %vm6381_vm15 = vmpackc.low %vm18654_vm9, %vm18654_vm9  ;;  %7660 = vst.msk [vmem:[#allocation4 + $0x1c0] sm:$0xf] %vm6679_vm14, %v21476_v49  ;;  %v15096_v24 = vld [vmem:[%s21036_s9 + $0x98] sm:$0xff] }
 0x5a8   : > { %vm18685_vm0 = vcmp.lt.s32.totalorder %v21572_v16, 2  ;;  %v6498_v22 = vrot.slane %v18295_v15, 7  ;;  %7137 = vst.msk [vmem:[#allocation4 + $0xd0] sm:$0xf] %vm6440_vm5, %v18678_v60  ;;  %v6803_v28 = vsel %vm16304_vm10, %v6795_v31, %v6802_v63  ;;  %v7173_v32 = vsel %vm16217_vm8, 0, %v18678_v60  ;;  %9082 = vmatpush.bf16.msrb.mxu0 %v15092_v0  ;;  %v21578_v58 = vld [vmem:[#allocation22_spill] sm:$0xff]  ;;  %9175 = vmatpush.bf16.msrb.mxu1 %v15096_v24 }
 0x5a9   : > { %vm21576_vm6 = vnez %v21575_v33  ;;  %7000 = vrot.lane.b32.xlu1 %v6803_v28, %s15378_s16  ;;  %v6171_v36 = vpop.f32.mrf.mxu3  ;;  %v7327_v45 = vrot.slane %v7326_v53, 4  ;;  %v7329_v25 = vshll.u32 %v7173_v32, 16  ;;  %v7901_v5 = vrot.slane %v7173_v32, 5  ;;  %8596 = vmatmul.bf16.vlgmr.msra.gmra.mxu0 %v18696_v52  ;;  %7661 = vst.msk [vmem:[#allocation4 + $0x1cc] sm:$0xf] %vm6679_vm14, %v21476_v49  ;;  %vm7773_vm9 = vmpackc.low %vm18685_vm0, %vm18685_vm0 }
 0x5aa   : > { %vm21577_vm2 = vmpackc.low %vm21576_vm6, %vm21576_vm6  ;;  %v6172_v12 = vadd.f32 %v18592_v61, %v6171_v36  ;;  %v7333_v30 = vshrl.u32 %v7173_v32, 16  ;;  %v18728_v26 = vld [vmem:[#allocation4] sm:$0xf]  ;;  %v18730_v18 = vld [vmem:[#allocation4 + $0x8] sm:$0xf0]  ;;  %v21579_v59 = vand.u32 15, %v21578_v58  ;;  %v6490_v16 = vsel %vm18370_vm1, %v6488_v50, %v6489_v4 }
 0x5ab   : > { %v6660_v1 = vsel %vm21577_vm2, 0, %v18678_v60  ;;  %v6413_v53 = vsel %vm6381_vm15, 0, %v18221_v42  ;;  %v15052_v40 = vld [vmem:[#allocation4 + $0xb8] sm:$0xf0]  ;;  %v7331_v31 = vrot.slane %v7329_v25, 5  ;;  %v7902_v63 = vsel %vm18079_vm13, %v7900_v20, %v7901_v5 }
 0x5ac   : > { %v6806_v38 = vshrl.u32 %v6660_v1, 16  ;;  %vm18737_vm6 = vcmp.ge.s32.totalorder %v21579_v59, 14  ;;  %7662 = vst.msk [vmem:[#allocation4 + $0x1d8] sm:$0xf] %vm6679_vm14, %v21476_v49  ;;  %v6809_v3 = vshll.u32 %v6660_v1, 16  ;;  %v6230_v37 = vmax.f32 %v6172_v12, 0.0 }
 0x5ad   : > { %vm6383_vm2 = vmpackc.low %vm18737_vm6, %vm18737_vm6  ;;  %v18758_v42 = vor.u32 %v15052_v40, %v13391_v7  ;;  %8005 = vst.msk [vmem:[#allocation4 + $0xc8] sm:$0xf] %vm6440_vm5, %v7902_v63  ;;  %v7335_v20 = vrot.slane %v7333_v30, 4  ;;  %v7332_v49 = vsel %vm16296_vm11, %v7327_v45, %v7331_v31  ;;  %v6494_v4 = vrot.slane %v6492_v23, 4  ;;  %v21584_v7 = vld [vmem:[#allocation39_spill] sm:$0xff] }
 0x5ae   : > { %v18761_v54 = vrot.slane %v6806_v38, 7  ;;  %7198 = vst [vmem:[#allocation4 + $0x28] sm:$0xf] %v7197_v29  ;;  %v6415_v44 = vsel %vm6383_vm2, 0, %v18320_v9  ;;  %v6495_v50 = vrot.slane %v6413_v53, 7  ;;  %v6262_v28 = vpack.c.bf16 %v6230_v37, %v6230_v37 }
 0x5af   : > { %21582 = vst [vmem:[#allocation81_spill] sm:$0xff] %v18758_v42  ;;  %vm21583_vm15 = vcmask 523264   ;;  %7544 = vrot.lane.b32.xlu0 %v7332_v49, %s15378_s16  ;;  %v6804_v32 = vrot.slane %v18663_v13, 4  ;;  %v7336_v1 = vor.u32 %v7335_v20, %v7331_v31  ;;  %v13600_v29 = vor.u32 %v18730_v18, %v18728_v26 }
 0x5b0   : > { %13587 = vmatmul.msk.bf16.gmra.mxu2 %vm21583_vm15, %v18758_v42  ;;  %v6811_v33 = vor.u32 %v6809_v3, %v18761_v54  ;;  %6613 = vst.msk [vmem:[#allocation4 + $0x54] sm:$0xf] %vm6440_vm5, %v6490_v16  ;;  %v6500_v6 = vrot.slane %v6498_v22, 4  ;;  %v6501_v9 = vrot.slane %v6415_v44, 7  ;;  %v6496_v23 = vsel %vm18370_vm1, %v6494_v4, %v6495_v50  ;;  %v7523_v0 = vpop.permute.xlu2 %7522 }
 0x5b1   : > { %v18785_v47 = vsel %vm16217_vm8, 0, %v6262_v28  ;;  %v7805_v13 = vsel %vm7773_vm9, 0, %v6262_v28  ;;  %7138 = vst.msk [vmem:[#allocation4 + $0xdc] sm:$0xf] %vm6440_vm5, %v6262_v28  ;;  %vm21585_vm2 = vnez %v21584_v7  ;;  %v7903_v38 = vrot.slane %v7901_v5, 4  ;;  %v6173_v55 = vpop.f32.mrf.mxu3 }
 0x5b2   : > { %v6812_v36 = vsel %vm16304_vm10, %v6804_v32, %v6811_v33  ;;  %vm21586_vm6 = vmpackc.low %vm21585_vm2, %vm21585_vm2  ;;  %v7904_v25 = vrot.slane %v7805_v13, 5  ;;  %7623 = vst.msk [vmem:[#allocation4 + $0x40] sm:$0xf] %vm6679_vm14, %v7523_v0  ;;  %v6174_v26 = vadd.f32 %v18592_v61, %v6173_v55  ;;  %v7337_v18 = vrot.slane %v7336_v1, 4 }
 0x5b3   : > { %v7174_v45 = vsel %vm21586_vm6, 0, %v6262_v28  ;;  %7002 = vrot.lane.b32.xlu2 %v6812_v36, %s15378_s16  ;;  %v6815_v24 = vshrl.u32 %v18785_v47, 16  ;;  %6614 = vst.msk [vmem:[#allocation4 + $0x60] sm:$0xf] %vm6440_vm5, %v18601_v57  ;;  %v6497_v58 = vrot.slane %v6495_v50, 4  ;;  %v6818_v56 = vshll.u32 %v18785_v47, 16 }
 0x5b4   : > { %v7339_v12 = vshll.u32 %v7174_v45, 16  ;;  %v7343_v30 = vshrl.u32 %v7174_v45, 16  ;;  %v7905_v59 = vsel %vm18079_vm13, %v7903_v38, %v7904_v25  ;;  %v6231_v40 = vmax.f32 %v6174_v26, 0.0  ;;  %6615 = vst.msk [vmem:[#allocation4 + $0x6c] sm:$0xf] %vm6440_vm5, %v6496_v23  ;;  %v21591_v28 = vld [vmem:[#allocation41_spill] sm:$0xff] }
 0x5b5   : > { %8006 = vst.msk [vmem:[#allocation4 + $0xd4] sm:$0xf] %vm6440_vm5, %v7905_v59  ;;  %v18810_v31 = vrot.slane %v6815_v24, 7  ;;  %v6502_v63 = vsel %vm18370_vm1, %v6500_v6, %v6501_v9  ;;  %v6499_v57 = vsel %vm18370_vm1, %v6497_v58, %v6498_v22  ;;  %vm21587_vm0 = vsmask.f32 7950  ;;  %v21595_v23 = vld [vmem:[#allocation40_spill] sm:$0xff] }
 0x5b6   : > { %v7341_v5 = vrot.slane %v7339_v12, 5  ;;  %v7345_v53 = vrot.slane %v7343_v30, 4  ;;  %vm21588_vm9 = vcmask 1043971   ;;  %v21589_v16 = vmov 0  ;;  %v7619_v37 = vld [vmem:[#allocation4 + $0x28] sm:$0x8] }
 0x5b7   : > { %vm18822_vm15 = vmand %vm21588_vm9, %vm21587_vm0  ;;  %6617 = vst.msk [vmem:[#allocation4 + $0x84] sm:$0xf] %vm6440_vm5, %v6502_v63  ;;  %v18827_v49 = vpack.c.bf16 %v6231_v40, %v6231_v40  ;;  %9001 = vmatmul.bf16.vlgmr.msrb.gmra.mxu3 %v13600_v29  ;;  %v6813_v15 = vrot.slane %v18761_v54, 4  ;;  %v6820_v22 = vor.u32 %v6818_v56, %v18810_v31  ;;  %v6504_v44 = vrot.slane %v18398_v17, 7  ;;  %v7519_v50 = vpop.permute.xlu0 %7518  ;;  %v13403_v38 = vld [vmem:[#allocation4 + $0xc8] sm:$0xf] }
 0x5b8   : > { %v7342_v3 = vsel %vm16296_vm11, %v7337_v18, %v7341_v5  ;;  %v21590_v16 = vsel %vm18822_vm15, 4294967295, %v21589_v16  ;;  %v7346_v20 = vor.u32 %v7345_v53, %v7341_v5  ;;  %v7906_v4 = vrot.slane %v7904_v25, 4  ;;  %6616 = vst.msk [vmem:[#allocation4 + $0x78] sm:$0xf] %vm6440_vm5, %v6499_v57  ;;  %v6981_v29 = vpop.permute.xlu2 %6980  ;;  %v21598_v30 = vld [vmem:[#allocation26_spill] sm:$0xff] }
 0x5b9   : > { %7546 = vrot.lane.b32.xlu1 %v7342_v3, %s15378_s16  ;;  %v21592_v32 = vand.u32 15, %v21591_v28  ;;  %v6503_v1 = vrot.slane %v6501_v9, 4  ;;  %7139 = vst.msk [vmem:[#allocation4 + $0xe8] sm:$0xf] %vm6440_vm5, %v18827_v49  ;;  %v7620_v54 = vsel %vm18822_vm15, %v7519_v50, %v7619_v37  ;;  %v6821_v17 = vsel %vm16304_vm10, %v6813_v15, %v6820_v22  ;;  %v6176_v13 = vpop.f32.mrf.mxu3  ;;  %v7077_v28 = vld [vmem:[#allocation4 + $0x30] sm:$0xf] }
 0x5ba   : > { %v7175_v6 = vsel %vm16217_vm8, 0, %v18827_v49  ;;  %vm21596_vm6 = vnez %v21595_v23  ;;  %7621 = vst [vmem:[#allocation4 + $0x28] sm:$0x8] %v7620_v54  ;;  %v7347_v0 = vrot.slane %v7346_v20, 4  ;;  %v6177_v25 = vadd.f32 %v18592_v61, %v6176_v13 }
 0x5bb   : > { %vm18836_vm2 = vcmp.lt.s32.totalorder %v21592_v32, 2  ;;  %vm21597_vm0 = vmpackc.low %vm21596_vm6, %vm21596_vm6  ;;  %7004 = vrot.lane.b32.xlu2 %v6821_v17, %s15378_s16  ;;  %v7349_v36 = vshll.u32 %v7175_v6, 16  ;;  %v7907_v7 = vrot.slane %v7175_v6, 5  ;;  %7081 = vst.msk [vmem:[#allocation4 + $0x48] sm:$0xf] %vm6679_vm14, %v6981_v29  ;;  %v7353_v55 = vshrl.u32 %v7175_v6, 16 }
 0x5bc   : > { %v6662_v9 = vsel %vm21597_vm0, 0, %v18827_v49  ;;  %v6505_v12 = vsel %vm18370_vm1, %v6503_v1, %v6504_v44  ;;  %v21599_v26 = vand.u32 15, %v21598_v30  ;;  %v15055_v18 = vld [vmem:[#allocation4 + $0xd0] sm:$0xf0]  ;;  %v6232_v56 = vmax.f32 %v6177_v25, 0.0  ;;  %vm7775_vm4 = vmpackc.low %vm18836_vm2, %vm18836_vm2 }
 0x5bd   : > { %v6824_v45 = vshrl.u32 %v6662_v9, 16  ;;  %v7351_v24 = vrot.slane %v7349_v36, 5  ;;  %v7908_v58 = vsel %vm18079_vm13, %v7906_v4, %v7907_v7  ;;  %v6827_v5 = vshll.u32 %v6662_v9, 16  ;;  %6618 = vst.msk [vmem:[#allocation4 + $0x90] sm:$0xf] %vm6440_vm5, %v6505_v12 }
 0x5be   : > { %vm6289_vm9 = vcmp.ge.s32.totalorder %v21599_v26, 14  ;;  %v18867_v53 = vor.u32 %v15055_v18, %v13403_v38  ;;  %8007 = vst.msk [vmem:[#allocation4 + $0xe0] sm:$0xf] %vm6440_vm5, %v7908_v58  ;;  %vm21601_vm0 = vsmask.f32 7938  ;;  %v7355_v63 = vrot.slane %v7353_v55, 4 }
 0x5bf   : > { %v18865_v59 = vrot.slane %v6824_v45, 7  ;;  %vm6385_vm6 = vmpackc.low %vm6289_vm9, %vm6289_vm9  ;;  %v7352_v3 = vsel %vm16296_vm11, %v7347_v0, %v7351_v24  ;;  %v6822_v37 = vrot.slane %v18810_v31, 4  ;;  %v6264_v22 = vpack.c.bf16 %v6232_v56, %v6232_v56  ;;  %v6977_v50 = vpop.permute.xlu0 %6976  ;;  %v21605_v0 = vld [vmem:[#allocation42_spill] sm:$0xff] }
 0x5c0   : > { %21600 = vst [vmem:[#allocation79_spill] sm:$0xff] %v18867_v53  ;;  %vm18872_vm15 = vmand %vm6679_vm14, %vm21601_vm0  ;;  %v6417_v57 = vsel %vm6385_vm6, 0, %v18433_v39  ;;  %vm21604_vm9 = vcmask 523264   ;;  %v15032_v39 = vld [vmem:[#allocation4 + $0x1c] sm:$0xf]  ;;  %v7909_v4 = vrot.slane %v7907_v7, 4  ;;  %v7356_v1 = vor.u32 %v7355_v63, %v7351_v24  ;;  %v7527_v6 = vpop.permute.xlu2 %7526 }
 0x5c1   : > { %v6829_v20 = vor.u32 %v6827_v5, %v18865_v59  ;;  %v6507_v15 = vrot.slane %v6417_v57, 7  ;;  %13588 = vmatmul.msk.bf16.gmra.mxu2 %vm21604_vm9, %v18867_v53  ;;  %7548 = vrot.lane.b32.xlu1 %v7352_v3, %s15378_s16  ;;  %v6506_v31 = vrot.slane %v6504_v44, 4  ;;  %v18892_v54 = vsel %vm16217_vm8, 0, %v6264_v22  ;;  %7140 = vst.msk [vmem:[#allocation4 + $0xf4] sm:$0xf] %vm6440_vm5, %v6264_v22  ;;  %v6178_v9 = vpop.f32.mrf.mxu3 }
 0x5c2   : > { %v7807_v17 = vsel %vm7775_vm4, 0, %v6264_v22  ;;  %v7078_v29 = vsel %vm18872_vm15, %v6977_v50, %v7077_v28  ;;  %v13313_v23 = vld [vmem:[#allocation4 + $0x24] sm:$0xf0]  ;;  %vm21606_vm6 = vnez %v21605_v0  ;;  %7625 = vst.msk [vmem:[#allocation4 + $0x58] sm:$0xf] %vm6679_vm14, %v7527_v6  ;;  %v6179_v7 = vadd.f32 %v18592_v61, %v6178_v9  ;;  %v6979_v45 = vpop.permute.xlu1 %6978  ;;  %v21612_v6 = vld [vmem:[#allocation44_spill] sm:$0xff] }
 0x5c3   : > { %v6830_v32 = vsel %vm16304_vm10, %v6822_v37, %v6829_v20  ;;  %v7910_v44 = vrot.slane %v7807_v17, 5  ;;  %7079 = vst [vmem:[#allocation4 + $0x30] sm:$0xf] %v7078_v29  ;;  %v18903_v13 = vor.u32 %v15032_v39, %v13313_v23  ;;  %vm21607_vm2 = vmpackc.low %vm21606_vm6, %vm21606_vm6  ;;  %v6508_v36 = vsel %vm18370_vm1, %v6506_v31, %v6507_v15 }
 0x5c4   : > { %7006 = vrot.lane.b32.xlu0 %v6830_v32, %s15378_s16  ;;  %v7176_v33 = vsel %vm21607_vm2, 0, %v6264_v22  ;;  %v6833_v55 = vshrl.u32 %v18892_v54, 16  ;;  %7080 = vst.msk [vmem:[#allocation4 + $0x3c] sm:$0xf] %vm6679_vm14, %v6979_v45  ;;  %v7357_v30 = vrot.slane %v7356_v1, 4  ;;  %v6836_v26 = vshll.u32 %v18892_v54, 16 }
 0x5c5   : > { %v7359_v25 = vshll.u32 %v7176_v33, 16  ;;  %v7363_v38 = vshrl.u32 %v7176_v33, 16  ;;  %v7911_v12 = vsel %vm18079_vm13, %v7909_v4, %v7910_v44  ;;  %8685 = vmatmul.bf16.vlgmr.msra.gmra.mxu1 %v18903_v13  ;;  %v6233_v18 = vmax.f32 %v6179_v7, 0.0  ;;  %6619 = vst.msk [vmem:[#allocation4 + $0x9c] sm:$0xf] %vm6440_vm5, %v6508_v36  ;;  %v21608_v22 = vld [vmem:[#allocation45_spill] sm:$0xff] }
 0x5c6   : > { %8008 = vst.msk [vmem:[#allocation4 + $0xec] sm:$0xf] %vm6440_vm5, %v7911_v12  ;;  %v18921_v58 = vrot.slane %v6833_v55, 7  ;;  %v6831_v56 = vrot.slane %v18865_v59, 4  ;;  %v6510_v63 = vrot.slane %v18520_v8, 7  ;;  %v21609_v39 = vand.u32 15, %v21608_v22 }
 0x5c7   : > { %v7361_v24 = vrot.slane %v7359_v25, 5  ;;  %v7365_v5 = vrot.slane %v7363_v38, 4  ;;  %v18926_v57 = vpack.c.bf16 %v6233_v18, %v6233_v18  ;;  %9006 = vmatmul.bf16.gmra.mxu3 %v18696_v52  ;;  %v6509_v4 = vrot.slane %v6507_v15, 4  ;;  %v13415_v29 = vld [vmem:[#allocation4 + $0xe0] sm:$0xf] }
 0x5c8   : > { %v6838_v37 = vor.u32 %v6836_v26, %v18921_v58  ;;  %vm18935_vm4 = vcmp.lt.s32.totalorder %v21609_v39, 2  ;;  %v7912_v50 = vrot.slane %v7910_v44, 4  ;;  %v7529_v28 = vpop.permute.xlu2 %7528  ;;  %vm21613_vm0 = vnez %v21612_v6  ;;  %v15174_v45 = vld [vmem:[%s21036_s9 + $0x170] sm:$0xff] }
 0x5c9   : > { %v7362_v3 = vsel %vm16296_vm11, %v7357_v30, %v7361_v24  ;;  %v7366_v20 = vor.u32 %v7365_v5, %v7361_v24  ;;  %7141 = vst.msk [vmem:[#allocation4 + $0x100] sm:$0xf] %vm6440_vm5, %v18926_v57  ;;  %v7177_v1 = vsel %vm16217_vm8, 0, %v18926_v57  ;;  %v6181_v31 = vpop.f32.mrf.mxu3  ;;  %vm21614_vm9 = vmpackc.low %vm21613_vm0, %vm21613_vm0  ;;  %v15091_v25 = vld [vmem:[%s21036_s9 + $0x70] sm:$0xff]  ;;  %v6511_v38 = vsel %vm18370_vm1, %v6509_v4, %v6510_v63  ;;  %9774 = vmatpush.bf16.msrb.mxu2 %v15174_v45 }
 0x5ca   : > { %7550 = vrot.lane.b32.xlu2 %v7362_v3, %s15378_s16  ;;  %v6839_v52 = vsel %vm16304_vm10, %v6831_v56, %v6838_v37  ;;  %v13323_v32 = vld [vmem:[#allocation4 + $0x30] sm:$0xf]  ;;  %7626 = vst.msk [vmem:[#allocation4 + $0x64] sm:$0xf] %vm6679_vm14, %v7529_v28  ;;  %v7369_v17 = vshll.u32 %v7177_v1, 16  ;;  %v7913_v15 = vrot.slane %v7177_v1, 5  ;;  %v6182_v9 = vadd.f32 %v18592_v61, %v6181_v31  ;;  %v7521_v0 = vpop.permute.xlu1 %7520  ;;  %9083 = vmatpush.bf16.msrb.mxu0 %v15091_v25  ;;  %vm7777_vm6 = vmpackc.low %vm18935_vm4, %vm18935_vm4 }
 0x5cb   : > { %v6664_v23 = vsel %vm21614_vm9, 0, %v18926_v57  ;;  %v7373_v44 = vshrl.u32 %v7177_v1, 16  ;;  %v15036_v33 = vld [vmem:[#allocation4 + $0x38] sm:$0xf0]  ;;  %v7367_v36 = vrot.slane %v7366_v20, 4  ;;  %v21616_v20 = vld [vmem:[#allocation30_spill] sm:$0xff] }
 0x5cc   : > { %7008 = vrot.lane.b32.xlu0 %v6839_v52, %s15378_s16  ;;  %v6842_v7 = vshrl.u32 %v6664_v23, 16  ;;  %7622 = vst.msk [vmem:[#allocation4 + $0x34] sm:$0xf] %vm6679_vm14, %v7521_v0  ;;  %v13324_v55 = vor.u32 %v15036_v33, %v13323_v32  ;;  %v7371_v12 = vrot.slane %v7369_v17, 5  ;;  %v7914_v30 = vsel %vm18079_vm13, %v7912_v50, %v7913_v15  ;;  %v21621_v31 = vld [vmem:[#allocation47_spill] sm:$0xff] }
 0x5cd   : > { %v15058_v26 = vld [vmem:[#allocation4 + $0xe8] sm:$0xf0]  ;;  %v6845_v18 = vshll.u32 %v6664_v23, 16  ;;  %v6234_v24 = vmax.f32 %v6182_v9, 0.0  ;;  %8009 = vst.msk [vmem:[#allocation4 + $0xf8] sm:$0xf] %vm6440_vm5, %v7914_v30  ;;  %vm21622_vm9 = vnez %v21621_v31 }
 0x5ce   : > { %v18969_v5 = vor.u32 %v15058_v26, %v13415_v29  ;;  %v18971_v56 = vrot.slane %v6842_v7, 7  ;;  %v7375_v3 = vrot.slane %v7373_v44, 4  ;;  %8601 = vmatmul.bf16.gmra.mxu0 %v13324_v55  ;;  %v7372_v37 = vsel %vm16296_vm11, %v7367_v36, %v7371_v12  ;;  %6620 = vst.msk [vmem:[#allocation4 + $0xa8] sm:$0xf] %vm6440_vm5, %v6511_v38  ;;  %v13325_v45 = vld [vmem:[#allocation4 + $0x3c] sm:$0xf0] }
 0x5cf   : > { %v21617_v22 = vand.u32 15, %v21616_v20  ;;  %v6266_v4 = vpack.c.bf16 %v6234_v24, %v6234_v24  ;;  %vm21620_vm0 = vcmask 523264   ;;  %v6840_v59 = vrot.slane %v18921_v58, 4 }
 0x5d0   : > { %21615 = vst [vmem:[#allocation80_spill] sm:$0xff] %v18969_v5  ;;  %v6847_v50 = vor.u32 %v6845_v18, %v18971_v56  ;;  %v7376_v28 = vor.u32 %v7375_v3, %v7371_v12  ;;  %v18998_v1 = vpop.f32.mrf.mxu2  ;;  %v7915_v6 = vrot.slane %v7913_v15, 4  ;;  %v6512_v20 = vrot.slane %v6510_v63, 4 }
 0x5d1   : > { %vm18981_vm2 = vcmp.ge.s32.totalorder %v21617_v22, 14  ;;  %13589 = vmatmul.msk.bf16.gmra.mxu2 %vm21620_vm0, %v18969_v5  ;;  %v18995_v52 = vsel %vm16217_vm8, 0, %v6266_v4  ;;  %v7809_v32 = vsel %vm7777_vm6, 0, %v6266_v4  ;;  %7142 = vst.msk [vmem:[#allocation4 + $0x10c] sm:$0xf] %vm6440_vm5, %v6266_v4  ;;  %vm21623_vm0 = vmpackc.low %vm21622_vm9, %vm21622_vm9  ;;  %v6183_v23 = vpop.f32.mrf.mxu3  ;;  %v6516_v8 = vrot.slane %v18631_v2, 7 }
 0x5d2   : > { %7552 = vrot.lane.b32.xlu2 %v7372_v37, %s15378_s16  ;;  %vm6387_vm4 = vmpackc.low %vm18981_vm2, %vm18981_vm2  ;;  %v6848_v58 = vsel %vm16304_vm10, %v6840_v59, %v6847_v50  ;;  %v7178_v17 = vsel %vm21623_vm0, 0, %v6266_v4  ;;  %v7916_v29 = vrot.slane %v7809_v32, 5  ;;  %v6184_v0 = vadd.f32 %v18592_v61, %v6183_v23  ;;  %v7525_v33 = vpop.permute.xlu1 %7524  ;;  %v6983_v36 = vpop.permute.xlu0 %6982 }
 0x5d3   : > { %7010 = vrot.lane.b32.xlu1 %v6848_v58, %s15378_s16  ;;  %v7379_v44 = vshll.u32 %v7178_v17, 16  ;;  %v7383_v9 = vshrl.u32 %v7178_v17, 16  ;;  %v15035_v7 = vld [vmem:[#allocation4 + $0x34] sm:$0xf]  ;;  %v6851_v25 = vshrl.u32 %v18995_v52, 16  ;;  %v6419_v15 = vsel %vm6387_vm4, 0, %v18552_v21 }
 0x5d4   : > { %v7917_v38 = vsel %vm18079_vm13, %v7915_v6, %v7916_v29  ;;  %7624 = vst.msk [vmem:[#allocation4 + $0x4c] sm:$0xf] %vm6679_vm14, %v7525_v33  ;;  %v19019_v12 = vor.u32 %v15035_v7, %v13325_v45  ;;  %v7377_v30 = vrot.slane %v7376_v28, 4  ;;  %v6235_v18 = vmax.f32 %v6184_v0, 0.0  ;;  %v21624_v28 = vld [vmem:[#allocation49_spill] sm:$0xff]  ;;  %v21628_v6 = vld [vmem:[#allocation48_spill] sm:$0xff] }
 0x5d5   : > { %v7381_v26 = vrot.slane %v7379_v44, 5  ;;  %8010 = vst.msk [vmem:[#allocation4 + $0x104] sm:$0xf] %vm6440_vm5, %v7917_v38  ;;  %v19022_v24 = vrot.slane %v6851_v25, 7  ;;  %v6854_v3 = vshll.u32 %v18995_v52, 16  ;;  %v7385_v37 = vrot.slane %v7383_v9, 4 }
 0x5d6   : > { %7082 = vst.msk [vmem:[#allocation4 + $0x54] sm:$0xf] %vm6679_vm14, %v6983_v36  ;;  %8690 = vmatmul.bf16.gmra.mxu1 %v19019_v12  ;;  %v6513_v22 = vrot.slane %v6419_v15, 7  ;;  %v19031_v39 = vpack.c.bf16 %v6235_v18, %v6235_v18  ;;  %v6849_v4 = vrot.slane %v18971_v56, 4  ;;  %v21625_v32 = vand.u32 15, %v21624_v28  ;;  %v21631_v38 = vld [vmem:[#allocation35_spill] sm:$0xff] }
 0x5d7   : > { %v7382_v21 = vsel %vm16296_vm11, %v7377_v30, %v7381_v26  ;;  %9011 = vmatmul.bf16.gmra.mxu3 %v13324_v55  ;;  %v6856_v59 = vor.u32 %v6854_v3, %v19022_v24  ;;  %v7386_v50 = vor.u32 %v7385_v37, %v7381_v26  ;;  %v7918_v31 = vrot.slane %v7916_v29, 4  ;;  %v13427_v23 = vld [vmem:[#allocation4 + $0xf8] sm:$0xf]  ;;  %v13335_v45 = vld [vmem:[#allocation4 + $0x48] sm:$0xf] }
 0x5d8   : > { %7554 = vrot.lane.b32.xlu0 %v7382_v21, %s15378_s16  ;;  %vm19038_vm6 = vcmp.lt.s32.totalorder %v21625_v32, 2  ;;  %v6514_v63 = vsel %vm18370_vm1, %v6512_v20, %v6513_v22  ;;  %7143 = vst.msk [vmem:[#allocation4 + $0x118] sm:$0xf] %vm6440_vm5, %v19031_v39  ;;  %v19047_v55 = vpop.f32.mrf.mxu2  ;;  %v7179_v17 = vsel %vm16217_vm8, 0, %v19031_v39  ;;  %vm21629_vm2 = vnez %v21628_v6  ;;  %v13337_v58 = vld [vmem:[#allocation4 + $0x54] sm:$0xf0] }
 0x5d9   : > { %v6857_v56 = vsel %vm16304_vm10, %v6849_v4, %v6856_v59  ;;  %vm21630_vm4 = vmpackc.low %vm21629_vm2, %vm21629_vm2  ;;  %v6186_v29 = vpop.f32.mrf.mxu3  ;;  %v7389_v44 = vshll.u32 %v7179_v17, 16  ;;  %v7919_v9 = vrot.slane %v7179_v17, 5  ;;  %v6515_v33 = vrot.slane %v6513_v22, 4  ;;  %6621 = vst.msk [vmem:[#allocation4 + $0xb4] sm:$0xf] %vm6440_vm5, %v6514_v63 }
 0x5da   : > { %v6666_v2 = vsel %vm21630_vm4, 0, %v19031_v39  ;;  %v6187_v36 = vadd.f32 %v18592_v61, %v6186_v29  ;;  %v6991_v7 = vpop.permute.xlu2 %6990  ;;  %v7387_v25 = vrot.slane %v7386_v50, 4  ;;  %v7393_v15 = vshrl.u32 %v7179_v17, 16  ;;  %v6985_v18 = vpop.permute.xlu0 %6984  ;;  %vm7779_vm2 = vmpackc.low %vm19038_vm6, %vm19038_vm6 }
 0x5db   : > { %7012 = vrot.lane.b32.xlu1 %v6857_v56, %s15378_s16  ;;  %v6860_v0 = vshrl.u32 %v6666_v2, 16  ;;  %v21632_v30 = vand.u32 15, %v21631_v38  ;;  %7086 = vst.msk [vmem:[#allocation4 + $0x84] sm:$0xf] %vm6679_vm14, %v6991_v7  ;;  %v7391_v37 = vrot.slane %v7389_v44, 5  ;;  %v7920_v21 = vsel %vm18079_vm13, %v7918_v31, %v7919_v9 }
 0x5dc   : > { %v15061_v3 = vld [vmem:[#allocation4 + $0x100] sm:$0xf0]  ;;  %v6863_v20 = vshll.u32 %v6666_v2, 16  ;;  %v6517_v22 = vsel %vm18370_vm1, %v6515_v33, %v6516_v8  ;;  %v6236_v4 = vmax.f32 %v6187_v36, 0.0  ;;  %7083 = vst.msk [vmem:[#allocation4 + $0x60] sm:$0xf] %vm6679_vm14, %v6985_v18 }
 0x5dd   : > { %vm19064_vm9 = vcmp.ge.s32.totalorder %v21632_v30, 14  ;;  %v15039_v59 = vld [vmem:[#allocation4 + $0x50] sm:$0xf0]  ;;  %v19078_v50 = vor.u32 %v15061_v3, %v13427_v23  ;;  %v6862_v28 = vrot.slane %v6860_v0, 7  ;;  %v7392_v63 = vsel %vm16296_vm11, %v7387_v25, %v7391_v37  ;;  %8011 = vst.msk [vmem:[#allocation4 + $0x110] sm:$0xf] %vm6440_vm5, %v7920_v21 }
 0x5de   : > { %vm6389_vm0 = vmpackc.low %vm19064_vm9, %vm19064_vm9  ;;  %v13336_v32 = vor.u32 %v15039_v59, %v13335_v45  ;;  %v7395_v31 = vrot.slane %v7393_v15, 4  ;;  %v6268_v17 = vpack.c.bf16 %v6236_v4, %v6236_v4  ;;  %vm21636_vm4 = vcmask 523264   ;;  %6622 = vst.msk [vmem:[#allocation4 + $0xc0] sm:$0xf] %vm6440_vm5, %v6517_v22  ;;  %v15038_v29 = vld [vmem:[#allocation4 + $0x4c] sm:$0xf] }
 0x5df   : > { %21635 = vst [vmem:[#allocation82_spill] sm:$0xff] %v19078_v50  ;;  %v6421_v56 = vsel %vm6389_vm0, 0, %v18678_v60  ;;  %v6858_v6 = vrot.slane %v19022_v24, 4  ;;  %v6865_v2 = vor.u32 %v6863_v20, %v6862_v28  ;;  %v6518_v44 = vrot.slane %v6516_v8, 4  ;;  %v21637_v36 = vld [vmem:[#allocation51_spill] sm:$0xff] }
 0x5e0   : > { %7556 = vrot.lane.b32.xlu0 %v7392_v63, %s15378_s16  ;;  %8606 = vmatmul.bf16.gmra.mxu0 %v13336_v32  ;;  %v7396_v23 = vor.u32 %v7395_v31, %v7391_v37  ;;  %v6519_v0 = vrot.slane %v6421_v56, 7  ;;  %v19094_v33 = vsel %vm16217_vm8, 0, %v6268_v17  ;;  %v7811_v60 = vsel %vm7779_vm2, 0, %v6268_v17  ;;  %7144 = vst.msk [vmem:[#allocation4 + $0x124] sm:$0xf] %vm6440_vm5, %v6268_v17 }
 0x5e1   : > { %13590 = vmatmul.msk.bf16.gmra.mxu2 %vm21636_vm4, %v19078_v50  ;;  %v6866_v24 = vsel %vm16304_vm10, %v6858_v6, %v6865_v2  ;;  %vm21638_vm9 = vnez %v21637_v36  ;;  %v7922_v7 = vrot.slane %v7811_v60, 5  ;;  %v7921_v45 = vrot.slane %v7919_v9, 4  ;;  %v6188_v25 = vpop.f32.mrf.mxu3  ;;  %v19110_v15 = vpop.f32.mrf.mxu2  ;;  %v21640_v60 = vld [vmem:[#allocation52_spill] sm:$0xff] }
 0x5e2   : > { %vm21639_vm0 = vmpackc.low %vm21638_vm9, %vm21638_vm9  ;;  %7014 = vrot.lane.b32.xlu2 %v6866_v24, %s15378_s16  ;;  %v6189_v26 = vadd.f32 %v18592_v61, %v6188_v25  ;;  %v6987_v18 = vpop.permute.xlu1 %6986  ;;  %v19113_v3 = vor.u32 %v15038_v29, %v13337_v58  ;;  %v6869_v37 = vshrl.u32 %v19094_v33, 16  ;;  %v6993_v20 = vpop.permute.xlu2 %6992  ;;  %v7397_v9 = vrot.slane %v7396_v23, 4  ;;  %v21644_v25 = vld [vmem:[#allocation53_spill] sm:$0xff] }
 0x5e3   : > { %v7180_v8 = vsel %vm21639_vm0, 0, %v6268_v17  ;;  %v7923_v21 = vsel %vm18079_vm13, %v7921_v45, %v7922_v7  ;;  %7084 = vst.msk [vmem:[#allocation4 + $0x6c] sm:$0xf] %vm6679_vm14, %v6987_v18  ;;  %v6520_v4 = vsel %vm18370_vm1, %v6518_v44, %v6519_v0  ;;  %v6872_v31 = vshll.u32 %v19094_v33, 16  ;;  %v13347_v45 = vld [vmem:[#allocation4 + $0x60] sm:$0xf] }
 0x5e4   : > { %v7399_v38 = vshll.u32 %v7180_v8, 16  ;;  %v7403_v30 = vshrl.u32 %v7180_v8, 16  ;;  %8012 = vst.msk [vmem:[#allocation4 + $0x11c] sm:$0xf] %vm6440_vm5, %v7923_v21  ;;  %v6237_v59 = vmax.f32 %v6189_v26, 0.0  ;;  %v19122_v63 = vrot.slane %v6869_v37, 7 }
 0x5e5   : > { %7087 = vst.msk [vmem:[#allocation4 + $0x90] sm:$0xf] %vm6679_vm14, %v6993_v20  ;;  %v6867_v17 = vrot.slane %v6862_v28, 4  ;;  %v6521_v23 = vrot.slane %v6519_v0, 4  ;;  %v6522_v44 = vrot.slane %v18785_v47, 7  ;;  %v21641_v24 = vand.u32 15, %v21640_v60 }
 0x5e6   : > { %v7401_v22 = vrot.slane %v7399_v38, 5  ;;  %8695 = vmatmul.bf16.gmra.mxu1 %v19113_v3  ;;  %v7405_v6 = vrot.slane %v7403_v30, 4  ;;  %v19129_v2 = vpack.c.bf16 %v6237_v59, %v6237_v59  ;;  %v6874_v29 = vor.u32 %v6872_v31, %v19122_v63  ;;  %6623 = vst.msk [vmem:[#allocation4 + $0xcc] sm:$0xf] %vm6440_vm5, %v6520_v4  ;;  %v15173_v38 = vld [vmem:[%s21036_s9 + $0x168] sm:$0xff] }
 0x5e7   : > { %9016 = vmatmul.bf16.gmra.mxu3 %v13336_v32  ;;  %vm19137_vm6 = vcmp.lt.s32.totalorder %v21641_v24, 2  ;;  %vm21645_vm2 = vnez %v21644_v25  ;;  %v15090_v30 = vld [vmem:[%s21036_s9 + $0x68] sm:$0xff]  ;;  %v6523_v26 = vsel %vm18370_vm1, %v6521_v23, %v6522_v44  ;;  %v7924_v18 = vrot.slane %v7922_v7, 4  ;;  %v13439_v20 = vld [vmem:[#allocation4 + $0x110] sm:$0xf]  ;;  %9775 = vmatpush.bf16.msrb.mxu2 %v15173_v38  ;;  %v15095_v7 = vld [vmem:[%s21036_s9 + $0x90] sm:$0xff] }
 0x5e8   : > { %v7402_v56 = vsel %vm16296_vm11, %v7397_v9, %v7401_v22  ;;  %v7406_v28 = vor.u32 %v7405_v6, %v7401_v22  ;;  %7145 = vst.msk [vmem:[#allocation4 + $0x130] sm:$0xf] %vm6440_vm5, %v19129_v2  ;;  %v6875_v32 = vsel %vm16304_vm10, %v6867_v17, %v6874_v29  ;;  %v7531_v8 = vpop.permute.xlu0 %7530  ;;  %v7181_v0 = vsel %vm16217_vm8, 0, %v19129_v2  ;;  %vm21646_vm4 = vmpackc.low %vm21645_vm2, %vm21645_vm2  ;;  %9084 = vmatpush.bf16.msrb.mxu0 %v15090_v30  ;;  %v21647_v6 = vld [vmem:[#allocation38_spill] sm:$0xff] }
 0x5e9   : > { %7558 = vrot.lane.b32.xlu1 %v7402_v56, %s15378_s16  ;;  %v6668_v58 = vsel %vm21646_vm4, 0, %v19129_v2  ;;  %7627 = vst.msk [vmem:[#allocation4 + $0x70] sm:$0xf] %vm6679_vm14, %v7531_v8  ;;  %v6191_v37 = vpop.f32.mrf.mxu3  ;;  %v19166_v21 = vpop.f32.mrf.mxu2  ;;  %v7409_v9 = vshll.u32 %v7181_v0, 16  ;;  %v7925_v22 = vrot.slane %v7181_v0, 5  ;;  %v7413_v17 = vshrl.u32 %v7181_v0, 16  ;;  %9176 = vmatpush.bf16.msrb.mxu1 %v15095_v7  ;;  %vm7781_vm2 = vmpackc.low %vm19137_vm6, %vm19137_vm6 }
 0x5ea   : > { %7016 = vrot.lane.b32.xlu2 %v6875_v32, %s15378_s16  ;;  %v6878_v4 = vshrl.u32 %v6668_v58, 16  ;;  %v6192_v59 = vadd.f32 %v18592_v61, %v6191_v37  ;;  %v15042_v31 = vld [vmem:[#allocation4 + $0x68] sm:$0xf0]  ;;  %v7407_v56 = vrot.slane %v7406_v28, 4  ;;  %v21648_v29 = vand.u32 15, %v21647_v6  ;;  %v6989_v60 = vpop.permute.xlu1 %6988 }
 0x5eb   : > { %v13348_v24 = vor.u32 %v15042_v31, %v13347_v45  ;;  %v15064_v32 = vld [vmem:[#allocation4 + $0x118] sm:$0xf0]  ;;  %v7411_v8 = vrot.slane %v7409_v9, 5  ;;  %v7926_v61 = vsel %vm18079_vm13, %v7924_v18, %v7925_v22  ;;  %v6881_v28 = vshll.u32 %v6668_v58, 16  ;;  %6624 = vst.msk [vmem:[#allocation4 + $0xd8] sm:$0xf] %vm6440_vm5, %v6523_v26 }
 0x5ec   : > { %vm19174_vm9 = vcmp.ge.s32.totalorder %v21648_v29, 14  ;;  %v6238_v0 = vmax.f32 %v6192_v59, 0.0  ;;  %7085 = vst.msk [vmem:[#allocation4 + $0x78] sm:$0xf] %vm6679_vm14, %v6989_v60  ;;  %v19185_v25 = vor.u32 %v15064_v32, %v13439_v20  ;;  %v19187_v38 = vrot.slane %v6878_v4, 7  ;;  %v21653_v29 = vld [vmem:[#allocation55_spill] sm:$0xff] }
 0x5ed   : > { %vm6391_vm0 = vmpackc.low %vm19174_vm9, %vm19174_vm9  ;;  %v7415_v45 = vrot.slane %v7413_v17, 4  ;;  %v7412_v58 = vsel %vm16296_vm11, %v7407_v56, %v7411_v8  ;;  %8013 = vst.msk [vmem:[#allocation4 + $0x128] sm:$0xf] %vm6440_vm5, %v7926_v61  ;;  %vm21652_vm4 = vcmask 523264   ;;  %v6876_v26 = vrot.slane %v19122_v63, 4 }
 0x5ee   : > { %21651 = vst [vmem:[#allocation85_spill] sm:$0xff] %v19185_v25  ;;  %v6270_v30 = vpack.c.bf16 %v6238_v0, %v6238_v0  ;;  %v6883_v18 = vor.u32 %v6881_v28, %v19187_v38  ;;  %v6423_v37 = vsel %vm6391_vm0, 0, %v18827_v49  ;;  %v15041_v56 = vld [vmem:[#allocation4 + $0x64] sm:$0xf]  ;;  %v7927_v7 = vrot.slane %v7925_v22, 4 }
 0x5ef   : > { %v7416_v36 = vor.u32 %v7415_v45, %v7411_v8  ;;  %vm21654_vm6 = vnez %v21653_v29  ;;  %v6525_v60 = vrot.slane %v6423_v37, 7  ;;  %v19221_v22 = vld [vmem:[%s21035_s8] ss:$0 sm:$0xff]  ;;  %v6885_v47 = vrot.slane %v19187_v38, 4 }
 0x5f0   : > { %8611 = vmatmul.bf16.gmra.mxu0 %v13348_v24  ;;  %v19203_v20 = vsel %vm16217_vm8, 0, %v6270_v30  ;;  %v7813_v9 = vsel %vm7781_vm2, 0, %v6270_v30  ;;  %7146 = vst.msk [vmem:[#allocation4 + $0x13c] sm:$0xf] %vm6440_vm5, %v6270_v30  ;;  %v6884_v59 = vsel %vm16304_vm10, %v6876_v26, %v6883_v18  ;;  %v7533_v31 = vpop.permute.xlu0 %7532  ;;  %v13349_v63 = vld [vmem:[#allocation4 + $0x6c] sm:$0xf0]  ;;  %vm21655_vm9 = vmpackc.low %vm21654_vm6, %vm21654_vm6 }
 0x5f1   : > { %13591 = vmatmul.msk.bf16.gmra.mxu2 %vm21652_vm4, %v19185_v25  ;;  %7560 = vrot.lane.b32.xlu1 %v7412_v58, %s15378_s16  ;;  %v7539_v4 = vpop.permute.xlu2 %7538  ;;  %v7928_v17 = vrot.slane %v7813_v9, 5  ;;  %v6193_v49 = vpop.f32.mrf.mxu3  ;;  %v7182_v23 = vsel %vm21655_vm9, 0, %v6270_v30  ;;  %7628 = vst.msk [vmem:[#allocation4 + $0x7c] sm:$0xf] %vm6679_vm14, %v7533_v31  ;;  %v6887_v28 = vshrl.u32 %v19203_v20, 16  ;;  %v19227_v45 = vor.u32 %v15041_v56, %v13349_v63  ;;  %v21656_v56 = vld [vmem:[#allocation57_spill] sm:$0xff] }
 0x5f2   : > { %7631 = vst.msk [vmem:[#allocation4 + $0xa0] sm:$0xf] %vm6679_vm14, %v7539_v4  ;;  %7018 = vrot.lane.b32.xlu0 %v6884_v59, %s15378_s16  ;;  %v19210_v6 = vpop.f32.mrf.mxu2  ;;  %v6194_v32 = vadd.f32 %v19221_v22, %v6193_v49  ;;  %v7419_v8 = vshll.u32 %v7182_v23, 16  ;;  %v7423_v61 = vshrl.u32 %v7182_v23, 16  ;;  %v7417_v58 = vrot.slane %v7416_v36, 4 }
 0x5f3   : > { %v7929_v0 = vsel %vm18079_vm13, %v7927_v7, %v7928_v17  ;;  %v6524_v30 = vrot.slane %v6522_v44, 4  ;;  %v6889_v37 = vrot.slane %v6887_v28, 7  ;;  %v6890_v9 = vshll.u32 %v19203_v20, 16 }
 0x5f4   : > { %8014 = vst.msk [vmem:[#allocation4 + $0x134] sm:$0xf] %vm6440_vm5, %v7929_v0  ;;  %v6239_v26 = vmax.f32 %v6194_v32, 0.0  ;;  %v7421_v18 = vrot.slane %v7419_v8, 5  ;;  %v7425_v4 = vrot.slane %v7423_v61, 4  ;;  %v21657_v63 = vand.u32 15, %v21656_v56 }
 0x5f5   : > { %v6526_v59 = vsel %vm18370_vm1, %v6524_v30, %v6525_v60  ;;  %v6892_v44 = vor.u32 %v6890_v9, %v6889_v37  ;;  %v6528_v29 = vrot.slane %v18892_v54, 7  ;;  %v13359_v32 = vld [vmem:[#allocation4 + $0x78] sm:$0xf]  ;;  %v21660_v61 = vld [vmem:[#allocation56_spill] sm:$0xff]  ;;  %v6527_v28 = vrot.slane %v6525_v60, 4 }
 0x5f6   : > { %8700 = vmatmul.bf16.gmra.mxu1 %v19227_v45  ;;  %v19236_v31 = vpack.c.bf16 %v6239_v26, %v6239_v26  ;;  %v7422_v36 = vsel %vm16296_vm11, %v7417_v58, %v7421_v18  ;;  %6625 = vst.msk [vmem:[#allocation4 + $0xe4] sm:$0xf] %vm6440_vm5, %v6526_v59  ;;  %vm19245_vm0 = vcmp.lt.s32.totalorder %v21657_v63, 2  ;;  %v7426_v49 = vor.u32 %v7425_v4, %v7421_v18  ;;  %v15045_v59 = vld [vmem:[#allocation4 + $0x80] sm:$0xf0] }
 0x5f7   : > { %9021 = vmatmul.bf16.gmra.mxu3 %v13348_v24  ;;  %7562 = vrot.lane.b32.xlu2 %v7422_v36, %s15378_s16  ;;  %v6893_v38 = vsel %vm16304_vm10, %v6885_v47, %v6892_v44  ;;  %vm21661_vm2 = vnez %v21660_v61  ;;  %v7930_v0 = vrot.slane %v7928_v17, 4  ;;  %v13451_v47 = vld [vmem:[#allocation4 + $0x128] sm:$0xf]  ;;  %v6529_v17 = vsel %vm18370_vm1, %v6527_v28, %v6528_v29  ;;  %vm7783_vm6 = vmpackc.low %vm19245_vm0, %vm19245_vm0 }
 0x5f8   : > { %7147 = vst.msk [vmem:[#allocation4 + $0x148] sm:$0xf] %vm6440_vm5, %v19236_v31  ;;  %v7535_v23 = vpop.permute.xlu1 %7534  ;;  %v7183_v8 = vsel %vm16217_vm8, 0, %v19236_v31  ;;  %vm21662_vm4 = vmpackc.low %vm21661_vm2, %vm21661_vm2  ;;  %v7427_v36 = vrot.slane %v7426_v49, 4 }
 0x5f9   : > { %v7541_v24 = vpop.permute.xlu2 %7540  ;;  %v6670_v54 = vsel %vm21662_vm4, 0, %v19236_v31  ;;  %v6196_v58 = vpop.f32.mrf.mxu3  ;;  %v7429_v26 = vshll.u32 %v7183_v8, 16  ;;  %v7931_v18 = vrot.slane %v7183_v8, 5  ;;  %7629 = vst.msk [vmem:[#allocation4 + $0x88] sm:$0xf] %vm6679_vm14, %v7535_v23  ;;  %v7433_v44 = vshrl.u32 %v7183_v8, 16 }
 0x5fa   : > { %7632 = vst.msk [vmem:[#allocation4 + $0xac] sm:$0xf] %vm6679_vm14, %v7541_v24  ;;  %7020 = vrot.lane.b32.xlu0 %v6893_v38, %s15378_s16  ;;  %v19265_v30 = vpop.f32.mrf.mxu2  ;;  %v6896_v9 = vshrl.u32 %v6670_v54, 16  ;;  %v6197_v4 = vadd.f32 %v19221_v22, %v6196_v58  ;;  %v6899_v38 = vshll.u32 %v6670_v54, 16  ;;  %v21664_v8 = vld [vmem:[#allocation43_spill] sm:$0xff]  ;;  %v13360_v58 = vor.u32 %v15045_v59, %v13359_v32 }
 0x5fb   : > { %v7431_v60 = vrot.slane %v7429_v26, 5  ;;  %v7932_v56 = vsel %vm18079_vm13, %v7930_v0, %v7931_v18  ;;  %v15067_v63 = vld [vmem:[#allocation4 + $0x130] sm:$0xf0]  ;;  %v7435_v23 = vrot.slane %v7433_v44, 4  ;;  %v21665_v28 = vand.u32 15, %v21664_v8 }
 0x5fc   : > { %v19273_v24 = vrot.slane %v6896_v9, 7  ;;  %v6240_v61 = vmax.f32 %v6197_v4, 0.0  ;;  %8015 = vst.msk [vmem:[#allocation4 + $0x140] sm:$0xf] %vm6440_vm5, %v7932_v56  ;;  %v19279_v49 = vor.u32 %v15067_v63, %v13451_v47  ;;  %v6894_v26 = vrot.slane %v6889_v37, 4  ;;  %v21667_v56 = vld [vmem:[#allocation59_spill] sm:$0xff] }
 0x5fd   : > { %vm6297_vm9 = vcmp.ge.s32.totalorder %v21665_v28, 14  ;;  %v7432_v0 = vsel %vm16296_vm11, %v7427_v36, %v7431_v60  ;;  %6626 = vst.msk [vmem:[#allocation4 + $0xf0] sm:$0xf] %vm6440_vm5, %v6529_v17  ;;  %vm21666_vm4 = vcmask 523264   ;;  %v7436_v59 = vor.u32 %v7435_v23, %v7431_v60  ;;  %v15044_v28 = vld [vmem:[#allocation4 + $0x7c] sm:$0xf] }
 0x5fe   : > { %21663 = vst [vmem:[#allocation83_spill] sm:$0xff] %v19279_v49  ;;  %v6901_v54 = vor.u32 %v6899_v38, %v19273_v24  ;;  %vm6393_vm2 = vmpackc.low %vm6297_vm9, %vm6297_vm9  ;;  %v6272_v9 = vpack.c.bf16 %v6240_v61, %v6240_v61  ;;  %v6530_v36 = vrot.slane %v6528_v29, 4  ;;  %vm21668_vm9 = vnez %v21667_v56 }
 0x5ff   : > { %v6425_v4 = vsel %vm6393_vm2, 0, %v18926_v57  ;;  %7564 = vrot.lane.b32.xlu2 %v7432_v0, %s15378_s16  ;;  %v7933_v57 = vrot.slane %v7931_v18, 4  ;;  %vm21669_vm2 = vmpackc.low %vm21668_vm9, %vm21668_vm9 }
 0x600   : > { %8616 = vmatmul.bf16.gmra.mxu0 %v13360_v58  ;;  %v6902_v32 = vsel %vm16304_vm10, %v6894_v26, %v6901_v54  ;;  %v6531_v37 = vrot.slane %v6425_v4, 7  ;;  %v19295_v47 = vsel %vm16217_vm8, 0, %v6272_v9  ;;  %v7815_v44 = vsel %vm7783_vm6, 0, %v6272_v9  ;;  %7148 = vst.msk [vmem:[#allocation4 + $0x154] sm:$0xf] %vm6440_vm5, %v6272_v9 }
 0x601   : > { %13592 = vmatmul.msk.bf16.gmra.mxu2 %vm21666_vm4, %v19279_v49  ;;  %7022 = vrot.lane.b32.xlu1 %v6902_v32, %s15378_s16  ;;  %v7537_v17 = vpop.permute.xlu1 %7536  ;;  %v7184_v29 = vsel %vm21669_vm2, 0, %v6272_v9  ;;  %v7934_v60 = vrot.slane %v7815_v44, 5  ;;  %v6198_v63 = vpop.f32.mrf.mxu3  ;;  %v13361_v7 = vld [vmem:[#allocation4 + $0x84] sm:$0xf0]  ;;  %v6905_v26 = vshrl.u32 %v19295_v47, 16  ;;  %v7437_v4 = vrot.slane %v7436_v59, 4 }
 0x602   : > { %7630 = vst.msk [vmem:[#allocation4 + $0x94] sm:$0xf] %vm6679_vm14, %v7537_v17  ;;  %v19310_v38 = vpop.f32.mrf.mxu2  ;;  %v7439_v61 = vshll.u32 %v7184_v29, 16  ;;  %v6532_v18 = vsel %vm18370_vm1, %v6530_v36, %v6531_v37  ;;  %v6199_v23 = vadd.f32 %v19221_v22, %v6198_v63  ;;  %v7443_v0 = vshrl.u32 %v7184_v29, 16 }
 0x603   : > { %v6995_v8 = vpop.permute.xlu0 %6994  ;;  %6627 = vst.msk [vmem:[#allocation4 + $0xfc] sm:$0xf] %vm6440_vm5, %v6532_v18  ;;  %v7935_v54 = vsel %vm18079_vm13, %v7933_v57, %v7934_v60  ;;  %v19320_v9 = vor.u32 %v15044_v28, %v13361_v7  ;;  %v19323_v44 = vrot.slane %v6905_v26, 7  ;;  %v6908_v17 = vshll.u32 %v19295_v47, 16  ;;  %v21671_v18 = vld [vmem:[#allocation61_spill] sm:$0xff] }
 0x604   : > { %7088 = vst.msk [vmem:[#allocation4 + $0x9c] sm:$0xf] %vm6679_vm14, %v6995_v8  ;;  %v7441_v32 = vrot.slane %v7439_v61, 5  ;;  %v6241_v36 = vmax.f32 %v6199_v23, 0.0  ;;  %v7445_v29 = vrot.slane %v7443_v0, 4  ;;  %v21259_v57 = vrot.slane %v18995_v52, 7 }
 0x605   : > { %21670 = vst [vmem:[#allocation84_spill] sm:$0xff] %v19320_v9  ;;  %v6903_v59 = vrot.slane %v19273_v24, 4  ;;  %v6910_v7 = vor.u32 %v6908_v17, %v19323_v44  ;;  %v6533_v61 = vrot.slane %v6531_v37, 4  ;;  %v21672_v23 = vand.u32 15, %v21671_v18  ;;  %v13371_v26 = vld [vmem:[#allocation4 + $0x90] sm:$0xf] }
 0x606   : > { %8016 = vst.msk [vmem:[#allocation4 + $0x14c] sm:$0xf] %vm6440_vm5, %v7935_v54  ;;  %8705 = vmatmul.bf16.gmra.mxu1 %v19320_v9  ;;  %v7442_v56 = vsel %vm16296_vm11, %v7437_v4, %v7441_v32  ;;  %v19330_v63 = vpack.c.bf16 %v6241_v36, %v6241_v36  ;;  %v7446_v28 = vor.u32 %v7445_v29, %v7441_v32  ;;  %v7936_v4 = vrot.slane %v7934_v60, 4  ;;  %v13463_v60 = vld [vmem:[#allocation4 + $0x140] sm:$0xf] }
 0x607   : > { %7566 = vrot.lane.b32.xlu0 %v7442_v56, %s15378_s16  ;;  %9026 = vmatmul.bf16.gmra.mxu3 %v13360_v58  ;;  %vm19337_vm0 = vcmp.lt.s32.totalorder %v21672_v23, 2  ;;  %v6911_v0 = vsel %vm16304_vm10, %v6903_v59, %v6910_v7  ;;  %v21675_v58 = vld [vmem:[#allocation60_spill] sm:$0xff]  ;;  %v6535_v54 = vsel %vm18370_vm1, %v6533_v61, %v21259_v57 }
 0x608   : > { %7149 = vst.msk [vmem:[#allocation4 + $0x160] sm:$0xf] %vm6440_vm5, %v19330_v63  ;;  %v7185_v24 = vsel %vm16217_vm8, 0, %v19330_v63  ;;  %vm21676_vm6 = vnez %v21675_v58  ;;  %v15172_v59 = vld [vmem:[%s21036_s9 + $0x160] sm:$0xff]  ;;  %v7447_v23 = vrot.slane %v7446_v28, 4  ;;  %vm7785_vm9 = vmpackc.low %vm19337_vm0, %vm19337_vm0 }
 0x609   : > { %vm21677_vm4 = vmpackc.low %vm21676_vm6, %vm21676_vm6  ;;  %7024 = vrot.lane.b32.xlu1 %v6911_v0, %s15378_s16  ;;  %v6201_v32 = vpop.f32.mrf.mxu3  ;;  %v7449_v17 = vshll.u32 %v7185_v24, 16  ;;  %v7937_v56 = vrot.slane %v7185_v24, 5  ;;  %v15089_v7 = vld [vmem:[%s21036_s9 + $0x60] sm:$0xff]  ;;  %v7453_v0 = vshrl.u32 %v7185_v24, 16  ;;  %9776 = vmatpush.bf16.msrb.mxu2 %v15172_v59  ;;  %6628 = vst.msk [vmem:[#allocation4 + $0x108] sm:$0xf] %vm6440_vm5, %v6535_v54 }
 0x60a   : > { %v6672_v37 = vsel %vm21677_vm4, 0, %v19330_v63  ;;  %v19359_v36 = vpop.f32.mrf.mxu2  ;;  %v6202_v18 = vadd.f32 %v19221_v22, %v6201_v32  ;;  %9085 = vmatpush.bf16.msrb.mxu0 %v15089_v7  ;;  %vm21683_vm6 = vcmask 523264   ;;  %v15047_v8 = vld [vmem:[#allocation4 + $0x94] sm:$0xf]  ;;  %v21684_v7 = vld [vmem:[#allocation63_spill] sm:$0xff] }
 0x60b   : > { %v6914_v29 = vshrl.u32 %v6672_v37, 16  ;;  %v15048_v61 = vld [vmem:[#allocation4 + $0x98] sm:$0xf0]  ;;  %v6997_v57 = vpop.permute.xlu0 %6996  ;;  %v7451_v50 = vrot.slane %v7449_v17, 5  ;;  %v7938_v5 = vsel %vm18079_vm13, %v7936_v4, %v7937_v56  ;;  %v6917_v53 = vshll.u32 %v6672_v37, 16  ;;  %v21679_v37 = vld [vmem:[#allocation46_spill] sm:$0xff] }
 0x60c   : > { %v13372_v49 = vor.u32 %v15048_v61, %v13371_v26  ;;  %v6242_v42 = vmax.f32 %v6202_v18, 0.0  ;;  %v7455_v24 = vrot.slane %v7453_v0, 4  ;;  %7089 = vst.msk [vmem:[#allocation4 + $0xa8] sm:$0xf] %vm6679_vm14, %v6997_v57  ;;  %v21680_v4 = vand.u32 15, %v21679_v37 }
 0x60d   : > { %v7003_v58 = vpop.permute.xlu2 %7002  ;;  %v15070_v25 = vld [vmem:[#allocation4 + $0x148] sm:$0xf0]  ;;  %v6916_v28 = vrot.slane %v6914_v29, 7  ;;  %v7452_v26 = vsel %vm16296_vm11, %v7447_v23, %v7451_v50  ;;  %8017 = vst.msk [vmem:[#allocation4 + $0x158] sm:$0xf] %vm6440_vm5, %v7938_v5  ;;  %vm21685_vm4 = vnez %v21684_v7 }
 0x60e   : > { %7092 = vst.msk [vmem:[#allocation4 + $0xcc] sm:$0xf] %vm6679_vm14, %v7003_v58  ;;  %v19372_v32 = vor.u32 %v15070_v25, %v13463_v60  ;;  %vm19382_vm2 = vcmp.ge.s32.totalorder %v21680_v4, 14  ;;  %v6274_v17 = vpack.c.bf16 %v6242_v42, %v6242_v42  ;;  %v6912_v25 = vrot.slane %v19323_v44, 4  ;;  %v13373_v60 = vld [vmem:[#allocation4 + $0x9c] sm:$0xf0] }
 0x60f   : > { %7568 = vrot.lane.b32.xlu0 %v7452_v26, %s15378_s16  ;;  %v6919_v57 = vor.u32 %v6917_v53, %v6916_v28  ;;  %v7456_v29 = vor.u32 %v7455_v24, %v7451_v50  ;;  %vm6395_vm0 = vmpackc.low %vm19382_vm2, %vm19382_vm2  ;;  %v7939_v44 = vrot.slane %v7937_v56, 4  ;;  %v19410_v26 = vor.u32 %v15047_v8, %v13373_v60 }
 0x610   : > { %21678 = vst [vmem:[#allocation86_spill] sm:$0xff] %v19372_v32  ;;  %8621 = vmatmul.bf16.gmra.mxu0 %v13372_v49  ;;  %v19396_v42 = vsel %vm16217_vm8, 0, %v6274_v17  ;;  %v7817_v59 = vsel %vm7785_vm9, 0, %v6274_v17  ;;  %v6427_v56 = vsel %vm6395_vm0, 0, %v19031_v39 }
 0x611   : > { %13593 = vmatmul.msk.bf16.gmra.mxu2 %vm21683_vm6, %v19372_v32  ;;  %7150 = vst.msk [vmem:[#allocation4 + $0x16c] sm:$0xf] %vm6440_vm5, %v6274_v17  ;;  %v6920_v5 = vsel %vm16304_vm10, %v6912_v25, %v6919_v57  ;;  %vm21686_vm6 = vmpackc.low %vm21685_vm4, %vm21685_vm4  ;;  %v7940_v50 = vrot.slane %v7817_v59, 5  ;;  %v6203_v18 = vpop.f32.mrf.mxu3  ;;  %v6923_v37 = vshrl.u32 %v19396_v42, 16  ;;  %v7457_v25 = vrot.slane %v7456_v29, 4 }
 0x612   : > { %v7186_v53 = vsel %vm21686_vm6, 0, %v6274_v17  ;;  %7026 = vrot.lane.b32.xlu2 %v6920_v5, %s15378_s16  ;;  %v19407_v61 = vpop.f32.mrf.mxu2  ;;  %v6204_v58 = vadd.f32 %v19221_v22, %v6203_v18  ;;  %21687 = vst [vmem:[#allocation87_spill] sm:$0xff] %v19410_v26  ;;  %v6926_v7 = vshll.u32 %v19396_v42, 16  ;;  %v6921_v18 = vrot.slane %v6916_v28, 4 }
 0x613   : > { %v7459_v23 = vshll.u32 %v7186_v53, 16  ;;  %v7463_v0 = vshrl.u32 %v7186_v53, 16  ;;  %v6999_v24 = vpop.permute.xlu1 %6998  ;;  %v7941_v4 = vsel %vm18079_vm13, %v7939_v44, %v7940_v50  ;;  %v19423_v5 = vrot.slane %v6923_v37, 7 }
 0x614   : > { %7090 = vst.msk [vmem:[#allocation4 + $0xb4] sm:$0xf] %vm6679_vm14, %v6999_v24  ;;  %v6243_v8 = vmax.f32 %v6204_v58, 0.0  ;;  %v21688_v53 = vrot.slane %v18995_v52, 7  ;;  %v21689_v58 = vld [vmem:[#allocation65_spill] sm:$0xff] }
 0x615   : > { %v7005_v17 = vpop.permute.xlu2 %7004  ;;  %v7461_v57 = vrot.slane %v7459_v23, 5  ;;  %v7465_v59 = vrot.slane %v7463_v0, 4  ;;  %8018 = vst.msk [vmem:[#allocation4 + $0x164] sm:$0xf] %vm6440_vm5, %v7941_v4  ;;  %v6928_v60 = vor.u32 %v6926_v7, %v19423_v5  ;;  %v6537_v23 = vrot.slane %v6427_v56, 7 }
 0x616   : > { %7093 = vst.msk [vmem:[#allocation4 + $0xd8] sm:$0xf] %vm6679_vm14, %v7005_v17  ;;  %8710 = vmatmul.bf16.gmra.mxu1 %v19410_v26  ;;  %v6536_v29 = vrot.slane %v21688_v53, 4  ;;  %v19432_v44 = vpack.c.bf16 %v6243_v8, %v6243_v8  ;;  %v7942_v0 = vrot.slane %v7940_v50, 4  ;;  %v21690_v24 = vand.u32 15, %v21689_v58  ;;  %v21693_v50 = vld [vmem:[#allocation64_spill] sm:$0xff] }
 0x617   : > { %v7462_v39 = vsel %vm16296_vm11, %v7457_v25, %v7461_v57  ;;  %v7466_v54 = vor.u32 %v7465_v59, %v7461_v57  ;;  %9031 = vmatmul.bf16.gmra.mxu3 %v13372_v49  ;;  %v6929_v52 = vsel %vm16304_vm10, %v6921_v18, %v6928_v60  ;;  %v13383_v49 = vld [vmem:[#allocation4 + $0xa8] sm:$0xf]  ;;  %vm21694_vm2 = vnez %v21693_v50 }
 0x618   : > { %7570 = vrot.lane.b32.xlu1 %v7462_v39, %s15378_s16  ;;  %vm19438_vm9 = vcmp.lt.s32.totalorder %v21690_v24, 2  ;;  %7151 = vst.msk [vmem:[#allocation4 + $0x178] sm:$0xf] %vm6440_vm5, %v19432_v44  ;;  %v7187_v28 = vsel %vm16217_vm8, 0, %v19432_v44  ;;  %vm21695_vm0 = vmpackc.low %vm21694_vm2, %vm21694_vm2  ;;  %v6538_v25 = vsel %vm18370_vm1, %v6536_v29, %v6537_v23  ;;  %v6539_v48 = vrot.slane %v6537_v23, 4 }
 0x619   : > { %v7467_v4 = vrot.slane %v7466_v54, 4  ;;  %v7543_v17 = vpop.permute.xlu0 %7542  ;;  %v6674_v56 = vsel %vm21695_vm0, 0, %v19432_v44  ;;  %v7469_v8 = vshll.u32 %v7187_v28, 16  ;;  %v7943_v7 = vrot.slane %v7187_v28, 5  ;;  %6629 = vst.msk [vmem:[#allocation4 + $0x114] sm:$0xf] %vm6440_vm5, %v6538_v25  ;;  %vm7787_vm4 = vmpackc.low %vm19438_vm9, %vm19438_vm9 }
 0x61a   : > { %7028 = vrot.lane.b32.xlu2 %v6929_v52, %s15378_s16  ;;  %7633 = vst.msk [vmem:[#allocation4 + $0xb8] sm:$0xf] %vm6679_vm14, %v7543_v17  ;;  %v6206_v57 = vpop.f32.mrf.mxu3  ;;  %v19459_v59 = vpop.f32.mrf.mxu2  ;;  %v6932_v39 = vshrl.u32 %v6674_v56, 16  ;;  %v6540_v54 = vrot.slane %v19094_v33, 7  ;;  %v6935_v60 = vshll.u32 %v6674_v56, 16  ;;  %v7473_v58 = vshrl.u32 %v7187_v28, 16 }
 0x61b   : > { %v6207_v53 = vadd.f32 %v19221_v22, %v6206_v57  ;;  %v15051_v18 = vld [vmem:[#allocation4 + $0xb0] sm:$0xf0]  ;;  %v7001_v29 = vpop.permute.xlu1 %7000  ;;  %v13475_v52 = vld [vmem:[#allocation4 + $0x158] sm:$0xf]  ;;  %v7471_v50 = vrot.slane %v7469_v8, 5  ;;  %v7944_v32 = vsel %vm18079_vm13, %v7942_v0, %v7943_v7  ;;  %v21697_v0 = vld [vmem:[#allocation50_spill] sm:$0xff] }
 0x61c   : > { %v19464_v24 = vor.u32 %v15051_v18, %v13383_v49  ;;  %v15073_v17 = vld [vmem:[#allocation4 + $0x160] sm:$0xf0]  ;;  %7091 = vst.msk [vmem:[#allocation4 + $0xc0] sm:$0xf] %vm6679_vm14, %v7001_v29  ;;  %v19471_v57 = vrot.slane %v6932_v39, 7  ;;  %v7475_v28 = vrot.slane %v7473_v58, 4  ;;  %v6541_v23 = vsel %vm18370_vm1, %v6539_v48, %v6540_v54 }
 0x61d   : > { %v6244_v26 = vmax.f32 %v6207_v53, 0.0  ;;  %v19469_v33 = vor.u32 %v15073_v17, %v13475_v52  ;;  %v7472_v49 = vsel %vm16296_vm11, %v7467_v4, %v7471_v50  ;;  %8019 = vst.msk [vmem:[#allocation4 + $0x170] sm:$0xf] %vm6440_vm5, %v7944_v32  ;;  %v21698_v56 = vand.u32 15, %v21697_v0  ;;  %v15171_v48 = vld [vmem:[%s21036_s9 + $0x158] sm:$0xff] }
 0x61e   : > { %vm21699_vm2 = vcmask 523264   ;;  %v6930_v8 = vrot.slane %v19423_v5, 4  ;;  %v6937_v39 = vor.u32 %v6935_v60, %v19471_v57  ;;  %v7476_v32 = vor.u32 %v7475_v28, %v7471_v50  ;;  %6630 = vst.msk [vmem:[#allocation4 + $0x120] sm:$0xf] %vm6440_vm5, %v6541_v23  ;;  %v15050_v60 = vld [vmem:[#allocation4 + $0xac] sm:$0xf]  ;;  %9777 = vmatpush.bf16.msrb.mxu2 %v15171_v48 }
 0x61f   : > { %21696 = vst [vmem:[#allocation88_spill] sm:$0xff] %v19469_v33  ;;  %vm6301_vm6 = vcmp.ge.s32.totalorder %v21698_v56, 14  ;;  %v6276_v25 = vpack.c.bf16 %v6244_v26, %v6244_v26  ;;  %v21700_v50 = vld [vmem:[#allocation67_spill] sm:$0xff]  ;;  %v6542_v28 = vrot.slane %v6540_v54, 4 }
 0x620   : > { %7572 = vrot.lane.b32.xlu1 %v7472_v49, %s15378_s16  ;;  %vm6397_vm0 = vmpackc.low %vm6301_vm6, %vm6301_vm6  ;;  %8626 = vmatmul.bf16.gmra.mxu0 %v19464_v24  ;;  %v6938_v53 = vsel %vm16304_vm10, %v6930_v8, %v6937_v39  ;;  %vm21701_vm6 = vnez %v21700_v50 }
 0x621   : > { %13594 = vmatmul.msk.bf16.gmra.mxu2 %vm21699_vm2, %v19469_v33  ;;  %v6429_v26 = vsel %vm6397_vm0, 0, %v19129_v2  ;;  %v19496_v4 = vsel %vm16217_vm8, 0, %v6276_v25  ;;  %v7819_v5 = vsel %vm7787_vm4, 0, %v6276_v25  ;;  %7152 = vst.msk [vmem:[#allocation4 + $0x184] sm:$0xf] %vm6440_vm5, %v6276_v25  ;;  %v7545_v18 = vpop.permute.xlu0 %7544  ;;  %v7945_v2 = vrot.slane %v7943_v7, 4  ;;  %7030 = vrot.lane.b32.xlu0 %v6938_v53, %s15378_s16  ;;  %vm21702_vm9 = vmpackc.low %vm21701_vm6, %vm21701_vm6 }
 0x622   : > { %v13385_v58 = vld [vmem:[#allocation4 + $0xb4] sm:$0xf0]  ;;  %v7946_v29 = vrot.slane %v7819_v5, 5  ;;  %7634 = vst.msk [vmem:[#allocation4 + $0xc4] sm:$0xf] %vm6679_vm14, %v7545_v18  ;;  %v6208_v17 = vpop.f32.mrf.mxu3  ;;  %v7188_v37 = vsel %vm21702_vm9, 0, %v6276_v25  ;;  %v19515_v23 = vpop.f32.mrf.mxu2 }
 0x623   : > { %v6209_v49 = vadd.f32 %v19221_v22, %v6208_v17  ;;  %v7479_v7 = vshll.u32 %v7188_v37, 16  ;;  %v7483_v0 = vshrl.u32 %v7188_v37, 16  ;;  %v6941_v56 = vshrl.u32 %v19496_v4, 16  ;;  %v15170_v17 = vld [vmem:[%s21036_s9 + $0x150] sm:$0xff]  ;;  %v15094_v37 = vld [vmem:[%s21036_s9 + $0x88] sm:$0xff] }
 0x624   : > { %v7551_v52 = vpop.permute.xlu2 %7550  ;;  %v7947_v8 = vsel %vm18079_vm13, %v7945_v2, %v7946_v29  ;;  %v19520_v39 = vor.u32 %v15050_v60, %v13385_v58  ;;  %v7477_v5 = vrot.slane %v7476_v32, 4  ;;  %v6543_v53 = vrot.slane %v6429_v26, 7  ;;  %v15088_v32 = vld [vmem:[%s21036_s9 + $0x58] sm:$0xff]  ;;  %9778 = vmatpush.bf16.msrb.mxu2 %v15170_v17  ;;  %9177 = vmatpush.bf16.msrb.mxu1 %v15094_v37  ;;  %v13487_v37 = vld [vmem:[#allocation4 + $0x170] sm:$0xf] }
 0x625   : > { %7637 = vst.msk [vmem:[#allocation4 + $0xe8] sm:$0xf] %vm6679_vm14, %v7551_v52  ;;  %v6245_v54 = vmax.f32 %v6209_v49, 0.0  ;;  %v7481_v25 = vrot.slane %v7479_v7, 5  ;;  %v19523_v48 = vrot.slane %v6941_v56, 7  ;;  %v6944_v18 = vshll.u32 %v19496_v4, 16  ;;  %9086 = vmatpush.bf16.msrb.mxu0 %v15088_v32 }
 0x626   : > { %21703 = vst [vmem:[#allocation89_spill] sm:$0xff] %v19520_v39  ;;  %8715 = vmatmul.bf16.gmra.mxu1 %v19520_v39  ;;  %v7485_v52 = vrot.slane %v7483_v0, 4  ;;  %v6544_v26 = vsel %vm18370_vm1, %v6542_v28, %v6543_v53  ;;  %v6939_v2 = vrot.slane %v19471_v57, 4  ;;  %v21704_v28 = vld [vmem:[#allocation68_spill] sm:$0xff]  ;;  %v7948_v17 = vrot.slane %v7946_v29, 4 }
 0x627   : > { %8020 = vst.msk [vmem:[#allocation4 + $0x17c] sm:$0xf] %vm6440_vm5, %v7947_v8  ;;  %v19535_v60 = vpack.c.bf16 %v6245_v54, %v6245_v54  ;;  %v7482_v58 = vsel %vm16296_vm11, %v7477_v5, %v7481_v25  ;;  %9036 = vmatmul.bf16.gmra.mxu3 %v19464_v24  ;;  %v6946_v50 = vor.u32 %v6944_v18, %v19523_v48  ;;  %v21705_v49 = vand.u32 15, %v21704_v28  ;;  %v15169_v24 = vld [vmem:[%s21036_s9 + $0x148] sm:$0xff]  ;;  %v13395_v5 = vld [vmem:[#allocation4 + $0xc0] sm:$0xf] }
 0x628   : > { %6631 = vst.msk [vmem:[#allocation4 + $0x12c] sm:$0xf] %vm6440_vm5, %v6544_v26  ;;  %7574 = vrot.lane.b32.xlu2 %v7482_v58, %s15378_s16  ;;  %v7486_v0 = vor.u32 %v7485_v52, %v7481_v25  ;;  %v21708_v25 = vld [vmem:[#allocation69_spill] sm:$0xff]  ;;  %v6545_v52 = vrot.slane %v6543_v53, 4  ;;  %v15054_v57 = vld [vmem:[#allocation4 + $0xc8] sm:$0xf0]  ;;  %9779 = vmatpush.bf16.msrb.mxu2 %v15169_v24 }
 0x629   : > { %vm19549_vm4 = vcmp.lt.s32.totalorder %v21705_v49, 2  ;;  %7153 = vst.msk [vmem:[#allocation4 + $0x190] sm:$0xf] %vm6440_vm5, %v19535_v60  ;;  %v6947_v8 = vsel %vm16304_vm10, %v6939_v2, %v6946_v50  ;;  %v7189_v54 = vsel %vm16217_vm8, 0, %v19535_v60  ;;  %vm21709_vm2 = vnez %v21708_v25 }
 0x62a   : > { %vm21710_vm0 = vmpackc.low %vm21709_vm2, %vm21709_vm2  ;;  %7032 = vrot.lane.b32.xlu0 %v6947_v8, %s15378_s16  ;;  %v6211_v58 = vpop.f32.mrf.mxu3  ;;  %v7489_v2 = vshll.u32 %v7189_v54, 16  ;;  %v7949_v50 = vrot.slane %v7189_v54, 5  ;;  %v19574_v25 = vpop.f32.mrf.mxu2  ;;  %v7487_v32 = vrot.slane %v7486_v0, 4  ;;  %v7493_v53 = vshrl.u32 %v7189_v54, 16 }
 0x62b   : > { %v7547_v56 = vpop.permute.xlu1 %7546  ;;  %v6676_v18 = vsel %vm21710_vm0, 0, %v19535_v60  ;;  %v6212_v49 = vadd.f32 %v19221_v22, %v6211_v58  ;;  %v21711_v29 = vrot.slane %v19203_v20, 7  ;;  %vm7789_vm6 = vmpackc.low %vm19549_vm4, %vm19549_vm4  ;;  %vm21715_vm0 = vcmask 523264  }
 0x62c   : > { %v7553_v26 = vpop.permute.xlu2 %7552  ;;  %7635 = vst.msk [vmem:[#allocation4 + $0xd0] sm:$0xf] %vm6679_vm14, %v7547_v56  ;;  %v6950_v28 = vshrl.u32 %v6676_v18, 16  ;;  %v7491_v8 = vrot.slane %v7489_v2, 5  ;;  %v7950_v33 = vsel %vm18079_vm13, %v7948_v17, %v7949_v50  ;;  %v7495_v54 = vrot.slane %v7493_v53, 4  ;;  %v21713_v17 = vld [vmem:[#allocation54_spill] sm:$0xff]  ;;  %vm21726_vm4 = vmmov %vm21715_vm0 }
 0x62d   : > { %7638 = vst.msk [vmem:[#allocation4 + $0xf4] sm:$0xf] %vm6679_vm14, %v7553_v26  ;;  %v6547_v56 = vsel %vm18370_vm1, %v6545_v52, %v21711_v29  ;;  %v6953_v26 = vshll.u32 %v6676_v18, 16  ;;  %v6246_v58 = vmax.f32 %v6212_v49, 0.0  ;;  %v15168_v52 = vld [vmem:[%s21036_s9 + $0x140] sm:$0xff]  ;;  %v21714_v2 = vand.u32 15, %v21713_v17 }
 0x62e   : > { %v15076_v39 = vld [vmem:[#allocation4 + $0x178] sm:$0xf0]  ;;  %v19582_v62 = vrot.slane %v6950_v28, 7  ;;  %8021 = vst.msk [vmem:[#allocation4 + $0x188] sm:$0xf] %vm6440_vm5, %v7950_v33  ;;  %v13396_v28 = vor.u32 %v15054_v57, %v13395_v5  ;;  %v7492_v24 = vsel %vm16296_vm11, %v7487_v32, %v7491_v8  ;;  %v6948_v18 = vrot.slane %v19523_v48, 4  ;;  %9780 = vmatpush.bf16.msrb.mxu2 %v15168_v52 }
 0x62f   : > { %v19588_v0 = vor.u32 %v15076_v39, %v13487_v37  ;;  %vm6303_vm9 = vcmp.ge.s32.totalorder %v21714_v2, 14  ;;  %6632 = vst.msk [vmem:[#allocation4 + $0x138] sm:$0xf] %vm6440_vm5, %v6547_v56  ;;  %v6278_v33 = vpack.c.bf16 %v6246_v58, %v6246_v58  ;;  %v7496_v5 = vor.u32 %v7495_v54, %v7491_v8  ;;  %v15053_v52 = vld [vmem:[#allocation4 + $0xc4] sm:$0xf] }
 0x630   : > { %v6955_v49 = vor.u32 %v6953_v26, %v19582_v62  ;;  %vm6399_vm2 = vmpackc.low %vm6303_vm9, %vm6303_vm9  ;;  %8631 = vmatmul.bf16.gmra.mxu0 %v13396_v28  ;;  %7576 = vrot.lane.b32.xlu2 %v7492_v24, %s15378_s16  ;;  %v7951_v56 = vrot.slane %v7949_v50, 4  ;;  %v21718_v58 = vrot.slane %v19203_v20, 7  ;;  %v6957_v26 = vrot.slane %v19582_v62, 4  ;;  %v13409_v14 = vld [vmem:[#allocation4 + $0xe4] sm:$0xf0] }
 0x631   : > { %21712 = vst [vmem:[#allocation90_spill] sm:$0xff] %v19588_v0  ;;  %13595 = vmatmul.msk.bf16.gmra.mxu2 %vm21715_vm0, %v19588_v0  ;;  %v6431_v39 = vsel %vm6399_vm2, 0, %v19236_v31  ;;  %v19608_v48 = vsel %vm16217_vm8, 0, %v6278_v33  ;;  %v7821_v37 = vsel %vm7789_vm6, 0, %v6278_v33  ;;  %vm21717_vm9 = vmpackc.low %vm17211_vm7, %vm17211_vm7 }
 0x632   : > { %v6956_v57 = vsel %vm16304_vm10, %v6948_v18, %v6955_v49  ;;  %v6549_v32 = vrot.slane %v6431_v39, 7  ;;  %7154 = vst.msk [vmem:[#allocation4 + $0x19c] sm:$0xf] %vm6440_vm5, %v6278_v33  ;;  %v7952_v29 = vrot.slane %v7821_v37, 5  ;;  %v6213_v8 = vpop.f32.mrf.mxu3  ;;  %v7190_v7 = vsel %vm21717_vm9, 0, %v6278_v33  ;;  %vm21721_vm7 = vmpackc.low %vm17248_vm3, %vm17248_vm3 }
 0x633   : > { %7034 = vrot.lane.b32.xlu1 %v6956_v57, %s15378_s16  ;;  %v7549_v31 = vpop.permute.xlu1 %7548  ;;  %v13397_v53 = vld [vmem:[#allocation4 + $0xcc] sm:$0xf0]  ;;  %v6548_v54 = vrot.slane %v21718_v58, 4  ;;  %v6214_v17 = vadd.f32 %v19221_v22, %v6213_v8  ;;  %v19626_v2 = vpop.f32.mrf.mxu2  ;;  %v7499_v18 = vshll.u32 %v7190_v7, 16  ;;  %v7503_v50 = vshrl.u32 %v7190_v7, 16 }
 0x634   : > { %7636 = vst.msk [vmem:[#allocation4 + $0xdc] sm:$0xf] %vm6679_vm14, %v7549_v31  ;;  %v6959_v49 = vshrl.u32 %v19608_v48, 16  ;;  %v7953_v39 = vsel %vm18079_vm13, %v7951_v56, %v7952_v29  ;;  %v19632_v57 = vor.u32 %v15053_v52, %v13397_v53  ;;  %v7497_v33 = vrot.slane %v7496_v5, 4 }
 0x635   : > { %v6550_v20 = vsel %vm18370_vm1, %v6548_v54, %v6549_v32  ;;  %8022 = vst.msk [vmem:[#allocation4 + $0x194] sm:$0xf] %vm6440_vm5, %v7953_v39  ;;  %v6247_v22 = vmax.f32 %v6214_v17, 0.0  ;;  %v7501_v37 = vrot.slane %v7499_v18, 5  ;;  %v6962_v8 = vshll.u32 %v19608_v48, 16  ;;  %v8597_v54 = vpop.f32.mrf.mxu0 }
 0x636   : > { %v7007_v24 = vpop.permute.xlu0 %7006  ;;  %21719 = vst [vmem:[#allocation91_spill] sm:$0xff] %v19632_v57  ;;  %v6961_v31 = vrot.slane %v6959_v49, 7  ;;  %8720 = vmatmul.bf16.gmra.mxu1 %v19632_v57  ;;  %v6552_v56 = vrot.slane %v19295_v47, 7  ;;  %v6551_v53 = vrot.slane %v6549_v32, 4  ;;  %v7505_v17 = vrot.slane %v7503_v50, 4 }
 0x637   : > { %7094 = vst.msk [vmem:[#allocation4 + $0xe4] sm:$0xf] %vm6679_vm14, %v7007_v24  ;;  %v19642_v5 = vpack.c.bf16 %v6247_v22, %v6247_v22  ;;  %9041 = vmatmul.bf16.gmra.mxu3 %v13396_v28  ;;  %v7502_v7 = vsel %vm16296_vm11, %v7497_v33, %v7501_v37  ;;  %v7954_v62 = vrot.slane %v7952_v29, 4  ;;  %v13407_v32 = vld [vmem:[#allocation4 + $0xd8] sm:$0xf] }
 0x638   : > { %6633 = vst.msk [vmem:[#allocation4 + $0x144] sm:$0xf] %vm6440_vm5, %v6550_v20  ;;  %v6964_v58 = vor.u32 %v6962_v8, %v6961_v31  ;;  %7578 = vrot.lane.b32.xlu0 %v7502_v7, %s15378_s16  ;;  %v6553_v24 = vsel %vm18370_vm1, %v6551_v53, %v6552_v56  ;;  %v13499_v50 = vld [vmem:[#allocation4 + $0x188] sm:$0xf]  ;;  %v7506_v22 = vor.u32 %v7505_v17, %v7501_v37  ;;  %v21722_v53 = vld [vmem:[#allocation58_spill] sm:$0xff] }
 0x639   : > { %7155 = vst.msk [vmem:[#allocation4 + $0x1a8] sm:$0xf] %vm6440_vm5, %v19642_v5  ;;  %v6678_v52 = vsel %vm21721_vm7, 0, %v19642_v5  ;;  %v7191_v18 = vsel %vm16217_vm8, 0, %v19642_v5  ;;  %v21723_v7 = vand.u32 15, %v21722_v53  ;;  %v6966_v53 = vrot.slane %v6961_v31, 4 }
 0x63a   : > { %v6965_v47 = vsel %vm16304_vm10, %v6957_v26, %v6964_v58  ;;  %v19663_v29 = vpop.f32.mrf.mxu3  ;;  %v6968_v49 = vshrl.u32 %v6678_v52, 16  ;;  %v7509_v39 = vshll.u32 %v7191_v18, 16  ;;  %6634 = vst.msk [vmem:[#allocation4 + $0x150] sm:$0xf] %vm6440_vm5, %v6553_v24  ;;  %v7955_v8 = vrot.slane %v7191_v18, 5 }
 0x63b   : > { %7036 = vrot.lane.b32.xlu1 %v6965_v47, %s15378_s16  ;;  %v19666_v33 = vpop.f32.mrf.mxu2  ;;  %v7513_v26 = vshrl.u32 %v7191_v18, 16  ;;  %vm19670_vm3 = vcmp.ge.s32.totalorder %v21723_v7, 14  ;;  %v6971_v9 = vshll.u32 %v6678_v52, 16  ;;  %v7507_v52 = vrot.slane %v7506_v22, 4 }
 0x63c   : > { %v7015_v58 = vpop.permute.xlu2 %7014  ;;  %v15099_v0 = vld [vmem:[#allocation4 + $0x190] sm:$0xf0]  ;;  %v6970_v57 = vrot.slane %v6968_v49, 7  ;;  %v7511_v43 = vrot.slane %v7509_v39, 5  ;;  %vm6401_vm8 = vmpackc.low %vm19670_vm3, %vm19670_vm3  ;;  %v7956_v17 = vsel %vm18079_vm13, %v7954_v62, %v7955_v8  ;;  %v7957_v24 = vrot.slane %v7955_v8, 4 }
 0x63d   : > { %7098 = vst.msk [vmem:[#allocation4 + $0x114] sm:$0xf] %vm6679_vm14, %v7015_v58  ;;  %v13500_v37 = vor.u32 %v15099_v0, %v13499_v50  ;;  %v7515_v18 = vrot.slane %v7513_v26, 4  ;;  %v6433_v49 = vsel %vm6401_vm8, 0, %v19330_v63  ;;  %vm21727_vm13 = vcmask 518144   ;;  %v8599_v31 = vpop.f32.mrf.mxu0 }
 0x63e   : > { %v15057_v20 = vld [vmem:[#allocation4 + $0xe0] sm:$0xf0]  ;;  %v7009_v47 = vpop.permute.xlu0 %7008  ;;  %8023 = vst.msk [vmem:[#allocation4 + $0x1a0] sm:$0xf] %vm6440_vm5, %v7956_v17  ;;  %v6555_v7 = vrot.slane %v6433_v49, 7  ;;  %v6975_v58 = vrot.slane %v6970_v57, 4 }
 0x63f   : > { %v13408_v28 = vor.u32 %v15057_v20, %v13407_v32  ;;  %7095 = vst.msk [vmem:[#allocation4 + $0xf0] sm:$0xf] %vm6679_vm14, %v7009_v47  ;;  %v6973_v32 = vor.u32 %v6971_v9, %v6970_v57  ;;  %v7516_v39 = vor.u32 %v7515_v18, %v7511_v43  ;;  %v6554_v20 = vrot.slane %v6552_v56, 4  ;;  %v15056_v62 = vld [vmem:[#allocation4 + $0xdc] sm:$0xf]  ;;  %v15087_v47 = vld [vmem:[%s21036_s9 + $0x50] sm:$0xff] }
 0x640   : > { %8024 = vst.msk [vmem:[#allocation4 + $0x1ac] sm:$0x7] %vm21727_vm13, %v7957_v24  ;;  %v7512_v9 = vsel %vm16296_vm11, %v7507_v52, %v7511_v43  ;;  %v19701_v26 = vor.u32 %v15056_v62, %v13409_v14  ;;  %v6557_v27 = vrot.slane %v6555_v7, 4  ;;  %9087 = vmatpush.bf16.msrb.mxu0 %v15087_v47  ;;  %v15121_v57 = vld [vmem:[#allocation4 + $0x38] sm:$0xf0]  ;;  %v21729_v18 = vld [vmem:[#allocation62_spill] sm:$0xff] }
 0x641   : > { %13596 = vmatmul.msk.bf16.gmra.mxu2 %vm21726_vm4, %v13500_v37  ;;  %8636 = vmatmul.bf16.gmra.mxu0 %v13408_v28  ;;  %v6974_v46 = vsel %vm16304_vm10, %v6966_v53, %v6973_v32  ;;  %v7517_v63 = vrot.slane %v7516_v39, 4  ;;  %v6556_v50 = vsel %vm18370_vm1, %v6554_v20, %v6555_v7  ;;  %v21730_v53 = vand.u32 15, %v21729_v18  ;;  %v13747_v20 = vld [vmem:[#allocation4 + $0x30] sm:$0xf] }
 0x642   : > { %v8686_v0 = vpop.f32.mrf.mxu1  ;;  %7038 = vrot.lane.b32.xlu2 %v6974_v46, %s15378_s16  ;;  %v19695_v34 = vpop.f32.mrf.mxu3  ;;  %6635 = vst.msk [vmem:[#allocation4 + $0x15c] sm:$0xf] %vm6440_vm5, %v6556_v50  ;;  %vm21737_vm7 = vcmask 516096  }
 0x643   : > { %v19692_v56 = vadd.f32 %v8686_v0, %v8597_v54  ;;  %7580 = vrot.lane.b32.xlu1 %v7512_v9, %s15378_s16  ;;  %7582 = vrot.lane.b32.xlu0 %v7517_v63, %s15378_s16  ;;  %21728 = vst [vmem:[#allocation75_spill] sm:$0xff] %v19701_v26  ;;  %v6558_v54 = vrot.slane %v19396_v42, 7  ;;  %vm6307_vm11 = vcmp.ge.s32.totalorder %v21730_v53, 14  ;;  %v13748_v0 = vor.u32 %v15121_v57, %v13747_v20 }
 0x644   : > { %v19698_v22 = vpop.f32.mrf.mxu2  ;;  %v7017_v43 = vpop.permute.xlu2 %7016  ;;  %vm6403_vm10 = vmpackc.low %vm6307_vm11, %vm6307_vm11 }
 0x645   : > { %v7011_v8 = vpop.permute.xlu1 %7010  ;;  %7099 = vst.msk [vmem:[#allocation4 + $0x120] sm:$0xf] %vm6679_vm14, %v7017_v43  ;;  %v6559_v37 = vsel %vm18370_vm1, %v6557_v27, %v6558_v54  ;;  %v6435_v7 = vsel %vm6403_vm10, 0, %v19432_v44  ;;  %v6560_v9 = vrot.slane %v6558_v54, 4  ;;  %v15059_v54 = vld [vmem:[#allocation4 + $0xf4] sm:$0xf]  ;;  %v8776_v41 = vadd.f32 %v18998_v1, %v19692_v56 }
 0x646   : > { %7096 = vst.msk [vmem:[#allocation4 + $0xfc] sm:$0xf] %vm6679_vm14, %v7011_v8  ;;  %8725 = vmatmul.bf16.gmra.mxu1 %v19701_v26  ;;  %v13419_v39 = vld [vmem:[#allocation4 + $0xf0] sm:$0xf]  ;;  %v6561_v63 = vrot.slane %v6435_v7, 7 }
 0x647   : > { %9046 = vmatmul.bf16.gmra.mxu3 %v13408_v28  ;;  %6636 = vst.msk [vmem:[#allocation4 + $0x168] sm:$0xf] %vm6440_vm5, %v6559_v37  ;;  %v13783_v56 = vld [vmem:[#allocation4 + $0x78] sm:$0xf] }
 0x648   : > { %v6562_v62 = vsel %vm18370_vm1, %v6560_v9, %v6561_v63 }
 0x649   : > { %6637 = vst.msk [vmem:[#allocation4 + $0x174] sm:$0xf] %vm6440_vm5, %v6562_v62  ;;  %v15063_v62 = vld [vmem:[#allocation4 + $0x110] sm:$0xf0] }
 0x64a   : > { %v8688_v17 = vpop.f32.mrf.mxu1  ;;  %v7555_v24 = vpop.permute.xlu0 %7554  ;;  %7040 = vrot.lane.b32.xlu2 %v6975_v58, %s15378_s16 }
 0x64b   : > { %v19714_v42 = vadd.f32 %v8688_v17, %v8599_v31  ;;  %7639 = vst.msk [vmem:[#allocation4 + $0x100] sm:$0xf] %vm6679_vm14, %v7555_v24  ;;  %v19717_v28 = vpop.f32.mrf.mxu3  ;;  %v8602_v49 = vpop.f32.mrf.mxu0  ;;  %v6563_v17 = vrot.slane %v6561_v63, 4  ;;  %v6564_v24 = vrot.slane %v19496_v4, 7 }
 0x64c   : > { %v19721_v32 = vpop.f32.mrf.mxu2 }
 0x64d   : > { %v7013_v52 = vpop.permute.xlu1 %7012  ;;  %v15060_v46 = vld [vmem:[#allocation4 + $0xf8] sm:$0xf0]  ;;  %v6565_v57 = vsel %vm18370_vm1, %v6563_v17, %v6564_v24 }
 0x64e   : > { %7097 = vst.msk [vmem:[#allocation4 + $0x108] sm:$0xf] %vm6679_vm14, %v7013_v52  ;;  %v13420_v31 = vor.u32 %v15060_v46, %v13419_v39  ;;  %v15124_v39 = vld [vmem:[#allocation4 + $0x50] sm:$0xf0] }
 0x64f   : > { %6638 = vst.msk [vmem:[#allocation4 + $0x180] sm:$0xf] %vm6440_vm5, %v6565_v57 }
 0x651   : > { %9781 = vmatmul.bf16.vlgmr.msrb.gmra.mxu2 %v13748_v0  ;;  %8641 = vmatmul.bf16.gmra.mxu0 %v13420_v31  ;;  %v7563_v43 = vpop.permute.xlu2 %7562  ;;  %v13759_v0 = vld [vmem:[#allocation4 + $0x48] sm:$0xf] }
 0x652   : > { %v7557_v50 = vpop.permute.xlu0 %7556  ;;  %v13421_v14 = vld [vmem:[#allocation4 + $0xfc] sm:$0xf0]  ;;  %7643 = vst.msk [vmem:[#allocation4 + $0x130] sm:$0xf] %vm6679_vm14, %v7563_v43 }
 0x653   : > { %7640 = vst.msk [vmem:[#allocation4 + $0x10c] sm:$0xf] %vm6679_vm14, %v7557_v50  ;;  %v19729_v44 = vpop.f32.mrf.mxu3  ;;  %v8604_v27 = vpop.f32.mrf.mxu0  ;;  %v19734_v47 = vor.u32 %v15059_v54, %v13421_v14  ;;  %v13760_v50 = vor.u32 %v15124_v39, %v13759_v0  ;;  %v6566_v14 = vrot.slane %v6564_v24, 4  ;;  %v15086_v0 = vld [vmem:[%s21036_s9 + $0x48] sm:$0xff] }
 0x654   : > { %v19732_v8 = vpop.f32.mrf.mxu2  ;;  %v8691_v58 = vpop.f32.mrf.mxu1  ;;  %9088 = vmatpush.bf16.msrb.mxu0 %v15086_v0 }
 0x655   : > { %21731 = vst [vmem:[#allocation73_spill] sm:$0xff] %v19734_v47  ;;  %v19736_v37 = vadd.f32 %v8691_v58, %v8602_v49  ;;  %v21732_v49 = vld [vmem:[#allocation66_spill] sm:$0xff]  ;;  %v13431_v7 = vld [vmem:[#allocation4 + $0x108] sm:$0xf] }
 0x656   : > { %8730 = vmatmul.bf16.gmra.mxu1 %v19734_v47  ;;  %v21733_v20 = vand.u32 15, %v21732_v49  ;;  %v13432_v54 = vor.u32 %v15063_v62, %v13431_v7  ;;  %v6570_v7 = vrot.slane %v19608_v48, 7  ;;  %v15127_v62 = vld [vmem:[#allocation4 + $0x68] sm:$0xf0] }
 0x657   : > { %9051 = vmatmul.bf16.gmra.mxu3 %v13420_v31 }
 0x658   : > { %vm6309_vm6 = vcmp.ge.s32.totalorder %v21733_v20, 14 }
 0x659   : > { %v7565_v53 = vpop.permute.xlu2 %7564  ;;  %vm6405_vm2 = vmpackc.low %vm6309_vm6, %vm6309_vm6 }
 0x65a   : > { %7644 = vst.msk [vmem:[#allocation4 + $0x13c] sm:$0xf] %vm6679_vm14, %v7565_v53  ;;  %v6437_v9 = vsel %vm6405_vm2, 0, %v19535_v60 }
 0x65b   : > { %v7559_v18 = vpop.permute.xlu1 %7558  ;;  %v19744_v52 = vpop.f32.mrf.mxu3  ;;  %v6567_v43 = vrot.slane %v6437_v9, 7  ;;  %v15093_v9 = vld [vmem:[%s21036_s9 + $0x80] sm:$0xff] }
 0x65c   : > { %7641 = vst.msk [vmem:[#allocation4 + $0x118] sm:$0xf] %vm6679_vm14, %v7559_v18  ;;  %v19749_v4 = vpop.f32.mrf.mxu2  ;;  %v8693_v46 = vpop.f32.mrf.mxu1  ;;  %v15062_v18 = vld [vmem:[#allocation4 + $0x10c] sm:$0xf]  ;;  %9178 = vmatpush.bf16.msrb.mxu1 %v15093_v9 }
 0x65d   : > { %v8607_v63 = vpop.f32.mrf.mxu0  ;;  %v19752_v31 = vadd.f32 %v8693_v46, %v8604_v27  ;;  %v6568_v58 = vsel %vm18370_vm1, %v6566_v14, %v6567_v43  ;;  %v6569_v46 = vrot.slane %v6567_v43, 4 }
 0x65e   : > { %6639 = vst.msk [vmem:[#allocation4 + $0x18c] sm:$0xf] %vm6440_vm5, %v6568_v58 }
 0x661   : > { %9786 = vmatmul.bf16.gmra.mxu2 %v13760_v50  ;;  %8646 = vmatmul.bf16.gmra.mxu0 %v13432_v54  ;;  %v21735_v50 = vld [vmem:[#allocation71_spill] sm:$0xff] }
 0x662   : > { %v21736_v14 = vand.u32 15, %v21735_v50 }
 0x663   : > { %v7561_v17 = vpop.permute.xlu1 %7560  ;;  %v13433_v57 = vld [vmem:[#allocation4 + $0x114] sm:$0xf0]  ;;  %v19758_v60 = vpop.f32.mrf.mxu3 }
 0x664   : > { %7642 = vst.msk [vmem:[#allocation4 + $0x124] sm:$0xf] %vm6679_vm14, %v7561_v17  ;;  %v19760_v27 = vpop.f32.mrf.mxu2  ;;  %v8696_v53 = vpop.f32.mrf.mxu1  ;;  %v19762_v39 = vor.u32 %v15062_v18, %v13433_v57  ;;  %vm6311_vm0 = vcmp.ge.s32.totalorder %v21736_v14, 14  ;;  %v13443_v57 = vld [vmem:[#allocation4 + $0x120] sm:$0xf]  ;;  %v6572_v14 = vrot.slane %v6570_v7, 4 }
 0x665   : > { %v7019_v24 = vpop.permute.xlu0 %7018  ;;  %v19764_v49 = vadd.f32 %v8696_v53, %v8607_v63  ;;  %v8609_v20 = vpop.f32.mrf.mxu0  ;;  %v6571_v63 = vsel %vm18370_vm1, %v6569_v46, %v6570_v7  ;;  %vm6407_vm9 = vmpackc.low %vm6311_vm0, %vm6311_vm0 }
 0x666   : > { %21734 = vst [vmem:[#allocation6_spill] sm:$0xff] %v19762_v39  ;;  %8735 = vmatmul.bf16.gmra.mxu1 %v19762_v39 }
 0x667   : > { %7100 = vst.msk [vmem:[#allocation4 + $0x12c] sm:$0xf] %vm6679_vm14, %v7019_v24  ;;  %9056 = vmatmul.bf16.gmra.mxu3 %v13432_v54  ;;  %v13771_v54 = vld [vmem:[#allocation4 + $0x60] sm:$0xf]  ;;  %v6439_v24 = vsel %vm6407_vm9, 0, %v19642_v5 }
 0x668   : > { %6640 = vst.msk [vmem:[#allocation4 + $0x198] sm:$0xf] %vm6440_vm5, %v6571_v63  ;;  %v13772_v53 = vor.u32 %v15127_v62, %v13771_v54  ;;  %v6573_v50 = vrot.slane %v6439_v24, 7  ;;  %v19810_v24 = vadd.f32 %v19663_v29, %v8776_v41  ;;  %v15182_v41 = vld [vmem:[%s21036_s9 + $0x1b0] sm:$0xff] }
 0x66a   : > { %v6574_v39 = vsel %vm18370_vm1, %v6572_v14, %v6573_v50  ;;  %v6575_v47 = vrot.slane %v6573_v50, 4  ;;  %vm21749_vm1 = vmmov %vm21726_vm4 }
 0x66b   : > { %v19778_v48 = vpop.f32.mrf.mxu3  ;;  %6641 = vst.msk [vmem:[#allocation4 + $0x1a4] sm:$0xf] %vm6440_vm5, %v6574_v39  ;;  %v15065_v5 = vld [vmem:[#allocation4 + $0x124] sm:$0xf]  ;;  %vm21747_vm5 = vnez %v21570_v35  ;;  %v13831_v35 = vld [vmem:[#allocation4 + $0xd8] sm:$0xf]  ;;  %vm21752_vm3 = vmmov %vm21749_vm1 }
 0x66c   : > { %v19782_v43 = vpop.f32.mrf.mxu2  ;;  %v7027_v58 = vpop.permute.xlu2 %7026  ;;  %6642 = vst.msk [vmem:[#allocation4 + $0x1b0] sm:$0x1] %vm21737_vm7, %v6575_v47  ;;  %v15183_v47 = vld [vmem:[%s21036_s9 + $0x1b8] sm:$0xff]  ;;  %vm21754_vm8 = vmmov %vm21749_vm1 }
 0x66d   : > { %v8698_v17 = vpop.f32.mrf.mxu1  ;;  %7104 = vst.msk [vmem:[#allocation4 + $0x15c] sm:$0xf] %vm6679_vm14, %v7027_v58  ;;  %v7021_v0 = vpop.permute.xlu0 %7020  ;;  %v13445_v58 = vld [vmem:[#allocation4 + $0x12c] sm:$0xf0]  ;;  %9862 = vmatpush.bf16.msra.mxu3 %v15183_v47  ;;  %vm21759_vm4 = vmmov %vm21749_vm1 }
 0x66e   : > { %v15066_v18 = vld [vmem:[#allocation4 + $0x128] sm:$0xf0]  ;;  %v19786_v46 = vadd.f32 %v8698_v17, %v8609_v20  ;;  %v8612_v9 = vpop.f32.mrf.mxu0  ;;  %7101 = vst.msk [vmem:[#allocation4 + $0x138] sm:$0xf] %vm6679_vm14, %v7021_v0  ;;  %vm21764_vm13 = vmmov %vm21749_vm1 }
 0x66f   : > { %v13444_v63 = vor.u32 %v15066_v18, %v13443_v57  ;;  %v19798_v57 = vor.u32 %v15065_v5, %v13445_v58  ;;  %v8778_v58 = vadd.f32 %v19047_v55, %v19714_v42  ;;  %vm21769_vm11 = vmmov %vm21749_vm1 }
 0x670   : > { %vm21775_vm10 = vmmov %vm21749_vm1 }
 0x671   : > { %9791 = vmatmul.bf16.gmra.mxu2 %v13772_v53  ;;  %8651 = vmatmul.bf16.gmra.mxu0 %v13444_v63  ;;  %21738 = vst [vmem:[#allocation74_spill] sm:$0xff] %v19798_v57  ;;  %v19829_v55 = vadd.f32 %v19695_v34, %v8778_v58  ;;  %v8781_v34 = vadd.f32 %v19110_v15, %v19736_v37  ;;  %vm21782_vm6 = vmmov %vm21749_vm1 }
 0x672   : > { %9863 = vmatpush.bf16.msra.mxu3 %v15182_v41  ;;  %vm21788_vm2 = vmmov %vm21749_vm1 }
 0x673   : > { %v19793_v20 = vpop.f32.mrf.mxu3  ;;  %v7023_v54 = vpop.permute.xlu1 %7022  ;;  %21739 = vst [vmem:[#allocation8_spill] sm:$0xff] %v19829_v55  ;;  %v15176_v55 = vld [vmem:[%s21036_s9 + $0x180] sm:$0xff]  ;;  %vm21794_vm0 = vmmov %vm21749_vm1 }
 0x674   : > { %v19795_v62 = vpop.f32.mrf.mxu2  ;;  %v7029_v7 = vpop.permute.xlu2 %7028  ;;  %7102 = vst.msk [vmem:[#allocation4 + $0x144] sm:$0xf] %vm6679_vm14, %v7023_v54  ;;  %v15130_v54 = vld [vmem:[#allocation4 + $0x80] sm:$0xf0]  ;;  %v15072_v37 = vld [vmem:[#allocation4 + $0x158] sm:$0xf0]  ;;  %vm21799_vm9 = vmmov %vm21794_vm0 }
 0x675   : > { %v8701_v17 = vpop.f32.mrf.mxu1  ;;  %7105 = vst.msk [vmem:[#allocation4 + $0x168] sm:$0xf] %vm6679_vm14, %v7029_v7  ;;  %vm21806_vm7 = vmmov %vm21794_vm0 }
 0x676   : > { %v8614_v39 = vpop.f32.mrf.mxu0  ;;  %v19803_v18 = vadd.f32 %v8701_v17, %v8612_v9  ;;  %8740 = vmatmul.bf16.gmra.mxu1 %v19798_v57  ;;  %v13455_v9 = vld [vmem:[#allocation4 + $0x138] sm:$0xf]  ;;  %v13784_v17 = vor.u32 %v15130_v54, %v13783_v56 }
 0x677   : > { %9061 = vmatmul.bf16.gmra.mxu3 %v13444_v63 }
 0x679   : > { %v7567_v53 = vpop.permute.xlu0 %7566 }
 0x67a   : > { %7645 = vst.msk [vmem:[#allocation4 + $0x148] sm:$0xf] %vm6679_vm14, %v7567_v53 }
 0x67b   : > { %v19813_v1 = vpop.f32.mrf.mxu3  ;;  %v15069_v50 = vld [vmem:[#allocation4 + $0x140] sm:$0xf0]  ;;  %v7025_v14 = vpop.permute.xlu1 %7024 }
 0x67c   : > { %v19815_v0 = vpop.f32.mrf.mxu2  ;;  %v13456_v5 = vor.u32 %v15069_v50, %v13455_v9  ;;  %7103 = vst.msk [vmem:[#allocation4 + $0x150] sm:$0xf] %vm6679_vm14, %v7025_v14  ;;  %v15181_v9 = vld [vmem:[%s21036_s9 + $0x1a8] sm:$0xff] }
 0x67d   : > { %v8703_v63 = vpop.f32.mrf.mxu1  ;;  %v15068_v50 = vld [vmem:[#allocation4 + $0x13c] sm:$0xf]  ;;  %9864 = vmatpush.bf16.msra.mxu3 %v15181_v9  ;;  %v19851_v9 = vadd.f32 %v19717_v28, %v8781_v34  ;;  %v15085_v28 = vld [vmem:[%s21036_s9 + $0x40] sm:$0xff] }
 0x67e   : > { %v8617_v29 = vpop.f32.mrf.mxu0  ;;  %v19820_v7 = vadd.f32 %v8703_v63, %v8614_v39  ;;  %9089 = vmatpush.bf16.msrb.mxu0 %v15085_v28  ;;  %v15178_v28 = vld [vmem:[%s21036_s9 + $0x190] sm:$0xff] }
 0x67f   : > { %21741 = vst [vmem:[#allocation10_spill] sm:$0xff] %v19851_v9 }
 0x681   : > { %9796 = vmatmul.bf16.gmra.mxu2 %v13784_v17  ;;  %8656 = vmatmul.bf16.gmra.mxu0 %v13456_v5  ;;  %v7569_v47 = vpop.permute.xlu0 %7568  ;;  %v13457_v53 = vld [vmem:[#allocation4 + $0x144] sm:$0xf0] }
 0x682   : > { %v7575_v42 = vpop.permute.xlu2 %7574  ;;  %7646 = vst.msk [vmem:[#allocation4 + $0x154] sm:$0xf] %vm6679_vm14, %v7569_v47  ;;  %v19837_v63 = vor.u32 %v15068_v50, %v13457_v53 }
 0x683   : > { %v19832_v39 = vpop.f32.mrf.mxu3  ;;  %7649 = vst.msk [vmem:[#allocation4 + $0x178] sm:$0xf] %vm6679_vm14, %v7575_v42  ;;  %v15133_v42 = vld [vmem:[#allocation4 + $0x98] sm:$0xf0] }
 0x684   : > { %v19835_v56 = vpop.f32.mrf.mxu2  ;;  %21740 = vst [vmem:[#allocation9_spill] sm:$0xff] %v19837_v63 }
 0x685   : > { %v8706_v14 = vpop.f32.mrf.mxu1 }
 0x686   : > { %v8619_v54 = vpop.f32.mrf.mxu0  ;;  %v19839_v17 = vadd.f32 %v8706_v14, %v8617_v29  ;;  %8745 = vmatmul.bf16.gmra.mxu1 %v19837_v63  ;;  %v13467_v29 = vld [vmem:[#allocation4 + $0x150] sm:$0xf] }
 0x687   : > { %9066 = vmatmul.bf16.gmra.mxu3 %v13456_v5  ;;  %v13795_v14 = vld [vmem:[#allocation4 + $0x90] sm:$0xf]  ;;  %v13468_v57 = vor.u32 %v15072_v37, %v13467_v29 }
 0x688   : > { %v13796_v5 = vor.u32 %v15133_v42, %v13795_v14 }
 0x689   : > { %v15071_v42 = vld [vmem:[#allocation4 + $0x154] sm:$0xf] }
 0x68a   : > { %v7571_v58 = vpop.permute.xlu1 %7570  ;;  %v7577_v41 = vpop.permute.xlu2 %7576 }
 0x68b   : > { %7647 = vst.msk [vmem:[#allocation4 + $0x160] sm:$0xf] %vm6679_vm14, %v7571_v58  ;;  %v19845_v47 = vpop.f32.mrf.mxu3  ;;  %v8783_v58 = vadd.f32 %v19166_v21, %v19752_v31 }
 0x68c   : > { %7650 = vst.msk [vmem:[#allocation4 + $0x184] sm:$0xf] %vm6679_vm14, %v7577_v41  ;;  %v19848_v53 = vpop.f32.mrf.mxu2  ;;  %v15180_v41 = vld [vmem:[%s21036_s9 + $0x1a0] sm:$0xff] }
 0x68d   : > { %v8708_v50 = vpop.f32.mrf.mxu1  ;;  %9865 = vmatpush.bf16.msra.mxu3 %v15180_v41  ;;  %v19872_v29 = vadd.f32 %v19729_v44, %v8783_v58  ;;  %v8786_v44 = vadd.f32 %v19210_v6, %v19764_v49  ;;  %v15136_v58 = vld [vmem:[#allocation4 + $0xb0] sm:$0xf0]  ;;  %v13479_v6 = vld [vmem:[#allocation4 + $0x168] sm:$0xf] }
 0x68e   : > { %v8622_v63 = vpop.f32.mrf.mxu0  ;;  %v19853_v15 = vadd.f32 %v8708_v50, %v8619_v54  ;;  %v15179_v54 = vld [vmem:[%s21036_s9 + $0x198] sm:$0xff] }
 0x68f   : > { %21742 = vst [vmem:[#allocation11_spill] sm:$0xff] %v19872_v29 }
 0x691   : > { %9801 = vmatmul.bf16.gmra.mxu2 %v13796_v5  ;;  %8661 = vmatmul.bf16.gmra.mxu0 %v13468_v57 }
 0x692   : > { %v7573_v34 = vpop.permute.xlu1 %7572  ;;  %v13469_v26 = vld [vmem:[#allocation4 + $0x15c] sm:$0xf0]  ;;  %9866 = vmatpush.bf16.msra.mxu3 %v15179_v54 }
 0x693   : > { %7648 = vst.msk [vmem:[#allocation4 + $0x16c] sm:$0xf] %vm6679_vm14, %v7573_v34  ;;  %v19867_v21 = vpop.f32.mrf.mxu3  ;;  %v7031_v14 = vpop.permute.xlu0 %7030  ;;  %v19874_v37 = vor.u32 %v15071_v42, %v13469_v26  ;;  %v15177_v26 = vld [vmem:[%s21036_s9 + $0x188] sm:$0xff]  ;;  %v13807_v42 = vld [vmem:[#allocation4 + $0xa8] sm:$0xf] }
 0x694   : > { %v19869_v31 = vpop.f32.mrf.mxu2  ;;  %7106 = vst.msk [vmem:[#allocation4 + $0x174] sm:$0xf] %vm6679_vm14, %v7031_v14  ;;  %v13808_v9 = vor.u32 %v15136_v58, %v13807_v42 }
 0x695   : > { %v8711_v50 = vpop.f32.mrf.mxu1  ;;  %21743 = vst [vmem:[#allocation16_spill] sm:$0xff] %v19874_v37 }
 0x696   : > { %v19876_v5 = vadd.f32 %v8711_v50, %v8622_v63  ;;  %v8624_v41 = vpop.f32.mrf.mxu0  ;;  %8750 = vmatmul.bf16.gmra.mxu1 %v19874_v37  ;;  %9867 = vmatpush.bf16.msra.mxu3 %v15178_v28  ;;  %v19893_v50 = vadd.f32 %v19744_v52, %v8786_v44  ;;  %v8788_v52 = vadd.f32 %v19265_v30, %v19786_v46  ;;  %v7111_v46 = vld [vmem:[#allocation4 + $0x1b0] sm:$0x1] }
 0x697   : > { %9071 = vmatmul.bf16.gmra.mxu3 %v13468_v57 }
 0x698   : > { %v19912_v58 = vadd.f32 %v19758_v60, %v8788_v52  ;;  %v8791_v60 = vadd.f32 %v19310_v38, %v19803_v18  ;;  %v15187_v52 = vld [vmem:[%s21036_s9 + $0x1d8] sm:$0xff] }
 0x699   : > { %9955 = vmatpush.bf16.msra.mxu0 %v15187_v52 }
 0x69a   : > { %9868 = vmatpush.bf16.msra.mxu3 %v15177_v26  ;;  %v15074_v44 = vld [vmem:[#allocation4 + $0x16c] sm:$0xf]  ;;  %21744 = vst [vmem:[#allocation13_spill] sm:$0xff] %v19912_v58  ;;  %v8793_v58 = vadd.f32 %v19359_v36, %v19820_v7  ;;  %v7653_v36 = vld [vmem:[#allocation4 + $0x1a8] sm:$0xf] }
 0x69b   : > { %v19888_v63 = vpop.f32.mrf.mxu3  ;;  %v15075_v49 = vld [vmem:[#allocation4 + $0x170] sm:$0xf0]  ;;  %v15251_v26 = vld [vmem:[%s21036_s9 + $0x258] sm:$0xff] }
 0x69c   : > { %v19890_v34 = vpop.f32.mrf.mxu2  ;;  %v7039_v54 = vpop.permute.xlu2 %7038  ;;  %v13480_v29 = vor.u32 %v15075_v49, %v13479_v6  ;;  %10674 = vmatpush.bf16.msra.mxu2 %v15251_v26 }
 0x69d   : > { %v8713_v14 = vpop.f32.mrf.mxu1  ;;  %v7033_v37 = vpop.permute.xlu0 %7032  ;;  %7110 = vst.msk [vmem:[#allocation4 + $0x1a4] sm:$0xf] %vm6679_vm14, %v7039_v54 }
 0x69e   : > { %v19896_v57 = vadd.f32 %v8713_v14, %v8624_v41  ;;  %7107 = vst.msk [vmem:[#allocation4 + $0x180] sm:$0xf] %vm6679_vm14, %v7033_v37  ;;  %v8627_v28 = vpop.f32.mrf.mxu0  ;;  %9869 = vmatpush.bf16.msra.mxu3 %v15176_v55  ;;  %v13481_v14 = vld [vmem:[#allocation4 + $0x174] sm:$0xf0] }
 0x69f   : > { %v19915_v42 = vor.u32 %v15074_v44, %v13481_v14 }
 0x6a1   : > { %9806 = vmatmul.bf16.gmra.mxu2 %v13808_v9  ;;  %8666 = vmatmul.bf16.gmra.mxu0 %v13480_v29  ;;  %21745 = vst [vmem:[#allocation15_spill] sm:$0xff] %v19915_v42 }
 0x6a3   : > { %v19904_v54 = vpop.f32.mrf.mxu3 }
 0x6a4   : > { %v19906_v41 = vpop.f32.mrf.mxu2  ;;  %v7041_v9 = vpop.permute.xlu2 %7040 }
 0x6a5   : > { %v7035_v37 = vpop.permute.xlu1 %7034  ;;  %v8716_v30 = vpop.f32.mrf.mxu1  ;;  %v7112_v49 = vsel %vm18334_vm12, %v7041_v9, %v7111_v46  ;;  %v13491_v38 = vld [vmem:[#allocation4 + $0x180] sm:$0xf]  ;;  %v15139_v9 = vld [vmem:[#allocation4 + $0xc8] sm:$0xf0]  ;;  %vm21748_vm12 = vnez %v21590_v16 }
 0x6a6   : > { %7108 = vst.msk [vmem:[#allocation4 + $0x18c] sm:$0xf] %vm6679_vm14, %v7035_v37  ;;  %v8629_v55 = vpop.f32.mrf.mxu0  ;;  %v19917_v6 = vadd.f32 %v8716_v30, %v8627_v28  ;;  %8755 = vmatmul.bf16.gmra.mxu1 %v19915_v42  ;;  %v15243_v28 = vld [vmem:[%s21036_s9 + $0x218] sm:$0xff]  ;;  %v13819_v37 = vld [vmem:[#allocation4 + $0xc0] sm:$0xf] }
 0x6a7   : > { %7113 = vst [vmem:[#allocation4 + $0x1b0] sm:$0x1] %v7112_v49  ;;  %9076 = vmatmul.bf16.gmra.mxu3 %v13480_v29  ;;  %10585 = vmatpush.bf16.msra.mxu1 %v15243_v28  ;;  %v19936_v29 = vadd.f32 %v19778_v48, %v8791_v60  ;;  %v13820_v28 = vor.u32 %v15139_v9, %v13819_v37  ;;  %v13749_v9 = vld [vmem:[#allocation4 + $0x3c] sm:$0xf0] }
 0x6a9   : > { %21746 = vst [vmem:[#allocation14_spill] sm:$0xff] %v19936_v29 }
 0x6aa   : > { %v7579_v44 = vpop.permute.xlu0 %7578 }
 0x6ab   : > { %v19930_v19 = vpop.f32.mrf.mxu3  ;;  %7651 = vst.msk [vmem:[#allocation4 + $0x190] sm:$0xf] %vm6679_vm14, %v7579_v44 }
 0x6ac   : > { %v19933_v14 = vpop.f32.mrf.mxu2 }
 0x6ad   : > { %v15098_v18 = vld [vmem:[#allocation4 + $0x188] sm:$0xf0]  ;;  %v8718_v26 = vpop.f32.mrf.mxu1  ;;  %v7037_v30 = vpop.permute.xlu1 %7036 }
 0x6ae   : > { %v13492_v46 = vor.u32 %v15098_v18, %v13491_v38  ;;  %v7114_v49 = vld [vmem:[#allocation4 + $0x1b0] sm:$0xf]  ;;  %v8632_v52 = vpop.f32.mrf.mxu0  ;;  %v19938_v42 = vadd.f32 %v8718_v26, %v8629_v55  ;;  %7109 = vst.msk [vmem:[#allocation4 + $0x198] sm:$0xf] %vm6679_vm14, %v7037_v30  ;;  %v15120_v38 = vld [vmem:[#allocation4 + $0x34] sm:$0xf]  ;;  %v19950_v26 = vadd.f32 %v19793_v20, %v8793_v58  ;;  %v8796_v20 = vadd.f32 %v19407_v61, %v19839_v17 }
 0x6af   : > { %v7115_v44 = vsel %vm18872_vm15, 0, %v7114_v49  ;;  %v15097_v55 = vld [vmem:[#allocation4 + $0x184] sm:$0xf]  ;;  %v8798_v17 = vadd.f32 %v19459_v59, %v19853_v15  ;;  %v13761_v15 = vld [vmem:[#allocation4 + $0x54] sm:$0xf0]  ;;  %vm21751_vm15 = vmmov %vm21749_vm1 }
 0x6b0   : > { %7116 = vst [vmem:[#allocation4 + $0x1b0] sm:$0xf] %v7115_v44  ;;  %v15029_v58 = vld [vmem:[#allocation4 + $0x4] sm:$0xf]  ;;  %v13601_v44 = vld [vmem:[#allocation4 + $0xc] sm:$0xf0] }
 0x6b1   : > { %9811 = vmatmul.bf16.gmra.mxu2 %v13820_v28  ;;  %8671 = vmatmul.bf16.gmra.mxu0 %v13492_v46  ;;  %v13752_v46 = vor.u32 %v15120_v38, %v13749_v9  ;;  %v19980_v59 = vadd.f32 %v19832_v39, %v8798_v17 }
 0x6b2   : > { %v13493_v60 = vld [vmem:[#allocation4 + $0x18c] sm:$0xf0] }
 0x6b3   : > { %v19945_v48 = vpop.f32.mrf.mxu3  ;;  %v13496_v40 = vor.u32 %v15097_v55, %v13493_v60 }
 0x6b4   : > { %v19947_v18 = vpop.f32.mrf.mxu2 }
 0x6b5   : > { %v8721_v37 = vpop.f32.mrf.mxu1  ;;  %v7581_v30 = vpop.permute.xlu1 %7580 }
 0x6b6   : > { %v8634_v49 = vpop.f32.mrf.mxu0  ;;  %v19952_v29 = vadd.f32 %v8721_v37, %v8632_v52  ;;  %7652 = vst.msk [vmem:[#allocation4 + $0x19c] sm:$0xf] %vm6679_vm14, %v7581_v30  ;;  %v7583_v7 = vpop.permute.xlu0 %7582  ;;  %8760 = vmatmul.bf16.gmra.mxu1 %v13496_v40  ;;  %v15142_v52 = vld [vmem:[#allocation4 + $0xe0] sm:$0xf0]  ;;  %v19964_v37 = vadd.f32 %v19813_v1, %v8796_v20  ;;  %v13604_v30 = vor.u32 %v15029_v58, %v13601_v44  ;;  %v15123_v58 = vld [vmem:[#allocation4 + $0x4c] sm:$0xf]  ;;  %vm21750_vm14 = vmmov %vm21749_vm1 }
 0x6b7   : > { %v7654_v28 = vsel %vm21747_vm5, %v7583_v7, %v7653_v36  ;;  %9870 = vmatmul.bf16.vlgmr.msra.gmra.mxu3 %v13752_v46  ;;  %v13832_v36 = vor.u32 %v15142_v52, %v13831_v35  ;;  %v13607_v46 = vld [vmem:[#allocation4 + $0x8] sm:$0xf]  ;;  %v13764_v35 = vor.u32 %v15123_v58, %v13761_v15  ;;  %vm21814_vm5 = vmmov %vm21794_vm0 }
 0x6b8   : > { %7655 = vst [vmem:[#allocation4 + $0x1a8] sm:$0xf] %v7654_v28  ;;  %v15031_v28 = vld [vmem:[#allocation4 + $0x10] sm:$0xf0] }
 0x6b9   : > { %v13608_v20 = vor.u32 %v15031_v28, %v13607_v46  ;;  %v13843_v46 = vld [vmem:[#allocation4 + $0xf0] sm:$0xf] }
 0x6bb   : > { %v19959_v60 = vpop.f32.mrf.mxu3 }
 0x6bc   : > { %v19961_v55 = vpop.f32.mrf.mxu2 }
 0x6bd   : > { %v8723_v38 = vpop.f32.mrf.mxu1 }
 0x6be   : > { %v8637_v9 = vpop.f32.mrf.mxu0  ;;  %v19966_v40 = vadd.f32 %v8723_v38, %v8634_v49  ;;  %v15250_v49 = vld [vmem:[%s21036_s9 + $0x250] sm:$0xff] }
 0x6bf   : > { %v7656_v61 = vld [vmem:[#allocation4 + $0x1a8] sm:$0x8]  ;;  %10675 = vmatpush.bf16.msra.mxu2 %v15250_v49  ;;  %v13773_v49 = vld [vmem:[#allocation4 + $0x6c] sm:$0xf0] }
 0x6c0   : > { %v7657_v7 = vsel %vm21748_vm12, 0, %v7656_v61  ;;  %v15145_v61 = vld [vmem:[#allocation4 + $0xf8] sm:$0xf0]  ;;  %vm21823_vm12 = vmmov %vm21794_vm0 }
 0x6c1   : > { %9816 = vmatmul.bf16.gmra.mxu2 %v13832_v36  ;;  %7658 = vst [vmem:[#allocation4 + $0x1a8] sm:$0x8] %v7657_v7  ;;  %9090 = vmatmul.bf16.vlgmr.msrb.gmra.mxu0 %v13604_v30  ;;  %v8801_v30 = vadd.f32 %v19515_v23, %v19876_v5  ;;  %v15242_v36 = vld [vmem:[%s21036_s9 + $0x210] sm:$0xff]  ;;  %v13844_v23 = vor.u32 %v15145_v61, %v13843_v46  ;;  %v15148_v46 = vld [vmem:[#allocation4 + $0x110] sm:$0xf0] }
 0x6c2   : > { %10586 = vmatpush.bf16.msra.mxu1 %v15242_v36  ;;  %v8803_v5 = vadd.f32 %v19574_v25, %v19896_v57  ;;  %v13855_v57 = vld [vmem:[#allocation4 + $0x108] sm:$0xf] }
 0x6c3   : > { %v19972_v1 = vpop.f32.mrf.mxu3 }
 0x6c4   : > { %v19974_v44 = vpop.f32.mrf.mxu2 }
 0x6c5   : > { %v8726_v16 = vpop.f32.mrf.mxu1 }
 0x6c6   : > { %v8639_v52 = vpop.f32.mrf.mxu0  ;;  %v19982_v38 = vadd.f32 %v8726_v16, %v8637_v9  ;;  %13689 = vmatmul.msk.bf16.vlgmr.msrb.gmra.mxu1 %vm21749_vm1, %v13608_v20  ;;  %v19995_v9 = vadd.f32 %v19845_v47, %v8801_v30  ;;  %v20007_v47 = vadd.f32 %v19867_v21, %v8803_v5  ;;  %v13856_v5 = vor.u32 %v15148_v46, %v13855_v57  ;;  %vm21824_vm1 = vmmov %vm21794_vm0 }
 0x6c7   : > { %9875 = vmatmul.bf16.gmra.mxu3 %v13764_v35  ;;  %v15126_v35 = vld [vmem:[#allocation4 + $0x64] sm:$0xf] }
 0x6c8   : > { %v13776_v36 = vor.u32 %v15126_v35, %v13773_v49 }
 0x6cb   : > { %v19990_v39 = vpop.f32.mrf.mxu3 }
 0x6cc   : > { %v19992_v17 = vpop.f32.mrf.mxu2 }
 0x6cd   : > { %v8728_v7 = vpop.f32.mrf.mxu1 }
 0x6ce   : > { %v8642_v28 = vpop.f32.mrf.mxu0  ;;  %v19997_v20 = vadd.f32 %v8728_v7, %v8639_v52 }
 0x6d1   : > { %9821 = vmatmul.bf16.gmra.mxu2 %v13844_v23  ;;  %9095 = vmatmul.bf16.gmra.mxu0 %v18903_v13  ;;  %v8806_v13 = vadd.f32 %v19626_v2, %v19917_v6  ;;  %v13785_v6 = vld [vmem:[#allocation4 + $0x84] sm:$0xf0] }
 0x6d3   : > { %v20002_v58 = vpop.f32.mrf.mxu3  ;;  %v20020_v21 = vadd.f32 %v19888_v63, %v8806_v13  ;;  %v15249_v63 = vld [vmem:[%s21036_s9 + $0x248] sm:$0xff] }
 0x6d4   : > { %v20004_v16 = vpop.f32.mrf.mxu2  ;;  %10676 = vmatpush.bf16.msra.mxu2 %v15249_v63 }
 0x6d5   : > { %v8731_v15 = vpop.f32.mrf.mxu1 }
 0x6d6   : > { %v8644_v30 = vpop.f32.mrf.mxu0  ;;  %v20009_v52 = vadd.f32 %v8731_v15, %v8642_v28  ;;  %13690 = vmatmul.msk.bf16.gmra.mxu1 %vm21750_vm14, %v18069_v51  ;;  %v8808_v51 = vadd.f32 %v19666_v33, %v19938_v42  ;;  %v15186_v42 = vld [vmem:[%s21036_s9 + $0x1d0] sm:$0xff]  ;;  %vm21827_vm14 = vmmov %vm21794_vm0 }
 0x6d7   : > { %9880 = vmatmul.bf16.gmra.mxu3 %v13776_v36  ;;  %9956 = vmatpush.bf16.msra.mxu0 %v15186_v42 }
 0x6d8   : > { %v20035_v15 = vadd.f32 %v19904_v54, %v8808_v51  ;;  %v15241_v54 = vld [vmem:[%s21036_s9 + $0x208] sm:$0xff] }
 0x6d9   : > { %10587 = vmatpush.bf16.msra.mxu1 %v15241_v54 }
 0x6db   : > { %v20015_v25 = vpop.f32.mrf.mxu3 }
 0x6dc   : > { %v20017_v61 = vpop.f32.mrf.mxu2 }
 0x6dd   : > { %v8733_v7 = vpop.f32.mrf.mxu1 }
 0x6de   : > { %v8647_v28 = vpop.f32.mrf.mxu0  ;;  %v20022_v23 = vadd.f32 %v8733_v7, %v8644_v30  ;;  %v15129_v30 = vld [vmem:[#allocation4 + $0x7c] sm:$0xf]  ;;  %v15151_v7 = vld [vmem:[#allocation4 + $0x128] sm:$0xf0] }
 0x6df   : > { %v13788_v33 = vor.u32 %v15129_v30, %v13785_v6  ;;  %v8813_v6 = vadd.f32 %v19721_v32, %v19966_v40  ;;  %v15154_v40 = vld [vmem:[#allocation4 + $0x140] sm:$0xf0] }
 0x6e1   : > { %9826 = vmatmul.bf16.gmra.mxu2 %v13856_v5  ;;  %9100 = vmatmul.bf16.gmra.mxu0 %v19019_v12  ;;  %v8811_v12 = vadd.f32 %v19698_v22, %v19952_v29  ;;  %v13867_v29 = vld [vmem:[#allocation4 + $0x120] sm:$0xf] }
 0x6e2   : > { %v13868_v51 = vor.u32 %v15151_v7, %v13867_v29  ;;  %v13879_v29 = vld [vmem:[#allocation4 + $0x138] sm:$0xf] }
 0x6e3   : > { %v20027_v2 = vpop.f32.mrf.mxu3 }
 0x6e4   : > { %v20029_v49 = vpop.f32.mrf.mxu2 }
 0x6e5   : > { %v8736_v35 = vpop.f32.mrf.mxu1 }
 0x6e6   : > { %v8649_v36 = vpop.f32.mrf.mxu0  ;;  %v20037_v13 = vadd.f32 %v8736_v35, %v8647_v28  ;;  %13691 = vmatmul.msk.bf16.gmra.mxu1 %vm21751_vm15, %v18182_v10  ;;  %v20054_v10 = vadd.f32 %v19930_v19, %v8811_v12  ;;  %v15132_v35 = vld [vmem:[#allocation4 + $0x94] sm:$0xf]  ;;  %v20066_v19 = vadd.f32 %v19945_v48, %v8813_v6  ;;  %v13797_v12 = vld [vmem:[#allocation4 + $0x9c] sm:$0xf0]  ;;  %v13880_v6 = vor.u32 %v15154_v40, %v13879_v29  ;;  %vm21830_vm15 = vmmov %vm21794_vm0 }
 0x6e7   : > { %9885 = vmatmul.bf16.gmra.mxu3 %v13788_v33  ;;  %v13800_v54 = vor.u32 %v15132_v35, %v13797_v12  ;;  %v15240_v40 = vld [vmem:[%s21036_s9 + $0x200] sm:$0xff] }
 0x6e8   : > { %10588 = vmatpush.bf16.msra.mxu1 %v15240_v40  ;;  %v15138_v40 = vld [vmem:[#allocation4 + $0xc4] sm:$0xf] }
 0x6eb   : > { %v20049_v57 = vpop.f32.mrf.mxu3 }
 0x6ec   : > { %v20051_v46 = vpop.f32.mrf.mxu2 }
 0x6ed   : > { %v8738_v22 = vpop.f32.mrf.mxu1 }
 0x6ee   : > { %v8652_v28 = vpop.f32.mrf.mxu0  ;;  %v20056_v5 = vadd.f32 %v8738_v22, %v8649_v36 }
 0x6f1   : > { %9831 = vmatmul.bf16.gmra.mxu2 %v13868_v51  ;;  %9105 = vmatmul.bf16.gmra.mxu0 %v19113_v3  ;;  %v8816_v3 = vadd.f32 %v19732_v8, %v19982_v38  ;;  %v13809_v38 = vld [vmem:[#allocation4 + $0xb4] sm:$0xf0] }
 0x6f3   : > { %v20061_v63 = vpop.f32.mrf.mxu3  ;;  %v20079_v48 = vadd.f32 %v19959_v60, %v8816_v3  ;;  %v15248_v60 = vld [vmem:[%s21036_s9 + $0x240] sm:$0xff] }
 0x6f4   : > { %v20063_v30 = vpop.f32.mrf.mxu2  ;;  %10677 = vmatpush.bf16.msra.mxu2 %v15248_v60 }
 0x6f5   : > { %v8741_v33 = vpop.f32.mrf.mxu1 }
 0x6f6   : > { %v8654_v42 = vpop.f32.mrf.mxu0  ;;  %v20068_v36 = vadd.f32 %v8741_v33, %v8652_v28  ;;  %13692 = vmatmul.msk.bf16.gmra.mxu1 %vm21752_vm3, %v18269_v11  ;;  %v8818_v11 = vadd.f32 %v19749_v4, %v19997_v20  ;;  %v8821_v20 = vadd.f32 %v19760_v27, %v20009_v52  ;;  %v8823_v52 = vadd.f32 %v19782_v43, %v20022_v23  ;;  %vm21834_vm3 = vmmov %vm21794_vm0 }
 0x6f7   : > { %9890 = vmatmul.bf16.gmra.mxu3 %v13800_v54  ;;  %v8826_v43 = vadd.f32 %v19795_v62, %v20037_v13  ;;  %v21761_v62 = vld [vmem:[#allocation87_spill] sm:$0xff] }
 0x6f8   : > { %v20094_v33 = vadd.f32 %v19972_v1, %v8818_v11  ;;  %v15157_v11 = vld [vmem:[#allocation4 + $0x158] sm:$0xf0]  ;;  %v15247_v13 = vld [vmem:[%s21036_s9 + $0x238] sm:$0xff] }
 0x6f9   : > { %10678 = vmatpush.bf16.msra.mxu2 %v15247_v13 }
 0x6fb   : > { %v20074_v32 = vpop.f32.mrf.mxu3 }
 0x6fc   : > { %v20076_v7 = vpop.f32.mrf.mxu2 }
 0x6fd   : > { %v8743_v22 = vpop.f32.mrf.mxu1 }
 0x6fe   : > { %v8657_v28 = vpop.f32.mrf.mxu0  ;;  %v20081_v51 = vadd.f32 %v8743_v22, %v8654_v42  ;;  %v15135_v42 = vld [vmem:[#allocation4 + $0xac] sm:$0xf]  ;;  %v13891_v22 = vld [vmem:[#allocation4 + $0x150] sm:$0xf] }
 0x6ff   : > { %v13812_v4 = vor.u32 %v15135_v42, %v13809_v38  ;;  %v13892_v27 = vor.u32 %v15157_v11, %v13891_v22  ;;  %v15160_v11 = vld [vmem:[#allocation4 + $0x170] sm:$0xf0] }
 0x701   : > { %9836 = vmatmul.bf16.gmra.mxu2 %v13880_v6  ;;  %9110 = vmatmul.bf16.gmra.mxu0 %v19227_v45  ;;  %v21753_v45 = vld [vmem:[#allocation78_spill] sm:$0xff] }
 0x703   : > { %v20086_v8 = vpop.f32.mrf.mxu3 }
 0x704   : > { %v20088_v35 = vpop.f32.mrf.mxu2 }
 0x705   : > { %v8746_v12 = vpop.f32.mrf.mxu1 }
 0x706   : > { %v8659_v54 = vpop.f32.mrf.mxu0  ;;  %v20096_v3 = vadd.f32 %v8746_v12, %v8657_v28  ;;  %13693 = vmatmul.msk.bf16.gmra.mxu1 %vm21754_vm8, %v21753_v45  ;;  %v20110_v28 = vadd.f32 %v19990_v39, %v8821_v20  ;;  %v21756_v12 = vld [vmem:[#allocation84_spill] sm:$0xff]  ;;  %v20122_v39 = vadd.f32 %v20002_v58, %v8823_v52  ;;  %v20135_v58 = vadd.f32 %v20015_v25, %v8826_v43  ;;  %v15141_v25 = vld [vmem:[#allocation4 + $0xdc] sm:$0xf]  ;;  %vm21837_vm8 = vmmov %vm21794_vm0 }
 0x707   : > { %9895 = vmatmul.bf16.gmra.mxu3 %v13812_v4  ;;  %v13821_v4 = vld [vmem:[#allocation4 + $0xcc] sm:$0xf0] }
 0x708   : > { %v13824_v22 = vor.u32 %v15138_v40, %v13821_v4  ;;  %v8828_v40 = vadd.f32 %v19815_v0, %v20056_v5 }
 0x70b   : > { %v20105_v1 = vpop.f32.mrf.mxu3 }
 0x70c   : > { %v20107_v29 = vpop.f32.mrf.mxu2 }
 0x70d   : > { %21755 = vst [vmem:[#allocation17_spill] sm:$0xff] %v20107_v29  ;;  %v8748_v6 = vpop.f32.mrf.mxu1 }
 0x70e   : > { %v8662_v38 = vpop.f32.mrf.mxu0  ;;  %v20112_v60 = vadd.f32 %v8748_v6, %v8659_v54  ;;  %v21758_v6 = vld [vmem:[#allocation76_spill] sm:$0xff] }
 0x711   : > { %9841 = vmatmul.bf16.gmra.mxu2 %v13892_v27  ;;  %9115 = vmatmul.bf16.gmra.mxu0 %v21756_v12  ;;  %v13903_v12 = vld [vmem:[#allocation4 + $0x168] sm:$0xf] }
 0x712   : > { %v13904_v4 = vor.u32 %v15160_v11, %v13903_v12  ;;  %v13833_v11 = vld [vmem:[#allocation4 + $0xe4] sm:$0xf0]  ;;  %v21763_v12 = vld [vmem:[#allocation77_spill] sm:$0xff] }
 0x713   : > { %v20117_v42 = vpop.f32.mrf.mxu3  ;;  %v13836_v5 = vor.u32 %v15141_v25, %v13833_v11  ;;  %v15163_v25 = vld [vmem:[#allocation4 + $0x188] sm:$0xf0] }
 0x714   : > { %v20119_v45 = vpop.f32.mrf.mxu2 }
 0x715   : > { %21757 = vst [vmem:[#allocation19_spill] sm:$0xff] %v20119_v45  ;;  %v8751_v20 = vpop.f32.mrf.mxu1  ;;  %v21768_v45 = vld [vmem:[#allocation81_spill] sm:$0xff] }
 0x716   : > { %v8664_v29 = vpop.f32.mrf.mxu0  ;;  %v20124_v54 = vadd.f32 %v8751_v20, %v8662_v38  ;;  %13694 = vmatmul.msk.bf16.gmra.mxu1 %vm21759_vm4, %v21758_v6  ;;  %vm21840_vm4 = vmmov %vm21794_vm0 }
 0x717   : > { %9900 = vmatmul.bf16.gmra.mxu3 %v13824_v22 }
 0x71b   : > { %v20130_v23 = vpop.f32.mrf.mxu3 }
 0x71c   : > { %v20132_v27 = vpop.f32.mrf.mxu2 }
 0x71d   : > { %21760 = vst [vmem:[#allocation7_spill] sm:$0xff] %v20132_v27  ;;  %v8753_v52 = vpop.f32.mrf.mxu1 }
 0x71e   : > { %v8667_v38 = vpop.f32.mrf.mxu0  ;;  %v20137_v20 = vadd.f32 %v8753_v52, %v8664_v29  ;;  %v20150_v29 = vadd.f32 %v20027_v2, %v8828_v40  ;;  %v15239_v2 = vld [vmem:[%s21036_s9 + $0x1f8] sm:$0xff]  ;;  %v15245_v40 = vld [vmem:[%s21036_s9 + $0x228] sm:$0xff] }
 0x71f   : > { %10589 = vmatpush.bf16.msra.mxu1 %v15239_v2  ;;  %v21766_v2 = vld [vmem:[#allocation89_spill] sm:$0xff] }
 0x721   : > { %9846 = vmatmul.bf16.gmra.mxu2 %v13904_v4  ;;  %9120 = vmatmul.bf16.gmra.mxu0 %v21761_v62  ;;  %v15246_v4 = vld [vmem:[%s21036_s9 + $0x230] sm:$0xff]  ;;  %v15185_v62 = vld [vmem:[%s21036_s9 + $0x1c8] sm:$0xff] }
 0x722   : > { %10679 = vmatpush.bf16.msra.mxu2 %v15246_v4  ;;  %9957 = vmatpush.bf16.msra.mxu0 %v15185_v62  ;;  %v15244_v4 = vld [vmem:[%s21036_s9 + $0x220] sm:$0xff]  ;;  %v8833_v62 = vadd.f32 %v19848_v53, %v20081_v51  ;;  %v8836_v53 = vadd.f32 %v19869_v31, %v20096_v3  ;;  %v8838_v31 = vadd.f32 %v19890_v34, %v20112_v60  ;;  %v21771_v3 = vld [vmem:[#allocation91_spill] sm:$0xff]  ;;  %v15238_v34 = vld [vmem:[%s21036_s9 + $0x1f0] sm:$0xff] }
 0x723   : > { %v20145_v22 = vpop.f32.mrf.mxu3  ;;  %v8841_v60 = vadd.f32 %v19906_v41, %v20124_v54  ;;  %10590 = vmatpush.bf16.msra.mxu1 %v15238_v34  ;;  %v8843_v41 = vadd.f32 %v19933_v14, %v20137_v20  ;;  %v21778_v54 = vld [vmem:[#allocation75_spill] sm:$0xff]  ;;  %v15150_v34 = vld [vmem:[#allocation4 + $0x124] sm:$0xf] }
 0x724   : > { %v20147_v6 = vpop.f32.mrf.mxu2 }
 0x725   : > { %21762 = vst [vmem:[#allocation20_spill] sm:$0xff] %v20147_v6  ;;  %v8756_v43 = vpop.f32.mrf.mxu1  ;;  %v13915_v6 = vld [vmem:[#allocation4 + $0x180] sm:$0xf] }
 0x726   : > { %v8669_v52 = vpop.f32.mrf.mxu0  ;;  %v20152_v0 = vadd.f32 %v8756_v43, %v8667_v38  ;;  %13695 = vmatmul.msk.bf16.gmra.mxu1 %vm21764_vm13, %v21763_v12  ;;  %v8831_v38 = vadd.f32 %v19835_v56, %v20068_v36  ;;  %10680 = vmatpush.bf16.msra.mxu2 %v15245_v40  ;;  %v15144_v40 = vld [vmem:[#allocation4 + $0xf4] sm:$0xf]  ;;  %vm21843_vm13 = vmmov %vm21794_vm0 }
 0x727   : > { %9905 = vmatmul.bf16.gmra.mxu3 %v13836_v5  ;;  %v13916_v5 = vor.u32 %v15163_v25, %v13915_v6 }
 0x728   : > { %v20175_v11 = vadd.f32 %v20049_v57, %v8831_v38  ;;  %v13845_v38 = vld [vmem:[#allocation4 + $0xfc] sm:$0xf0]  ;;  %v8846_v14 = vadd.f32 %v19947_v18, %v20152_v0  ;;  %v21784_v0 = vld [vmem:[#allocation73_spill] sm:$0xff] }
 0x729   : > { %v13848_v27 = vor.u32 %v15144_v40, %v13845_v38  ;;  %v13857_v40 = vld [vmem:[#allocation4 + $0x114] sm:$0xf0] }
 0x72a   : > { %10681 = vmatpush.bf16.msra.mxu2 %v15244_v4 }
 0x72b   : > { %v20170_v13 = vpop.f32.mrf.mxu3 }
 0x72c   : > { %v20172_v43 = vpop.f32.mrf.mxu2 }
 0x72d   : > { %21765 = vst [vmem:[#allocation21_spill] sm:$0xff] %v20172_v43  ;;  %v8758_v12 = vpop.f32.mrf.mxu1 }
 0x72e   : > { %v8672_v56 = vpop.f32.mrf.mxu0  ;;  %v20177_v36 = vadd.f32 %v8758_v12, %v8669_v52  ;;  %v20190_v52 = vadd.f32 %v20061_v63, %v8833_v62  ;;  %v15166_v62 = vld [vmem:[#allocation4 + $0x1a0] sm:$0xf0] }
 0x730   : > { %v8848_v18 = vadd.f32 %v19961_v55, %v20177_v36  ;;  %v15184_v55 = vld [vmem:[%s21036_s9 + $0x1c0] sm:$0xff]  ;;  %v15237_v36 = vld [vmem:[%s21036_s9 + $0x1e8] sm:$0xff] }
 0x731   : > { %9851 = vmatmul.bf16.gmra.mxu2 %v13916_v5  ;;  %9125 = vmatmul.bf16.gmra.mxu0 %v21766_v2  ;;  %v13927_v5 = vld [vmem:[#allocation4 + $0x198] sm:$0xf]  ;;  %v20203_v2 = vadd.f32 %v20074_v32, %v8836_v53  ;;  %v15147_v32 = vld [vmem:[#allocation4 + $0x10c] sm:$0xf] }
 0x732   : > { %9958 = vmatpush.bf16.msra.mxu0 %v15184_v55  ;;  %10591 = vmatpush.bf16.msra.mxu1 %v15237_v36  ;;  %v13893_v36 = vld [vmem:[#allocation4 + $0x15c] sm:$0xf0] }
 0x733   : > { %v20185_v57 = vpop.f32.mrf.mxu3 }
 0x734   : > { %v20187_v43 = vpop.f32.mrf.mxu2 }
 0x735   : > { %21767 = vst [vmem:[#allocation23_spill] sm:$0xff] %v20187_v43  ;;  %v8761_v6 = vpop.f32.mrf.mxu1 }
 0x736   : > { %v8674_v25 = vpop.f32.mrf.mxu0  ;;  %v20192_v12 = vadd.f32 %v8761_v6, %v8672_v56  ;;  %13696 = vmatmul.msk.bf16.gmra.mxu1 %vm21769_vm11, %v21768_v45  ;;  %v13928_v6 = vor.u32 %v15166_v62, %v13927_v5  ;;  %vm21846_vm11 = vmmov %vm21794_vm0 }
 0x737   : > { %9910 = vmatmul.bf16.gmra.mxu3 %v13848_v27 }
 0x73b   : > { %v20198_v51 = vpop.f32.mrf.mxu3 }
 0x73c   : > { %v20200_v4 = vpop.f32.mrf.mxu2 }
 0x73d   : > { %21770 = vst [vmem:[#allocation24_spill] sm:$0xff] %v20200_v4  ;;  %v8763_v63 = vpop.f32.mrf.mxu1 }
 0x73e   : > { %v20205_v56 = vadd.f32 %v8763_v63, %v8674_v25  ;;  %v9091_v38 = vpop.f32.mrf.mxu0  ;;  %v20216_v25 = vadd.f32 %v20086_v8, %v8838_v31  ;;  %v21773_v63 = vld [vmem:[#allocation8_spill] sm:$0xff]  ;;  %v14077_v31 = vld [vmem:[#allocation4 + $0x54] sm:$0xf0] }
 0x73f   : > { %v9092_v45 = vadd.f32 %v9091_v38, %v19810_v24  ;;  %v13860_v24 = vor.u32 %v15147_v32, %v13857_v40  ;;  %v21774_v38 = vld [vmem:[#allocation79_spill] sm:$0xff] }
 0x741   : > { %9856 = vmatmul.bf16.gmra.mxu2 %v13928_v6  ;;  %9130 = vmatmul.bf16.gmra.mxu0 %v21771_v3  ;;  %v15188_v6 = vld [vmem:[#allocation4 + $0x4c] sm:$0xf]  ;;  %v20233_v3 = vadd.f32 %v20105_v1, %v8841_v60  ;;  %v13869_v1 = vld [vmem:[#allocation4 + $0x12c] sm:$0xf0]  ;;  %v20246_v60 = vadd.f32 %v20117_v42, %v8843_v41  ;;  %v15191_v41 = vld [vmem:[#allocation4 + $0x64] sm:$0xf] }
 0x743   : > { %v20211_v27 = vpop.f32.mrf.mxu3 }
 0x744   : > { %v20213_v4 = vpop.f32.mrf.mxu2 }
 0x745   : > { %21772 = vst [vmem:[#allocation25_spill] sm:$0xff] %v20213_v4  ;;  %v9180_v43 = vpop.f32.mrf.mxu1 }
 0x746   : > { %v9093_v53 = vpop.f32.mrf.mxu0  ;;  %v20218_v5 = vadd.f32 %v9180_v43, %v9092_v45  ;;  %13697 = vmatmul.msk.bf16.gmra.mxu1 %vm21775_vm10, %v21774_v38  ;;  %vm21849_vm10 = vmmov %vm21794_vm0 }
 0x747   : > { %v9094_v62 = vadd.f32 %v9093_v53, %v21773_v63  ;;  %9915 = vmatmul.bf16.gmra.mxu3 %v13860_v24  ;;  %v14080_v53 = vor.u32 %v15188_v6, %v14077_v31  ;;  %v21777_v63 = vld [vmem:[#allocation10_spill] sm:$0xff]  ;;  %v21780_v31 = vld [vmem:[#allocation11_spill] sm:$0xff] }
 0x74b   : > { %v20228_v8 = vpop.f32.mrf.mxu3 }
 0x74c   : > { %v20230_v43 = vpop.f32.mrf.mxu2 }
 0x74d   : > { %21776 = vst [vmem:[#allocation27_spill] sm:$0xff] %v20230_v43  ;;  %v9182_v45 = vpop.f32.mrf.mxu1 }
 0x74e   : > { %v9096_v40 = vpop.f32.mrf.mxu0  ;;  %v20235_v32 = vadd.f32 %v9182_v45, %v9094_v62  ;;  %v13872_v45 = vor.u32 %v15150_v34, %v13869_v1 }
 0x74f   : > { %v9097_v24 = vadd.f32 %v9096_v40, %v21777_v63  ;;  %v14089_v63 = vld [vmem:[#allocation4 + $0x6c] sm:$0xf0] }
 0x750   : > { %v14092_v1 = vor.u32 %v15191_v41, %v14089_v63 }
 0x751   : > { %10682 = vmatmul.bf16.vlgmr.msra.gmra.mxu2 %v14080_v53  ;;  %9135 = vmatmul.bf16.gmra.mxu0 %v21778_v54  ;;  %v21781_v53 = vld [vmem:[#allocation80_spill] sm:$0xff] }
 0x753   : > { %v20241_v38 = vpop.f32.mrf.mxu3 }
 0x754   : > { %v20243_v43 = vpop.f32.mrf.mxu2 }
 0x755   : > { %21779 = vst [vmem:[#allocation28_spill] sm:$0xff] %v20243_v43  ;;  %v9185_v4 = vpop.f32.mrf.mxu1 }
 0x756   : > { %v9098_v62 = vpop.f32.mrf.mxu0  ;;  %v20248_v6 = vadd.f32 %v9185_v4, %v9097_v24  ;;  %13698 = vmatmul.msk.bf16.gmra.mxu1 %vm21782_vm6, %v21781_v53  ;;  %v20260_v4 = vadd.f32 %v20130_v23, %v8846_v14  ;;  %v15153_v23 = vld [vmem:[#allocation4 + $0x13c] sm:$0xf]  ;;  %v20273_v14 = vadd.f32 %v20145_v22, %v8848_v18  ;;  %v8851_v22 = vadd.f32 %v19974_v44, %v20192_v12  ;;  %v21791_v12 = vld [vmem:[#allocation6_spill] sm:$0xff]  ;;  %vm21852_vm6 = vmmov %vm21794_vm0 }
 0x757   : > { %v9099_v40 = vadd.f32 %v9098_v62, %v21780_v31  ;;  %9920 = vmatmul.bf16.gmra.mxu3 %v13872_v45  ;;  %v13881_v31 = vld [vmem:[#allocation4 + $0x144] sm:$0xf0]  ;;  %v8853_v44 = vadd.f32 %v19992_v17, %v20205_v56  ;;  %v15197_v56 = vld [vmem:[#allocation4 + $0x94] sm:$0xf] }
 0x75b   : > { %v20255_v20 = vpop.f32.mrf.mxu3 }
 0x75c   : > { %v20257_v54 = vpop.f32.mrf.mxu2 }
 0x75d   : > { %21783 = vst [vmem:[#allocation29_spill] sm:$0xff] %v20257_v54  ;;  %v9187_v42 = vpop.f32.mrf.mxu1 }
 0x75e   : > { %v9101_v24 = vpop.f32.mrf.mxu0  ;;  %v20262_v34 = vadd.f32 %v9187_v42, %v9099_v40  ;;  %v21786_v42 = vld [vmem:[#allocation13_spill] sm:$0xff] }
 0x75f   : > { %v9102_v62 = vadd.f32 %v9101_v24, %v19893_v50  ;;  %v13884_v50 = vor.u32 %v15153_v23, %v13881_v31  ;;  %v21787_v24 = vld [vmem:[#allocation82_spill] sm:$0xff]  ;;  %v20293_v31 = vadd.f32 %v20170_v13, %v8851_v22  ;;  %v15156_v13 = vld [vmem:[#allocation4 + $0x154] sm:$0xf]  ;;  %v20306_v22 = vadd.f32 %v20185_v57, %v8853_v44 }
 0x761   : > { %10687 = vmatmul.bf16.gmra.mxu2 %v14092_v1  ;;  %9140 = vmatmul.bf16.gmra.mxu0 %v21784_v0  ;;  %v14101_v1 = vld [vmem:[#allocation4 + $0x84] sm:$0xf0]  ;;  %v15194_v0 = vld [vmem:[#allocation4 + $0x7c] sm:$0xf] }
 0x763   : > { %v20268_v45 = vpop.f32.mrf.mxu3 }
 0x764   : > { %v20270_v53 = vpop.f32.mrf.mxu2 }
 0x765   : > { %21785 = vst [vmem:[#allocation12_spill] sm:$0xff] %v20270_v53  ;;  %v9190_v54 = vpop.f32.mrf.mxu1 }
 0x766   : > { %v9103_v40 = vpop.f32.mrf.mxu0  ;;  %v20275_v63 = vadd.f32 %v9190_v54, %v9102_v62  ;;  %13699 = vmatmul.msk.bf16.gmra.mxu1 %vm21788_vm2, %v21787_v24  ;;  %vm21855_vm2 = vmmov %vm21794_vm0 }
 0x767   : > { %v9104_v41 = vadd.f32 %v9103_v40, %v21786_v42  ;;  %9925 = vmatmul.bf16.gmra.mxu3 %v13884_v50  ;;  %v14104_v42 = vor.u32 %v15194_v0, %v14101_v1  ;;  %v21790_v50 = vld [vmem:[#allocation14_spill] sm:$0xff] }
 0x76b   : > { %v20288_v54 = vpop.f32.mrf.mxu3 }
 0x76c   : > { %v20290_v62 = vpop.f32.mrf.mxu2 }
 0x76d   : > { %21789 = vst [vmem:[#allocation31_spill] sm:$0xff] %v20290_v62  ;;  %v9192_v18 = vpop.f32.mrf.mxu1 }
 0x76e   : > { %v9106_v23 = vpop.f32.mrf.mxu0  ;;  %v20295_v40 = vadd.f32 %v9192_v18, %v9104_v41  ;;  %v13896_v18 = vor.u32 %v15156_v13, %v13893_v36  ;;  %v15159_v36 = vld [vmem:[#allocation4 + $0x16c] sm:$0xf] }
 0x76f   : > { %v9107_v24 = vadd.f32 %v9106_v23, %v21790_v50  ;;  %v21793_v23 = vld [vmem:[#allocation85_spill] sm:$0xff] }
 0x771   : > { %10692 = vmatmul.bf16.gmra.mxu2 %v14104_v42  ;;  %9145 = vmatmul.bf16.gmra.mxu0 %v21791_v12  ;;  %v14113_v12 = vld [vmem:[#allocation4 + $0x9c] sm:$0xf0] }
 0x772   : > { %v14116_v44 = vor.u32 %v15197_v56, %v14113_v12  ;;  %v14125_v12 = vld [vmem:[#allocation4 + $0xb4] sm:$0xf0] }
 0x773   : > { %v20301_v55 = vpop.f32.mrf.mxu3 }
 0x774   : > { %v20303_v62 = vpop.f32.mrf.mxu2 }
 0x775   : > { %21792 = vst [vmem:[#allocation32_spill] sm:$0xff] %v20303_v62  ;;  %v9195_v53 = vpop.f32.mrf.mxu1 }
 0x776   : > { %v9108_v41 = vpop.f32.mrf.mxu0  ;;  %v20308_v1 = vadd.f32 %v9195_v53, %v9107_v24  ;;  %13700 = vmatmul.msk.bf16.gmra.mxu1 %vm21794_vm0, %v21793_v23  ;;  %v21796_v24 = vld [vmem:[#allocation74_spill] sm:$0xff] }
 0x777   : > { %v9109_v0 = vadd.f32 %v9108_v41, %v19950_v26  ;;  %9930 = vmatmul.bf16.gmra.mxu3 %v13896_v18  ;;  %v13905_v18 = vld [vmem:[#allocation4 + $0x174] sm:$0xf0] }
 0x778   : > { %v13908_v43 = vor.u32 %v15159_v36, %v13905_v18 }
 0x77b   : > { %v20313_v17 = vpop.f32.mrf.mxu3 }
 0x77c   : > { %v20315_v42 = vpop.f32.mrf.mxu2 }
 0x77d   : > { %21795 = vst [vmem:[#allocation33_spill] sm:$0xff] %v20315_v42  ;;  %v9197_v50 = vpop.f32.mrf.mxu1 }
 0x77e   : > { %v9111_v62 = vpop.f32.mrf.mxu0  ;;  %v20317_v57 = vadd.f32 %v9197_v50, %v9109_v0  ;;  %v21798_v50 = vld [vmem:[#allocation83_spill] sm:$0xff] }
 0x77f   : > { %v9112_v53 = vadd.f32 %v9111_v62, %v19964_v37  ;;  %v15236_v37 = vld [vmem:[%s21036_s9 + $0x1e0] sm:$0xff]  ;;  %v15255_v62 = vld [vmem:[%s21036_s9 + $0x278] sm:$0xff] }
 0x780   : > { %10592 = vmatpush.bf16.msra.mxu1 %v15236_v37  ;;  %10767 = vmatpush.bf16.msrb.mxu3 %v15255_v62  ;;  %v13917_v62 = vld [vmem:[#allocation4 + $0x18c] sm:$0xf0] }
 0x781   : > { %10697 = vmatmul.bf16.gmra.mxu2 %v14116_v44  ;;  %9150 = vmatmul.bf16.gmra.mxu0 %v21796_v24 }
 0x783   : > { %v20321_v26 = vpop.f32.mrf.mxu3 }
 0x784   : > { %v20323_v13 = vpop.f32.mrf.mxu2 }
 0x785   : > { %21797 = vst [vmem:[#allocation34_spill] sm:$0xff] %v20323_v13  ;;  %v9200_v41 = vpop.f32.mrf.mxu1 }
 0x786   : > { %v9113_v23 = vpop.f32.mrf.mxu0  ;;  %v20325_v42 = vadd.f32 %v9200_v41, %v9112_v53  ;;  %13701 = vmatmul.msk.bf16.gmra.mxu1 %vm21799_vm9, %v21798_v50  ;;  %v15200_v53 = vld [vmem:[#allocation4 + $0xac] sm:$0xf]  ;;  %v15253_v50 = vld [vmem:[%s21036_s9 + $0x268] sm:$0xff]  ;;  %vm21858_vm9 = vmmov %vm21794_vm0 }
 0x787   : > { %v9114_v0 = vadd.f32 %v9113_v23, %v19980_v59  ;;  %9935 = vmatmul.bf16.gmra.mxu3 %v13908_v43  ;;  %v14128_v41 = vor.u32 %v15200_v53, %v14125_v12  ;;  %v15254_v43 = vld [vmem:[%s21036_s9 + $0x270] sm:$0xff]  ;;  %v21801_v23 = vld [vmem:[#allocation9_spill] sm:$0xff] }
 0x788   : > { %10768 = vmatpush.bf16.msrb.mxu3 %v15254_v43  ;;  %v15252_v43 = vld [vmem:[%s21036_s9 + $0x260] sm:$0xff] }
 0x78b   : > { %v20336_v56 = vpop.f32.mrf.mxu3 }
 0x78c   : > { %v20338_v44 = vpop.f32.mrf.mxu2  ;;  %10769 = vmatpush.bf16.msrb.mxu3 %v15253_v50 }
 0x78d   : > { %21800 = vst [vmem:[#allocation18_spill] sm:$0xff] %v20338_v44  ;;  %v9202_v59 = vpop.f32.mrf.mxu1 }
 0x78e   : > { %v9116_v24 = vpop.f32.mrf.mxu0  ;;  %v20340_v36 = vadd.f32 %v9202_v59, %v9114_v0  ;;  %v15162_v59 = vld [vmem:[#allocation4 + $0x184] sm:$0xf] }
 0x78f   : > { %v9117_v18 = vadd.f32 %v9116_v24, %v19995_v9  ;;  %v13920_v24 = vor.u32 %v15162_v59, %v13917_v62 }
 0x790   : > { %10770 = vmatpush.bf16.msrb.mxu3 %v15252_v43 }
 0x791   : > { %10702 = vmatmul.bf16.gmra.mxu2 %v14128_v41  ;;  %9155 = vmatmul.bf16.gmra.mxu0 %v21801_v23  ;;  %v21805_v23 = vld [vmem:[#allocation86_spill] sm:$0xff] }
 0x793   : > { %v20350_v37 = vpop.f32.mrf.mxu3 }
 0x794   : > { %21802 = vst [vmem:[#allocation36_spill] sm:$0xff] %v20350_v37  ;;  %v20352_v0 = vpop.f32.mrf.mxu2  ;;  %v15165_v37 = vld [vmem:[#allocation4 + $0x19c] sm:$0xf] }
 0x795   : > { %21803 = vst [vmem:[#allocation37_spill] sm:$0xff] %v20352_v0  ;;  %v9205_v12 = vpop.f32.mrf.mxu1  ;;  %v14137_v0 = vld [vmem:[#allocation4 + $0xcc] sm:$0xf0] }
 0x796   : > { %v9118_v9 = vpop.f32.mrf.mxu0  ;;  %v20354_v53 = vadd.f32 %v9205_v12, %v9117_v18  ;;  %13702 = vmatmul.msk.bf16.gmra.mxu1 %vm21806_vm7, %v21805_v23  ;;  %v15203_v18 = vld [vmem:[#allocation4 + $0xc4] sm:$0xf]  ;;  %vm21861_vm7 = vmmov %vm21794_vm0 }
 0x797   : > { %v9119_v41 = vadd.f32 %v9118_v9, %v20007_v47  ;;  %9940 = vmatmul.bf16.gmra.mxu3 %v13920_v24  ;;  %v14140_v47 = vor.u32 %v15203_v18, %v14137_v0  ;;  %v21809_v9 = vld [vmem:[#allocation16_spill] sm:$0xff]  ;;  %v13929_v24 = vld [vmem:[#allocation4 + $0x1a4] sm:$0xf0] }
 0x798   : > { %21804 = vst [vmem:[#allocation22_spill] sm:$0xff] %v20354_v53  ;;  %v13932_v0 = vor.u32 %v15165_v37, %v13929_v24  ;;  %v15311_v18 = vld [vmem:[%s21036_s9 + $0x2b8] sm:$0xff]  ;;  %v15206_v37 = vld [vmem:[#allocation4 + $0xdc] sm:$0xf] }
 0x799   : > { %11397 = vmatpush.bf16.msrb.mxu0 %v15311_v18 }
 0x79b   : > { %v20362_v44 = vpop.f32.mrf.mxu3 }
 0x79c   : > { %21807 = vst [vmem:[#allocation39_spill] sm:$0xff] %v20362_v44  ;;  %v20364_v13 = vpop.f32.mrf.mxu2 }
 0x79d   : > { %21808 = vst [vmem:[#allocation41_spill] sm:$0xff] %v20364_v13  ;;  %v9207_v50 = vpop.f32.mrf.mxu1  ;;  %v15323_v13 = vld [vmem:[%s21036_s9 + $0x318] sm:$0xff] }
 0x79e   : > { %v9121_v12 = vpop.f32.mrf.mxu0  ;;  %v20366_v62 = vadd.f32 %v9207_v50, %v9119_v41  ;;  %11579 = vmatpush.bf16.msrb.mxu2 %v15323_v13  ;;  %v21813_v50 = vld [vmem:[#allocation88_spill] sm:$0xff] }
 0x79f   : > { %v9122_v59 = vadd.f32 %v9121_v12, %v20020_v21  ;;  %v15319_v12 = vld [vmem:[%s21036_s9 + $0x2f8] sm:$0xff] }
 0x7a0   : > { %11486 = vmatpush.bf16.msrb.mxu1 %v15319_v12 }
 0x7a1   : > { %10707 = vmatmul.bf16.gmra.mxu2 %v14140_v47  ;;  %9160 = vmatmul.bf16.gmra.mxu0 %v21809_v9 }
 0x7a3   : > { %v20370_v23 = vpop.f32.mrf.mxu3 }
 0x7a4   : > { %21810 = vst [vmem:[#allocation40_spill] sm:$0xff] %v20370_v23  ;;  %v20372_v43 = vpop.f32.mrf.mxu2 }
 0x7a5   : > { %21811 = vst [vmem:[#allocation26_spill] sm:$0xff] %v20372_v43  ;;  %v9210_v44 = vpop.f32.mrf.mxu1 }
 0x7a6   : > { %v9123_v53 = vpop.f32.mrf.mxu0  ;;  %v20377_v41 = vadd.f32 %v9210_v44, %v9122_v59  ;;  %13703 = vmatmul.msk.bf16.gmra.mxu1 %vm21814_vm5, %v21813_v50  ;;  %v21818_v50 = vld [vmem:[#allocation15_spill] sm:$0xff]  ;;  %vm21864_vm5 = vmmov %vm21794_vm0 }
 0x7a7   : > { %v9124_v21 = vadd.f32 %v9123_v53, %v20035_v15  ;;  %9945 = vmatmul.bf16.gmra.mxu3 %v13932_v0  ;;  %v14149_v53 = vld [vmem:[#allocation4 + $0xe4] sm:$0xf0]  ;;  %v15190_v0 = vld [vmem:[#allocation4 + $0x58] sm:$0xf0] }
 0x7a8   : > { %21812 = vst [vmem:[#allocation42_spill] sm:$0xff] %v20377_v41  ;;  %v14152_v9 = vor.u32 %v15206_v37, %v14149_v53  ;;  %v14161_v37 = vld [vmem:[#allocation4 + $0xfc] sm:$0xf0] }
 0x7ab   : > { %v20388_v44 = vpop.f32.mrf.mxu3 }
 0x7ac   : > { %21815 = vst [vmem:[#allocation45_spill] sm:$0xff] %v20388_v44  ;;  %v20390_v13 = vpop.f32.mrf.mxu2  ;;  %v14083_v44 = vld [vmem:[#allocation4 + $0x50] sm:$0xf] }
 0x7ad   : > { %21816 = vst [vmem:[#allocation44_spill] sm:$0xff] %v20390_v13  ;;  %v9212_v15 = vpop.f32.mrf.mxu1  ;;  %v14084_v41 = vor.u32 %v15190_v0, %v14083_v44 }
 0x7ae   : > { %v9126_v47 = vpop.f32.mrf.mxu0  ;;  %v20392_v59 = vadd.f32 %v9212_v15, %v9124_v21  ;;  %v21822_v15 = vld [vmem:[#allocation90_spill] sm:$0xff] }
 0x7af   : > { %v9127_v24 = vadd.f32 %v9126_v47, %v20054_v10  ;;  %v15122_v47 = vld [vmem:[#allocation4 + $0x40] sm:$0xf0] }
 0x7b0   : > { %21817 = vst [vmem:[#allocation30_spill] sm:$0xff] %v20392_v59  ;;  %v14095_v59 = vld [vmem:[#allocation4 + $0x68] sm:$0xf] }
 0x7b1   : > { %10712 = vmatmul.bf16.gmra.mxu2 %v14152_v9  ;;  %9165 = vmatmul.bf16.gmra.mxu0 %v21818_v50  ;;  %v15209_v50 = vld [vmem:[#allocation4 + $0xf4] sm:$0xf] }
 0x7b2   : > { %v14164_v44 = vor.u32 %v15209_v50, %v14161_v37 }
 0x7b3   : > { %v20396_v43 = vpop.f32.mrf.mxu3 }
 0x7b4   : > { %21819 = vst [vmem:[#allocation47_spill] sm:$0xff] %v20396_v43  ;;  %v20398_v18 = vpop.f32.mrf.mxu2 }
 0x7b5   : > { %21820 = vst [vmem:[#allocation49_spill] sm:$0xff] %v20398_v18  ;;  %v9215_v12 = vpop.f32.mrf.mxu1 }
 0x7b6   : > { %v9128_v23 = vpop.f32.mrf.mxu0  ;;  %v20400_v13 = vadd.f32 %v9215_v12, %v9127_v24  ;;  %13704 = vmatmul.msk.bf16.gmra.mxu1 %vm21823_vm12, %v21822_v15  ;;  %v13755_v24 = vld [vmem:[#allocation4 + $0x38] sm:$0xf]  ;;  %v15193_v12 = vld [vmem:[#allocation4 + $0x70] sm:$0xf0]  ;;  %vm21867_vm12 = vmmov %vm21794_vm0 }
 0x7b7   : > { %v9129_v21 = vadd.f32 %v9128_v23, %v20066_v19  ;;  %14345 = vmatmul.msk.bf16.vlgmr.msrb.gmra.mxu3 %vm21824_vm1, %v14084_v41  ;;  %v13756_v23 = vor.u32 %v15122_v47, %v13755_v24  ;;  %v15189_v41 = vld [vmem:[#allocation4 + $0x50] sm:$0xf0]  ;;  %v14096_v37 = vor.u32 %v15193_v12, %v14095_v59  ;;  %v15318_v47 = vld [vmem:[%s21036_s9 + $0x2f0] sm:$0xff]  ;;  %v15125_v59 = vld [vmem:[#allocation4 + $0x58] sm:$0xf0] }
 0x7b8   : > { %21821 = vst [vmem:[#allocation48_spill] sm:$0xff] %v20400_v13  ;;  %11487 = vmatpush.bf16.msrb.mxu1 %v15318_v47  ;;  %vm21870_vm1 = vmmov %vm21794_vm0 }
 0x7bb   : > { %v20406_v10 = vpop.f32.mrf.mxu3 }
 0x7bc   : > { %21825 = vst [vmem:[#allocation35_spill] sm:$0xff] %v20406_v10  ;;  %v20408_v53 = vpop.f32.mrf.mxu2 }
 0x7bd   : > { %21826 = vst [vmem:[#allocation51_spill] sm:$0xff] %v20408_v53  ;;  %v9217_v9 = vpop.f32.mrf.mxu1  ;;  %v14075_v53 = vld [vmem:[#allocation4 + $0x48] sm:$0xf] }
 0x7be   : > { %v9131_v18 = vpop.f32.mrf.mxu0  ;;  %v20410_v43 = vadd.f32 %v9217_v9, %v9129_v21  ;;  %v14076_v13 = vor.u32 %v15189_v41, %v14075_v53 }
 0x7bf   : > { %v9132_v19 = vadd.f32 %v9131_v18, %v20079_v48  ;;  %v15310_v18 = vld [vmem:[%s21036_s9 + $0x2b0] sm:$0xff] }
 0x7c0   : > { %11398 = vmatpush.bf16.msrb.mxu0 %v15310_v18  ;;  %v15196_v18 = vld [vmem:[#allocation4 + $0x88] sm:$0xf0] }
 0x7c1   : > { %10717 = vmatmul.bf16.gmra.mxu2 %v14164_v44  ;;  %14017 = vmatmul.msk.bf16.vlgmr.msra.gmra.mxu0 %vm21827_vm14, %v13756_v23  ;;  %vm21871_vm14 = vmmov %vm21794_vm0 }
 0x7c3   : > { %v20414_v0 = vpop.f32.mrf.mxu3 }
 0x7c4   : > { %21828 = vst [vmem:[#allocation52_spill] sm:$0xff] %v20414_v0  ;;  %v20416_v15 = vpop.f32.mrf.mxu2  ;;  %v14107_v0 = vld [vmem:[#allocation4 + $0x80] sm:$0xf] }
 0x7c5   : > { %21829 = vst [vmem:[#allocation53_spill] sm:$0xff] %v20416_v15  ;;  %v9220_v10 = vpop.f32.mrf.mxu1 }
 0x7c6   : > { %v9133_v21 = vpop.f32.mrf.mxu0  ;;  %v20418_v9 = vadd.f32 %v9220_v10, %v9132_v19  ;;  %10593 = vmatmul.bf16.vlgmr.msra.gmra.mxu1 %v14076_v13  ;;  %v14173_v10 = vld [vmem:[#allocation4 + $0x114] sm:$0xf0]  ;;  %v15212_v13 = vld [vmem:[#allocation4 + $0x10c] sm:$0xf]  ;;  %v13767_v19 = vld [vmem:[#allocation4 + $0x50] sm:$0xf] }
 0x7c7   : > { %v9134_v48 = vadd.f32 %v9133_v21, %v20094_v33  ;;  %14346 = vmatmul.msk.bf16.gmra.mxu3 %vm21830_vm15, %v14096_v37  ;;  %v14176_v23 = vor.u32 %v15212_v13, %v14173_v10  ;;  %v13768_v12 = vor.u32 %v15125_v59, %v13767_v19  ;;  %v15192_v21 = vld [vmem:[#allocation4 + $0x68] sm:$0xf0]  ;;  %v14108_v10 = vor.u32 %v15196_v18, %v14107_v0  ;;  %v15215_v13 = vld [vmem:[#allocation4 + $0x124] sm:$0xf]  ;;  %v15128_v19 = vld [vmem:[#allocation4 + $0x70] sm:$0xf0] }
 0x7c8   : > { %v15199_v18 = vld [vmem:[#allocation4 + $0xa0] sm:$0xf0]  ;;  %vm21872_vm15 = vmmov %vm21794_vm0 }
 0x7cb   : > { %v20428_v53 = vpop.f32.mrf.mxu3 }
 0x7cc   : > { %21831 = vst [vmem:[#allocation38_spill] sm:$0xff] %v20428_v53  ;;  %v20430_v50 = vpop.f32.mrf.mxu2 }
 0x7cd   : > { %21832 = vst [vmem:[#allocation55_spill] sm:$0xff] %v20430_v50  ;;  %v9222_v33 = vpop.f32.mrf.mxu1  ;;  %v14087_v50 = vld [vmem:[#allocation4 + $0x60] sm:$0xf] }
 0x7ce   : > { %v9136_v24 = vpop.f32.mrf.mxu0  ;;  %v20432_v44 = vadd.f32 %v9222_v33, %v9134_v48  ;;  %v14088_v53 = vor.u32 %v15192_v21, %v14087_v50  ;;  %v13779_v21 = vld [vmem:[#allocation4 + $0x68] sm:$0xf] }
 0x7cf   : > { %v9137_v41 = vadd.f32 %v9136_v24, %v20110_v28 }
 0x7d0   : > { %21833 = vst [vmem:[#allocation57_spill] sm:$0xff] %v20432_v44  ;;  %v14131_v44 = vld [vmem:[#allocation4 + $0xb0] sm:$0xf] }
 0x7d1   : > { %10722 = vmatmul.bf16.gmra.mxu2 %v14176_v23  ;;  %14018 = vmatmul.msk.bf16.gmra.mxu0 %vm21834_vm3, %v13768_v12  ;;  %v14185_v12 = vld [vmem:[#allocation4 + $0x12c] sm:$0xf0]  ;;  %vm21873_vm3 = vmmov %vm21794_vm0 }
 0x7d3   : > { %v20436_v37 = vpop.f32.mrf.mxu3 }
 0x7d4   : > { %21835 = vst [vmem:[#allocation56_spill] sm:$0xff] %v20436_v37  ;;  %v20438_v47 = vpop.f32.mrf.mxu2 }
 0x7d5   : > { %v9225_v15 = vpop.f32.mrf.mxu1 }
 0x7d6   : > { %v9138_v48 = vpop.f32.mrf.mxu0  ;;  %v20440_v33 = vadd.f32 %v9225_v15, %v9137_v41  ;;  %10598 = vmatmul.bf16.gmra.mxu1 %v14088_v53  ;;  %v14188_v15 = vor.u32 %v15215_v13, %v14185_v12  ;;  %v13780_v41 = vor.u32 %v15128_v19, %v13779_v21  ;;  %v14119_v13 = vld [vmem:[#allocation4 + $0x98] sm:$0xf] }
 0x7d7   : > { %v9139_v28 = vadd.f32 %v9138_v48, %v20122_v39  ;;  %14347 = vmatmul.msk.bf16.gmra.mxu3 %vm21837_vm8, %v14108_v10  ;;  %v14099_v39 = vld [vmem:[#allocation4 + $0x78] sm:$0xf]  ;;  %v15195_v10 = vld [vmem:[#allocation4 + $0x80] sm:$0xf0]  ;;  %vm21874_vm8 = vmmov %vm21794_vm0 }
 0x7d8   : > { %21836 = vst [vmem:[#allocation43_spill] sm:$0xff] %v20440_v33  ;;  %v15309_v21 = vld [vmem:[%s21036_s9 + $0x2a8] sm:$0xff] }
 0x7d9   : > { %11399 = vmatpush.bf16.msrb.mxu0 %v15309_v21 }
 0x7db   : > { %v20444_v59 = vpop.f32.mrf.mxu3 }
 0x7dc   : > { %21838 = vst [vmem:[#allocation59_spill] sm:$0xff] %v20444_v59  ;;  %v20446_v24 = vpop.f32.mrf.mxu2  ;;  %v14100_v59 = vor.u32 %v15195_v10, %v14099_v39 }
 0x7dd   : > { %v9227_v23 = vpop.f32.mrf.mxu1 }
 0x7de   : > { %v9141_v37 = vpop.f32.mrf.mxu0  ;;  %v20448_v50 = vadd.f32 %v9227_v23, %v9139_v28  ;;  %v15322_v28 = vld [vmem:[%s21036_s9 + $0x310] sm:$0xff] }
 0x7df   : > { %v9142_v0 = vadd.f32 %v9141_v37, %v20135_v58  ;;  %v14120_v37 = vor.u32 %v15199_v18, %v14119_v13  ;;  %11580 = vmatpush.bf16.msrb.mxu2 %v15322_v28  ;;  %v15131_v18 = vld [vmem:[#allocation4 + $0x88] sm:$0xf0] }
 0x7e0   : > { %21839 = vst [vmem:[#allocation61_spill] sm:$0xff] %v20448_v50 }
 0x7e1   : > { %10727 = vmatmul.bf16.gmra.mxu2 %v14188_v15  ;;  %14019 = vmatmul.msk.bf16.gmra.mxu0 %vm21840_vm4, %v13780_v41  ;;  %v15317_v15 = vld [vmem:[%s21036_s9 + $0x2e8] sm:$0xff]  ;;  %vm21875_vm4 = vmmov %vm21794_vm0 }
 0x7e2   : > { %11488 = vmatpush.bf16.msrb.mxu1 %v15317_v15  ;;  %v15202_v15 = vld [vmem:[#allocation4 + $0xb8] sm:$0xf0] }
 0x7e3   : > { %v20452_v53 = vpop.f32.mrf.mxu3 }
 0x7e4   : > { %21841 = vst [vmem:[#allocation60_spill] sm:$0xff] %v20452_v53  ;;  %v20454_v48 = vpop.f32.mrf.mxu2 }
 0x7e5   : > { %v9230_v23 = vpop.f32.mrf.mxu1 }
 0x7e6   : > { %v9143_v12 = vpop.f32.mrf.mxu0  ;;  %v20459_v58 = vadd.f32 %v9230_v23, %v9142_v0  ;;  %10603 = vmatmul.bf16.gmra.mxu1 %v14100_v59  ;;  %v14197_v0 = vld [vmem:[#allocation4 + $0x144] sm:$0xf0]  ;;  %v15218_v59 = vld [vmem:[#allocation4 + $0x13c] sm:$0xf]  ;;  %v13791_v23 = vld [vmem:[#allocation4 + $0x80] sm:$0xf] }
 0x7e7   : > { %v9144_v19 = vadd.f32 %v9143_v12, %v20150_v29  ;;  %14348 = vmatmul.msk.bf16.gmra.mxu3 %vm21843_vm13, %v14120_v37  ;;  %v14200_v13 = vor.u32 %v15218_v59, %v14197_v0  ;;  %v13792_v53 = vor.u32 %v15131_v18, %v13791_v23  ;;  %v15198_v37 = vld [vmem:[#allocation4 + $0x98] sm:$0xf0]  ;;  %v14132_v0 = vor.u32 %v15202_v15, %v14131_v44  ;;  %v14209_v18 = vld [vmem:[#allocation4 + $0x15c] sm:$0xf0]  ;;  %v15205_v15 = vld [vmem:[#allocation4 + $0xd0] sm:$0xf0] }
 0x7e8   : > { %21842 = vst [vmem:[#allocation46_spill] sm:$0xff] %v20459_v58  ;;  %v14111_v58 = vld [vmem:[#allocation4 + $0x90] sm:$0xf]  ;;  %vm21876_vm13 = vmmov %vm21794_vm0 }
 0x7e9   : > { %v14112_v33 = vor.u32 %v15198_v37, %v14111_v58  ;;  %v13803_v37 = vld [vmem:[#allocation4 + $0x98] sm:$0xf] }
 0x7eb   : > { %v20469_v41 = vpop.f32.mrf.mxu3 }
 0x7ec   : > { %21844 = vst [vmem:[#allocation63_spill] sm:$0xff] %v20469_v41  ;;  %v20471_v39 = vpop.f32.mrf.mxu2 }
 0x7ed   : > { %v9232_v29 = vpop.f32.mrf.mxu1 }
 0x7ee   : > { %v9146_v10 = vpop.f32.mrf.mxu0  ;;  %v20473_v28 = vadd.f32 %v9232_v29, %v9144_v19 }
 0x7ef   : > { %v9147_v12 = vadd.f32 %v9146_v10, %v20175_v11  ;;  %v15134_v10 = vld [vmem:[#allocation4 + $0xa0] sm:$0xf0] }
 0x7f0   : > { %21845 = vst [vmem:[#allocation65_spill] sm:$0xff] %v20473_v28  ;;  %v14143_v28 = vld [vmem:[#allocation4 + $0xc8] sm:$0xf] }
 0x7f1   : > { %10732 = vmatmul.bf16.gmra.mxu2 %v14200_v13  ;;  %14020 = vmatmul.msk.bf16.gmra.mxu0 %vm21846_vm11, %v13792_v53  ;;  %v15221_v13 = vld [vmem:[#allocation4 + $0x154] sm:$0xf]  ;;  %vm21877_vm11 = vmmov %vm21794_vm0 }
 0x7f3   : > { %v20477_v21 = vpop.f32.mrf.mxu3 }
 0x7f4   : > { %21847 = vst [vmem:[#allocation64_spill] sm:$0xff] %v20477_v21  ;;  %v20479_v41 = vpop.f32.mrf.mxu2 }
 0x7f5   : > { %v9235_v50 = vpop.f32.mrf.mxu1 }
 0x7f6   : > { %v9148_v19 = vpop.f32.mrf.mxu0  ;;  %v20481_v29 = vadd.f32 %v9235_v50, %v9147_v12  ;;  %10608 = vmatmul.bf16.gmra.mxu1 %v14112_v33  ;;  %v14212_v50 = vor.u32 %v15221_v13, %v14209_v18  ;;  %v13804_v12 = vor.u32 %v15134_v10, %v13803_v37  ;;  %v14144_v18 = vor.u32 %v15205_v15, %v14143_v28  ;;  %v15316_v10 = vld [vmem:[%s21036_s9 + $0x2e0] sm:$0xff]  ;;  %v15137_v28 = vld [vmem:[#allocation4 + $0xb8] sm:$0xf0] }
 0x7f7   : > { %v9149_v11 = vadd.f32 %v9148_v19, %v20190_v52  ;;  %14349 = vmatmul.msk.bf16.gmra.mxu3 %vm21849_vm10, %v14132_v0  ;;  %v15201_v52 = vld [vmem:[#allocation4 + $0xb0] sm:$0xf0]  ;;  %v14123_v0 = vld [vmem:[#allocation4 + $0xa8] sm:$0xf]  ;;  %11489 = vmatpush.bf16.msrb.mxu1 %v15316_v10  ;;  %vm21878_vm10 = vmmov %vm21794_vm0 }
 0x7f8   : > { %21848 = vst [vmem:[#allocation50_spill] sm:$0xff] %v20481_v29  ;;  %v14124_v29 = vor.u32 %v15201_v52, %v14123_v0 }
 0x7fb   : > { %v20485_v53 = vpop.f32.mrf.mxu3 }
 0x7fc   : > { %21850 = vst [vmem:[#allocation67_spill] sm:$0xff] %v20485_v53  ;;  %v20487_v59 = vpop.f32.mrf.mxu2 }
 0x7fd   : > { %v9237_v23 = vpop.f32.mrf.mxu1 }
 0x7fe   : > { %v9151_v21 = vpop.f32.mrf.mxu0  ;;  %v20489_v58 = vadd.f32 %v9237_v23, %v9149_v11 }
 0x7ff   : > { %v9152_v44 = vadd.f32 %v9151_v21, %v20203_v2  ;;  %v15308_v21 = vld [vmem:[%s21036_s9 + $0x2a0] sm:$0xff] }
 0x800   : > { %21851 = vst [vmem:[#allocation68_spill] sm:$0xff] %v20489_v58  ;;  %11400 = vmatpush.bf16.msrb.mxu0 %v15308_v21  ;;  %v15208_v21 = vld [vmem:[#allocation4 + $0xe8] sm:$0xf0]  ;;  %v14155_v58 = vld [vmem:[#allocation4 + $0xe0] sm:$0xf] }
 0x801   : > { %10737 = vmatmul.bf16.gmra.mxu2 %v14212_v50  ;;  %14021 = vmatmul.msk.bf16.gmra.mxu0 %vm21852_vm6, %v13804_v12  ;;  %v13815_v12 = vld [vmem:[#allocation4 + $0xb0] sm:$0xf]  ;;  %vm21879_vm6 = vmmov %vm21794_vm0 }
 0x802   : > { %v13816_v0 = vor.u32 %v15137_v28, %v13815_v12  ;;  %v15140_v12 = vld [vmem:[#allocation4 + $0xd0] sm:$0xf0] }
 0x803   : > { %v20493_v33 = vpop.f32.mrf.mxu3 }
 0x804   : > { %21853 = vst [vmem:[#allocation69_spill] sm:$0xff] %v20493_v33  ;;  %v20495_v19 = vpop.f32.mrf.mxu2 }
 0x805   : > { %v9240_v53 = vpop.f32.mrf.mxu1 }
 0x806   : > { %v9153_v11 = vpop.f32.mrf.mxu0  ;;  %v20497_v23 = vadd.f32 %v9240_v53, %v9152_v44  ;;  %10613 = vmatmul.bf16.gmra.mxu1 %v14124_v29  ;;  %v15224_v53 = vld [vmem:[#allocation4 + $0x16c] sm:$0xf]  ;;  %v14221_v29 = vld [vmem:[#allocation4 + $0x174] sm:$0xf0] }
 0x807   : > { %v9154_v2 = vadd.f32 %v9153_v11, %v20216_v25  ;;  %14350 = vmatmul.msk.bf16.gmra.mxu3 %vm21855_vm2, %v14144_v18  ;;  %v14224_v52 = vor.u32 %v15224_v53, %v14221_v29  ;;  %v14135_v11 = vld [vmem:[#allocation4 + $0xc0] sm:$0xf]  ;;  %v14156_v53 = vor.u32 %v15208_v21, %v14155_v58  ;;  %v14233_v29 = vld [vmem:[#allocation4 + $0x18c] sm:$0xf0]  ;;  %v15211_v21 = vld [vmem:[#allocation4 + $0x100] sm:$0xf0] }
 0x808   : > { %21854 = vst [vmem:[#allocation54_spill] sm:$0xff] %v20497_v23  ;;  %vm21880_vm2 = vmmov %vm21794_vm0 }
 0x80b   : > { %v20507_v13 = vpop.f32.mrf.mxu3 }
 0x80c   : > { %21856 = vst [vmem:[#allocation70_spill] sm:$0xff] %v20507_v13  ;;  %v20509_v37 = vpop.f32.mrf.mxu2  ;;  %v15204_v13 = vld [vmem:[#allocation4 + $0xc8] sm:$0xf0] }
 0x80d   : > { %v9242_v25 = vpop.f32.mrf.mxu1  ;;  %v14136_v23 = vor.u32 %v15204_v13, %v14135_v11  ;;  %v13827_v11 = vld [vmem:[#allocation4 + $0xc8] sm:$0xf] }
 0x80e   : > { %v9156_v50 = vpop.f32.mrf.mxu0  ;;  %v20511_v44 = vadd.f32 %v9242_v25, %v9154_v2 }
 0x80f   : > { %v9157_v15 = vadd.f32 %v9156_v50, %v20233_v3 }
 0x811   : > { %10742 = vmatmul.bf16.gmra.mxu2 %v14224_v52  ;;  %14022 = vmatmul.msk.bf16.gmra.mxu0 %vm21794_vm0, %v13816_v0  ;;  %v15227_v0 = vld [vmem:[#allocation4 + $0x184] sm:$0xf] }
 0x813   : > { %v20515_v18 = vpop.f32.mrf.mxu3 }
 0x814   : > { %21857 = vst [vmem:[#allocation72_spill] sm:$0xff] %v20515_v18  ;;  %v20517_v10 = vpop.f32.mrf.mxu2 }
 0x815   : > { %v9245_v33 = vpop.f32.mrf.mxu1 }
 0x816   : > { %v9158_v2 = vpop.f32.mrf.mxu0  ;;  %v20519_v25 = vadd.f32 %v9245_v33, %v9157_v15  ;;  %10618 = vmatmul.bf16.gmra.mxu1 %v14136_v23  ;;  %v14236_v33 = vor.u32 %v15227_v0, %v14233_v29  ;;  %v13828_v15 = vor.u32 %v15140_v12, %v13827_v11  ;;  %v15307_v0 = vld [vmem:[%s21036_s9 + $0x298] sm:$0xff] }
 0x817   : > { %v9159_v3 = vadd.f32 %v9158_v2, %v20246_v60  ;;  %14351 = vmatmul.msk.bf16.gmra.mxu3 %vm21858_vm9, %v14156_v53  ;;  %v15207_v60 = vld [vmem:[#allocation4 + $0xe0] sm:$0xf0]  ;;  %v14147_v2 = vld [vmem:[#allocation4 + $0xd8] sm:$0xf]  ;;  %v15315_v11 = vld [vmem:[%s21036_s9 + $0x2d8] sm:$0xff]  ;;  %11401 = vmatpush.bf16.msrb.mxu0 %v15307_v0 }
 0x818   : > { %v15321_v53 = vld [vmem:[%s21036_s9 + $0x308] sm:$0xff]  ;;  %11490 = vmatpush.bf16.msrb.mxu1 %v15315_v11  ;;  %v15320_v0 = vld [vmem:[%s21036_s9 + $0x300] sm:$0xff]  ;;  %vm21883_vm9 = vmmov %vm21794_vm0 }
 0x819   : > { %11581 = vmatpush.bf16.msrb.mxu2 %v15321_v53 }
 0x81b   : > { %v20523_v28 = vpop.f32.mrf.mxu3 }
 0x81c   : > { %21859 = vst [vmem:[#allocation58_spill] sm:$0xff] %v20523_v28  ;;  %v20525_v50 = vpop.f32.mrf.mxu2 }
 0x81d   : > { %v9247_v52 = vpop.f32.mrf.mxu1  ;;  %11582 = vmatpush.bf16.msrb.mxu2 %v15320_v0 }
 0x81e   : > { %v9161_v18 = vpop.f32.mrf.mxu0  ;;  %v20527_v13 = vadd.f32 %v9247_v52, %v9159_v3  ;;  %v14148_v3 = vor.u32 %v15207_v60, %v14147_v2  ;;  %v14167_v52 = vld [vmem:[#allocation4 + $0xf8] sm:$0xf]  ;;  %v15230_v60 = vld [vmem:[#allocation4 + $0x19c] sm:$0xf]  ;;  %v13839_v2 = vld [vmem:[#allocation4 + $0xe0] sm:$0xf] }
 0x81f   : > { %v9162_v58 = vadd.f32 %v9161_v18, %v20260_v4  ;;  %v14168_v18 = vor.u32 %v15211_v21, %v14167_v52 }
 0x820   : > { %21860 = vst [vmem:[#allocation62_spill] sm:$0xff] %v20527_v13 }
 0x821   : > { %10747 = vmatmul.bf16.gmra.mxu2 %v14236_v33  ;;  %14023 = vmatmul.msk.bf16.gmra.mxu0 %vm21861_vm7, %v13828_v15  ;;  %v14245_v15 = vld [vmem:[#allocation4 + $0x1a4] sm:$0xf0]  ;;  %vm21884_vm7 = vmmov %vm21794_vm0 }
 0x822   : > { %v14248_v53 = vor.u32 %v15230_v60, %v14245_v15  ;;  %v14179_v60 = vld [vmem:[#allocation4 + $0x110] sm:$0xf] }
 0x823   : > { %v20531_v23 = vpop.f32.mrf.mxu3 }
 0x824   : > { %21862 = vst [vmem:[#allocation66_spill] sm:$0xff] %v20531_v23  ;;  %v20536_v13 = vpop.f32.mrf.mxu2  ;;  %v15146_v23 = vld [vmem:[#allocation4 + $0x100] sm:$0xf0] }
 0x825   : > { %v9250_v28 = vpop.f32.mrf.mxu1 }
 0x826   : > { %v9163_v29 = vpop.f32.mrf.mxu0  ;;  %v20538_v4 = vadd.f32 %v9250_v28, %v9162_v58  ;;  %10623 = vmatmul.bf16.gmra.mxu1 %v14148_v3  ;;  %v15143_v28 = vld [vmem:[#allocation4 + $0xe8] sm:$0xf0] }
 0x827   : > { %v9164_v12 = vadd.f32 %v9163_v29, %v20273_v14  ;;  %14352 = vmatmul.msk.bf16.gmra.mxu3 %vm21864_vm5, %v14168_v18  ;;  %v13840_v52 = vor.u32 %v15143_v28, %v13839_v2  ;;  %v15210_v18 = vld [vmem:[#allocation4 + $0xf8] sm:$0xf0]  ;;  %vm21886_vm5 = vmmov %vm21794_vm0 }
 0x828   : > { %21863 = vst [vmem:[#allocation71_spill] sm:$0xff] %v20538_v4 }
 0x82b   : > { %v20548_v33 = vpop.f32.mrf.mxu3 }
 0x82c   : > { %21865 = vst [vmem:[#allocation78_spill] sm:$0xff] %v20548_v33  ;;  %v20553_v29 = vpop.f32.mrf.mxu2  ;;  %v15214_v33 = vld [vmem:[#allocation4 + $0x118] sm:$0xf0] }
 0x82d   : > { %v9252_v58 = vpop.f32.mrf.mxu1 }
 0x82e   : > { %v9166_v14 = vpop.f32.mrf.mxu0  ;;  %v20550_v21 = vadd.f32 %v9252_v58, %v9164_v12  ;;  %v14159_v12 = vld [vmem:[#allocation4 + $0xf0] sm:$0xf] }
 0x82f   : > { %v9167_v3 = vadd.f32 %v9166_v14, %v20293_v31  ;;  %v14160_v15 = vor.u32 %v15210_v18, %v14159_v12  ;;  %v14180_v14 = vor.u32 %v15214_v33, %v14179_v60  ;;  %v9872_v18 = vadd.f32 %v20198_v51, %v20004_v16  ;;  %v13851_v33 = vld [vmem:[#allocation4 + $0xf8] sm:$0xf]  ;;  %v14171_v60 = vld [vmem:[#allocation4 + $0x108] sm:$0xf] }
 0x830   : > { %21866 = vst [vmem:[#allocation84_spill] sm:$0xff] %v20550_v21  ;;  %v9874_v16 = vadd.f32 %v20211_v27, %v20017_v61  ;;  %v15306_v61 = vld [vmem:[%s21036_s9 + $0x290] sm:$0xff] }
 0x831   : > { %10752 = vmatmul.bf16.gmra.mxu2 %v14248_v53  ;;  %14024 = vmatmul.msk.bf16.gmra.mxu0 %vm21867_vm12, %v13840_v52  ;;  %v15233_v53 = vld [vmem:[#allocation4 + $0x1b4] sm:$0xf]  ;;  %v14257_v52 = vld [vmem:[#allocation4 + $0x1bc] sm:$0xf0]  ;;  %vm21888_vm12 = vmmov %vm21794_vm0 }
 0x832   : > { %v14260_v4 = vor.u32 %v15233_v53, %v14257_v52  ;;  %v15213_v53 = vld [vmem:[#allocation4 + $0x110] sm:$0xf0]  ;;  %v14191_v52 = vld [vmem:[#allocation4 + $0x128] sm:$0xf]  ;;  %v15314_v27 = vld [vmem:[%s21036_s9 + $0x2d0] sm:$0xff]  ;;  %11402 = vmatpush.bf16.msrb.mxu0 %v15306_v61 }
 0x833   : > { %v20559_v11 = vpop.f32.mrf.mxu3  ;;  %11491 = vmatpush.bf16.msrb.mxu1 %v15314_v27 }
 0x834   : > { %21868 = vst [vmem:[#allocation76_spill] sm:$0xff] %v20559_v11  ;;  %v20565_v21 = vpop.f32.mrf.mxu2 }
 0x835   : > { %v9255_v58 = vpop.f32.mrf.mxu1 }
 0x836   : > { %v9168_v31 = vpop.f32.mrf.mxu0  ;;  %v20561_v28 = vadd.f32 %v9255_v58, %v9167_v3  ;;  %10628 = vmatmul.bf16.gmra.mxu1 %v14160_v15 }
 0x837   : > { %v9169_v2 = vadd.f32 %v9168_v31, %v20306_v22  ;;  %14353 = vmatmul.msk.bf16.gmra.mxu3 %vm21870_vm1, %v14180_v14  ;;  %v13852_v22 = vor.u32 %v15146_v23, %v13851_v33  ;;  %v15217_v14 = vld [vmem:[#allocation4 + $0x130] sm:$0xf0]  ;;  %vm21890_vm1 = vmmov %vm21794_vm0 }
 0x838   : > { %21869 = vst [vmem:[#allocation87_spill] sm:$0xff] %v20561_v28 }
 0x83b   : > { %v10772_v11 = vpop.f32.mrf.mxu3 }
 0x83c   : > { %v20573_v28 = vpop.f32.mrf.mxu2 }
 0x83d   : > { %v9257_v0 = vpop.f32.mrf.mxu1 }
 0x83e   : > { %v20569_v12 = vadd.f32 %v9257_v0, %v9169_v2  ;;  %v9960_v3 = vpop.f32.mrf.mxu0  ;;  %v14172_v2 = vor.u32 %v15213_v53, %v14171_v60 }
 0x83f   : > { %v9961_v58 = vadd.f32 %v9960_v3, %v9872_v18 }
 0x841   : > { %10757 = vmatmul.bf16.gmra.mxu2 %v14260_v4  ;;  %v10040_v15 = vadd.f32 %v9961_v58, %v20218_v5  ;;  %14025 = vmatmul.msk.bf16.gmra.mxu0 %vm21871_vm14, %v13852_v22  ;;  %v14192_v4 = vor.u32 %v15217_v14, %v14191_v52  ;;  %v15149_v22 = vld [vmem:[#allocation4 + $0x118] sm:$0xf0]  ;;  %vm21893_vm14 = vmmov %vm21794_vm0 }
 0x843   : > { %v10774_v31 = vpop.f32.mrf.mxu3 }
 0x845   : > { %v10594_v51 = vpop.f32.mrf.mxu1 }
 0x846   : > { %v9962_v0 = vpop.f32.mrf.mxu0  ;;  %v10684_v23 = vadd.f32 %v20438_v47, %v10594_v51  ;;  %10633 = vmatmul.bf16.gmra.mxu1 %v14172_v2  ;;  %v15258_v47 = vld [vmem:[#allocation4 + $0x70] sm:$0xf0] }
 0x847   : > { %v9963_v18 = vadd.f32 %v9962_v0, %v9874_v16  ;;  %14354 = vmatmul.msk.bf16.gmra.mxu3 %vm21872_vm15, %v14192_v4  ;;  %v13863_v16 = vld [vmem:[#allocation4 + $0x110] sm:$0xf]  ;;  %vm21896_vm15 = vmmov %vm21794_vm0 }
 0x848   : > { %v10773_v5 = vadd.f32 %v10772_v11, %v10684_v23  ;;  %v9877_v11 = vadd.f32 %v20228_v8, %v20029_v49  ;;  %v13864_v52 = vor.u32 %v15149_v22, %v13863_v16  ;;  %v15216_v49 = vld [vmem:[#allocation4 + $0x128] sm:$0xf0]  ;;  %v9882_v16 = vadd.f32 %v20255_v20, %v20063_v30  ;;  %v15219_v30 = vld [vmem:[#allocation4 + $0x140] sm:$0xf0] }
 0x849   : > { %v10041_v3 = vadd.f32 %v9963_v18, %v20235_v32  ;;  %v14411_v32 = vld [vmem:[#allocation4 + $0x68] sm:$0xf]  ;;  %v15220_v18 = vld [vmem:[#allocation4 + $0x148] sm:$0xf0] }
 0x84a   : > { %v20580_v33 = vadd.f32 %v10773_v5, %v10040_v15  ;;  %v20590_v15 = vpop.f32.mrf.mxu2  ;;  %v14412_v51 = vor.u32 %v15258_v47, %v14411_v32  ;;  %v14183_v5 = vld [vmem:[#allocation4 + $0x120] sm:$0xf] }
 0x84b   : > { %v10777_v58 = vpop.f32.mrf.mxu3  ;;  %v14184_v27 = vor.u32 %v15216_v49, %v14183_v5  ;;  %v14203_v47 = vld [vmem:[#allocation4 + $0x140] sm:$0xf] }
 0x84d   : > { %v10596_v60 = vpop.f32.mrf.mxu1 }
 0x84e   : > { %v9965_v14 = vpop.f32.mrf.mxu0  ;;  %v10686_v53 = vadd.f32 %v20446_v24, %v10596_v60  ;;  %v9879_v24 = vadd.f32 %v20241_v38, %v20051_v46  ;;  %v15261_v46 = vld [vmem:[#allocation4 + $0x88] sm:$0xf0]  ;;  %v15152_v38 = vld [vmem:[#allocation4 + $0x130] sm:$0xf0] }
 0x84f   : > { %v9966_v2 = vadd.f32 %v9965_v14, %v9877_v11  ;;  %v14204_v11 = vor.u32 %v15220_v18, %v14203_v47 }
 0x850   : > { %v10775_v0 = vadd.f32 %v10774_v31, %v10686_v53 }
 0x851   : > { %14673 = vmatmul.msk.bf16.vlgmr.msrb.gmra.mxu2 %vm21873_vm3, %v14412_v51  ;;  %v10042_v23 = vadd.f32 %v9966_v2, %v20248_v6  ;;  %14026 = vmatmul.msk.bf16.gmra.mxu0 %vm21874_vm8, %v13864_v52  ;;  %vm21898_vm3 = vmmov %vm21794_vm0 }
 0x852   : > { %v20596_v4 = vadd.f32 %v10775_v0, %v10041_v3  ;;  %v20601_v6 = vpop.f32.mrf.mxu2  ;;  %v13875_v0 = vld [vmem:[#allocation4 + $0x128] sm:$0xf]  ;;  %vm21901_vm8 = vmmov %vm21794_vm0 }
 0x853   : > { %v10779_v8 = vpop.f32.mrf.mxu3  ;;  %v13876_v18 = vor.u32 %v15152_v38, %v13875_v0  ;;  %v13887_v0 = vld [vmem:[#allocation4 + $0x140] sm:$0xf] }
 0x855   : > { %v10599_v61 = vpop.f32.mrf.mxu1 }
 0x856   : > { %v9967_v22 = vpop.f32.mrf.mxu0  ;;  %v10689_v31 = vadd.f32 %v20454_v48, %v10599_v61  ;;  %10638 = vmatmul.bf16.gmra.mxu1 %v14184_v27  ;;  %v14423_v48 = vld [vmem:[#allocation4 + $0x80] sm:$0xf]  ;;  %v15223_v61 = vld [vmem:[#allocation4 + $0x160] sm:$0xf0]  ;;  %v14195_v27 = vld [vmem:[#allocation4 + $0x138] sm:$0xf] }
 0x857   : > { %v9968_v60 = vadd.f32 %v9967_v22, %v9879_v24  ;;  %14355 = vmatmul.msk.bf16.gmra.mxu3 %vm21875_vm4, %v14204_v11  ;;  %v14424_v49 = vor.u32 %v15261_v46, %v14423_v48  ;;  %v14196_v22 = vor.u32 %v15219_v30, %v14195_v27  ;;  %v14435_v48 = vld [vmem:[#allocation4 + $0x98] sm:$0xf]  ;;  %v15222_v27 = vld [vmem:[#allocation4 + $0x158] sm:$0xf0]  ;;  %vm21905_vm4 = vmmov %vm21794_vm0 }
 0x858   : > { %v10778_v3 = vadd.f32 %v10777_v58, %v10689_v31 }
 0x859   : > { %v10043_v32 = vadd.f32 %v9968_v60, %v20262_v34 }
 0x85a   : > { %v20605_v14 = vadd.f32 %v10778_v3, %v10042_v23  ;;  %v20613_v23 = vpop.f32.mrf.mxu2 }
 0x85b   : > { %v10782_v53 = vpop.f32.mrf.mxu3 }
 0x85d   : > { %v10601_v51 = vpop.f32.mrf.mxu1 }
 0x85e   : > { %v9970_v2 = vpop.f32.mrf.mxu0  ;;  %v10691_v52 = vadd.f32 %v20471_v39, %v10601_v51  ;;  %v9884_v39 = vadd.f32 %v20268_v45, %v20076_v7  ;;  %v15305_v7 = vld [vmem:[%s21036_s9 + $0x288] sm:$0xff]  ;;  %v15155_v51 = vld [vmem:[#allocation4 + $0x148] sm:$0xf0] }
 0x85f   : > { %v9971_v58 = vadd.f32 %v9970_v2, %v9882_v16  ;;  %v15313_v45 = vld [vmem:[%s21036_s9 + $0x2c8] sm:$0xff]  ;;  %11403 = vmatpush.bf16.msrb.mxu0 %v15305_v7 }
 0x860   : > { %v10780_v5 = vadd.f32 %v10779_v8, %v10691_v52  ;;  %v14215_v8 = vld [vmem:[#allocation4 + $0x158] sm:$0xf]  ;;  %11492 = vmatpush.bf16.msrb.mxu1 %v15313_v45  ;;  %v15158_v45 = vld [vmem:[#allocation4 + $0x160] sm:$0xf0] }
 0x861   : > { %14674 = vmatmul.msk.bf16.gmra.mxu2 %vm21876_vm13, %v14424_v49  ;;  %v10044_v34 = vadd.f32 %v9971_v58, %v20275_v63  ;;  %14027 = vmatmul.msk.bf16.gmra.mxu0 %vm21877_vm11, %v13876_v18  ;;  %v14216_v63 = vor.u32 %v15223_v61, %v14215_v8  ;;  %v13888_v18 = vor.u32 %v15155_v51, %v13887_v0  ;;  %v14207_v61 = vld [vmem:[#allocation4 + $0x150] sm:$0xf]  ;;  %vm21907_vm13 = vmmov %vm21794_vm0 }
 0x862   : > { %v20615_v24 = vadd.f32 %v10780_v5, %v10043_v32  ;;  %v20630_v16 = vpop.f32.mrf.mxu2  ;;  %v14227_v8 = vld [vmem:[#allocation4 + $0x170] sm:$0xf]  ;;  %vm21912_vm11 = vmmov %vm21794_vm0 }
 0x863   : > { %v10784_v20 = vpop.f32.mrf.mxu3 }
 0x865   : > { %v10604_v47 = vpop.f32.mrf.mxu1 }
 0x866   : > { %v9972_v31 = vpop.f32.mrf.mxu0  ;;  %v10694_v11 = vadd.f32 %v20479_v41, %v10604_v47  ;;  %10643 = vmatmul.bf16.gmra.mxu1 %v14196_v22  ;;  %v15264_v41 = vld [vmem:[#allocation4 + $0xa0] sm:$0xf0]  ;;  %v14208_v22 = vor.u32 %v15222_v27, %v14207_v61  ;;  %v14219_v61 = vld [vmem:[#allocation4 + $0x168] sm:$0xf] }
 0x867   : > { %v9973_v60 = vadd.f32 %v9972_v31, %v9884_v39  ;;  %14356 = vmatmul.msk.bf16.gmra.mxu3 %vm21878_vm10, %v14216_v63  ;;  %v14436_v49 = vor.u32 %v15264_v41, %v14435_v48  ;;  %v21881_v39 = vld [vmem:[#allocation17_spill] sm:$0xff]  ;;  %v21882_v41 = vld [vmem:[#allocation19_spill] sm:$0xff]  ;;  %vm21918_vm10 = vmmov %vm21794_vm0 }
 0x868   : > { %v10783_v3 = vadd.f32 %v10782_v53, %v10694_v11  ;;  %v9892_v51 = vadd.f32 %v20313_v17, %v21882_v41  ;;  %v15225_v17 = vld [vmem:[#allocation4 + $0x170] sm:$0xf0] }
 0x869   : > { %v10045_v32 = vadd.f32 %v9973_v60, %v20295_v40  ;;  %v9887_v40 = vadd.f32 %v20288_v54, %v20088_v35  ;;  %v15226_v54 = vld [vmem:[#allocation4 + $0x178] sm:$0xf0] }
 0x86a   : > { %v20622_v46 = vadd.f32 %v10783_v3, %v10044_v34  ;;  %v20642_v31 = vpop.f32.mrf.mxu2 }
 0x86b   : > { %v10787_v38 = vpop.f32.mrf.mxu3 }
 0x86d   : > { %v10606_v53 = vpop.f32.mrf.mxu1 }
 0x86e   : > { %v9975_v2 = vpop.f32.mrf.mxu0  ;;  %v10696_v52 = vadd.f32 %v20487_v59, %v10606_v53  ;;  %v9889_v59 = vadd.f32 %v20301_v55, %v21881_v39  ;;  %v15267_v55 = vld [vmem:[#allocation4 + $0xb8] sm:$0xf0]  ;;  %v14447_v53 = vld [vmem:[#allocation4 + $0xb0] sm:$0xf]  ;;  %v14220_v39 = vor.u32 %v15225_v17, %v14219_v61  ;;  %v15232_v17 = vld [vmem:[#allocation4 + $0x1a8] sm:$0xf0] }
 0x86f   : > { %v9976_v58 = vadd.f32 %v9975_v2, %v9887_v40  ;;  %v13899_v2 = vld [vmem:[#allocation4 + $0x158] sm:$0xf] }
 0x870   : > { %v10785_v5 = vadd.f32 %v10784_v20, %v10696_v52  ;;  %v14448_v52 = vor.u32 %v15267_v55, %v14447_v53  ;;  %v13900_v0 = vor.u32 %v15158_v45, %v13899_v2  ;;  %v14459_v45 = vld [vmem:[#allocation4 + $0xc8] sm:$0xf]  ;;  %v21891_v61 = vld [vmem:[#allocation21_spill] sm:$0xff] }
 0x871   : > { %14675 = vmatmul.msk.bf16.gmra.mxu2 %vm21879_vm6, %v14436_v49  ;;  %v10046_v34 = vadd.f32 %v9976_v58, %v20308_v1  ;;  %14028 = vmatmul.msk.bf16.gmra.mxu0 %vm21880_vm2, %v13888_v18  ;;  %v14228_v1 = vor.u32 %v15226_v54, %v14227_v8  ;;  %vm21925_vm6 = vmmov %vm21794_vm0 }
 0x872   : > { %v20638_v30 = vadd.f32 %v10785_v5, %v10045_v32  ;;  %v20652_v49 = vpop.f32.mrf.mxu2  ;;  %vm21932_vm2 = vmmov %vm21794_vm0 }
 0x873   : > { %v10789_v35 = vpop.f32.mrf.mxu3 }
 0x875   : > { %v10609_v47 = vpop.f32.mrf.mxu1 }
 0x876   : > { %v9977_v20 = vpop.f32.mrf.mxu0  ;;  %v10699_v11 = vadd.f32 %v20495_v19, %v10609_v47  ;;  %10648 = vmatmul.bf16.gmra.mxu1 %v14208_v22 }
 0x877   : > { %v9978_v63 = vadd.f32 %v9977_v20, %v9889_v59  ;;  %14357 = vmatmul.msk.bf16.gmra.mxu3 %vm21794_vm0, %v14228_v1  ;;  %v14239_v59 = vld [vmem:[#allocation4 + $0x188] sm:$0xf] }
 0x878   : > { %v10788_v60 = vadd.f32 %v10787_v38, %v10699_v11 }
 0x879   : > { %v10047_v3 = vadd.f32 %v9978_v63, %v20317_v57 }
 0x87a   : > { %v20647_v32 = vadd.f32 %v10788_v60, %v10046_v34  ;;  %v15229_v34 = vld [vmem:[#allocation4 + $0x190] sm:$0xf0]  ;;  %v20664_v11 = vpop.f32.mrf.mxu2 }
 0x87b   : > { %v10792_v7 = vpop.f32.mrf.mxu3  ;;  %v14240_v22 = vor.u32 %v15229_v34, %v14239_v59  ;;  %v15270_v60 = vld [vmem:[#allocation4 + $0xd0] sm:$0xf0] }
 0x87c   : > { %v14460_v53 = vor.u32 %v15270_v60, %v14459_v45  ;;  %v21894_v60 = vld [vmem:[#allocation23_spill] sm:$0xff] }
 0x87d   : > { %v10611_v40 = vpop.f32.mrf.mxu1 }
 0x87e   : > { %v9980_v48 = vpop.f32.mrf.mxu0  ;;  %v10701_v19 = vadd.f32 %v20509_v37, %v10611_v40  ;;  %v21885_v37 = vld [vmem:[#allocation7_spill] sm:$0xff]  ;;  %v13911_v40 = vld [vmem:[#allocation4 + $0x170] sm:$0xf] }
 0x87f   : > { %v9981_v38 = vadd.f32 %v9980_v48, %v9892_v51  ;;  %v9894_v54 = vadd.f32 %v20321_v26, %v21885_v37  ;;  %v15304_v26 = vld [vmem:[%s21036_s9 + $0x280] sm:$0xff] }
 0x880   : > { %v10790_v57 = vadd.f32 %v10789_v35, %v10701_v19  ;;  %11404 = vmatpush.bf16.msrb.mxu0 %v15304_v26  ;;  %v21892_v37 = vld [vmem:[#allocation36_spill] sm:$0xff]  ;;  %v15273_v26 = vld [vmem:[#allocation4 + $0xe8] sm:$0xf0] }
 0x881   : > { %14676 = vmatmul.msk.bf16.gmra.mxu2 %vm21883_vm9, %v14448_v52  ;;  %v10048_v58 = vadd.f32 %v9981_v38, %v20325_v42  ;;  %14029 = vmatmul.msk.bf16.gmra.mxu0 %vm21884_vm7, %v13900_v0  ;;  %v21889_v52 = vld [vmem:[#allocation22_spill] sm:$0xff]  ;;  %vm21944_vm9 = vmmov %vm21794_vm0 }
 0x882   : > { %v20657_v18 = vadd.f32 %v10790_v57, %v10047_v3  ;;  %v15161_v3 = vld [vmem:[#allocation4 + $0x178] sm:$0xf0]  ;;  %v15228_v57 = vld [vmem:[#allocation4 + $0x188] sm:$0xf0]  ;;  %v20682_v34 = vpop.f32.mrf.mxu2  ;;  %vm21950_vm7 = vmmov %vm21794_vm0 }
 0x883   : > { %v10794_v5 = vpop.f32.mrf.mxu3  ;;  %v13912_v19 = vor.u32 %v15161_v3, %v13911_v40  ;;  %v21895_v3 = vld [vmem:[#allocation39_spill] sm:$0xff] }
 0x885   : > { %v10614_v27 = vpop.f32.mrf.mxu1 }
 0x886   : > { %v9982_v47 = vpop.f32.mrf.mxu0  ;;  %v10704_v35 = vadd.f32 %v20517_v10, %v10614_v27  ;;  %10653 = vmatmul.bf16.gmra.mxu1 %v14220_v39  ;;  %v15312_v10 = vld [vmem:[%s21036_s9 + $0x2c0] sm:$0xff] }
 0x887   : > { %v9983_v8 = vadd.f32 %v9982_v47, %v9894_v54  ;;  %14358 = vmatmul.msk.bf16.gmra.mxu3 %vm21886_vm5, %v14240_v22  ;;  %11493 = vmatpush.bf16.msrb.mxu1 %v15312_v10  ;;  %v9899_v54 = vadd.f32 %v21892_v37, %v21891_v61  ;;  %v15164_v10 = vld [vmem:[#allocation4 + $0x190] sm:$0xf0]  ;;  %vm11732_vm5 = vcmask 64512  }
 0x888   : > { %v10793_v42 = vadd.f32 %v10792_v7, %v10704_v35  ;;  %v21887_v7 = vld [vmem:[#allocation20_spill] sm:$0xff] }
 0x889   : > { %v10049_v20 = vadd.f32 %v9983_v8, %v20340_v36  ;;  %v9897_v36 = vadd.f32 %v20336_v56, %v21887_v7  ;;  %v9902_v7 = vadd.f32 %v21895_v3, %v21894_v60  ;;  %v21900_v61 = vld [vmem:[#allocation40_spill] sm:$0xff]  ;;  %v13935_v60 = vld [vmem:[#allocation4 + $0x1a0] sm:$0xf]  ;;  %v15167_v3 = vld [vmem:[#allocation4 + $0x1a8] sm:$0xf0] }
 0x88a   : > { %v20666_v1 = vadd.f32 %v10793_v42, %v10048_v58  ;;  %v14251_v58 = vld [vmem:[#allocation4 + $0x1a0] sm:$0xf]  ;;  %v20693_v45 = vpop.f32.mrf.mxu2 }
 0x88b   : > { %v10797_v63 = vpop.f32.mrf.mxu3  ;;  %v14252_v47 = vor.u32 %v15232_v17, %v14251_v58  ;;  %v15231_v17 = vld [vmem:[#allocation4 + $0x1a0] sm:$0xf0] }
 0x88d   : > { %v10616_v55 = vpop.f32.mrf.mxu1 }
 0x88e   : > { %v9985_v41 = vpop.f32.mrf.mxu0  ;;  %v10706_v51 = vadd.f32 %v20525_v50, %v10616_v55  ;;  %v14231_v50 = vld [vmem:[#allocation4 + $0x180] sm:$0xf] }
 0x88f   : > { %v9986_v48 = vadd.f32 %v9985_v41, %v9897_v36  ;;  %v14471_v55 = vld [vmem:[#allocation4 + $0xe0] sm:$0xf] }
 0x890   : > { %v10795_v2 = vadd.f32 %v10794_v5, %v10706_v51  ;;  %v14232_v5 = vor.u32 %v15228_v57, %v14231_v50  ;;  %v14472_v51 = vor.u32 %v15273_v26, %v14471_v55  ;;  %v14243_v57 = vld [vmem:[#allocation4 + $0x198] sm:$0xf] }
 0x891   : > { %14677 = vmatmul.msk.bf16.gmra.mxu2 %vm21888_vm12, %v14460_v53  ;;  %v10050_v38 = vadd.f32 %v9986_v48, %v21889_v52  ;;  %14030 = vmatmul.msk.bf16.gmra.mxu0 %vm21890_vm1, %v13912_v19  ;;  %v21897_v48 = vld [vmem:[#allocation42_spill] sm:$0xff]  ;;  %vm21960_vm12 = vmmov %vm21794_vm0 }
 0x892   : > { %v20680_v0 = vadd.f32 %v10795_v2, %v10049_v20  ;;  %v14263_v2 = vld [vmem:[#allocation4 + $0x1b8] sm:$0xf]  ;;  %v15235_v52 = vld [vmem:[#allocation4 + $0x1c0] sm:$0xf0]  ;;  %vm21961_vm1 = vmmov %vm21794_vm0 }
 0x893   : > { %v10799_v56 = vpop.f32.mrf.mxu3  ;;  %v14264_v50 = vor.u32 %v15235_v52, %v14263_v2  ;;  %v14255_v52 = vld [vmem:[#allocation4 + $0x1b0] sm:$0xf] }
 0x895   : > { %v10619_v27 = vpop.f32.mrf.mxu1 }
 0x896   : > { %v9987_v39 = vpop.f32.mrf.mxu0  ;;  %v10709_v59 = vadd.f32 %v20536_v13, %v10619_v27  ;;  %10658 = vmatmul.bf16.gmra.mxu1 %v14232_v5  ;;  %v14244_v27 = vor.u32 %v15231_v17, %v14243_v57  ;;  %v15234_v57 = vld [vmem:[#allocation4 + $0x1b8] sm:$0xf0] }
 0x897   : > { %v9988_v35 = vadd.f32 %v9987_v39, %v9899_v54  ;;  %14359 = vmatmul.msk.bf16.gmra.mxu3 %vm21893_vm14, %v14252_v47 }
 0x898   : > { %v10798_v22 = vadd.f32 %v10797_v63, %v10709_v59  ;;  %v13923_v63 = vld [vmem:[#allocation4 + $0x188] sm:$0xf]  ;;  %v20704_v59 = vpop.f32.mrf.mxu2 }
 0x899   : > { %v10051_v8 = vadd.f32 %v9988_v35, %v20366_v62  ;;  %v13924_v53 = vor.u32 %v15164_v10, %v13923_v63  ;;  %v21902_v35 = vld [vmem:[#allocation30_spill] sm:$0xff] }
 0x89a   : > { %v20689_v42 = vadd.f32 %v10798_v22, %v10050_v38  ;;  %v15276_v10 = vld [vmem:[#allocation4 + $0x100] sm:$0xf0] }
 0x89b   : > { %v10802_v20 = vpop.f32.mrf.mxu3 }
 0x89d   : > { %v10621_v36 = vpop.f32.mrf.mxu1 }
 0x89e   : > { %v9990_v13 = vpop.f32.mrf.mxu0  ;;  %v10711_v41 = vadd.f32 %v20553_v29, %v10621_v36  ;;  %v21899_v29 = vld [vmem:[#allocation24_spill] sm:$0xff]  ;;  %v21904_v36 = vld [vmem:[#allocation45_spill] sm:$0xff] }
 0x89f   : > { %v9991_v40 = vadd.f32 %v9990_v13, %v9902_v7  ;;  %v9904_v37 = vadd.f32 %v21900_v61, %v21899_v29  ;;  %v21903_v7 = vld [vmem:[#allocation25_spill] sm:$0xff]  ;;  %v21909_v29 = vld [vmem:[#allocation47_spill] sm:$0xff] }
 0x8a0   : > { %v10800_v62 = vadd.f32 %v10799_v56, %v10711_v41  ;;  %v9907_v55 = vadd.f32 %v21904_v36, %v21903_v7 }
 0x8a1   : > { %14678 = vmatmul.msk.bf16.gmra.mxu2 %vm21896_vm15, %v14472_v51  ;;  %v10052_v19 = vadd.f32 %v9991_v40, %v21897_v48  ;;  %14031 = vmatmul.msk.bf16.gmra.mxu0 %vm21898_vm3, %v13924_v53  ;;  %v13936_v40 = vor.u32 %v15167_v3, %v13935_v60  ;;  %v21910_v60 = vld [vmem:[#allocation28_spill] sm:$0xff]  ;;  %v21911_v3 = vld [vmem:[#allocation35_spill] sm:$0xff] }
 0x8a2   : > { %v20699_v38 = vadd.f32 %v10800_v62, %v10051_v8  ;;  %v21906_v62 = vld [vmem:[#allocation48_spill] sm:$0xff]  ;;  %v9912_v7 = vadd.f32 %v21911_v3, %v21910_v60 }
 0x8a3   : > { %v10804_v58 = vpop.f32.mrf.mxu3 }
 0x8a5   : > { %v10624_v54 = vpop.f32.mrf.mxu1 }
 0x8a6   : > { %v9992_v56 = vpop.f32.mrf.mxu0  ;;  %v10714_v5 = vadd.f32 %v20565_v21, %v10624_v54  ;;  %10663 = vmatmul.bf16.gmra.mxu1 %v14244_v27  ;;  %v14483_v21 = vld [vmem:[#allocation4 + $0xf8] sm:$0xf] }
 0x8a7   : > { %v9993_v39 = vadd.f32 %v9992_v56, %v9904_v37  ;;  %14360 = vmatmul.msk.bf16.gmra.mxu3 %vm21901_vm8, %v14264_v50  ;;  %v14484_v51 = vor.u32 %v15276_v10, %v14483_v21  ;;  %v21908_v50 = vld [vmem:[#allocation27_spill] sm:$0xff]  ;;  %v14256_v37 = vor.u32 %v15234_v57, %v14255_v52  ;;  %v14403_v21 = vld [vmem:[#allocation4 + $0x60] sm:$0xf]  ;;  %v21914_v52 = vld [vmem:[#allocation52_spill] sm:$0xff] }
 0x8a8   : > { %v10803_v47 = vadd.f32 %v10802_v20, %v10714_v5  ;;  %v15257_v10 = vld [vmem:[#allocation4 + $0x68] sm:$0xf0] }
 0x8a9   : > { %v10053_v22 = vadd.f32 %v9993_v39, %v21902_v35  ;;  %v15279_v35 = vld [vmem:[#allocation4 + $0x118] sm:$0xf0] }
 0x8aa   : > { %v20708_v8 = vadd.f32 %v10803_v47, %v10052_v19  ;;  %v20716_v19 = vpop.f32.mrf.mxu2 }
 0x8ab   : > { %v10807_v26 = vpop.f32.mrf.mxu3 }
 0x8ad   : > { %v10626_v13 = vpop.f32.mrf.mxu1 }
 0x8ae   : > { %v9995_v41 = vpop.f32.mrf.mxu0  ;;  %v10716_v63 = vadd.f32 %v20573_v28, %v10626_v13  ;;  %v9909_v28 = vadd.f32 %v21909_v29, %v21908_v50 }
 0x8af   : > { %v9996_v20 = vadd.f32 %v9995_v41, %v9907_v55  ;;  %v14495_v55 = vld [vmem:[#allocation4 + $0x110] sm:$0xf] }
 0x8b0   : > { %v10805_v53 = vadd.f32 %v10804_v58, %v10716_v63  ;;  %v14496_v41 = vor.u32 %v15279_v35, %v14495_v55  ;;  %v14404_v63 = vor.u32 %v15257_v10, %v14403_v21  ;;  %v21916_v35 = vld [vmem:[#allocation12_spill] sm:$0xff]  ;;  %v21917_v10 = vld [vmem:[#allocation38_spill] sm:$0xff] }
 0x8b1   : > { %14679 = vmatmul.msk.bf16.gmra.mxu2 %vm21905_vm4, %v14484_v51  ;;  %v10054_v48 = vadd.f32 %v9996_v20, %v21906_v62  ;;  %14032 = vmatmul.msk.bf16.gmra.mxu0 %vm21907_vm13, %v13936_v40  ;;  %v14405_v40 = vld [vmem:[#allocation4 + $0x6c] sm:$0xf0]  ;;  %v15256_v62 = vld [vmem:[#allocation4 + $0x64] sm:$0xf]  ;;  %v9917_v60 = vadd.f32 %v21917_v10, %v21916_v35  ;;  %v15263_v35 = vld [vmem:[#allocation4 + $0x98] sm:$0xf0] }
 0x8b2   : > { %v20718_v2 = vadd.f32 %v10805_v53, %v10053_v22  ;;  %v20726_v22 = vpop.f32.mrf.mxu2  ;;  %v21923_v10 = vld [vmem:[#allocation32_spill] sm:$0xff] }
 0x8b3   : > { %v10809_v17 = vpop.f32.mrf.mxu3 }
 0x8b5   : > { %v10629_v61 = vpop.f32.mrf.mxu1 }
 0x8b6   : > { %v9997_v54 = vpop.f32.mrf.mxu0  ;;  %v10719_v58 = vadd.f32 %v20590_v15, %v10629_v61  ;;  %10668 = vmatmul.bf16.gmra.mxu1 %v14256_v37 }
 0x8b7   : > { %v9998_v27 = vadd.f32 %v9997_v54, %v9909_v28 }
 0x8b8   : > { %v10808_v56 = vadd.f32 %v10807_v26, %v10719_v58 }
 0x8b9   : > { %v10055_v5 = vadd.f32 %v9998_v27, %v20410_v43 }
 0x8ba   : > { %v20724_v39 = vadd.f32 %v10808_v56, %v10054_v48  ;;  %v21913_v48 = vld [vmem:[#allocation29_spill] sm:$0xff]  ;;  %v20737_v29 = vpop.f32.mrf.mxu2  ;;  %v15282_v56 = vld [vmem:[#allocation4 + $0x130] sm:$0xf0] }
 0x8bb   : > { %v10812_v47 = vpop.f32.mrf.mxu3  ;;  %v9914_v57 = vadd.f32 %v21914_v52, %v21913_v48  ;;  %v21920_v48 = vld [vmem:[#allocation31_spill] sm:$0xff]  ;;  %v21921_v52 = vld [vmem:[#allocation56_spill] sm:$0xff] }
 0x8bd   : > { %v10631_v36 = vpop.f32.mrf.mxu1 }
 0x8be   : > { %v10000_v13 = vpop.f32.mrf.mxu0  ;;  %v10721_v15 = vadd.f32 %v20601_v6, %v10631_v36  ;;  %v14408_v6 = vor.u32 %v15256_v62, %v14405_v40  ;;  %v15259_v62 = vld [vmem:[#allocation4 + $0x7c] sm:$0xf] }
 0x8bf   : > { %v10001_v26 = vadd.f32 %v10000_v13, %v9912_v7  ;;  %v14507_v7 = vld [vmem:[#allocation4 + $0x128] sm:$0xf]  ;;  %v15260_v13 = vld [vmem:[#allocation4 + $0x80] sm:$0xf0] }
 0x8c0   : > { %v10810_v43 = vadd.f32 %v10809_v17, %v10721_v15 }
 0x8c1   : > { %14680 = vmatmul.msk.bf16.gmra.mxu2 %vm21912_vm11, %v14496_v41  ;;  %v10056_v51 = vadd.f32 %v10001_v26, %v20418_v9  ;;  %11405 = vmatmul.bf16.vlgmr.msrb.gmra.mxu0 %v14404_v63  ;;  %v21915_v9 = vld [vmem:[#allocation57_spill] sm:$0xff]  ;;  %v21919_v26 = vld [vmem:[#allocation43_spill] sm:$0xff] }
 0x8c2   : > { %v20733_v20 = vadd.f32 %v10810_v43, %v10055_v5  ;;  %v14415_v5 = vld [vmem:[#allocation4 + $0x78] sm:$0xf] }
 0x8c3   : > { %v10814_v53 = vpop.f32.mrf.mxu3  ;;  %v14416_v21 = vor.u32 %v15260_v13, %v14415_v5  ;;  %v15285_v5 = vld [vmem:[#allocation4 + $0x148] sm:$0xf0]  ;;  %v14427_v13 = vld [vmem:[#allocation4 + $0x90] sm:$0xf] }
 0x8c5   : > { %v10634_v50 = vpop.f32.mrf.mxu1 }
 0x8c6   : > { %v10002_v28 = vpop.f32.mrf.mxu0  ;;  %v10724_v17 = vadd.f32 %v20613_v23, %v10634_v50  ;;  %11494 = vmatmul.bf16.vlgmr.msrb.gmra.mxu1 %v14408_v6  ;;  %v14508_v23 = vor.u32 %v15282_v56, %v14507_v7 }
 0x8c7   : > { %v10003_v61 = vadd.f32 %v10002_v28, %v9914_v57 }
 0x8c8   : > { %v10813_v37 = vadd.f32 %v10812_v47, %v10724_v17  ;;  %v20746_v47 = vpop.f32.mrf.mxu2 }
 0x8c9   : > { %v10057_v54 = vadd.f32 %v10003_v61, %v21915_v9  ;;  %v21922_v61 = vld [vmem:[#allocation61_spill] sm:$0xff] }
 0x8ca   : > { %v20741_v58 = vadd.f32 %v10813_v37, %v10056_v51  ;;  %v14417_v51 = vld [vmem:[#allocation4 + $0x84] sm:$0xf0] }
 0x8cb   : > { %v10817_v27 = vpop.f32.mrf.mxu3  ;;  %v14420_v50 = vor.u32 %v15259_v62, %v14417_v51  ;;  %v15262_v51 = vld [vmem:[#allocation4 + $0x94] sm:$0xf] }
 0x8cd   : > { %v10636_v3 = vpop.f32.mrf.mxu1 }
 0x8ce   : > { %v10005_v36 = vpop.f32.mrf.mxu0  ;;  %v10726_v55 = vadd.f32 %v20630_v16, %v10636_v3  ;;  %v9919_v16 = vadd.f32 %v21921_v52, %v21920_v48  ;;  %v14429_v52 = vld [vmem:[#allocation4 + $0x9c] sm:$0xf0] }
 0x8cf   : > { %v10006_v15 = vadd.f32 %v10005_v36, %v9917_v60  ;;  %v21924_v60 = vld [vmem:[#allocation59_spill] sm:$0xff]  ;;  %v14519_v36 = vld [vmem:[#allocation4 + $0x140] sm:$0xf] }
 0x8d0   : > { %v10815_v41 = vadd.f32 %v10814_v53, %v10726_v55  ;;  %v20756_v9 = vpop.f32.mrf.mxu2  ;;  %v9922_v3 = vadd.f32 %v21924_v60, %v21923_v10  ;;  %v15288_v10 = vld [vmem:[#allocation4 + $0x160] sm:$0xf0]  ;;  %v15266_v60 = vld [vmem:[#allocation4 + $0xb0] sm:$0xf0] }
 0x8d1   : > { %14681 = vmatmul.msk.bf16.gmra.mxu2 %vm21918_vm10, %v14508_v23  ;;  %v10058_v63 = vadd.f32 %v10006_v15, %v21919_v26  ;;  %11410 = vmatmul.bf16.gmra.mxu0 %v14416_v21  ;;  %v14520_v23 = vor.u32 %v15285_v5, %v14519_v36  ;;  %v14428_v15 = vor.u32 %v15263_v35, %v14427_v13 }
 0x8d2   : > { %v20750_v43 = vadd.f32 %v10815_v41, %v10057_v54  ;;  %v21926_v41 = vld [vmem:[#allocation46_spill] sm:$0xff] }
 0x8d3   : > { %v10819_v40 = vpop.f32.mrf.mxu3 }
 0x8d5   : > { %v10639_v57 = vpop.f32.mrf.mxu1 }
 0x8d6   : > { %v10007_v6 = vpop.f32.mrf.mxu0  ;;  %v10729_v28 = vadd.f32 %v20642_v31, %v10639_v57  ;;  %11499 = vmatmul.bf16.gmra.mxu1 %v14420_v50  ;;  %v21928_v57 = vld [vmem:[#allocation60_spill] sm:$0xff] }
 0x8d7   : > { %v10008_v17 = vadd.f32 %v10007_v6, %v9919_v16  ;;  %v21927_v16 = vld [vmem:[#allocation33_spill] sm:$0xff]  ;;  %v14432_v6 = vor.u32 %v15262_v51, %v14429_v52 }
 0x8d8   : > { %v10818_v53 = vadd.f32 %v10817_v27, %v10729_v28  ;;  %v20767_v48 = vpop.f32.mrf.mxu2 }
 0x8d9   : > { %v10059_v37 = vadd.f32 %v10008_v17, %v21922_v61  ;;  %v21929_v61 = vld [vmem:[#allocation65_spill] sm:$0xff] }
 0x8da   : > { %v20758_v54 = vadd.f32 %v10818_v53, %v10058_v63 }
 0x8db   : > { %v10822_v56 = vpop.f32.mrf.mxu3 }
 0x8dd   : > { %v10641_v7 = vpop.f32.mrf.mxu1 }
 0x8de   : > { %v10010_v55 = vpop.f32.mrf.mxu0  ;;  %v10731_v31 = vadd.f32 %v20652_v49, %v10641_v7  ;;  %v9924_v49 = vadd.f32 %v21928_v57, %v21927_v16  ;;  %v21931_v7 = vld [vmem:[#allocation63_spill] sm:$0xff]  ;;  %v14441_v16 = vld [vmem:[#allocation4 + $0xb4] sm:$0xf0] }
 0x8df   : > { %v10011_v27 = vadd.f32 %v10010_v55, %v9922_v3  ;;  %v21930_v3 = vld [vmem:[#allocation34_spill] sm:$0xff] }
 0x8e0   : > { %v10820_v21 = vadd.f32 %v10819_v40, %v10731_v31  ;;  %v9927_v36 = vadd.f32 %v21931_v7, %v21930_v3  ;;  %v14531_v31 = vld [vmem:[#allocation4 + $0x158] sm:$0xf]  ;;  %v20777_v13 = vpop.f32.mrf.mxu2 }
 0x8e1   : > { %14682 = vmatmul.msk.bf16.gmra.mxu2 %vm21925_vm6, %v14520_v23  ;;  %v10060_v26 = vadd.f32 %v10011_v27, %v21926_v41  ;;  %11415 = vmatmul.bf16.gmra.mxu0 %v14428_v15  ;;  %v14439_v27 = vld [vmem:[#allocation4 + $0xa8] sm:$0xf]  ;;  %v14532_v15 = vor.u32 %v15288_v10, %v14531_v31  ;;  %v21937_v31 = vld [vmem:[#allocation37_spill] sm:$0xff] }
 0x8e2   : > { %v20765_v63 = vadd.f32 %v10820_v21, %v10059_v37  ;;  %v14440_v21 = vor.u32 %v15266_v60, %v14439_v27  ;;  %v21936_v60 = vld [vmem:[#allocation68_spill] sm:$0xff] }
 0x8e3   : > { %v10824_v62 = vpop.f32.mrf.mxu3 }
 0x8e5   : > { %v10644_v50 = vpop.f32.mrf.mxu1 }
 0x8e6   : > { %v10012_v28 = vpop.f32.mrf.mxu0  ;;  %v10734_v40 = vadd.f32 %v20664_v11, %v10644_v50  ;;  %11504 = vmatmul.bf16.gmra.mxu1 %v14432_v6  ;;  %v21934_v50 = vld [vmem:[#allocation18_spill] sm:$0xff]  ;;  %v21935_v6 = vld [vmem:[#allocation64_spill] sm:$0xff] }
 0x8e7   : > { %v10013_v17 = vadd.f32 %v10012_v28, %v9924_v49  ;;  %v15265_v49 = vld [vmem:[#allocation4 + $0xac] sm:$0xf]  ;;  %v9929_v28 = vadd.f32 %v21935_v6, %v21934_v50 }
 0x8e8   : > { %v10823_v53 = vadd.f32 %v10822_v56, %v10734_v40 }
 0x8e9   : > { %v10061_v5 = vadd.f32 %v10013_v17, %v21929_v61 }
 0x8ea   : > { %v20773_v37 = vadd.f32 %v10823_v53, %v10060_v26  ;;  %v21933_v26 = vld [vmem:[#allocation50_spill] sm:$0xff] }
 0x8eb   : > { %v10827_v35 = vpop.f32.mrf.mxu3 }
 0x8ed   : > { %v10646_v55 = vpop.f32.mrf.mxu1 }
 0x8ee   : > { %v10015_v23 = vpop.f32.mrf.mxu0  ;;  %v10736_v11 = vadd.f32 %v20682_v34, %v10646_v55  ;;  %v14444_v34 = vor.u32 %v15265_v49, %v14441_v16  ;;  %v14451_v55 = vld [vmem:[#allocation4 + $0xc0] sm:$0xf] }
 0x8ef   : > { %v10016_v56 = vadd.f32 %v10015_v23, %v9927_v36  ;;  %v15291_v36 = vld [vmem:[#allocation4 + $0x178] sm:$0xf0]  ;;  %v21938_v23 = vld [vmem:[#allocation67_spill] sm:$0xff] }
 0x8f0   : > { %v10825_v41 = vadd.f32 %v10824_v62, %v10736_v11  ;;  %v20787_v62 = vpop.f32.mrf.mxu2  ;;  %v9932_v11 = vadd.f32 %v21938_v23, %v21937_v31 }
 0x8f1   : > { %14683 = vmatmul.msk.bf16.gmra.mxu2 %vm21932_vm2, %v14532_v15  ;;  %v10062_v51 = vadd.f32 %v10016_v56, %v21933_v26  ;;  %11420 = vmatmul.bf16.gmra.mxu0 %v14440_v21  ;;  %v14543_v15 = vld [vmem:[#allocation4 + $0x170] sm:$0xf]  ;;  %v15269_v21 = vld [vmem:[#allocation4 + $0xc8] sm:$0xf0] }
 0x8f2   : > { %v20782_v52 = vadd.f32 %v10825_v41, %v10061_v5  ;;  %v14544_v41 = vor.u32 %v15291_v36, %v14543_v15  ;;  %v14452_v16 = vor.u32 %v15269_v21, %v14451_v55  ;;  %v21942_v15 = vld [vmem:[#allocation26_spill] sm:$0xff] }
 0x8f3   : > { %v10829_v57 = vpop.f32.mrf.mxu3 }
 0x8f5   : > { %v10649_v40 = vpop.f32.mrf.mxu1 }
 0x8f6   : > { %v10017_v17 = vpop.f32.mrf.mxu0  ;;  %v10739_v53 = vadd.f32 %v20693_v45, %v10649_v40  ;;  %11509 = vmatmul.bf16.gmra.mxu1 %v14444_v34  ;;  %v15268_v34 = vld [vmem:[#allocation4 + $0xc4] sm:$0xf] }
 0x8f7   : > { %v10018_v61 = vadd.f32 %v10017_v17, %v9929_v28  ;;  %v14453_v28 = vld [vmem:[#allocation4 + $0xcc] sm:$0xf0]  ;;  %v21940_v17 = vld [vmem:[#allocation41_spill] sm:$0xff] }
 0x8f8   : > { %v10828_v10 = vadd.f32 %v10827_v35, %v10739_v53  ;;  %v20797_v50 = vpop.f32.mrf.mxu2  ;;  %v21941_v53 = vld [vmem:[#allocation69_spill] sm:$0xff] }
 0x8f9   : > { %v10063_v3 = vadd.f32 %v10018_v61, %v21936_v60 }
 0x8fa   : > { %v20790_v5 = vadd.f32 %v10828_v10, %v10062_v51  ;;  %v21939_v51 = vld [vmem:[#allocation54_spill] sm:$0xff]  ;;  %v14456_v10 = vor.u32 %v15268_v34, %v14453_v28 }
 0x8fb   : > { %v10832_v7 = vpop.f32.mrf.mxu3 }
 0x8fd   : > { %v10651_v27 = vpop.f32.mrf.mxu1 }
 0x8fe   : > { %v10020_v56 = vpop.f32.mrf.mxu0  ;;  %v10741_v45 = vadd.f32 %v20704_v59, %v10651_v27  ;;  %v9934_v59 = vadd.f32 %v21941_v53, %v21940_v17  ;;  %v15272_v27 = vld [vmem:[#allocation4 + $0xe0] sm:$0xf0]  ;;  %v15271_v17 = vld [vmem:[#allocation4 + $0xdc] sm:$0xf]  ;;  %v14465_v53 = vld [vmem:[#allocation4 + $0xe4] sm:$0xf0] }
 0x8ff   : > { %v10021_v26 = vadd.f32 %v10020_v56, %v9932_v11  ;;  %v21943_v56 = vld [vmem:[#allocation70_spill] sm:$0xff] }
 0x900   : > { %v10830_v35 = vadd.f32 %v10829_v57, %v10741_v45  ;;  %v20807_v11 = vpop.f32.mrf.mxu2  ;;  %v9937_v45 = vadd.f32 %v21943_v56, %v21942_v15  ;;  %v14567_v56 = vld [vmem:[#allocation4 + $0x1a0] sm:$0xf] }
 0x901   : > { %14684 = vmatmul.msk.bf16.gmra.mxu2 %vm21794_vm0, %v14544_v41  ;;  %v10064_v49 = vadd.f32 %v10021_v26, %v21939_v51  ;;  %11425 = vmatmul.bf16.gmra.mxu0 %v14452_v16  ;;  %v14555_v26 = vld [vmem:[#allocation4 + $0x188] sm:$0xf] }
 0x902   : > { %v20799_v6 = vadd.f32 %v10830_v35, %v10063_v3  ;;  %v15294_v3 = vld [vmem:[#allocation4 + $0x190] sm:$0xf0]  ;;  %v14463_v35 = vld [vmem:[#allocation4 + $0xd8] sm:$0xf] }
 0x903   : > { %v10834_v40 = vpop.f32.mrf.mxu3  ;;  %v14556_v51 = vor.u32 %v15294_v3, %v14555_v26  ;;  %v14464_v28 = vor.u32 %v15272_v27, %v14463_v35  ;;  %v21948_v26 = vld [vmem:[#allocation49_spill] sm:$0xff] }
 0x905   : > { %v10654_v61 = vpop.f32.mrf.mxu1 }
 0x906   : > { %v10022_v60 = vpop.f32.mrf.mxu0  ;;  %v10744_v57 = vadd.f32 %v20716_v19, %v10654_v61  ;;  %11514 = vmatmul.bf16.gmra.mxu1 %v14456_v10  ;;  %v21946_v61 = vld [vmem:[#allocation72_spill] sm:$0xff] }
 0x907   : > { %v10023_v36 = vadd.f32 %v10022_v60, %v9934_v59  ;;  %v21945_v59 = vld [vmem:[#allocation44_spill] sm:$0xff] }
 0x908   : > { %v10833_v55 = vadd.f32 %v10832_v7, %v10744_v57  ;;  %v9939_v10 = vadd.f32 %v21946_v61, %v21945_v59  ;;  %v14468_v57 = vor.u32 %v15271_v17, %v14465_v53  ;;  %v21951_v59 = vld [vmem:[#allocation71_spill] sm:$0xff] }
 0x909   : > { %v10065_v31 = vadd.f32 %v10023_v36, %v20511_v44 }
 0x90a   : > { %v20805_v23 = vadd.f32 %v10833_v55, %v10064_v49 }
 0x90b   : > { %v10837_v21 = vpop.f32.mrf.mxu3 }
 0x90d   : > { %v10656_v41 = vpop.f32.mrf.mxu1 }
 0x90e   : > { %v10025_v16 = vpop.f32.mrf.mxu0  ;;  %v10746_v19 = vadd.f32 %v20726_v22, %v10656_v41  ;;  %v20818_v22 = vpop.f32.mrf.mxu2  ;;  %v15275_v41 = vld [vmem:[#allocation4 + $0xf8] sm:$0xf0] }
 0x90f   : > { %v10026_v7 = vadd.f32 %v10025_v16, %v9937_v45  ;;  %v15297_v45 = vld [vmem:[#allocation4 + $0x1a8] sm:$0xf0]  ;;  %v21949_v16 = vld [vmem:[#allocation58_spill] sm:$0xff] }
 0x910   : > { %v10835_v44 = vadd.f32 %v10834_v40, %v10746_v19  ;;  %v9942_v19 = vadd.f32 %v21949_v16, %v21948_v26 }
 0x911   : > { %14685 = vmatmul.msk.bf16.gmra.mxu2 %vm21944_vm9, %v14556_v51  ;;  %v10066_v49 = vadd.f32 %v10026_v7, %v20519_v25  ;;  %11430 = vmatmul.bf16.gmra.mxu0 %v14464_v28  ;;  %v21947_v25 = vld [vmem:[#allocation62_spill] sm:$0xff]  ;;  %v14475_v28 = vld [vmem:[#allocation4 + $0xf0] sm:$0xf] }
 0x912   : > { %v20814_v34 = vadd.f32 %v10835_v44, %v10065_v31  ;;  %v14476_v17 = vor.u32 %v15275_v41, %v14475_v28  ;;  %v21954_v41 = vld [vmem:[#allocation84_spill] sm:$0xff] }
 0x913   : > { %v10839_v40 = vpop.f32.mrf.mxu3 }
 0x915   : > { %v10659_v60 = vpop.f32.mrf.mxu1 }
 0x916   : > { %v10027_v36 = vpop.f32.mrf.mxu0  ;;  %v10749_v55 = vadd.f32 %v20737_v29, %v10659_v60  ;;  %11519 = vmatmul.bf16.gmra.mxu1 %v14468_v57  ;;  %v14568_v29 = vor.u32 %v15297_v45, %v14567_v56  ;;  %v20827_v53 = vpop.f32.mrf.mxu2  ;;  %v14477_v60 = vld [vmem:[#allocation4 + $0xfc] sm:$0xf0]  ;;  %v15274_v57 = vld [vmem:[#allocation4 + $0xf4] sm:$0xf] }
 0x917   : > { %v10028_v3 = vadd.f32 %v10027_v36, %v9939_v10  ;;  %v21952_v36 = vld [vmem:[#allocation51_spill] sm:$0xff] }
 0x918   : > { %v10838_v27 = vadd.f32 %v10837_v21, %v10749_v55  ;;  %v21953_v55 = vld [vmem:[#allocation66_spill] sm:$0xff] }
 0x919   : > { %v10067_v15 = vadd.f32 %v10028_v3, %v21947_v25 }
 0x91a   : > { %v20822_v31 = vadd.f32 %v10838_v27, %v10066_v49  ;;  %v14480_v27 = vor.u32 %v15274_v57, %v14477_v60  ;;  %v21957_v60 = vld [vmem:[#allocation87_spill] sm:$0xff] }
 0x91b   : > { %v10842_v49 = vpop.f32.mrf.mxu3 }
 0x91d   : > { %v10661_v35 = vpop.f32.mrf.mxu1 }
 0x91e   : > { %v10030_v51 = vpop.f32.mrf.mxu0  ;;  %v10751_v7 = vadd.f32 %v20746_v47, %v10661_v35  ;;  %v9944_v47 = vadd.f32 %v21953_v55, %v21952_v36  ;;  %v21955_v35 = vld [vmem:[#allocation53_spill] sm:$0xff] }
 0x91f   : > { %v10031_v44 = vadd.f32 %v10030_v51, %v9942_v19  ;;  %v21956_v51 = vld [vmem:[#allocation78_spill] sm:$0xff]  ;;  %v14489_v36 = vld [vmem:[#allocation4 + $0x114] sm:$0xf0] }
 0x920   : > { %v10840_v21 = vadd.f32 %v10839_v40, %v10751_v7  ;;  %v9947_v7 = vadd.f32 %v21956_v51, %v21955_v35  ;;  %v15281_v51 = vld [vmem:[#allocation4 + $0x128] sm:$0xf0] }
 0x921   : > { %14686 = vmatmul.msk.bf16.gmra.mxu2 %vm21950_vm7, %v14568_v29  ;;  %v10068_v61 = vadd.f32 %v10031_v44, %v21951_v59  ;;  %11435 = vmatmul.bf16.gmra.mxu0 %v14476_v17  ;;  %v15278_v17 = vld [vmem:[#allocation4 + $0x110] sm:$0xf0] }
 0x922   : > { %v20831_v10 = vadd.f32 %v10840_v21, %v10067_v15  ;;  %v14487_v15 = vld [vmem:[#allocation4 + $0x108] sm:$0xf] }
 0x923   : > { %v10844_v19 = vpop.f32.mrf.mxu3  ;;  %v14488_v59 = vor.u32 %v15278_v17, %v14487_v15  ;;  %v14499_v17 = vld [vmem:[#allocation4 + $0x120] sm:$0xf] }
 0x925   : > { %v10664_v3 = vpop.f32.mrf.mxu1 }
 0x926   : > { %v10032_v25 = vpop.f32.mrf.mxu0  ;;  %v10754_v56 = vadd.f32 %v20756_v9, %v10664_v3  ;;  %11524 = vmatmul.bf16.gmra.mxu1 %v14480_v27  ;;  %v21958_v3 = vld [vmem:[#allocation55_spill] sm:$0xff]  ;;  %v21959_v27 = vld [vmem:[#allocation76_spill] sm:$0xff] }
 0x927   : > { %v10033_v45 = vadd.f32 %v10032_v25, %v9944_v47  ;;  %v15277_v47 = vld [vmem:[#allocation4 + $0x10c] sm:$0xf]  ;;  %v9949_v25 = vadd.f32 %v21959_v27, %v21958_v3 }
 0x928   : > { %v10843_v40 = vadd.f32 %v10842_v49, %v10754_v56  ;;  %v20843_v49 = vpop.f32.mrf.mxu2 }
 0x929   : > { %v10069_v26 = vadd.f32 %v10033_v45, %v21954_v41  ;;  %v14492_v45 = vor.u32 %v15277_v47, %v14489_v36 }
 0x92a   : > { %v20837_v16 = vadd.f32 %v10843_v40, %v10068_v61 }
 0x92b   : > { %v10847_v55 = vpop.f32.mrf.mxu3 }
 0x92d   : > { %v10666_v28 = vpop.f32.mrf.mxu1 }
 0x92e   : > { %v10035_v29 = vpop.f32.mrf.mxu0  ;;  %v10756_v44 = vadd.f32 %v20767_v48, %v10666_v28 }
 0x92f   : > { %v10036_v21 = vadd.f32 %v10035_v29, %v9947_v7 }
 0x930   : > { %v10845_v9 = vadd.f32 %v10844_v19, %v10756_v44 }
 0x931   : > { %v10070_v57 = vadd.f32 %v10036_v21, %v21957_v60  ;;  %11440 = vmatmul.bf16.gmra.mxu0 %v14488_v59  ;;  %v14500_v21 = vor.u32 %v15281_v51, %v14499_v17  ;;  %v14501_v60 = vld [vmem:[#allocation4 + $0x12c] sm:$0xf0]  ;;  %v14513_v51 = vld [vmem:[#allocation4 + $0x144] sm:$0xf0] }
 0x932   : > { %v20845_v61 = vadd.f32 %v10845_v9, %v10069_v26  ;;  %v20853_v26 = vpop.f32.mrf.mxu2  ;;  %v15280_v9 = vld [vmem:[#allocation4 + $0x124] sm:$0xf] }
 0x933   : > { %v10849_v28 = vpop.f32.mrf.mxu3 }
 0x935   : > { %v10669_v56 = vpop.f32.mrf.mxu1 }
 0x936   : > { %v10037_v48 = vpop.f32.mrf.mxu0  ;;  %v10759_v40 = vadd.f32 %v20777_v13, %v10669_v56  ;;  %11529 = vmatmul.bf16.gmra.mxu1 %v14492_v45  ;;  %v15284_v56 = vld [vmem:[#allocation4 + $0x140] sm:$0xf0] }
 0x937   : > { %v10038_v41 = vadd.f32 %v10037_v48, %v9949_v25 }
 0x938   : > { %v10848_v19 = vadd.f32 %v10847_v55, %v10759_v40  ;;  %v14511_v40 = vld [vmem:[#allocation4 + $0x138] sm:$0xf] }
 0x939   : > { %v10071_v15 = vadd.f32 %v10038_v41, %v20569_v12  ;;  %v14512_v41 = vor.u32 %v15284_v56, %v14511_v40  ;;  %v15286_v56 = vld [vmem:[#allocation4 + $0x154] sm:$0xf] }
 0x93a   : > { %v20851_v35 = vadd.f32 %v10848_v19, %v10070_v57  ;;  %v14504_v57 = vor.u32 %v15280_v9, %v14501_v60  ;;  %v20858_v47 = vpop.f32.mrf.mxu2  ;;  %v14523_v60 = vld [vmem:[#allocation4 + $0x150] sm:$0xf] }
 0x93d   : > { %v10671_v7 = vpop.f32.mrf.mxu1 }
 0x93e   : > { %v10761_v29 = vadd.f32 %v20787_v62, %v10671_v7  ;;  %v11406_v44 = vpop.f32.mrf.mxu0  ;;  %v20864_v62 = vld [vmem:[%s21037_s10] ss:$0 sm:$0xff] }
 0x940   : > { %v10850_v59 = vadd.f32 %v10849_v28, %v10761_v29  ;;  %v15283_v28 = vld [vmem:[#allocation4 + $0x13c] sm:$0xf] }
 0x941   : > { %11445 = vmatmul.bf16.gmra.mxu0 %v14500_v21 }
 0x942   : > { %v20856_v13 = vadd.f32 %v10850_v59, %v10071_v15  ;;  %v20878_v19 = vpop.f32.mrf.mxu2 }
 0x945   : > { %v11495_v12 = vpop.f32.mrf.mxu1 }
 0x946   : > { %v11408_v36 = vpop.f32.mrf.mxu0  ;;  %v11496_v55 = vadd.f32 %v11495_v12, %v11406_v44  ;;  %11534 = vmatmul.bf16.gmra.mxu1 %v14504_v57  ;;  %v14516_v44 = vor.u32 %v15283_v28, %v14513_v51 }
 0x948   : > { %v11585_v3 = vadd.f32 %v20797_v50, %v11496_v55  ;;  %v15287_v55 = vld [vmem:[#allocation4 + $0x158] sm:$0xf0] }
 0x94a   : > { %v11664_v27 = vadd.f32 %v11585_v3, %v20580_v33  ;;  %v20886_v9 = vpop.f32.mrf.mxu2  ;;  %v14524_v3 = vor.u32 %v15287_v55, %v14523_v60 }
 0x94c   : > { %v11700_v25 = vadd.f32 %v20864_v62, %v11664_v27 }
 0x94d   : > { %v11497_v50 = vpop.f32.mrf.mxu1 }
 0x94e   : > { %11733 = vst.msk [vmem:[%s20872_s30] sm:$0xff] %vm11732_vm5, %v11700_v25  ;;  %v11411_v45 = vpop.f32.mrf.mxu0  ;;  %v11498_v48 = vadd.f32 %v11497_v50, %v11408_v36 }
 0x950   : > { %v11587_v33 = vadd.f32 %v20807_v11, %v11498_v48 }
 0x951   : > { %11450 = vmatmul.bf16.gmra.mxu0 %v14512_v41 }
 0x952   : > { %v11665_v15 = vadd.f32 %v11587_v33, %v20596_v4  ;;  %v20894_v50 = vpop.f32.mrf.mxu2 }
 0x954   : > { %v11701_v7 = vadd.f32 %v20864_v62, %v11665_v15  ;;  %v15290_v15 = vld [vmem:[#allocation4 + $0x170] sm:$0xf0] }
 0x955   : > { %v11500_v29 = vpop.f32.mrf.mxu1 }
 0x956   : > { %11734 = vst.msk [vmem:[%s20872_s30 + $0x8] sm:$0xff] %vm11732_vm5, %v11701_v7  ;;  %v11413_v17 = vpop.f32.mrf.mxu0  ;;  %v11501_v21 = vadd.f32 %v11500_v29, %v11411_v45  ;;  %11539 = vmatmul.bf16.gmra.mxu1 %v14516_v44  ;;  %v14535_v29 = vld [vmem:[#allocation4 + $0x168] sm:$0xf] }
 0x958   : > { %v11590_v59 = vadd.f32 %v20818_v22, %v11501_v21 }
 0x95a   : > { %v11666_v11 = vadd.f32 %v11590_v59, %v20605_v14  ;;  %v14525_v14 = vld [vmem:[#allocation4 + $0x15c] sm:$0xf0]  ;;  %v20903_v44 = vpop.f32.mrf.mxu2  ;;  %v15289_v59 = vld [vmem:[#allocation4 + $0x16c] sm:$0xf] }
 0x95b   : > { %v14528_v48 = vor.u32 %v15286_v56, %v14525_v14  ;;  %v14579_v56 = vld [vmem:[#allocation4 + $0x1b8] sm:$0xf] }
 0x95c   : > { %v11702_v4 = vadd.f32 %v20864_v62, %v11666_v11  ;;  %v14537_v11 = vld [vmem:[#allocation4 + $0x174] sm:$0xf0] }
 0x95d   : > { %v11502_v12 = vpop.f32.mrf.mxu1  ;;  %v14540_v60 = vor.u32 %v15289_v59, %v14537_v11  ;;  %v15296_v11 = vld [vmem:[#allocation4 + $0x1a0] sm:$0xf0] }
 0x95e   : > { %11735 = vst.msk [vmem:[%s20872_s30 + $0x10] sm:$0xff] %vm11732_vm5, %v11702_v4  ;;  %v11416_v57 = vpop.f32.mrf.mxu0  ;;  %v11503_v36 = vadd.f32 %v11502_v12, %v11413_v17  ;;  %v14536_v17 = vor.u32 %v15290_v15, %v14535_v29 }
 0x960   : > { %v11592_v27 = vadd.f32 %v20827_v53, %v11503_v36 }
 0x961   : > { %11455 = vmatmul.bf16.gmra.mxu0 %v14524_v3  ;;  %v15293_v3 = vld [vmem:[#allocation4 + $0x188] sm:$0xf0] }
 0x962   : > { %v11667_v22 = vadd.f32 %v11592_v27, %v20615_v24  ;;  %v20911_v55 = vpop.f32.mrf.mxu2 }
 0x964   : > { %v11703_v25 = vadd.f32 %v20864_v62, %v11667_v22  ;;  %v14547_v22 = vld [vmem:[#allocation4 + $0x180] sm:$0xf] }
 0x965   : > { %v11505_v45 = vpop.f32.mrf.mxu1 }
 0x966   : > { %11736 = vst.msk [vmem:[%s20872_s30 + $0x18] sm:$0xff] %vm11732_vm5, %v11703_v25  ;;  %v11418_v40 = vpop.f32.mrf.mxu0  ;;  %v11506_v41 = vadd.f32 %v11505_v45, %v11416_v57  ;;  %11544 = vmatmul.bf16.gmra.mxu1 %v14528_v48  ;;  %v15300_v45 = vld [vmem:[#allocation4 + $0x1c0] sm:$0xf0]  ;;  %v14548_v48 = vor.u32 %v15293_v3, %v14547_v22 }
 0x968   : > { %v11595_v33 = vadd.f32 %v20843_v49, %v11506_v41  ;;  %v14549_v41 = vld [vmem:[#allocation4 + $0x18c] sm:$0xf0] }
 0x96a   : > { %v11668_v53 = vadd.f32 %v11595_v33, %v20622_v46  ;;  %v11614_v33 = vpop.f32.mrf.mxu2 }
 0x96c   : > { %v11704_v24 = vadd.f32 %v20864_v62, %v11668_v53 }
 0x96d   : > { %v11507_v51 = vpop.f32.mrf.mxu1 }
 0x96e   : > { %11737 = vst.msk [vmem:[%s20872_s30 + $0x20] sm:$0xff] %vm11732_vm5, %v11704_v24  ;;  %v11421_v7 = vpop.f32.mrf.mxu0  ;;  %v11508_v28 = vadd.f32 %v11507_v51, %v11418_v40  ;;  %v14580_v40 = vor.u32 %v15300_v45, %v14579_v56  ;;  %v15292_v24 = vld [vmem:[#allocation4 + $0x184] sm:$0xf]  ;;  %v14571_v45 = vld [vmem:[#allocation4 + $0x1b0] sm:$0xf] }
 0x96f   : > { %v14552_v51 = vor.u32 %v15292_v24, %v14549_v41  ;;  %v15298_v24 = vld [vmem:[#allocation4 + $0x1b4] sm:$0xf] }
 0x970   : > { %v11597_v21 = vadd.f32 %v20853_v26, %v11508_v28  ;;  %14687 = vmatmul.msk.bf16.gmra.mxu2 %vm21960_vm12, %v14580_v40 }
 0x971   : > { %11460 = vmatmul.bf16.gmra.mxu0 %v14536_v17 }
 0x972   : > { %v11669_v49 = vadd.f32 %v11597_v21, %v20638_v30  ;;  %v11616_v21 = vpop.f32.mrf.mxu2 }
 0x974   : > { %v11705_v46 = vadd.f32 %v20864_v62, %v11669_v49 }
 0x975   : > { %v11510_v4 = vpop.f32.mrf.mxu1 }
 0x976   : > { %11738 = vst.msk [vmem:[%s20872_s30 + $0x28] sm:$0xff] %vm11732_vm5, %v11705_v46  ;;  %v11423_v12 = vpop.f32.mrf.mxu0  ;;  %v11511_v57 = vadd.f32 %v11510_v4, %v11421_v7  ;;  %11549 = vmatmul.bf16.gmra.mxu1 %v14540_v60  ;;  %v14591_v60 = vld [vmem:[#allocation4 + $0x1d0] sm:$0xf] }
 0x978   : > { %v11600_v36 = vadd.f32 %v20858_v47, %v11511_v57 }
 0x97a   : > { %v11670_v26 = vadd.f32 %v11600_v36, %v20647_v32 }
 0x97c   : > { %v11706_v30 = vadd.f32 %v20864_v62, %v11670_v26 }
 0x97d   : > { %v11512_v27 = vpop.f32.mrf.mxu1 }
 0x97e   : > { %11739 = vst.msk [vmem:[%s20872_s30 + $0x30] sm:$0xff] %vm11732_vm5, %v11706_v30  ;;  %v11426_v14 = vpop.f32.mrf.mxu0  ;;  %v11513_v25 = vadd.f32 %v11512_v27, %v11423_v12  ;;  %v15303_v12 = vld [vmem:[#allocation4 + $0x1d8] sm:$0xf0] }
 0x97f   : > { %v14592_v36 = vor.u32 %v15303_v12, %v14591_v60  ;;  %v15295_v30 = vld [vmem:[#allocation4 + $0x19c] sm:$0xf] }
 0x980   : > { %v11602_v47 = vadd.f32 %v20878_v19, %v11513_v25  ;;  %v11619_v25 = vpop.f32.mrf.mxu2 }
 0x981   : > { %11465 = vmatmul.bf16.gmra.mxu0 %v14548_v48  ;;  %14688 = vmatmul.msk.bf16.gmra.mxu2 %vm21961_vm1, %v14592_v36  ;;  %v15299_v48 = vld [vmem:[#allocation4 + $0x1b8] sm:$0xf0]  ;;  %v14585_v36 = vld [vmem:[#allocation4 + $0x1d4] sm:$0xf0] }
 0x982   : > { %v11671_v32 = vadd.f32 %v11602_v47, %v20657_v18  ;;  %v14559_v18 = vld [vmem:[#allocation4 + $0x198] sm:$0xf]  ;;  %v14572_v41 = vor.u32 %v15299_v48, %v14571_v45 }
 0x983   : > { %v14560_v4 = vor.u32 %v15296_v11, %v14559_v18 }
 0x984   : > { %v11707_v53 = vadd.f32 %v20864_v62, %v11671_v32 }
 0x985   : > { %v11515_v15 = vpop.f32.mrf.mxu1 }
 0x986   : > { %11740 = vst.msk [vmem:[%s20872_s30 + $0x38] sm:$0xff] %vm11732_vm5, %v11707_v53  ;;  %v11428_v7 = vpop.f32.mrf.mxu0  ;;  %v11516_v28 = vadd.f32 %v11515_v15, %v11426_v14  ;;  %11554 = vmatmul.bf16.gmra.mxu1 %v14552_v51  ;;  %v14573_v15 = vld [vmem:[#allocation4 + $0x1bc] sm:$0xf0] }
 0x988   : > { %v11605_v19 = vadd.f32 %v20886_v9, %v11516_v28  ;;  %v14561_v9 = vld [vmem:[#allocation4 + $0x1a4] sm:$0xf0]  ;;  %v11621_v51 = vpop.f32.mrf.mxu2 }
 0x989   : > { %v14564_v27 = vor.u32 %v15295_v30, %v14561_v9 }
 0x98a   : > { %v11672_v29 = vadd.f32 %v11605_v19, %v20666_v1 }
 0x98c   : > { %v11708_v17 = vadd.f32 %v20864_v62, %v11672_v29 }
 0x98d   : > { %v11517_v49 = vpop.f32.mrf.mxu1 }
 0x98e   : > { %11741 = vst.msk [vmem:[%s20872_s30 + $0x40] sm:$0xff] %vm11732_vm5, %v11708_v17  ;;  %v11431_v59 = vpop.f32.mrf.mxu0  ;;  %v11518_v46 = vadd.f32 %v11517_v49, %v11428_v7  ;;  %v15302_v49 = vld [vmem:[#allocation4 + $0x1d0] sm:$0xf0] }
 0x990   : > { %v11607_v57 = vadd.f32 %v20894_v50, %v11518_v46 }
 0x991   : > { %11470 = vmatmul.bf16.gmra.mxu0 %v14560_v4 }
 0x992   : > { %v11673_v1 = vadd.f32 %v11607_v57, %v20680_v0  ;;  %v15301_v57 = vld [vmem:[#allocation4 + $0x1cc] sm:$0xf] }
 0x994   : > { %v11709_v26 = vadd.f32 %v20864_v62, %v11673_v1 }
 0x995   : > { %v11520_v3 = vpop.f32.mrf.mxu1 }
 0x996   : > { %11742 = vst.msk [vmem:[%s20872_s30 + $0x48] sm:$0xff] %vm11732_vm5, %v11709_v26  ;;  %v11433_v22 = vpop.f32.mrf.mxu0  ;;  %v11521_v14 = vadd.f32 %v11520_v3, %v11431_v59  ;;  %11559 = vmatmul.bf16.gmra.mxu1 %v14564_v27  ;;  %v11624_v59 = vpop.f32.mrf.mxu2 }
 0x998   : > { %v11610_v50 = vadd.f32 %v20903_v44, %v11521_v14 }
 0x99a   : > { %v11674_v56 = vadd.f32 %v11610_v50, %v20689_v42  ;;  %v14576_v42 = vor.u32 %v15298_v24, %v14573_v15 }
 0x99c   : > { %v11710_v0 = vadd.f32 %v20864_v62, %v11674_v56 }
 0x99d   : > { %v11522_v40 = vpop.f32.mrf.mxu1 }
 0x99e   : > { %11743 = vst.msk [vmem:[%s20872_s30 + $0x50] sm:$0xff] %vm11732_vm5, %v11710_v0  ;;  %v11436_v47 = vpop.f32.mrf.mxu0  ;;  %v11523_v32 = vadd.f32 %v11522_v40, %v11433_v22  ;;  %v11626_v9 = vpop.f32.mrf.mxu2 }
 0x9a0   : > { %v11612_v53 = vadd.f32 %v20911_v55, %v11523_v32  ;;  %v14583_v55 = vld [vmem:[#allocation4 + $0x1c8] sm:$0xf] }
 0x9a1   : > { %11475 = vmatmul.bf16.gmra.mxu0 %v14572_v41  ;;  %v14584_v11 = vor.u32 %v15302_v49, %v14583_v55 }
 0x9a2   : > { %v11675_v44 = vadd.f32 %v11612_v53, %v20699_v38 }
 0x9a4   : > { %v11711_v7 = vadd.f32 %v20864_v62, %v11675_v44 }
 0x9a5   : > { %v11525_v28 = vpop.f32.mrf.mxu1 }
 0x9a6   : > { %11744 = vst.msk [vmem:[%s20872_s30 + $0x58] sm:$0xff] %vm11732_vm5, %v11711_v7  ;;  %v11438_v19 = vpop.f32.mrf.mxu0  ;;  %v11526_v29 = vadd.f32 %v11525_v28, %v11436_v47  ;;  %11564 = vmatmul.bf16.gmra.mxu1 %v14576_v42  ;;  %v11629_v56 = vpop.f32.mrf.mxu2 }
 0x9a8   : > { %v11615_v17 = vadd.f32 %v11614_v33, %v11526_v29 }
 0x9aa   : > { %v11676_v18 = vadd.f32 %v11615_v17, %v20708_v8  ;;  %v14588_v8 = vor.u32 %v15301_v57, %v14585_v36 }
 0x9ac   : > { %v11712_v46 = vadd.f32 %v20864_v62, %v11676_v18 }
 0x9ad   : > { %v11527_v38 = vpop.f32.mrf.mxu1 }
 0x9ae   : > { %11745 = vst.msk [vmem:[%s20872_s30 + $0x60] sm:$0xff] %vm11732_vm5, %v11712_v46  ;;  %v11441_v4 = vpop.f32.mrf.mxu0  ;;  %v11528_v60 = vadd.f32 %v11527_v38, %v11438_v19  ;;  %v11631_v32 = vpop.f32.mrf.mxu2 }
 0x9b0   : > { %v11617_v12 = vadd.f32 %v11616_v21, %v11528_v60 }
 0x9b1   : > { %11480 = vmatmul.bf16.gmra.mxu0 %v14584_v11 }
 0x9b2   : > { %v11677_v33 = vadd.f32 %v11617_v12, %v20718_v2 }
 0x9b4   : > { %v11713_v1 = vadd.f32 %v20864_v62, %v11677_v33 }
 0x9b5   : > { %v11530_v26 = vpop.f32.mrf.mxu1 }
 0x9b6   : > { %11746 = vst.msk [vmem:[%s20872_s30 + $0x68] sm:$0xff] %vm11732_vm5, %v11713_v1  ;;  %v11443_v30 = vpop.f32.mrf.mxu0  ;;  %v11531_v3 = vadd.f32 %v11530_v26, %v11441_v4  ;;  %11569 = vmatmul.bf16.gmra.mxu1 %v14588_v8  ;;  %v11634_v42 = vpop.f32.mrf.mxu2 }
 0x9b8   : > { %v11620_v27 = vadd.f32 %v11619_v25, %v11531_v3 }
 0x9ba   : > { %v11678_v21 = vadd.f32 %v11620_v27, %v20724_v39 }
 0x9bc   : > { %v11714_v22 = vadd.f32 %v20864_v62, %v11678_v21 }
 0x9bd   : > { %v11532_v14 = vpop.f32.mrf.mxu1 }
 0x9be   : > { %11747 = vst.msk [vmem:[%s20872_s30 + $0x70] sm:$0xff] %vm11732_vm5, %v11714_v22  ;;  %v11446_v2 = vpop.f32.mrf.mxu0  ;;  %v11533_v50 = vadd.f32 %v11532_v14, %v11443_v30  ;;  %v11636_v55 = vpop.f32.mrf.mxu2 }
 0x9c0   : > { %v11622_v0 = vadd.f32 %v11621_v51, %v11533_v50 }
 0x9c2   : > { %v11679_v45 = vadd.f32 %v11622_v0, %v20733_v20 }
 0x9c4   : > { %v11715_v48 = vadd.f32 %v20864_v62, %v11679_v45 }
 0x9c5   : > { %v11535_v40 = vpop.f32.mrf.mxu1 }
 0x9c6   : > { %11748 = vst.msk [vmem:[%s20872_s30 + $0x78] sm:$0xff] %vm11732_vm5, %v11715_v48  ;;  %v11448_v25 = vpop.f32.mrf.mxu0  ;;  %v11536_v39 = vadd.f32 %v11535_v40, %v11446_v2  ;;  %v11639_v12 = vpop.f32.mrf.mxu2 }
 0x9c8   : > { %v11625_v47 = vadd.f32 %v11624_v59, %v11536_v39 }
 0x9ca   : > { %v11680_v41 = vadd.f32 %v11625_v47, %v20741_v58 }
 0x9cc   : > { %v11716_v53 = vadd.f32 %v20864_v62, %v11680_v41 }
 0x9cd   : > { %v11537_v24 = vpop.f32.mrf.mxu1 }
 0x9ce   : > { %11749 = vst.msk [vmem:[%s20872_s30 + $0x80] sm:$0xff] %vm11732_vm5, %v11716_v53  ;;  %v11451_v15 = vpop.f32.mrf.mxu0  ;;  %v11538_v20 = vadd.f32 %v11537_v24, %v11448_v25  ;;  %v11641_v26 = vpop.f32.mrf.mxu2 }
 0x9d0   : > { %v11627_v51 = vadd.f32 %v11626_v9, %v11538_v20 }
 0x9d2   : > { %v11681_v44 = vadd.f32 %v11627_v51, %v20750_v43 }
 0x9d4   : > { %v11717_v7 = vadd.f32 %v20864_v62, %v11681_v44 }
 0x9d5   : > { %v11540_v28 = vpop.f32.mrf.mxu1 }
 0x9d6   : > { %11750 = vst.msk [vmem:[%s20872_s30 + $0x88] sm:$0xff] %vm11732_vm5, %v11717_v7  ;;  %v11453_v19 = vpop.f32.mrf.mxu0  ;;  %v11541_v58 = vadd.f32 %v11540_v28, %v11451_v15  ;;  %v11644_v2 = vpop.f32.mrf.mxu2 }
 0x9d8   : > { %v11630_v29 = vadd.f32 %v11629_v56, %v11541_v58 }
 0x9da   : > { %v11682_v17 = vadd.f32 %v11630_v29, %v20758_v54 }
 0x9dc   : > { %v11718_v18 = vadd.f32 %v20864_v62, %v11682_v17 }
 0x9dd   : > { %v11542_v49 = vpop.f32.mrf.mxu1 }
 0x9de   : > { %11751 = vst.msk [vmem:[%s20872_s30 + $0x90] sm:$0xff] %vm11732_vm5, %v11718_v18  ;;  %v11456_v43 = vpop.f32.mrf.mxu0  ;;  %v11543_v59 = vadd.f32 %v11542_v49, %v11453_v19  ;;  %v11646_v25 = vpop.f32.mrf.mxu2 }
 0x9e0   : > { %v11632_v46 = vadd.f32 %v11631_v32, %v11543_v59 }
 0x9e2   : > { %v11683_v38 = vadd.f32 %v11632_v46, %v20765_v63 }
 0x9e4   : > { %v11719_v11 = vadd.f32 %v20864_v62, %v11683_v38 }
 0x9e5   : > { %v11545_v4 = vpop.f32.mrf.mxu1 }
 0x9e6   : > { %11752 = vst.msk [vmem:[%s20872_s30 + $0x98] sm:$0xff] %vm11732_vm5, %v11719_v11  ;;  %v11458_v60 = vpop.f32.mrf.mxu0  ;;  %v11546_v54 = vadd.f32 %v11545_v4, %v11456_v43  ;;  %v11649_v20 = vpop.f32.mrf.mxu2 }
 0x9e8   : > { %v11635_v57 = vadd.f32 %v11634_v42, %v11546_v54 }
 0x9ea   : > { %v11684_v36 = vadd.f32 %v11635_v57, %v20773_v37 }
 0x9ec   : > { %v11720_v33 = vadd.f32 %v20864_v62, %v11684_v36 }
 0x9ed   : > { %v11547_v8 = vpop.f32.mrf.mxu1 }
 0x9ee   : > { %11753 = vst.msk [vmem:[%s20872_s30 + $0xa0] sm:$0xff] %vm11732_vm5, %v11720_v33  ;;  %v11461_v1 = vpop.f32.mrf.mxu0  ;;  %v11548_v63 = vadd.f32 %v11547_v8, %v11458_v60  ;;  %v11651_v58 = vpop.f32.mrf.mxu2 }
 0x9f0   : > { %v11637_v9 = vadd.f32 %v11636_v55, %v11548_v63 }
 0x9f2   : > { %v11685_v30 = vadd.f32 %v11637_v9, %v20782_v52 }
 0x9f4   : > { %v11721_v3 = vadd.f32 %v20864_v62, %v11685_v30 }
 0x9f5   : > { %v11550_v27 = vpop.f32.mrf.mxu1 }
 0x9f6   : > { %11754 = vst.msk [vmem:[%s20872_s30 + $0xa8] sm:$0xff] %vm11732_vm5, %v11721_v3  ;;  %v11463_v21 = vpop.f32.mrf.mxu0  ;;  %v11551_v37 = vadd.f32 %v11550_v27, %v11461_v1  ;;  %v11654_v43 = vpop.f32.mrf.mxu2 }
 0x9f8   : > { %v11640_v22 = vadd.f32 %v11639_v12, %v11551_v37 }
 0x9fa   : > { %v11686_v14 = vadd.f32 %v11640_v22, %v20790_v5 }
 0x9fc   : > { %v11722_v50 = vadd.f32 %v20864_v62, %v11686_v14 }
 0x9fd   : > { %v11552_v56 = vpop.f32.mrf.mxu1 }
 0x9fe   : > { %11755 = vst.msk [vmem:[%s20872_s30 + $0xb0] sm:$0xff] %vm11732_vm5, %v11722_v50  ;;  %v11466_v0 = vpop.f32.mrf.mxu0  ;;  %v11553_v52 = vadd.f32 %v11552_v56, %v11463_v21  ;;  %v11656_v54 = vpop.f32.mrf.mxu2 }
 0xa00   : > { %v11642_v45 = vadd.f32 %v11641_v26, %v11553_v52 }
 0xa02   : > { %v11687_v48 = vadd.f32 %v11642_v45, %v20799_v6 }
 0xa04   : > { %v11723_v40 = vadd.f32 %v20864_v62, %v11687_v48 }
 0xa05   : > { %v11555_v39 = vpop.f32.mrf.mxu1 }
 0xa06   : > { %11756 = vst.msk [vmem:[%s20872_s30 + $0xb8] sm:$0xff] %vm11732_vm5, %v11723_v40  ;;  %v11468_v5 = vpop.f32.mrf.mxu0  ;;  %v11556_v47 = vadd.f32 %v11555_v39, %v11466_v0  ;;  %v11659_v63 = vpop.f32.mrf.mxu2 }
 0xa08   : > { %v11645_v32 = vadd.f32 %v11644_v2, %v11556_v47 }
 0xa0a   : > { %v11688_v41 = vadd.f32 %v11645_v32, %v20805_v23 }
 0xa0c   : > { %v11724_v53 = vadd.f32 %v20864_v62, %v11688_v41 }
 0xa0d   : > { %v11557_v24 = vpop.f32.mrf.mxu1 }
 0xa0e   : > { %11757 = vst.msk [vmem:[%s20872_s30 + $0xc0] sm:$0xff] %vm11732_vm5, %v11724_v53  ;;  %v11471_v15 = vpop.f32.mrf.mxu0  ;;  %v11558_v6 = vadd.f32 %v11557_v24, %v11468_v5 }
 0xa10   : > { %v11647_v51 = vadd.f32 %v11646_v25, %v11558_v6 }
 0xa12   : > { %v11689_v44 = vadd.f32 %v11647_v51, %v20814_v34 }
 0xa14   : > { %v11725_v42 = vadd.f32 %v20864_v62, %v11689_v44 }
 0xa15   : > { %v11560_v7 = vpop.f32.mrf.mxu1 }
 0xa16   : > { %11758 = vst.msk [vmem:[%s20872_s30 + $0xc8] sm:$0xff] %vm11732_vm5, %v11725_v42  ;;  %v11473_v28 = vpop.f32.mrf.mxu0  ;;  %v11561_v23 = vadd.f32 %v11560_v7, %v11471_v15 }
 0xa18   : > { %v11650_v19 = vadd.f32 %v11649_v20, %v11561_v23 }
 0xa1a   : > { %v11690_v29 = vadd.f32 %v11650_v19, %v20822_v31 }
 0xa1c   : > { %v11726_v17 = vadd.f32 %v20864_v62, %v11690_v29 }
 0xa1d   : > { %v11562_v18 = vpop.f32.mrf.mxu1 }
 0xa1e   : > { %11759 = vst.msk [vmem:[%s20872_s30 + $0xd0] sm:$0xff] %vm11732_vm5, %v11726_v17  ;;  %v11563_v55 = vadd.f32 %v11562_v18, %v11473_v28  ;;  %v11476_v34 = vpop.f32.mrf.mxu0 }
 0xa20   : > { %v11652_v49 = vadd.f32 %v11651_v58, %v11563_v55 }
 0xa22   : > { %v11691_v59 = vadd.f32 %v11652_v49, %v20831_v10 }
 0xa24   : > { %v11727_v46 = vadd.f32 %v20864_v62, %v11691_v59 }
 0xa25   : > { %v11565_v38 = vpop.f32.mrf.mxu1 }
 0xa26   : > { %11760 = vst.msk [vmem:[%s20872_s30 + $0xd8] sm:$0xff] %vm11732_vm5, %v11727_v46  ;;  %v11566_v11 = vadd.f32 %v11565_v38, %v11476_v34  ;;  %v11478_v4 = vpop.f32.mrf.mxu0 }
 0xa28   : > { %v11655_v31 = vadd.f32 %v11654_v43, %v11566_v11 }
 0xa2a   : > { %v11692_v60 = vadd.f32 %v11655_v31, %v20837_v16 }
 0xa2c   : > { %v11728_v12 = vadd.f32 %v20864_v62, %v11692_v60 }
 0xa2d   : > { %v11567_v57 = vpop.f32.mrf.mxu1 }
 0xa2e   : > { %11761 = vst.msk [vmem:[%s20872_s30 + $0xe0] sm:$0xff] %vm11732_vm5, %v11728_v12  ;;  %v11568_v36 = vadd.f32 %v11567_v57, %v11478_v4  ;;  %v11481_v8 = vpop.f32.mrf.mxu0 }
 0xa30   : > { %v11657_v10 = vadd.f32 %v11656_v54, %v11568_v36 }
 0xa32   : > { %v11693_v33 = vadd.f32 %v11657_v10, %v20845_v61  ;;  %v11661_v61 = vpop.f32.mrf.mxu2 }
 0xa34   : > { %v11729_v1 = vadd.f32 %v20864_v62, %v11693_v33 }
 0xa35   : > { %v11570_v9 = vpop.f32.mrf.mxu1 }
 0xa36   : > { %11762 = vst.msk [vmem:[%s20872_s30 + $0xe8] sm:$0xff] %vm11732_vm5, %v11729_v1  ;;  %v11571_v16 = vadd.f32 %v11570_v9, %v11481_v8  ;;  %v11483_v27 = vpop.f32.mrf.mxu0 }
 0xa38   : > { %v11660_v26 = vadd.f32 %v11659_v63, %v11571_v16 }
 0xa3a   : > { %v11694_v30 = vadd.f32 %v11660_v26, %v20851_v35 }
 0xa3c   : > { %v11730_v3 = vadd.f32 %v20864_v62, %v11694_v30 }
 0xa3d   : > { %v11572_v21 = vpop.f32.mrf.mxu1 }
 0xa3e   : > { %11763 = vst.msk [vmem:[%s20872_s30 + $0xf0] sm:$0xff] %vm11732_vm5, %v11730_v3  ;;  %v11573_v37 = vadd.f32 %v11572_v21, %v11483_v27 }
 0xa40   : > { %v11662_v22 = vadd.f32 %v11661_v61, %v11573_v37 }
 0xa42   : > { %v11695_v14 = vadd.f32 %v11662_v22, %v20856_v13 }
 0xa44   : > { %v11731_v2 = vadd.f32 %v20864_v62, %v11695_v14 }
 0xa46   : > { %11764 = vst.msk [vmem:[%s20872_s30 + $0xf8] sm:$0xff] %vm11732_vm5, %v11731_v2 }
 0xa47 PF: > { %s21_s17 = sadd.s32 1, %s15374_s17  }
 0xa48   : > { %p18_p4 = scmp.ge.s32.totalorder %s21_s17, 4  }
 0xa4a   :  { %20 = sbr.rel (!%p18_p4) target bundleno = 1 (0x1), region = 100 }

</bundles_post_ra>
